<compile_context>
chip_gen: v7x
topology: tpu7x:2x2x1
jax: 0.10.0
libtpu: 0.0.40
codegen_flags: <defaults>
</compile_context>

<pallas_src>
import jax
import jax.numpy as jnp
from jax.experimental import pallas as pl
from jax.experimental.pallas import tpu as pltpu

LOG2PI = 1.8378770664093453  # log(2*pi)

# indices into the packed (3, Z, Z) small-weight stack
_W_PX2, _W_PZ1, _W_PZ2 = 0, 1, 2
# indices into the packed (4, 128, Z) padded head-weight stack
_H_PR2M, _H_PR2S, _H_EN2M, _H_EN2S = 0, 1, 2, 3
# indices into the packed (8, Z) bias stack
(_B_PX1, _B_PX2, _B_PZ1, _B_PZ2,
 _B_PR2M, _B_PR2S, _B_EN2M, _B_EN2S) = range(8)


# ----------------------------- kernel helpers -----------------------------
def _softplus(x):
    return jnp.logaddexp(x, 0.0)


def _normal_logprob_sum(z, mu, sigma):
    zs = (z - mu) / sigma
    lp = -0.5 * zs * zs - jnp.log(sigma) - 0.5 * LOG2PI
    return jnp.sum(lp, axis=-1, keepdims=True)          # (TB, 1)


# -------------------------------- kernel ----------------------------------
def vrnn_kernel(
    x_ref, y_ref, eps_ref,                               # data: (TB, D), (TB, D), (T, B, Z)
    wh_ref, wxz_ref, w_heads_ref, w_zz_ref,              # fused / padded weights
    px_w1_ref, de_w2_ref,
    b_wide_ref, b_small_ref, b_out_ref,                  # packed biases
    out_ref,                                              # output (TB, 3): [log_px|log_pz|log_qz]
    xall_ref, pr_sref, de_sref, z_sref, mq_sref, sq_sref,  # VMEM scratch
):
    T, B, Z = eps_ref.shape
    TB, D = x_ref.shape
    H = wh_ref.shape[0]
    G = 4 * H                      # LSTM gate width (=128 here)
    SEG = w_heads_ref.shape[1]     # 128-lane padded segment width

    def mm(a, b):
        return jnp.dot(a, b, preferred_element_type=jnp.float32)

    def brow(k):                   # (1, Z) bias row, read at use site
        return b_small_ref[k:k + 1, :]

    # ---------------- prelude: whole x-path batched over T*B rows ----------------
    x_flat = x_ref[...]                                            # (TB, D)
    x_feat = mm(jnp.maximum(mm(x_flat, px_w1_ref[...]) + brow(_B_PX1), 0.0),
                w_zz_ref[_W_PX2]) + brow(_B_PX2)                   # (TB, Z)
    # fused consumers of x_feat: [LSTM-x (+b_ih+b_hh) | encoder-x (+b_en1)]
    x_all = mm(x_feat, wxz_ref[0]) + b_wide_ref[0:1, :]            # (TB, G+SEG)
    xall_ref[...] = x_all.reshape(T, B, G + SEG)

    # gate lane mask: tanh on g-gate lanes [2H, 3H), sigmoid elsewhere (PyTorch i,f,g,o order)
    lane = jax.lax.broadcasted_iota(jnp.int32, (B, G), 1)
    g_lane = (lane >= 2 * H) & (lane < 3 * H)

    # ---------------- recurrence: only what (h, c) actually depends on ----------------
    def step(t, carry):
        h_prev, c_prev = carry                     # (B, H) each
        eps_t = eps_ref[t]                         # (B, Z)

        # every consumer of h_{t-1} in one fused matmul, 128-aligned segments
        h_all = mm(h_prev, wh_ref[...])            # (B, G + 3*SEG)
        lstm_h = h_all[:, :G]
        enc_h = h_all[:, G:G + SEG]
        dec_h = h_all[:, G + SEG:G + 2 * SEG]
        pr_pre = h_all[:, G + 2 * SEG:G + 3 * SEG]

        xa = xall_ref[t]                           # (B, G+SEG) precomputed
        lstm_x = xa[:, :G]
        enc_x = xa[:, G:]

        # posterior q(z_t | x_t) — needed for z_t, so it stays on the chain
        eh = jnp.maximum(enc_h + enc_x, 0.0)       # b_en1 already folded into enc_x
        mu_q = mm(eh, w_heads_ref[_H_EN2M]) + brow(_B_EN2M)
        sg_q = jnp.maximum(
            _softplus(mm(eh, w_heads_ref[_H_EN2S]) + brow(_B_EN2S) + 0.5), 0.0)
        z_t = mu_q + sg_q * eps_t                  # reparameterized sample

        # phi_z(z_t)
        z_feat = mm(jnp.maximum(mm(z_t, w_zz_ref[_W_PZ1]) + brow(_B_PZ1), 0.0),
                    w_zz_ref[_W_PZ2]) + brow(_B_PZ2)

        # fused consumers of z_feat: [LSTM-z | decoder-z], 128-aligned
        z_all = mm(z_feat, wxz_ref[1])             # (B, G+SEG)
        lstm_z = z_all[:, :G]
        dec_z = z_all[:, G:]

        # stash everything the post-loop phase needs
        pr_sref[t] = pr_pre
        de_sref[t] = dec_h + dec_z
        z_sref[t] = z_t
        mq_sref[t] = mu_q
        sq_sref[t] = sg_q

        # LSTM cell: single tanh EUP pass; sigmoid(x) = 0.5*(1 + tanh(x/2))
        gates = lstm_h + lstm_x + lstm_z           # biases already in lstm_x
        pre = jnp.where(g_lane, gates, 0.5 * gates)
        th = jnp.tanh(pre)
        act = jnp.where(g_lane, th, 0.5 * th + 0.5)
        i_g = act[:, 0 * H:1 * H]
        f_g = act[:, 1 * H:2 * H]
        g_g = act[:, 2 * H:3 * H]
        o_g = act[:, 3 * H:4 * H]
        c_new = f_g * c_prev + i_g * g_g
        h_new = o_g * jnp.tanh(c_new)
        return h_new, c_new

    h0 = jnp.zeros((B, H), jnp.float32)
    c0 = jnp.zeros((B, H), jnp.float32)
    jax.lax.fori_loop(0, T, step, (h0, c0), unroll=True)

    # ---------------- post phase: batched heads + log-probs, single output store ----------------
    b_pr1 = b_wide_ref[1:2, :SEG]
    b_de1 = b_wide_ref[1:2, SEG:2 * SEG]

    # prior p(z_t)
    ph = jnp.maximum(pr_sref[...].reshape(TB, SEG) + b_pr1, 0.0)
    mu_p = mm(ph, w_heads_ref[_H_PR2M]) + brow(_B_PR2M)
    sg_p = jnp.maximum(_softplus(mm(ph, w_heads_ref[_H_PR2S]) + brow(_B_PR2S) + 0.5), 0.0)

    # generative p(x_t | z_t): Bernoulli logits
    dh = jnp.maximum(de_sref[...].reshape(TB, SEG) + b_de1, 0.0)
    logits = mm(dh, de_w2_ref[...]) + b_out_ref[...]               # (TB, D)

    y_flat = y_ref[...]                                            # (TB, D)
    lpx = jnp.sum(logits * y_flat - _softplus(logits), axis=-1, keepdims=True)

    z = z_sref[...].reshape(TB, Z)
    mu_q = mq_sref[...].reshape(TB, Z)
    sg_q = sq_sref[...].reshape(TB, Z)
    lpz = _normal_logprob_sum(z, mu_p, sg_p)
    lqz = _normal_logprob_sum(z, mu_q, sg_q)

    out_ref[...] = jnp.concatenate([lpx, lpz, lqz], axis=1)        # (TB, 3)


# ---------------------------- parameter packing -----------------------------
def make_params(key, D, Z, H):
    """Deterministic synthetic parameters in the original (unfused) layout."""
    keys = jax.random.split(key, 16)
    s = 0.1

    def lin(k, fi, fo):
        return jax.random.normal(k, (fi, fo), jnp.float32) * s

    p = {}
    p["px_w1"], p["px_b1"] = lin(keys[0], D, Z), jnp.zeros((1, Z), jnp.float32)
    p["px_w2"], p["px_b2"] = lin(keys[1], Z, Z), jnp.zeros((1, Z), jnp.float32)
    p["pz_w1"], p["pz_b1"] = lin(keys[2], Z, Z), jnp.zeros((1, Z), jnp.float32)
    p["pz_w2"], p["pz_b2"] = lin(keys[3], Z, Z), jnp.zeros((1, Z), jnp.float32)
    p["pr_w1"], p["pr_b1"] = lin(keys[4], H, Z), jnp.zeros((1, Z), jnp.float32)
    p["pr_w2"], p["pr_b2"] = lin(keys[5], Z, 2 * Z), jnp.zeros((1, 2 * Z), jnp.float32)
    p["en_w1"], p["en_b1"] = lin(keys[6], H + Z, Z), jnp.zeros((1, Z), jnp.float32)
    p["en_w2"], p["en_b2"] = lin(keys[7], Z, 2 * Z), jnp.zeros((1, 2 * Z), jnp.float32)
    p["de_w1"], p["de_b1"] = lin(keys[8], Z + H, Z), jnp.zeros((1, Z), jnp.float32)
    p["de_w2"], p["de_b2"] = lin(keys[9], Z, D), jnp.zeros((1, D), jnp.float32)
    p["w_ih"] = lin(keys[10], 2 * Z, 4 * H)          # (2Z, 4H), gate order i,f,g,o
    p["w_hh"] = lin(keys[11], H, 4 * H)              # (H, 4H)
    p["b_ih"] = jnp.zeros((1, 4 * H), jnp.float32)
    p["b_hh"] = jnp.zeros((1, 4 * H), jnp.float32)
    p["gen_bias"] = jax.random.normal(keys[12], (1, D), jnp.float32) * s
    return p


def pack_params(p):
    """Fuse / pad / stack the original tensors into 9 lane-aligned kernel inputs."""
    Z = p["pz_w1"].shape[0]
    H = p["w_hh"].shape[0]
    G = 4 * H
    SEG = 128

    def pad_c(w):   # zero-pad columns up to SEG
        return jnp.pad(w, ((0, 0), (0, SEG - w.shape[1])))

    def pad_r(w):   # zero-pad rows up to SEG
        return jnp.pad(w, ((0, SEG - w.shape[0]), (0, 0)))

    def pad_v(v, n):
        return jnp.pad(v, (0, n - v.shape[0]))

    # encoder input = [h, x_feat]; decoder input = [z_feat, h]; rnn input = [x_feat, z_feat]
    en_w1_h, en_w1_x = p["en_w1"][:H, :], p["en_w1"][H:, :]
    de_w1_z, de_w1_h = p["de_w1"][:Z, :], p["de_w1"][Z:, :]

    # every consumer of h_{t-1}: [lstm (G) | enc (SEG) | dec (SEG) | prior (SEG)]
    wh = jnp.concatenate(
        [p["w_hh"], pad_c(en_w1_h), pad_c(de_w1_h), pad_c(p["pr_w1"])], axis=1)   # (H, G+3*SEG)
    # every consumer of x_feat: [lstm | enc];  every consumer of z_feat: [lstm | dec]
    wx = jnp.concatenate([p["w_ih"][:Z, :], pad_c(en_w1_x)], axis=1)              # (Z, G+SEG)
    wz = jnp.concatenate([p["w_ih"][Z:, :], pad_c(de_w1_z)], axis=1)              # (Z, G+SEG)
    wxz = jnp.stack([wx, wz])                                                      # (2, Z, G+SEG)

    # second-layer heads, zero-padded to K = SEG so the 128-wide segments feed them directly
    w_heads = jnp.stack([
        pad_r(p["pr_w2"][:, :Z]), pad_r(p["pr_w2"][:, Z:]),
        pad_r(p["en_w2"][:, :Z]), pad_r(p["en_w2"][:, Z:]),
    ])                                                                             # (4, SEG, Z)
    de_w2 = pad_r(p["de_w2"])                                                      # (SEG, D)

    w_zz = jnp.stack([p["px_w2"], p["pz_w1"], p["pz_w2"]])                         # (3, Z, Z)

    # wide biases: row 0 = x_all bias [b_ih+b_hh | b_en1 pad]; row 1 = [b_pr1 pad | b_de1 pad]
    b_lstm = (p["b_ih"] + p["b_hh"])[0]
    row0 = jnp.concatenate([b_lstm, pad_v(p["en_b1"][0], SEG)])
    row1 = pad_v(jnp.concatenate([pad_v(p["pr_b1"][0], SEG), pad_v(p["de_b1"][0], SEG)]),
                 G + SEG)
    b_wide = jnp.stack([row0, row1])                                               # (2, G+SEG)

    b_small = jnp.stack([
        p["px_b1"][0], p["px_b2"][0], p["pz_b1"][0], p["pz_b2"][0],
        p["pr_b2"][0, :Z], p["pr_b2"][0, Z:],
        p["en_b2"][0, :Z], p["en_b2"][0, Z:],
    ])                                                                             # (8, Z)

    return {
        "wh": wh, "wxz": wxz, "w_heads": w_heads, "w_zz": w_zz,
        "px_w1": p["px_w1"], "de_w2": de_w2,
        "b_wide": b_wide, "b_small": b_small,
        "b_out": p["de_b2"] + p["gen_bias"],
    }


_PACK_ORDER = ["wh", "wxz", "w_heads", "w_zz", "px_w1", "de_w2", "b_wide", "b_small", "b_out"]


# -------------------------------- wrapper ----------------------------------
@jax.jit
def vrnn_forward(inputs, targets, eps, params):
    """inputs/targets: (B, T, D), eps: (B, T, Z).  Returns (log_px, log_pz, log_qz), each (T, B)."""
    B, T, D = inputs.shape
    Z = eps.shape[-1]
    H = params["w_hh"].shape[0]
    G, SEG = 4 * H, 128

    # time-major, then flatten (T, B) so the kernel's batched phases run at M = T*B
    x = jnp.transpose(inputs, (1, 0, 2)).reshape(T * B, D)
    y = jnp.transpose(targets, (1, 0, 2)).reshape(T * B, D)
    e = jnp.transpose(eps, (1, 0, 2))                       # (T, B, Z) for per-step reads

    packed = pack_params(params)
    weights = [packed[k] for k in _PACK_ORDER]

    def full_spec(arr):
        nd = arr.ndim
        return pl.BlockSpec(arr.shape, lambda i, _nd=nd: (0,) * _nd)

    in_specs = [full_spec(a) for a in (x, y, e)] + [full_spec(w) for w in weights]
    out_spec = pl.BlockSpec((T * B, 3), lambda i: (0, 0))

    grid_spec = pltpu.PrefetchScalarGridSpec(
        num_scalar_prefetch=0,
        grid=(1,),                          # whole recurrence inside one kernel invocation
        in_specs=in_specs,
        out_specs=out_spec,
        scratch_shapes=[
            pltpu.VMEM((T, B, G + SEG), jnp.float32),   # precomputed x_all
            pltpu.VMEM((T, B, SEG), jnp.float32),       # prior pre-activations
            pltpu.VMEM((T, B, SEG), jnp.float32),       # decoder pre-activations
            pltpu.VMEM((T, B, Z), jnp.float32),         # z samples
            pltpu.VMEM((T, B, Z), jnp.float32),         # mu_q
            pltpu.VMEM((T, B, Z), jnp.float32),         # sigma_q
        ],
    )

    out = pl.pallas_call(
        vrnn_kernel,
        out_shape=jax.ShapeDtypeStruct((T * B, 3), jnp.float32),
        grid_spec=grid_spec,
        compiler_params=pltpu.CompilerParams(
            dimension_semantics=("arbitrary",),
        ),
    )(x, y, e, *weights)

    out = out.reshape(T, B, 3)
    return out[..., 0], out[..., 1], out[..., 2]


# ---------------------- pure-JAX reference (validation) ----------------------
def vrnn_reference(inputs, targets, eps, p):
    B, T, D = inputs.shape
    Z = eps.shape[-1]
    H = p["w_hh"].shape[0]
    x = jnp.transpose(inputs, (1, 0, 2))
    y = jnp.transpose(targets, (1, 0, 2))
    e = jnp.transpose(eps, (1, 0, 2))

    def mlp(v, w1, b1, w2, b2):
        return jnp.maximum(v @ w1 + b1, 0.0) @ w2 + b2

    def sp(v):
        return jnp.logaddexp(v, 0.0)

    def nlp(z, mu, sig):
        zs = (z - mu) / sig
        return jnp.sum(-0.5 * zs * zs - jnp.log(sig) - 0.5 * LOG2PI, axis=-1)

    h = jnp.zeros((B, H)); c = jnp.zeros((B, H))
    lpx, lpz, lqz = [], [], []
    for t in range(T):
        xt, yt, et = x[t], y[t], e[t]
        xf = mlp(xt, p["px_w1"], p["px_b1"], p["px_w2"], p["px_b2"])
        hp = mlp(h, p["pr_w1"], p["pr_b1"], p["pr_w2"], p["pr_b2"])
        mu_p, sg_p = hp[:, :Z], jnp.maximum(sp(hp[:, Z:] + 0.5), 0.0)
        he = mlp(jnp.concatenate([h, xf], 1), p["en_w1"], p["en_b1"], p["en_w2"], p["en_b2"])
        mu_q, sg_q = he[:, :Z], jnp.maximum(sp(he[:, Z:] + 0.5), 0.0)
        z = mu_q + sg_q * et
        zf = mlp(z, p["pz_w1"], p["pz_b1"], p["pz_w2"], p["pz_b2"])
        logits = mlp(jnp.concatenate([zf, h], 1), p["de_w1"], p["de_b1"], p["de_w2"], p["de_b2"]) + p["gen_bias"]
        lpx.append(jnp.sum(logits * yt - sp(logits), axis=-1))
        lpz.append(nlp(z, mu_p, sg_p))
        lqz.append(nlp(z, mu_q, sg_q))
        gates = jnp.concatenate([xf, zf], 1) @ p["w_ih"] + p["b_ih"] + h @ p["w_hh"] + p["b_hh"]
        i_g = jax.nn.sigmoid(gates[:, 0 * H:1 * H])
        f_g = jax.nn.sigmoid(gates[:, 1 * H:2 * H])
        g_g = jnp.tanh(gates[:, 2 * H:3 * H])
        o_g = jax.nn.sigmoid(gates[:, 3 * H:4 * H])
        c = f_g * c + i_g * g_g
        h = o_g * jnp.tanh(c)
    return jnp.stack(lpx), jnp.stack(lpz), jnp.stack(lqz)


# ----------------------------------- main -----------------------------------
if __name__ == "__main__":
    B, T, D, Z, H = 8, 8, 16, 32, 32   # batch, seq, input_shape, latent_shape, recurrent_shape

    key = jax.random.PRNGKey(0)
    k_in, k_tgt, k_eps, k_par = jax.random.split(key, 4)

    inputs = jax.random.uniform(k_in, (B, T, D), jnp.float32)
    targets = jax.random.bernoulli(k_tgt, 0.5, (B, T, D)).astype(jnp.float32)
    eps = jax.random.normal(k_eps, (B, T, Z), jnp.float32)   # reparameterization noise
    params = make_params(k_par, D, Z, H)

    log_px, log_pz, log_qz = vrnn_forward(inputs, targets, eps, params)
    jax.block_until_ready((log_px, log_pz, log_qz))

    # sanity-check against the pure-JAX reference (unfused / unpadded weights)
    r_px, r_pz, r_qz = vrnn_reference(inputs, targets, eps, params)
    assert jnp.allclose(log_px, r_px, atol=1e-3, rtol=1e-3)
    assert jnp.allclose(log_pz, r_pz, atol=1e-3, rtol=1e-3)
    assert jnp.allclose(log_qz, r_qz, atol=1e-3, rtol=1e-3)

    print("KERNEL_OK")
</pallas_src>

<mosaic_0001>
module attributes {stable_mosaic.version = 11 : i64} {
  func.func @vrnn_kernel(%arg0: i32, %arg1: memref<64x16xf32, #tpu.memory_space<vmem>>, %arg2: memref<64x16xf32, #tpu.memory_space<vmem>>, %arg3: memref<8x8x32xf32, #tpu.memory_space<vmem>>, %arg4: memref<32x512xf32, #tpu.memory_space<vmem>>, %arg5: memref<2x32x256xf32, #tpu.memory_space<vmem>>, %arg6: memref<4x128x32xf32, #tpu.memory_space<vmem>>, %arg7: memref<3x32x32xf32, #tpu.memory_space<vmem>>, %arg8: memref<16x32xf32, #tpu.memory_space<vmem>>, %arg9: memref<128x16xf32, #tpu.memory_space<vmem>>, %arg10: memref<2x256xf32, #tpu.memory_space<vmem>>, %arg11: memref<8x32xf32, #tpu.memory_space<vmem>>, %arg12: memref<1x16xf32, #tpu.memory_space<vmem>>, %arg13: memref<64x3xf32, #tpu.memory_space<vmem>>, %arg14: memref<8x8x256xf32, #tpu.memory_space<vmem>>, %arg15: memref<8x8x128xf32, #tpu.memory_space<vmem>>, %arg16: memref<8x8x128xf32, #tpu.memory_space<vmem>>, %arg17: memref<8x8x32xf32, #tpu.memory_space<vmem>>, %arg18: memref<8x8x32xf32, #tpu.memory_space<vmem>>, %arg19: memref<8x8x32xf32, #tpu.memory_space<vmem>>) attributes {dimension_semantics = [#tpu.dimension_semantics<arbitrary>], iteration_bounds = array<i64: 1>, scalar_prefetch = 0 : i64, scratch_operands = 6 : i64, tpu.core_type = #tpu.core_type<tc>, window_params = [{pipeline_mode = #tpu.pipeline_mode<synchronous>, transform_indices = @transform_0, window_bounds = array<i64: 64, 16>}, {pipeline_mode = #tpu.pipeline_mode<synchronous>, transform_indices = @transform_1, window_bounds = array<i64: 64, 16>}, {pipeline_mode = #tpu.pipeline_mode<synchronous>, transform_indices = @transform_2, window_bounds = array<i64: 8, 8, 32>}, {pipeline_mode = #tpu.pipeline_mode<synchronous>, transform_indices = @transform_3, window_bounds = array<i64: 32, 512>}, {pipeline_mode = #tpu.pipeline_mode<synchronous>, transform_indices = @transform_4, window_bounds = array<i64: 2, 32, 256>}, {pipeline_mode = #tpu.pipeline_mode<synchronous>, transform_indices = @transform_5, window_bounds = array<i64: 4, 128, 32>}, {pipeline_mode = #tpu.pipeline_mode<synchronous>, transform_indices = @transform_6, window_bounds = array<i64: 3, 32, 32>}, {pipeline_mode = #tpu.pipeline_mode<synchronous>, transform_indices = @transform_7, window_bounds = array<i64: 16, 32>}, {pipeline_mode = #tpu.pipeline_mode<synchronous>, transform_indices = @transform_8, window_bounds = array<i64: 128, 16>}, {pipeline_mode = #tpu.pipeline_mode<synchronous>, transform_indices = @transform_9, window_bounds = array<i64: 2, 256>}, {pipeline_mode = #tpu.pipeline_mode<synchronous>, transform_indices = @transform_10, window_bounds = array<i64: 8, 32>}, {pipeline_mode = #tpu.pipeline_mode<synchronous>, transform_indices = @transform_11, window_bounds = array<i64: 1, 16>}, {pipeline_mode = #tpu.pipeline_mode<synchronous>, transform_indices = @transform_12, window_bounds = array<i64: 64, 3>}]} {
    %c0 = arith.constant 0 : index
    %c0_0 = arith.constant 0 : index
    %0 = vector.load %arg1[%c0, %c0_0] : memref<64x16xf32, #tpu.memory_space<vmem>>, vector<64x16xf32>
    %c0_1 = arith.constant 0 : index
    %c0_2 = arith.constant 0 : index
    %1 = vector.load %arg8[%c0_1, %c0_2] : memref<16x32xf32, #tpu.memory_space<vmem>>, vector<16x32xf32>
    %cst = arith.constant dense<0.000000e+00> : vector<64x32xf32>
    %2 = tpu.matmul %0, %1, %cst {dimension_numbers = #tpu.dot_dimension_numbers<[1], [0], [0], [1], [0, 0, 1, 1], [], []>} : vector<64x16xf32>, vector<16x32xf32>, vector<64x32xf32> -> vector<64x32xf32>
    %c0_3 = arith.constant 0 : index
    %c0_4 = arith.constant 0 : index
    %3 = vector.load %arg11[%c0_3, %c0_4] : memref<8x32xf32, #tpu.memory_space<vmem>>, vector<1x32xf32>
    %4 = vector.broadcast %3 : vector<1x32xf32> to vector<64x32xf32>
    %5 = arith.addf %2, %4 : vector<64x32xf32>
    %cst_5 = arith.constant 0.000000e+00 : f32
    %6 = vector.broadcast %cst_5 : f32 to vector<64x32xf32>
    %7 = arith.maximumf %5, %6 : vector<64x32xf32>
    %c0_6 = arith.constant 0 : index
    %c0_7 = arith.constant 0 : index
    %c0_8 = arith.constant 0 : index
    %8 = vector.load %arg7[%c0_6, %c0_7, %c0_8] : memref<3x32x32xf32, #tpu.memory_space<vmem>>, vector<1x32x32xf32>
    %9 = vector.shape_cast %8 : vector<1x32x32xf32> to vector<32x32xf32>
    %cst_9 = arith.constant dense<0.000000e+00> : vector<64x32xf32>
    %10 = tpu.matmul %7, %9, %cst_9 {dimension_numbers = #tpu.dot_dimension_numbers<[1], [0], [0], [1], [0, 0, 1, 1], [], []>} : vector<64x32xf32>, vector<32x32xf32>, vector<64x32xf32> -> vector<64x32xf32>
    %c1 = arith.constant 1 : index
    %c0_10 = arith.constant 0 : index
    %11 = vector.load %arg11[%c1, %c0_10] : memref<8x32xf32, #tpu.memory_space<vmem>>, vector<1x32xf32>
    %12 = vector.broadcast %11 : vector<1x32xf32> to vector<64x32xf32>
    %13 = arith.addf %10, %12 : vector<64x32xf32>
    %c0_11 = arith.constant 0 : index
    %c0_12 = arith.constant 0 : index
    %c0_13 = arith.constant 0 : index
    %14 = vector.load %arg5[%c0_11, %c0_12, %c0_13] : memref<2x32x256xf32, #tpu.memory_space<vmem>>, vector<1x32x256xf32>
    %15 = vector.shape_cast %14 : vector<1x32x256xf32> to vector<32x256xf32>
    %cst_14 = arith.constant dense<0.000000e+00> : vector<64x256xf32>
    %16 = tpu.matmul %13, %15, %cst_14 {dimension_numbers = #tpu.dot_dimension_numbers<[1], [0], [0], [1], [0, 0, 1, 1], [], []>} : vector<64x32xf32>, vector<32x256xf32>, vector<64x256xf32> -> vector<64x256xf32>
    %c0_15 = arith.constant 0 : index
    %c0_16 = arith.constant 0 : index
    %17 = vector.load %arg10[%c0_15, %c0_16] : memref<2x256xf32, #tpu.memory_space<vmem>>, vector<1x256xf32>
    %18 = vector.broadcast %17 : vector<1x256xf32> to vector<64x256xf32>
    %19 = arith.addf %16, %18 : vector<64x256xf32>
    %20 = vector.shape_cast %19 : vector<64x256xf32> to vector<8x8x256xf32>
    %c0_17 = arith.constant 0 : index
    %c0_18 = arith.constant 0 : index
    %c0_19 = arith.constant 0 : index
    %21 = vector.load %arg14[%c0_17, %c0_18, %c0_19] : memref<8x8x256xf32, #tpu.memory_space<vmem>>, vector<8x8x256xf32>
    tpu.vector_store %arg14[%c0_17, %c0_18, %c0_19], %20 {strides = array<i32>} : memref<8x8x256xf32, #tpu.memory_space<vmem>>, vector<8x8x256xf32>,
    %22 = tpu.iota {dimensions = array<i32: 1>} : vector<8x128xi32>
    %c64_i32 = arith.constant 64 : i32
    %23 = vector.broadcast %c64_i32 : i32 to vector<8x128xi32>
    %24 = arith.cmpi sge, %22, %23 : vector<8x128xi32>
    %c96_i32 = arith.constant 96 : i32
    %25 = vector.broadcast %c96_i32 : i32 to vector<8x128xi32>
    %26 = arith.cmpi slt, %22, %25 : vector<8x128xi32>
    %27 = arith.andi %24, %26 : vector<8x128xi1>
    %cst_20 = arith.constant 0.000000e+00 : f32
    %28 = vector.broadcast %cst_20 : f32 to vector<8x32xf32>
    %cst_21 = arith.constant 0.000000e+00 : f32
    %29 = vector.broadcast %cst_21 : f32 to vector<8x32xf32>
    %c0_i32 = arith.constant 0 : i32
    %30 = arith.index_cast %c0_i32 : i32 to index
    %c0_22 = arith.constant 0 : index
    %c0_23 = arith.constant 0 : index
    %31 = vector.load %arg3[%30, %c0_22, %c0_23] : memref<8x8x32xf32, #tpu.memory_space<vmem>>, vector<1x8x32xf32>
    %32 = vector.shape_cast %31 : vector<1x8x32xf32> to vector<8x32xf32>
    %c0_24 = arith.constant 0 : index
    %c0_25 = arith.constant 0 : index
    %33 = vector.load %arg4[%c0_24, %c0_25] : memref<32x512xf32, #tpu.memory_space<vmem>>, vector<32x512xf32>
    %cst_26 = arith.constant dense<0.000000e+00> : vector<8x512xf32>
    %34 = tpu.matmul %28, %33, %cst_26 {dimension_numbers = #tpu.dot_dimension_numbers<[1], [0], [0], [1], [0, 0, 1, 1], [], []>} : vector<8x32xf32>, vector<32x512xf32>, vector<8x512xf32> -> vector<8x512xf32>
    %35 = vector.extract_strided_slice %34 {offsets = [0, 0], sizes = [8, 128], strides = [1, 1]} : vector<8x512xf32> to vector<8x128xf32>
    %36 = vector.extract_strided_slice %34 {offsets = [0, 128], sizes = [8, 128], strides = [1, 1]} : vector<8x512xf32> to vector<8x128xf32>
    %37 = vector.extract_strided_slice %34 {offsets = [0, 256], sizes = [8, 128], strides = [1, 1]} : vector<8x512xf32> to vector<8x128xf32>
    %38 = vector.extract_strided_slice %34 {offsets = [0, 384], sizes = [8, 128], strides = [1, 1]} : vector<8x512xf32> to vector<8x128xf32>
    %39 = arith.index_cast %c0_i32 : i32 to index
    %c0_27 = arith.constant 0 : index
    %c0_28 = arith.constant 0 : index
    %40 = vector.load %arg14[%39, %c0_27, %c0_28] : memref<8x8x256xf32, #tpu.memory_space<vmem>>, vector<1x8x256xf32>
    %41 = vector.shape_cast %40 : vector<1x8x256xf32> to vector<8x256xf32>
    %42 = vector.extract_strided_slice %41 {offsets = [0, 0], sizes = [8, 128], strides = [1, 1]} : vector<8x256xf32> to vector<8x128xf32>
    %43 = vector.extract_strided_slice %41 {offsets = [0, 128], sizes = [8, 128], strides = [1, 1]} : vector<8x256xf32> to vector<8x128xf32>
    %44 = arith.addf %36, %43 : vector<8x128xf32>
    %cst_29 = arith.constant 0.000000e+00 : f32
    %45 = vector.broadcast %cst_29 : f32 to vector<8x128xf32>
    %46 = arith.maximumf %44, %45 : vector<8x128xf32>
    %c2 = arith.constant 2 : index
    %c0_30 = arith.constant 0 : index
    %c0_31 = arith.constant 0 : index
    %47 = vector.load %arg6[%c2, %c0_30, %c0_31] : memref<4x128x32xf32, #tpu.memory_space<vmem>>, vector<1x128x32xf32>
    %48 = vector.shape_cast %47 : vector<1x128x32xf32> to vector<128x32xf32>
    %cst_32 = arith.constant dense<0.000000e+00> : vector<8x32xf32>
    %49 = tpu.matmul %46, %48, %cst_32 {dimension_numbers = #tpu.dot_dimension_numbers<[1], [0], [0], [1], [0, 0, 1, 1], [], []>} : vector<8x128xf32>, vector<128x32xf32>, vector<8x32xf32> -> vector<8x32xf32>
    %c6 = arith.constant 6 : index
    %c0_33 = arith.constant 0 : index
    %50 = vector.load %arg11[%c6, %c0_33] : memref<8x32xf32, #tpu.memory_space<vmem>>, vector<1x32xf32>
    %51 = vector.broadcast %50 : vector<1x32xf32> to vector<8x32xf32>
    %52 = arith.addf %49, %51 : vector<8x32xf32>
    %c3 = arith.constant 3 : index
    %c0_34 = arith.constant 0 : index
    %c0_35 = arith.constant 0 : index
    %53 = vector.load %arg6[%c3, %c0_34, %c0_35] : memref<4x128x32xf32, #tpu.memory_space<vmem>>, vector<1x128x32xf32>
    %54 = vector.shape_cast %53 : vector<1x128x32xf32> to vector<128x32xf32>
    %cst_36 = arith.constant dense<0.000000e+00> : vector<8x32xf32>
    %55 = tpu.matmul %46, %54, %cst_36 {dimension_numbers = #tpu.dot_dimension_numbers<[1], [0], [0], [1], [0, 0, 1, 1], [], []>} : vector<8x128xf32>, vector<128x32xf32>, vector<8x32xf32> -> vector<8x32xf32>
    %c7 = arith.constant 7 : index
    %c0_37 = arith.constant 0 : index
    %56 = vector.load %arg11[%c7, %c0_37] : memref<8x32xf32, #tpu.memory_space<vmem>>, vector<1x32xf32>
    %57 = vector.broadcast %56 : vector<1x32xf32> to vector<8x32xf32>
    %58 = arith.addf %55, %57 : vector<8x32xf32>
    %cst_38 = arith.constant 5.000000e-01 : f32
    %59 = vector.broadcast %cst_38 : f32 to vector<8x32xf32>
    %60 = arith.addf %58, %59 : vector<8x32xf32>
    %cst_39 = arith.constant 0.000000e+00 : f32
    %61 = vector.broadcast %cst_39 : f32 to vector<8x32xf32>
    %62 = arith.maximumf %60, %61 : vector<8x32xf32>
    %63 = vector.broadcast %cst_39 : f32 to vector<8x32xf32>
    %64 = arith.subf %60, %63 : vector<8x32xf32>
    %65 = arith.cmpf one, %64, %64 : vector<8x32xf32>
    %66 = vector.broadcast %cst_39 : f32 to vector<8x32xf32>
    %67 = arith.addf %60, %66 : vector<8x32xf32>
    %68 = math.absf %64 : vector<8x32xf32>
    %cst_40 = arith.constant 0.000000e+00 : f32
    %69 = vector.broadcast %cst_40 : f32 to vector<8x32xf32>
    %70 = arith.subf %69, %68 : vector<8x32xf32>
    %71 = math.exp %70 : vector<8x32xf32>
    %72 = math.log1p %71 : vector<8x32xf32>
    %73 = arith.addf %62, %72 : vector<8x32xf32>
    %74 = arith.select %65, %67, %73 : vector<8x32xi1>, vector<8x32xf32>
    %cst_41 = arith.constant 0.000000e+00 : f32
    %75 = vector.broadcast %cst_41 : f32 to vector<8x32xf32>
    %76 = arith.maximumf %74, %75 : vector<8x32xf32>
    %77 = arith.mulf %76, %32 : vector<8x32xf32>
    %78 = arith.addf %52, %77 : vector<8x32xf32>
    %c1_42 = arith.constant 1 : index
    %c0_43 = arith.constant 0 : index
    %c0_44 = arith.constant 0 : index
    %79 = vector.load %arg7[%c1_42, %c0_43, %c0_44] : memref<3x32x32xf32, #tpu.memory_space<vmem>>, vector<1x32x32xf32>
    %80 = vector.shape_cast %79 : vector<1x32x32xf32> to vector<32x32xf32>
    %cst_45 = arith.constant dense<0.000000e+00> : vector<8x32xf32>
    %81 = tpu.matmul %78, %80, %cst_45 {dimension_numbers = #tpu.dot_dimension_numbers<[1], [0], [0], [1], [0, 0, 1, 1], [], []>} : vector<8x32xf32>, vector<32x32xf32>, vector<8x32xf32> -> vector<8x32xf32>
    %c2_46 = arith.constant 2 : index
    %c0_47 = arith.constant 0 : index
    %82 = vector.load %arg11[%c2_46, %c0_47] : memref<8x32xf32, #tpu.memory_space<vmem>>, vector<1x32xf32>
    %83 = vector.broadcast %82 : vector<1x32xf32> to vector<8x32xf32>
    %84 = arith.addf %81, %83 : vector<8x32xf32>
    %cst_48 = arith.constant 0.000000e+00 : f32
    %85 = vector.broadcast %cst_48 : f32 to vector<8x32xf32>
    %86 = arith.maximumf %84, %85 : vector<8x32xf32>
    %c2_49 = arith.constant 2 : index
    %c0_50 = arith.constant 0 : index
    %c0_51 = arith.constant 0 : index
    %87 = vector.load %arg7[%c2_49, %c0_50, %c0_51] : memref<3x32x32xf32, #tpu.memory_space<vmem>>, vector<1x32x32xf32>
    %88 = vector.shape_cast %87 : vector<1x32x32xf32> to vector<32x32xf32>
    %cst_52 = arith.constant dense<0.000000e+00> : vector<8x32xf32>
    %89 = tpu.matmul %86, %88, %cst_52 {dimension_numbers = #tpu.dot_dimension_numbers<[1], [0], [0], [1], [0, 0, 1, 1], [], []>} : vector<8x32xf32>, vector<32x32xf32>, vector<8x32xf32> -> vector<8x32xf32>
    %c3_53 = arith.constant 3 : index
    %c0_54 = arith.constant 0 : index
    %90 = vector.load %arg11[%c3_53, %c0_54] : memref<8x32xf32, #tpu.memory_space<vmem>>, vector<1x32xf32>
    %91 = vector.broadcast %90 : vector<1x32xf32> to vector<8x32xf32>
    %92 = arith.addf %89, %91 : vector<8x32xf32>
    %c1_55 = arith.constant 1 : index
    %c0_56 = arith.constant 0 : index
    %c0_57 = arith.constant 0 : index
    %93 = vector.load %arg5[%c1_55, %c0_56, %c0_57] : memref<2x32x256xf32, #tpu.memory_space<vmem>>, vector<1x32x256xf32>
    %94 = vector.shape_cast %93 : vector<1x32x256xf32> to vector<32x256xf32>
    %cst_58 = arith.constant dense<0.000000e+00> : vector<8x256xf32>
    %95 = tpu.matmul %92, %94, %cst_58 {dimension_numbers = #tpu.dot_dimension_numbers<[1], [0], [0], [1], [0, 0, 1, 1], [], []>} : vector<8x32xf32>, vector<32x256xf32>, vector<8x256xf32> -> vector<8x256xf32>
    %96 = vector.extract_strided_slice %95 {offsets = [0, 0], sizes = [8, 128], strides = [1, 1]} : vector<8x256xf32> to vector<8x128xf32>
    %97 = vector.extract_strided_slice %95 {offsets = [0, 128], sizes = [8, 128], strides = [1, 1]} : vector<8x256xf32> to vector<8x128xf32>
    %98 = arith.index_cast %c0_i32 : i32 to index
    %c0_59 = arith.constant 0 : index
    %c0_60 = arith.constant 0 : index
    %99 = vector.load %arg15[%98, %c0_59, %c0_60] : memref<8x8x128xf32, #tpu.memory_space<vmem>>, vector<1x8x128xf32>
    %100 = vector.shape_cast %99 : vector<1x8x128xf32> to vector<8x128xf32>
    %101 = vector.shape_cast %38 : vector<8x128xf32> to vector<1x8x128xf32>
    tpu.vector_store %arg15[%98, %c0_59, %c0_60], %101 {strides = array<i32>} : memref<8x8x128xf32, #tpu.memory_space<vmem>>, vector<1x8x128xf32>,
    %102 = arith.addf %37, %97 : vector<8x128xf32>
    %103 = arith.index_cast %c0_i32 : i32 to index
    %c0_61 = arith.constant 0 : index
    %c0_62 = arith.constant 0 : index
    %104 = vector.load %arg16[%103, %c0_61, %c0_62] : memref<8x8x128xf32, #tpu.memory_space<vmem>>, vector<1x8x128xf32>
    %105 = vector.shape_cast %104 : vector<1x8x128xf32> to vector<8x128xf32>
    %106 = vector.shape_cast %102 : vector<8x128xf32> to vector<1x8x128xf32>
    tpu.vector_store %arg16[%103, %c0_61, %c0_62], %106 {strides = array<i32>} : memref<8x8x128xf32, #tpu.memory_space<vmem>>, vector<1x8x128xf32>,
    %107 = arith.index_cast %c0_i32 : i32 to index
    %c0_63 = arith.constant 0 : index
    %c0_64 = arith.constant 0 : index
    %108 = vector.load %arg17[%107, %c0_63, %c0_64] : memref<8x8x32xf32, #tpu.memory_space<vmem>>, vector<1x8x32xf32>
    %109 = vector.shape_cast %108 : vector<1x8x32xf32> to vector<8x32xf32>
    %110 = vector.shape_cast %78 : vector<8x32xf32> to vector<1x8x32xf32>
    tpu.vector_store %arg17[%107, %c0_63, %c0_64], %110 {strides = array<i32>} : memref<8x8x32xf32, #tpu.memory_space<vmem>>, vector<1x8x32xf32>,
    %111 = arith.index_cast %c0_i32 : i32 to index
    %c0_65 = arith.constant 0 : index
    %c0_66 = arith.constant 0 : index
    %112 = vector.load %arg18[%111, %c0_65, %c0_66] : memref<8x8x32xf32, #tpu.memory_space<vmem>>, vector<1x8x32xf32>
    %113 = vector.shape_cast %112 : vector<1x8x32xf32> to vector<8x32xf32>
    %114 = vector.shape_cast %52 : vector<8x32xf32> to vector<1x8x32xf32>
    tpu.vector_store %arg18[%111, %c0_65, %c0_66], %114 {strides = array<i32>} : memref<8x8x32xf32, #tpu.memory_space<vmem>>, vector<1x8x32xf32>,
    %115 = arith.index_cast %c0_i32 : i32 to index
    %c0_67 = arith.constant 0 : index
    %c0_68 = arith.constant 0 : index
    %116 = vector.load %arg19[%115, %c0_67, %c0_68] : memref<8x8x32xf32, #tpu.memory_space<vmem>>, vector<1x8x32xf32>
    %117 = vector.shape_cast %116 : vector<1x8x32xf32> to vector<8x32xf32>
    %118 = vector.shape_cast %76 : vector<8x32xf32> to vector<1x8x32xf32>
    tpu.vector_store %arg19[%115, %c0_67, %c0_68], %118 {strides = array<i32>} : memref<8x8x32xf32, #tpu.memory_space<vmem>>, vector<1x8x32xf32>,
    %119 = arith.addf %35, %42 : vector<8x128xf32>
    %120 = arith.addf %119, %96 : vector<8x128xf32>
    %cst_69 = arith.constant 5.000000e-01 : f32
    %121 = vector.broadcast %cst_69 : f32 to vector<8x128xf32>
    %122 = arith.mulf %121, %120 : vector<8x128xf32>
    %123 = arith.select %27, %120, %122 : vector<8x128xi1>, vector<8x128xf32>
    %124 = math.tanh %123 : vector<8x128xf32>
    %cst_70 = arith.constant 5.000000e-01 : f32
    %125 = vector.broadcast %cst_70 : f32 to vector<8x128xf32>
    %126 = arith.mulf %125, %124 : vector<8x128xf32>
    %cst_71 = arith.constant 5.000000e-01 : f32
    %127 = vector.broadcast %cst_71 : f32 to vector<8x128xf32>
    %128 = arith.addf %126, %127 : vector<8x128xf32>
    %129 = arith.select %27, %124, %128 : vector<8x128xi1>, vector<8x128xf32>
    %130 = vector.extract_strided_slice %129 {offsets = [0, 0], sizes = [8, 32], strides = [1, 1]} : vector<8x128xf32> to vector<8x32xf32>
    %131 = vector.extract_strided_slice %129 {offsets = [0, 32], sizes = [8, 32], strides = [1, 1]} : vector<8x128xf32> to vector<8x32xf32>
    %132 = vector.extract_strided_slice %129 {offsets = [0, 64], sizes = [8, 32], strides = [1, 1]} : vector<8x128xf32> to vector<8x32xf32>
    %133 = vector.extract_strided_slice %129 {offsets = [0, 96], sizes = [8, 32], strides = [1, 1]} : vector<8x128xf32> to vector<8x32xf32>
    %134 = arith.mulf %131, %29 : vector<8x32xf32>
    %135 = arith.mulf %130, %132 : vector<8x32xf32>
    %136 = arith.addf %134, %135 : vector<8x32xf32>
    %137 = math.tanh %136 : vector<8x32xf32>
    %138 = arith.mulf %133, %137 : vector<8x32xf32>
    %c1_i32 = arith.constant 1 : i32
    %139 = arith.index_cast %c1_i32 : i32 to index
    %c0_72 = arith.constant 0 : index
    %c0_73 = arith.constant 0 : index
    %140 = vector.load %arg3[%139, %c0_72, %c0_73] : memref<8x8x32xf32, #tpu.memory_space<vmem>>, vector<1x8x32xf32>
    %141 = vector.shape_cast %140 : vector<1x8x32xf32> to vector<8x32xf32>
    %c0_74 = arith.constant 0 : index
    %c0_75 = arith.constant 0 : index
    %142 = vector.load %arg4[%c0_74, %c0_75] : memref<32x512xf32, #tpu.memory_space<vmem>>, vector<32x512xf32>
    %cst_76 = arith.constant dense<0.000000e+00> : vector<8x512xf32>
    %143 = tpu.matmul %138, %142, %cst_76 {dimension_numbers = #tpu.dot_dimension_numbers<[1], [0], [0], [1], [0, 0, 1, 1], [], []>} : vector<8x32xf32>, vector<32x512xf32>, vector<8x512xf32> -> vector<8x512xf32>
    %144 = vector.extract_strided_slice %143 {offsets = [0, 0], sizes = [8, 128], strides = [1, 1]} : vector<8x512xf32> to vector<8x128xf32>
    %145 = vector.extract_strided_slice %143 {offsets = [0, 128], sizes = [8, 128], strides = [1, 1]} : vector<8x512xf32> to vector<8x128xf32>
    %146 = vector.extract_strided_slice %143 {offsets = [0, 256], sizes = [8, 128], strides = [1, 1]} : vector<8x512xf32> to vector<8x128xf32>
    %147 = vector.extract_strided_slice %143 {offsets = [0, 384], sizes = [8, 128], strides = [1, 1]} : vector<8x512xf32> to vector<8x128xf32>
    %148 = arith.index_cast %c1_i32 : i32 to index
    %c0_77 = arith.constant 0 : index
    %c0_78 = arith.constant 0 : index
    %149 = vector.load %arg14[%148, %c0_77, %c0_78] : memref<8x8x256xf32, #tpu.memory_space<vmem>>, vector<1x8x256xf32>
    %150 = vector.shape_cast %149 : vector<1x8x256xf32> to vector<8x256xf32>
    %151 = vector.extract_strided_slice %150 {offsets = [0, 0], sizes = [8, 128], strides = [1, 1]} : vector<8x256xf32> to vector<8x128xf32>
    %152 = vector.extract_strided_slice %150 {offsets = [0, 128], sizes = [8, 128], strides = [1, 1]} : vector<8x256xf32> to vector<8x128xf32>
    %153 = arith.addf %145, %152 : vector<8x128xf32>
    %cst_79 = arith.constant 0.000000e+00 : f32
    %154 = vector.broadcast %cst_79 : f32 to vector<8x128xf32>
    %155 = arith.maximumf %153, %154 : vector<8x128xf32>
    %c2_80 = arith.constant 2 : index
    %c0_81 = arith.constant 0 : index
    %c0_82 = arith.constant 0 : index
    %156 = vector.load %arg6[%c2_80, %c0_81, %c0_82] : memref<4x128x32xf32, #tpu.memory_space<vmem>>, vector<1x128x32xf32>
    %157 = vector.shape_cast %156 : vector<1x128x32xf32> to vector<128x32xf32>
    %cst_83 = arith.constant dense<0.000000e+00> : vector<8x32xf32>
    %158 = tpu.matmul %155, %157, %cst_83 {dimension_numbers = #tpu.dot_dimension_numbers<[1], [0], [0], [1], [0, 0, 1, 1], [], []>} : vector<8x128xf32>, vector<128x32xf32>, vector<8x32xf32> -> vector<8x32xf32>
    %c6_84 = arith.constant 6 : index
    %c0_85 = arith.constant 0 : index
    %159 = vector.load %arg11[%c6_84, %c0_85] : memref<8x32xf32, #tpu.memory_space<vmem>>, vector<1x32xf32>
    %160 = vector.broadcast %159 : vector<1x32xf32> to vector<8x32xf32>
    %161 = arith.addf %158, %160 : vector<8x32xf32>
    %c3_86 = arith.constant 3 : index
    %c0_87 = arith.constant 0 : index
    %c0_88 = arith.constant 0 : index
    %162 = vector.load %arg6[%c3_86, %c0_87, %c0_88] : memref<4x128x32xf32, #tpu.memory_space<vmem>>, vector<1x128x32xf32>
    %163 = vector.shape_cast %162 : vector<1x128x32xf32> to vector<128x32xf32>
    %cst_89 = arith.constant dense<0.000000e+00> : vector<8x32xf32>
    %164 = tpu.matmul %155, %163, %cst_89 {dimension_numbers = #tpu.dot_dimension_numbers<[1], [0], [0], [1], [0, 0, 1, 1], [], []>} : vector<8x128xf32>, vector<128x32xf32>, vector<8x32xf32> -> vector<8x32xf32>
    %c7_90 = arith.constant 7 : index
    %c0_91 = arith.constant 0 : index
    %165 = vector.load %arg11[%c7_90, %c0_91] : memref<8x32xf32, #tpu.memory_space<vmem>>, vector<1x32xf32>
    %166 = vector.broadcast %165 : vector<1x32xf32> to vector<8x32xf32>
    %167 = arith.addf %164, %166 : vector<8x32xf32>
    %cst_92 = arith.constant 5.000000e-01 : f32
    %168 = vector.broadcast %cst_92 : f32 to vector<8x32xf32>
    %169 = arith.addf %167, %168 : vector<8x32xf32>
    %cst_93 = arith.constant 0.000000e+00 : f32
    %170 = vector.broadcast %cst_93 : f32 to vector<8x32xf32>
    %171 = arith.maximumf %169, %170 : vector<8x32xf32>
    %172 = vector.broadcast %cst_93 : f32 to vector<8x32xf32>
    %173 = arith.subf %169, %172 : vector<8x32xf32>
    %174 = arith.cmpf one, %173, %173 : vector<8x32xf32>
    %175 = vector.broadcast %cst_93 : f32 to vector<8x32xf32>
    %176 = arith.addf %169, %175 : vector<8x32xf32>
    %177 = math.absf %173 : vector<8x32xf32>
    %cst_94 = arith.constant 0.000000e+00 : f32
    %178 = vector.broadcast %cst_94 : f32 to vector<8x32xf32>
    %179 = arith.subf %178, %177 : vector<8x32xf32>
    %180 = math.exp %179 : vector<8x32xf32>
    %181 = math.log1p %180 : vector<8x32xf32>
    %182 = arith.addf %171, %181 : vector<8x32xf32>
    %183 = arith.select %174, %176, %182 : vector<8x32xi1>, vector<8x32xf32>
    %cst_95 = arith.constant 0.000000e+00 : f32
    %184 = vector.broadcast %cst_95 : f32 to vector<8x32xf32>
    %185 = arith.maximumf %183, %184 : vector<8x32xf32>
    %186 = arith.mulf %185, %141 : vector<8x32xf32>
    %187 = arith.addf %161, %186 : vector<8x32xf32>
    %c1_96 = arith.constant 1 : index
    %c0_97 = arith.constant 0 : index
    %c0_98 = arith.constant 0 : index
    %188 = vector.load %arg7[%c1_96, %c0_97, %c0_98] : memref<3x32x32xf32, #tpu.memory_space<vmem>>, vector<1x32x32xf32>
    %189 = vector.shape_cast %188 : vector<1x32x32xf32> to vector<32x32xf32>
    %cst_99 = arith.constant dense<0.000000e+00> : vector<8x32xf32>
    %190 = tpu.matmul %187, %189, %cst_99 {dimension_numbers = #tpu.dot_dimension_numbers<[1], [0], [0], [1], [0, 0, 1, 1], [], []>} : vector<8x32xf32>, vector<32x32xf32>, vector<8x32xf32> -> vector<8x32xf32>
    %c2_100 = arith.constant 2 : index
    %c0_101 = arith.constant 0 : index
    %191 = vector.load %arg11[%c2_100, %c0_101] : memref<8x32xf32, #tpu.memory_space<vmem>>, vector<1x32xf32>
    %192 = vector.broadcast %191 : vector<1x32xf32> to vector<8x32xf32>
    %193 = arith.addf %190, %192 : vector<8x32xf32>
    %cst_102 = arith.constant 0.000000e+00 : f32
    %194 = vector.broadcast %cst_102 : f32 to vector<8x32xf32>
    %195 = arith.maximumf %193, %194 : vector<8x32xf32>
    %c2_103 = arith.constant 2 : index
    %c0_104 = arith.constant 0 : index
    %c0_105 = arith.constant 0 : index
    %196 = vector.load %arg7[%c2_103, %c0_104, %c0_105] : memref<3x32x32xf32, #tpu.memory_space<vmem>>, vector<1x32x32xf32>
    %197 = vector.shape_cast %196 : vector<1x32x32xf32> to vector<32x32xf32>
    %cst_106 = arith.constant dense<0.000000e+00> : vector<8x32xf32>
    %198 = tpu.matmul %195, %197, %cst_106 {dimension_numbers = #tpu.dot_dimension_numbers<[1], [0], [0], [1], [0, 0, 1, 1], [], []>} : vector<8x32xf32>, vector<32x32xf32>, vector<8x32xf32> -> vector<8x32xf32>
    %c3_107 = arith.constant 3 : index
    %c0_108 = arith.constant 0 : index
    %199 = vector.load %arg11[%c3_107, %c0_108] : memref<8x32xf32, #tpu.memory_space<vmem>>, vector<1x32xf32>
    %200 = vector.broadcast %199 : vector<1x32xf32> to vector<8x32xf32>
    %201 = arith.addf %198, %200 : vector<8x32xf32>
    %c1_109 = arith.constant 1 : index
    %c0_110 = arith.constant 0 : index
    %c0_111 = arith.constant 0 : index
    %202 = vector.load %arg5[%c1_109, %c0_110, %c0_111] : memref<2x32x256xf32, #tpu.memory_space<vmem>>, vector<1x32x256xf32>
    %203 = vector.shape_cast %202 : vector<1x32x256xf32> to vector<32x256xf32>
    %cst_112 = arith.constant dense<0.000000e+00> : vector<8x256xf32>
    %204 = tpu.matmul %201, %203, %cst_112 {dimension_numbers = #tpu.dot_dimension_numbers<[1], [0], [0], [1], [0, 0, 1, 1], [], []>} : vector<8x32xf32>, vector<32x256xf32>, vector<8x256xf32> -> vector<8x256xf32>
    %205 = vector.extract_strided_slice %204 {offsets = [0, 0], sizes = [8, 128], strides = [1, 1]} : vector<8x256xf32> to vector<8x128xf32>
    %206 = vector.extract_strided_slice %204 {offsets = [0, 128], sizes = [8, 128], strides = [1, 1]} : vector<8x256xf32> to vector<8x128xf32>
    %207 = arith.index_cast %c1_i32 : i32 to index
    %c0_113 = arith.constant 0 : index
    %c0_114 = arith.constant 0 : index
    %208 = vector.load %arg15[%207, %c0_113, %c0_114] : memref<8x8x128xf32, #tpu.memory_space<vmem>>, vector<1x8x128xf32>
    %209 = vector.shape_cast %208 : vector<1x8x128xf32> to vector<8x128xf32>
    %210 = vector.shape_cast %147 : vector<8x128xf32> to vector<1x8x128xf32>
    tpu.vector_store %arg15[%207, %c0_113, %c0_114], %210 {strides = array<i32>} : memref<8x8x128xf32, #tpu.memory_space<vmem>>, vector<1x8x128xf32>,
    %211 = arith.addf %146, %206 : vector<8x128xf32>
    %212 = arith.index_cast %c1_i32 : i32 to index
    %c0_115 = arith.constant 0 : index
    %c0_116 = arith.constant 0 : index
    %213 = vector.load %arg16[%212, %c0_115, %c0_116] : memref<8x8x128xf32, #tpu.memory_space<vmem>>, vector<1x8x128xf32>
    %214 = vector.shape_cast %213 : vector<1x8x128xf32> to vector<8x128xf32>
    %215 = vector.shape_cast %211 : vector<8x128xf32> to vector<1x8x128xf32>
    tpu.vector_store %arg16[%212, %c0_115, %c0_116], %215 {strides = array<i32>} : memref<8x8x128xf32, #tpu.memory_space<vmem>>, vector<1x8x128xf32>,
    %216 = arith.index_cast %c1_i32 : i32 to index
    %c0_117 = arith.constant 0 : index
    %c0_118 = arith.constant 0 : index
    %217 = vector.load %arg17[%216, %c0_117, %c0_118] : memref<8x8x32xf32, #tpu.memory_space<vmem>>, vector<1x8x32xf32>
    %218 = vector.shape_cast %217 : vector<1x8x32xf32> to vector<8x32xf32>
    %219 = vector.shape_cast %187 : vector<8x32xf32> to vector<1x8x32xf32>
    tpu.vector_store %arg17[%216, %c0_117, %c0_118], %219 {strides = array<i32>} : memref<8x8x32xf32, #tpu.memory_space<vmem>>, vector<1x8x32xf32>,
    %220 = arith.index_cast %c1_i32 : i32 to index
    %c0_119 = arith.constant 0 : index
    %c0_120 = arith.constant 0 : index
    %221 = vector.load %arg18[%220, %c0_119, %c0_120] : memref<8x8x32xf32, #tpu.memory_space<vmem>>, vector<1x8x32xf32>
    %222 = vector.shape_cast %221 : vector<1x8x32xf32> to vector<8x32xf32>
    %223 = vector.shape_cast %161 : vector<8x32xf32> to vector<1x8x32xf32>
    tpu.vector_store %arg18[%220, %c0_119, %c0_120], %223 {strides = array<i32>} : memref<8x8x32xf32, #tpu.memory_space<vmem>>, vector<1x8x32xf32>,
    %224 = arith.index_cast %c1_i32 : i32 to index
    %c0_121 = arith.constant 0 : index
    %c0_122 = arith.constant 0 : index
    %225 = vector.load %arg19[%224, %c0_121, %c0_122] : memref<8x8x32xf32, #tpu.memory_space<vmem>>, vector<1x8x32xf32>
    %226 = vector.shape_cast %225 : vector<1x8x32xf32> to vector<8x32xf32>
    %227 = vector.shape_cast %185 : vector<8x32xf32> to vector<1x8x32xf32>
    tpu.vector_store %arg19[%224, %c0_121, %c0_122], %227 {strides = array<i32>} : memref<8x8x32xf32, #tpu.memory_space<vmem>>, vector<1x8x32xf32>,
    %228 = arith.addf %144, %151 : vector<8x128xf32>
    %229 = arith.addf %228, %205 : vector<8x128xf32>
    %cst_123 = arith.constant 5.000000e-01 : f32
    %230 = vector.broadcast %cst_123 : f32 to vector<8x128xf32>
    %231 = arith.mulf %230, %229 : vector<8x128xf32>
    %232 = arith.select %27, %229, %231 : vector<8x128xi1>, vector<8x128xf32>
    %233 = math.tanh %232 : vector<8x128xf32>
    %cst_124 = arith.constant 5.000000e-01 : f32
    %234 = vector.broadcast %cst_124 : f32 to vector<8x128xf32>
    %235 = arith.mulf %234, %233 : vector<8x128xf32>
    %cst_125 = arith.constant 5.000000e-01 : f32
    %236 = vector.broadcast %cst_125 : f32 to vector<8x128xf32>
    %237 = arith.addf %235, %236 : vector<8x128xf32>
    %238 = arith.select %27, %233, %237 : vector<8x128xi1>, vector<8x128xf32>
    %239 = vector.extract_strided_slice %238 {offsets = [0, 0], sizes = [8, 32], strides = [1, 1]} : vector<8x128xf32> to vector<8x32xf32>
    %240 = vector.extract_strided_slice %238 {offsets = [0, 32], sizes = [8, 32], strides = [1, 1]} : vector<8x128xf32> to vector<8x32xf32>
    %241 = vector.extract_strided_slice %238 {offsets = [0, 64], sizes = [8, 32], strides = [1, 1]} : vector<8x128xf32> to vector<8x32xf32>
    %242 = vector.extract_strided_slice %238 {offsets = [0, 96], sizes = [8, 32], strides = [1, 1]} : vector<8x128xf32> to vector<8x32xf32>
    %243 = arith.mulf %240, %136 : vector<8x32xf32>
    %244 = arith.mulf %239, %241 : vector<8x32xf32>
    %245 = arith.addf %243, %244 : vector<8x32xf32>
    %246 = math.tanh %245 : vector<8x32xf32>
    %247 = arith.mulf %242, %246 : vector<8x32xf32>
    %c2_i32 = arith.constant 2 : i32
    %248 = arith.index_cast %c2_i32 : i32 to index
    %c0_126 = arith.constant 0 : index
    %c0_127 = arith.constant 0 : index
    %249 = vector.load %arg3[%248, %c0_126, %c0_127] : memref<8x8x32xf32, #tpu.memory_space<vmem>>, vector<1x8x32xf32>
    %250 = vector.shape_cast %249 : vector<1x8x32xf32> to vector<8x32xf32>
    %c0_128 = arith.constant 0 : index
    %c0_129 = arith.constant 0 : index
    %251 = vector.load %arg4[%c0_128, %c0_129] : memref<32x512xf32, #tpu.memory_space<vmem>>, vector<32x512xf32>
    %cst_130 = arith.constant dense<0.000000e+00> : vector<8x512xf32>
    %252 = tpu.matmul %247, %251, %cst_130 {dimension_numbers = #tpu.dot_dimension_numbers<[1], [0], [0], [1], [0, 0, 1, 1], [], []>} : vector<8x32xf32>, vector<32x512xf32>, vector<8x512xf32> -> vector<8x512xf32>
    %253 = vector.extract_strided_slice %252 {offsets = [0, 0], sizes = [8, 128], strides = [1, 1]} : vector<8x512xf32> to vector<8x128xf32>
    %254 = vector.extract_strided_slice %252 {offsets = [0, 128], sizes = [8, 128], strides = [1, 1]} : vector<8x512xf32> to vector<8x128xf32>
    %255 = vector.extract_strided_slice %252 {offsets = [0, 256], sizes = [8, 128], strides = [1, 1]} : vector<8x512xf32> to vector<8x128xf32>
    %256 = vector.extract_strided_slice %252 {offsets = [0, 384], sizes = [8, 128], strides = [1, 1]} : vector<8x512xf32> to vector<8x128xf32>
    %257 = arith.index_cast %c2_i32 : i32 to index
    %c0_131 = arith.constant 0 : index
    %c0_132 = arith.constant 0 : index
    %258 = vector.load %arg14[%257, %c0_131, %c0_132] : memref<8x8x256xf32, #tpu.memory_space<vmem>>, vector<1x8x256xf32>
    %259 = vector.shape_cast %258 : vector<1x8x256xf32> to vector<8x256xf32>
    %260 = vector.extract_strided_slice %259 {offsets = [0, 0], sizes = [8, 128], strides = [1, 1]} : vector<8x256xf32> to vector<8x128xf32>
    %261 = vector.extract_strided_slice %259 {offsets = [0, 128], sizes = [8, 128], strides = [1, 1]} : vector<8x256xf32> to vector<8x128xf32>
    %262 = arith.addf %254, %261 : vector<8x128xf32>
    %cst_133 = arith.constant 0.000000e+00 : f32
    %263 = vector.broadcast %cst_133 : f32 to vector<8x128xf32>
    %264 = arith.maximumf %262, %263 : vector<8x128xf32>
    %c2_134 = arith.constant 2 : index
    %c0_135 = arith.constant 0 : index
    %c0_136 = arith.constant 0 : index
    %265 = vector.load %arg6[%c2_134, %c0_135, %c0_136] : memref<4x128x32xf32, #tpu.memory_space<vmem>>, vector<1x128x32xf32>
    %266 = vector.shape_cast %265 : vector<1x128x32xf32> to vector<128x32xf32>
    %cst_137 = arith.constant dense<0.000000e+00> : vector<8x32xf32>
    %267 = tpu.matmul %264, %266, %cst_137 {dimension_numbers = #tpu.dot_dimension_numbers<[1], [0], [0], [1], [0, 0, 1, 1], [], []>} : vector<8x128xf32>, vector<128x32xf32>, vector<8x32xf32> -> vector<8x32xf32>
    %c6_138 = arith.constant 6 : index
    %c0_139 = arith.constant 0 : index
    %268 = vector.load %arg11[%c6_138, %c0_139] : memref<8x32xf32, #tpu.memory_space<vmem>>, vector<1x32xf32>
    %269 = vector.broadcast %268 : vector<1x32xf32> to vector<8x32xf32>
    %270 = arith.addf %267, %269 : vector<8x32xf32>
    %c3_140 = arith.constant 3 : index
    %c0_141 = arith.constant 0 : index
    %c0_142 = arith.constant 0 : index
    %271 = vector.load %arg6[%c3_140, %c0_141, %c0_142] : memref<4x128x32xf32, #tpu.memory_space<vmem>>, vector<1x128x32xf32>
    %272 = vector.shape_cast %271 : vector<1x128x32xf32> to vector<128x32xf32>
    %cst_143 = arith.constant dense<0.000000e+00> : vector<8x32xf32>
    %273 = tpu.matmul %264, %272, %cst_143 {dimension_numbers = #tpu.dot_dimension_numbers<[1], [0], [0], [1], [0, 0, 1, 1], [], []>} : vector<8x128xf32>, vector<128x32xf32>, vector<8x32xf32> -> vector<8x32xf32>
    %c7_144 = arith.constant 7 : index
    %c0_145 = arith.constant 0 : index
    %274 = vector.load %arg11[%c7_144, %c0_145] : memref<8x32xf32, #tpu.memory_space<vmem>>, vector<1x32xf32>
    %275 = vector.broadcast %274 : vector<1x32xf32> to vector<8x32xf32>
    %276 = arith.addf %273, %275 : vector<8x32xf32>
    %cst_146 = arith.constant 5.000000e-01 : f32
    %277 = vector.broadcast %cst_146 : f32 to vector<8x32xf32>
    %278 = arith.addf %276, %277 : vector<8x32xf32>
    %cst_147 = arith.constant 0.000000e+00 : f32
    %279 = vector.broadcast %cst_147 : f32 to vector<8x32xf32>
    %280 = arith.maximumf %278, %279 : vector<8x32xf32>
    %281 = vector.broadcast %cst_147 : f32 to vector<8x32xf32>
    %282 = arith.subf %278, %281 : vector<8x32xf32>
    %283 = arith.cmpf one, %282, %282 : vector<8x32xf32>
    %284 = vector.broadcast %cst_147 : f32 to vector<8x32xf32>
    %285 = arith.addf %278, %284 : vector<8x32xf32>
    %286 = math.absf %282 : vector<8x32xf32>
    %cst_148 = arith.constant 0.000000e+00 : f32
    %287 = vector.broadcast %cst_148 : f32 to vector<8x32xf32>
    %288 = arith.subf %287, %286 : vector<8x32xf32>
    %289 = math.exp %288 : vector<8x32xf32>
    %290 = math.log1p %289 : vector<8x32xf32>
    %291 = arith.addf %280, %290 : vector<8x32xf32>
    %292 = arith.select %283, %285, %291 : vector<8x32xi1>, vector<8x32xf32>
    %cst_149 = arith.constant 0.000000e+00 : f32
    %293 = vector.broadcast %cst_149 : f32 to vector<8x32xf32>
    %294 = arith.maximumf %292, %293 : vector<8x32xf32>
    %295 = arith.mulf %294, %250 : vector<8x32xf32>
    %296 = arith.addf %270, %295 : vector<8x32xf32>
    %c1_150 = arith.constant 1 : index
    %c0_151 = arith.constant 0 : index
    %c0_152 = arith.constant 0 : index
    %297 = vector.load %arg7[%c1_150, %c0_151, %c0_152] : memref<3x32x32xf32, #tpu.memory_space<vmem>>, vector<1x32x32xf32>
    %298 = vector.shape_cast %297 : vector<1x32x32xf32> to vector<32x32xf32>
    %cst_153 = arith.constant dense<0.000000e+00> : vector<8x32xf32>
    %299 = tpu.matmul %296, %298, %cst_153 {dimension_numbers = #tpu.dot_dimension_numbers<[1], [0], [0], [1], [0, 0, 1, 1], [], []>} : vector<8x32xf32>, vector<32x32xf32>, vector<8x32xf32> -> vector<8x32xf32>
    %c2_154 = arith.constant 2 : index
    %c0_155 = arith.constant 0 : index
    %300 = vector.load %arg11[%c2_154, %c0_155] : memref<8x32xf32, #tpu.memory_space<vmem>>, vector<1x32xf32>
    %301 = vector.broadcast %300 : vector<1x32xf32> to vector<8x32xf32>
    %302 = arith.addf %299, %301 : vector<8x32xf32>
    %cst_156 = arith.constant 0.000000e+00 : f32
    %303 = vector.broadcast %cst_156 : f32 to vector<8x32xf32>
    %304 = arith.maximumf %302, %303 : vector<8x32xf32>
    %c2_157 = arith.constant 2 : index
    %c0_158 = arith.constant 0 : index
    %c0_159 = arith.constant 0 : index
    %305 = vector.load %arg7[%c2_157, %c0_158, %c0_159] : memref<3x32x32xf32, #tpu.memory_space<vmem>>, vector<1x32x32xf32>
    %306 = vector.shape_cast %305 : vector<1x32x32xf32> to vector<32x32xf32>
    %cst_160 = arith.constant dense<0.000000e+00> : vector<8x32xf32>
    %307 = tpu.matmul %304, %306, %cst_160 {dimension_numbers = #tpu.dot_dimension_numbers<[1], [0], [0], [1], [0, 0, 1, 1], [], []>} : vector<8x32xf32>, vector<32x32xf32>, vector<8x32xf32> -> vector<8x32xf32>
    %c3_161 = arith.constant 3 : index
    %c0_162 = arith.constant 0 : index
    %308 = vector.load %arg11[%c3_161, %c0_162] : memref<8x32xf32, #tpu.memory_space<vmem>>, vector<1x32xf32>
    %309 = vector.broadcast %308 : vector<1x32xf32> to vector<8x32xf32>
    %310 = arith.addf %307, %309 : vector<8x32xf32>
    %c1_163 = arith.constant 1 : index
    %c0_164 = arith.constant 0 : index
    %c0_165 = arith.constant 0 : index
    %311 = vector.load %arg5[%c1_163, %c0_164, %c0_165] : memref<2x32x256xf32, #tpu.memory_space<vmem>>, vector<1x32x256xf32>
    %312 = vector.shape_cast %311 : vector<1x32x256xf32> to vector<32x256xf32>
    %cst_166 = arith.constant dense<0.000000e+00> : vector<8x256xf32>
    %313 = tpu.matmul %310, %312, %cst_166 {dimension_numbers = #tpu.dot_dimension_numbers<[1], [0], [0], [1], [0, 0, 1, 1], [], []>} : vector<8x32xf32>, vector<32x256xf32>, vector<8x256xf32> -> vector<8x256xf32>
    %314 = vector.extract_strided_slice %313 {offsets = [0, 0], sizes = [8, 128], strides = [1, 1]} : vector<8x256xf32> to vector<8x128xf32>
    %315 = vector.extract_strided_slice %313 {offsets = [0, 128], sizes = [8, 128], strides = [1, 1]} : vector<8x256xf32> to vector<8x128xf32>
    %316 = arith.index_cast %c2_i32 : i32 to index
    %c0_167 = arith.constant 0 : index
    %c0_168 = arith.constant 0 : index
    %317 = vector.load %arg15[%316, %c0_167, %c0_168] : memref<8x8x128xf32, #tpu.memory_space<vmem>>, vector<1x8x128xf32>
    %318 = vector.shape_cast %317 : vector<1x8x128xf32> to vector<8x128xf32>
    %319 = vector.shape_cast %256 : vector<8x128xf32> to vector<1x8x128xf32>
    tpu.vector_store %arg15[%316, %c0_167, %c0_168], %319 {strides = array<i32>} : memref<8x8x128xf32, #tpu.memory_space<vmem>>, vector<1x8x128xf32>,
    %320 = arith.addf %255, %315 : vector<8x128xf32>
    %321 = arith.index_cast %c2_i32 : i32 to index
    %c0_169 = arith.constant 0 : index
    %c0_170 = arith.constant 0 : index
    %322 = vector.load %arg16[%321, %c0_169, %c0_170] : memref<8x8x128xf32, #tpu.memory_space<vmem>>, vector<1x8x128xf32>
    %323 = vector.shape_cast %322 : vector<1x8x128xf32> to vector<8x128xf32>
    %324 = vector.shape_cast %320 : vector<8x128xf32> to vector<1x8x128xf32>
    tpu.vector_store %arg16[%321, %c0_169, %c0_170], %324 {strides = array<i32>} : memref<8x8x128xf32, #tpu.memory_space<vmem>>, vector<1x8x128xf32>,
    %325 = arith.index_cast %c2_i32 : i32 to index
    %c0_171 = arith.constant 0 : index
    %c0_172 = arith.constant 0 : index
    %326 = vector.load %arg17[%325, %c0_171, %c0_172] : memref<8x8x32xf32, #tpu.memory_space<vmem>>, vector<1x8x32xf32>
    %327 = vector.shape_cast %326 : vector<1x8x32xf32> to vector<8x32xf32>
    %328 = vector.shape_cast %296 : vector<8x32xf32> to vector<1x8x32xf32>
    tpu.vector_store %arg17[%325, %c0_171, %c0_172], %328 {strides = array<i32>} : memref<8x8x32xf32, #tpu.memory_space<vmem>>, vector<1x8x32xf32>,
    %329 = arith.index_cast %c2_i32 : i32 to index
    %c0_173 = arith.constant 0 : index
    %c0_174 = arith.constant 0 : index
    %330 = vector.load %arg18[%329, %c0_173, %c0_174] : memref<8x8x32xf32, #tpu.memory_space<vmem>>, vector<1x8x32xf32>
    %331 = vector.shape_cast %330 : vector<1x8x32xf32> to vector<8x32xf32>
    %332 = vector.shape_cast %270 : vector<8x32xf32> to vector<1x8x32xf32>
    tpu.vector_store %arg18[%329, %c0_173, %c0_174], %332 {strides = array<i32>} : memref<8x8x32xf32, #tpu.memory_space<vmem>>, vector<1x8x32xf32>,
    %333 = arith.index_cast %c2_i32 : i32 to index
    %c0_175 = arith.constant 0 : index
    %c0_176 = arith.constant 0 : index
    %334 = vector.load %arg19[%333, %c0_175, %c0_176] : memref<8x8x32xf32, #tpu.memory_space<vmem>>, vector<1x8x32xf32>
    %335 = vector.shape_cast %334 : vector<1x8x32xf32> to vector<8x32xf32>
    %336 = vector.shape_cast %294 : vector<8x32xf32> to vector<1x8x32xf32>
    tpu.vector_store %arg19[%333, %c0_175, %c0_176], %336 {strides = array<i32>} : memref<8x8x32xf32, #tpu.memory_space<vmem>>, vector<1x8x32xf32>,
    %337 = arith.addf %253, %260 : vector<8x128xf32>
    %338 = arith.addf %337, %314 : vector<8x128xf32>
    %cst_177 = arith.constant 5.000000e-01 : f32
    %339 = vector.broadcast %cst_177 : f32 to vector<8x128xf32>
    %340 = arith.mulf %339, %338 : vector<8x128xf32>
    %341 = arith.select %27, %338, %340 : vector<8x128xi1>, vector<8x128xf32>
    %342 = math.tanh %341 : vector<8x128xf32>
    %cst_178 = arith.constant 5.000000e-01 : f32
    %343 = vector.broadcast %cst_178 : f32 to vector<8x128xf32>
    %344 = arith.mulf %343, %342 : vector<8x128xf32>
    %cst_179 = arith.constant 5.000000e-01 : f32
    %345 = vector.broadcast %cst_179 : f32 to vector<8x128xf32>
    %346 = arith.addf %344, %345 : vector<8x128xf32>
    %347 = arith.select %27, %342, %346 : vector<8x128xi1>, vector<8x128xf32>
    %348 = vector.extract_strided_slice %347 {offsets = [0, 0], sizes = [8, 32], strides = [1, 1]} : vector<8x128xf32> to vector<8x32xf32>
    %349 = vector.extract_strided_slice %347 {offsets = [0, 32], sizes = [8, 32], strides = [1, 1]} : vector<8x128xf32> to vector<8x32xf32>
    %350 = vector.extract_strided_slice %347 {offsets = [0, 64], sizes = [8, 32], strides = [1, 1]} : vector<8x128xf32> to vector<8x32xf32>
    %351 = vector.extract_strided_slice %347 {offsets = [0, 96], sizes = [8, 32], strides = [1, 1]} : vector<8x128xf32> to vector<8x32xf32>
    %352 = arith.mulf %349, %245 : vector<8x32xf32>
    %353 = arith.mulf %348, %350 : vector<8x32xf32>
    %354 = arith.addf %352, %353 : vector<8x32xf32>
    %355 = math.tanh %354 : vector<8x32xf32>
    %356 = arith.mulf %351, %355 : vector<8x32xf32>
    %c3_i32 = arith.constant 3 : i32
    %357 = arith.index_cast %c3_i32 : i32 to index
    %c0_180 = arith.constant 0 : index
    %c0_181 = arith.constant 0 : index
    %358 = vector.load %arg3[%357, %c0_180, %c0_181] : memref<8x8x32xf32, #tpu.memory_space<vmem>>, vector<1x8x32xf32>
    %359 = vector.shape_cast %358 : vector<1x8x32xf32> to vector<8x32xf32>
    %c0_182 = arith.constant 0 : index
    %c0_183 = arith.constant 0 : index
    %360 = vector.load %arg4[%c0_182, %c0_183] : memref<32x512xf32, #tpu.memory_space<vmem>>, vector<32x512xf32>
    %cst_184 = arith.constant dense<0.000000e+00> : vector<8x512xf32>
    %361 = tpu.matmul %356, %360, %cst_184 {dimension_numbers = #tpu.dot_dimension_numbers<[1], [0], [0], [1], [0, 0, 1, 1], [], []>} : vector<8x32xf32>, vector<32x512xf32>, vector<8x512xf32> -> vector<8x512xf32>
    %362 = vector.extract_strided_slice %361 {offsets = [0, 0], sizes = [8, 128], strides = [1, 1]} : vector<8x512xf32> to vector<8x128xf32>
    %363 = vector.extract_strided_slice %361 {offsets = [0, 128], sizes = [8, 128], strides = [1, 1]} : vector<8x512xf32> to vector<8x128xf32>
    %364 = vector.extract_strided_slice %361 {offsets = [0, 256], sizes = [8, 128], strides = [1, 1]} : vector<8x512xf32> to vector<8x128xf32>
    %365 = vector.extract_strided_slice %361 {offsets = [0, 384], sizes = [8, 128], strides = [1, 1]} : vector<8x512xf32> to vector<8x128xf32>
    %366 = arith.index_cast %c3_i32 : i32 to index
    %c0_185 = arith.constant 0 : index
    %c0_186 = arith.constant 0 : index
    %367 = vector.load %arg14[%366, %c0_185, %c0_186] : memref<8x8x256xf32, #tpu.memory_space<vmem>>, vector<1x8x256xf32>
    %368 = vector.shape_cast %367 : vector<1x8x256xf32> to vector<8x256xf32>
    %369 = vector.extract_strided_slice %368 {offsets = [0, 0], sizes = [8, 128], strides = [1, 1]} : vector<8x256xf32> to vector<8x128xf32>
    %370 = vector.extract_strided_slice %368 {offsets = [0, 128], sizes = [8, 128], strides = [1, 1]} : vector<8x256xf32> to vector<8x128xf32>
    %371 = arith.addf %363, %370 : vector<8x128xf32>
    %cst_187 = arith.constant 0.000000e+00 : f32
    %372 = vector.broadcast %cst_187 : f32 to vector<8x128xf32>
    %373 = arith.maximumf %371, %372 : vector<8x128xf32>
    %c2_188 = arith.constant 2 : index
    %c0_189 = arith.constant 0 : index
    %c0_190 = arith.constant 0 : index
    %374 = vector.load %arg6[%c2_188, %c0_189, %c0_190] : memref<4x128x32xf32, #tpu.memory_space<vmem>>, vector<1x128x32xf32>
    %375 = vector.shape_cast %374 : vector<1x128x32xf32> to vector<128x32xf32>
    %cst_191 = arith.constant dense<0.000000e+00> : vector<8x32xf32>
    %376 = tpu.matmul %373, %375, %cst_191 {dimension_numbers = #tpu.dot_dimension_numbers<[1], [0], [0], [1], [0, 0, 1, 1], [], []>} : vector<8x128xf32>, vector<128x32xf32>, vector<8x32xf32> -> vector<8x32xf32>
    %c6_192 = arith.constant 6 : index
    %c0_193 = arith.constant 0 : index
    %377 = vector.load %arg11[%c6_192, %c0_193] : memref<8x32xf32, #tpu.memory_space<vmem>>, vector<1x32xf32>
    %378 = vector.broadcast %377 : vector<1x32xf32> to vector<8x32xf32>
    %379 = arith.addf %376, %378 : vector<8x32xf32>
    %c3_194 = arith.constant 3 : index
    %c0_195 = arith.constant 0 : index
    %c0_196 = arith.constant 0 : index
    %380 = vector.load %arg6[%c3_194, %c0_195, %c0_196] : memref<4x128x32xf32, #tpu.memory_space<vmem>>, vector<1x128x32xf32>
    %381 = vector.shape_cast %380 : vector<1x128x32xf32> to vector<128x32xf32>
    %cst_197 = arith.constant dense<0.000000e+00> : vector<8x32xf32>
    %382 = tpu.matmul %373, %381, %cst_197 {dimension_numbers = #tpu.dot_dimension_numbers<[1], [0], [0], [1], [0, 0, 1, 1], [], []>} : vector<8x128xf32>, vector<128x32xf32>, vector<8x32xf32> -> vector<8x32xf32>
    %c7_198 = arith.constant 7 : index
    %c0_199 = arith.constant 0 : index
    %383 = vector.load %arg11[%c7_198, %c0_199] : memref<8x32xf32, #tpu.memory_space<vmem>>, vector<1x32xf32>
    %384 = vector.broadcast %383 : vector<1x32xf32> to vector<8x32xf32>
    %385 = arith.addf %382, %384 : vector<8x32xf32>
    %cst_200 = arith.constant 5.000000e-01 : f32
    %386 = vector.broadcast %cst_200 : f32 to vector<8x32xf32>
    %387 = arith.addf %385, %386 : vector<8x32xf32>
    %cst_201 = arith.constant 0.000000e+00 : f32
    %388 = vector.broadcast %cst_201 : f32 to vector<8x32xf32>
    %389 = arith.maximumf %387, %388 : vector<8x32xf32>
    %390 = vector.broadcast %cst_201 : f32 to vector<8x32xf32>
    %391 = arith.subf %387, %390 : vector<8x32xf32>
    %392 = arith.cmpf one, %391, %391 : vector<8x32xf32>
    %393 = vector.broadcast %cst_201 : f32 to vector<8x32xf32>
    %394 = arith.addf %387, %393 : vector<8x32xf32>
    %395 = math.absf %391 : vector<8x32xf32>
    %cst_202 = arith.constant 0.000000e+00 : f32
    %396 = vector.broadcast %cst_202 : f32 to vector<8x32xf32>
    %397 = arith.subf %396, %395 : vector<8x32xf32>
    %398 = math.exp %397 : vector<8x32xf32>
    %399 = math.log1p %398 : vector<8x32xf32>
    %400 = arith.addf %389, %399 : vector<8x32xf32>
    %401 = arith.select %392, %394, %400 : vector<8x32xi1>, vector<8x32xf32>
    %cst_203 = arith.constant 0.000000e+00 : f32
    %402 = vector.broadcast %cst_203 : f32 to vector<8x32xf32>
    %403 = arith.maximumf %401, %402 : vector<8x32xf32>
    %404 = arith.mulf %403, %359 : vector<8x32xf32>
    %405 = arith.addf %379, %404 : vector<8x32xf32>
    %c1_204 = arith.constant 1 : index
    %c0_205 = arith.constant 0 : index
    %c0_206 = arith.constant 0 : index
    %406 = vector.load %arg7[%c1_204, %c0_205, %c0_206] : memref<3x32x32xf32, #tpu.memory_space<vmem>>, vector<1x32x32xf32>
    %407 = vector.shape_cast %406 : vector<1x32x32xf32> to vector<32x32xf32>
    %cst_207 = arith.constant dense<0.000000e+00> : vector<8x32xf32>
    %408 = tpu.matmul %405, %407, %cst_207 {dimension_numbers = #tpu.dot_dimension_numbers<[1], [0], [0], [1], [0, 0, 1, 1], [], []>} : vector<8x32xf32>, vector<32x32xf32>, vector<8x32xf32> -> vector<8x32xf32>
    %c2_208 = arith.constant 2 : index
    %c0_209 = arith.constant 0 : index
    %409 = vector.load %arg11[%c2_208, %c0_209] : memref<8x32xf32, #tpu.memory_space<vmem>>, vector<1x32xf32>
    %410 = vector.broadcast %409 : vector<1x32xf32> to vector<8x32xf32>
    %411 = arith.addf %408, %410 : vector<8x32xf32>
    %cst_210 = arith.constant 0.000000e+00 : f32
    %412 = vector.broadcast %cst_210 : f32 to vector<8x32xf32>
    %413 = arith.maximumf %411, %412 : vector<8x32xf32>
    %c2_211 = arith.constant 2 : index
    %c0_212 = arith.constant 0 : index
    %c0_213 = arith.constant 0 : index
    %414 = vector.load %arg7[%c2_211, %c0_212, %c0_213] : memref<3x32x32xf32, #tpu.memory_space<vmem>>, vector<1x32x32xf32>
    %415 = vector.shape_cast %414 : vector<1x32x32xf32> to vector<32x32xf32>
    %cst_214 = arith.constant dense<0.000000e+00> : vector<8x32xf32>
    %416 = tpu.matmul %413, %415, %cst_214 {dimension_numbers = #tpu.dot_dimension_numbers<[1], [0], [0], [1], [0, 0, 1, 1], [], []>} : vector<8x32xf32>, vector<32x32xf32>, vector<8x32xf32> -> vector<8x32xf32>
    %c3_215 = arith.constant 3 : index
    %c0_216 = arith.constant 0 : index
    %417 = vector.load %arg11[%c3_215, %c0_216] : memref<8x32xf32, #tpu.memory_space<vmem>>, vector<1x32xf32>
    %418 = vector.broadcast %417 : vector<1x32xf32> to vector<8x32xf32>
    %419 = arith.addf %416, %418 : vector<8x32xf32>
    %c1_217 = arith.constant 1 : index
    %c0_218 = arith.constant 0 : index
    %c0_219 = arith.constant 0 : index
    %420 = vector.load %arg5[%c1_217, %c0_218, %c0_219] : memref<2x32x256xf32, #tpu.memory_space<vmem>>, vector<1x32x256xf32>
    %421 = vector.shape_cast %420 : vector<1x32x256xf32> to vector<32x256xf32>
    %cst_220 = arith.constant dense<0.000000e+00> : vector<8x256xf32>
    %422 = tpu.matmul %419, %421, %cst_220 {dimension_numbers = #tpu.dot_dimension_numbers<[1], [0], [0], [1], [0, 0, 1, 1], [], []>} : vector<8x32xf32>, vector<32x256xf32>, vector<8x256xf32> -> vector<8x256xf32>
    %423 = vector.extract_strided_slice %422 {offsets = [0, 0], sizes = [8, 128], strides = [1, 1]} : vector<8x256xf32> to vector<8x128xf32>
    %424 = vector.extract_strided_slice %422 {offsets = [0, 128], sizes = [8, 128], strides = [1, 1]} : vector<8x256xf32> to vector<8x128xf32>
    %425 = arith.index_cast %c3_i32 : i32 to index
    %c0_221 = arith.constant 0 : index
    %c0_222 = arith.constant 0 : index
    %426 = vector.load %arg15[%425, %c0_221, %c0_222] : memref<8x8x128xf32, #tpu.memory_space<vmem>>, vector<1x8x128xf32>
    %427 = vector.shape_cast %426 : vector<1x8x128xf32> to vector<8x128xf32>
    %428 = vector.shape_cast %365 : vector<8x128xf32> to vector<1x8x128xf32>
    tpu.vector_store %arg15[%425, %c0_221, %c0_222], %428 {strides = array<i32>} : memref<8x8x128xf32, #tpu.memory_space<vmem>>, vector<1x8x128xf32>,
    %429 = arith.addf %364, %424 : vector<8x128xf32>
    %430 = arith.index_cast %c3_i32 : i32 to index
    %c0_223 = arith.constant 0 : index
    %c0_224 = arith.constant 0 : index
    %431 = vector.load %arg16[%430, %c0_223, %c0_224] : memref<8x8x128xf32, #tpu.memory_space<vmem>>, vector<1x8x128xf32>
    %432 = vector.shape_cast %431 : vector<1x8x128xf32> to vector<8x128xf32>
    %433 = vector.shape_cast %429 : vector<8x128xf32> to vector<1x8x128xf32>
    tpu.vector_store %arg16[%430, %c0_223, %c0_224], %433 {strides = array<i32>} : memref<8x8x128xf32, #tpu.memory_space<vmem>>, vector<1x8x128xf32>,
    %434 = arith.index_cast %c3_i32 : i32 to index
    %c0_225 = arith.constant 0 : index
    %c0_226 = arith.constant 0 : index
    %435 = vector.load %arg17[%434, %c0_225, %c0_226] : memref<8x8x32xf32, #tpu.memory_space<vmem>>, vector<1x8x32xf32>
    %436 = vector.shape_cast %435 : vector<1x8x32xf32> to vector<8x32xf32>
    %437 = vector.shape_cast %405 : vector<8x32xf32> to vector<1x8x32xf32>
    tpu.vector_store %arg17[%434, %c0_225, %c0_226], %437 {strides = array<i32>} : memref<8x8x32xf32, #tpu.memory_space<vmem>>, vector<1x8x32xf32>,
    %438 = arith.index_cast %c3_i32 : i32 to index
    %c0_227 = arith.constant 0 : index
    %c0_228 = arith.constant 0 : index
    %439 = vector.load %arg18[%438, %c0_227, %c0_228] : memref<8x8x32xf32, #tpu.memory_space<vmem>>, vector<1x8x32xf32>
    %440 = vector.shape_cast %439 : vector<1x8x32xf32> to vector<8x32xf32>
    %441 = vector.shape_cast %379 : vector<8x32xf32> to vector<1x8x32xf32>
    tpu.vector_store %arg18[%438, %c0_227, %c0_228], %441 {strides = array<i32>} : memref<8x8x32xf32, #tpu.memory_space<vmem>>, vector<1x8x32xf32>,
    %442 = arith.index_cast %c3_i32 : i32 to index
    %c0_229 = arith.constant 0 : index
    %c0_230 = arith.constant 0 : index
    %443 = vector.load %arg19[%442, %c0_229, %c0_230] : memref<8x8x32xf32, #tpu.memory_space<vmem>>, vector<1x8x32xf32>
    %444 = vector.shape_cast %443 : vector<1x8x32xf32> to vector<8x32xf32>
    %445 = vector.shape_cast %403 : vector<8x32xf32> to vector<1x8x32xf32>
    tpu.vector_store %arg19[%442, %c0_229, %c0_230], %445 {strides = array<i32>} : memref<8x8x32xf32, #tpu.memory_space<vmem>>, vector<1x8x32xf32>,
    %446 = arith.addf %362, %369 : vector<8x128xf32>
    %447 = arith.addf %446, %423 : vector<8x128xf32>
    %cst_231 = arith.constant 5.000000e-01 : f32
    %448 = vector.broadcast %cst_231 : f32 to vector<8x128xf32>
    %449 = arith.mulf %448, %447 : vector<8x128xf32>
    %450 = arith.select %27, %447, %449 : vector<8x128xi1>, vector<8x128xf32>
    %451 = math.tanh %450 : vector<8x128xf32>
    %cst_232 = arith.constant 5.000000e-01 : f32
    %452 = vector.broadcast %cst_232 : f32 to vector<8x128xf32>
    %453 = arith.mulf %452, %451 : vector<8x128xf32>
    %cst_233 = arith.constant 5.000000e-01 : f32
    %454 = vector.broadcast %cst_233 : f32 to vector<8x128xf32>
    %455 = arith.addf %453, %454 : vector<8x128xf32>
    %456 = arith.select %27, %451, %455 : vector<8x128xi1>, vector<8x128xf32>
    %457 = vector.extract_strided_slice %456 {offsets = [0, 0], sizes = [8, 32], strides = [1, 1]} : vector<8x128xf32> to vector<8x32xf32>
    %458 = vector.extract_strided_slice %456 {offsets = [0, 32], sizes = [8, 32], strides = [1, 1]} : vector<8x128xf32> to vector<8x32xf32>
    %459 = vector.extract_strided_slice %456 {offsets = [0, 64], sizes = [8, 32], strides = [1, 1]} : vector<8x128xf32> to vector<8x32xf32>
    %460 = vector.extract_strided_slice %456 {offsets = [0, 96], sizes = [8, 32], strides = [1, 1]} : vector<8x128xf32> to vector<8x32xf32>
    %461 = arith.mulf %458, %354 : vector<8x32xf32>
    %462 = arith.mulf %457, %459 : vector<8x32xf32>
    %463 = arith.addf %461, %462 : vector<8x32xf32>
    %464 = math.tanh %463 : vector<8x32xf32>
    %465 = arith.mulf %460, %464 : vector<8x32xf32>
    %c4_i32 = arith.constant 4 : i32
    %466 = arith.index_cast %c4_i32 : i32 to index
    %c0_234 = arith.constant 0 : index
    %c0_235 = arith.constant 0 : index
    %467 = vector.load %arg3[%466, %c0_234, %c0_235] : memref<8x8x32xf32, #tpu.memory_space<vmem>>, vector<1x8x32xf32>
    %468 = vector.shape_cast %467 : vector<1x8x32xf32> to vector<8x32xf32>
    %c0_236 = arith.constant 0 : index
    %c0_237 = arith.constant 0 : index
    %469 = vector.load %arg4[%c0_236, %c0_237] : memref<32x512xf32, #tpu.memory_space<vmem>>, vector<32x512xf32>
    %cst_238 = arith.constant dense<0.000000e+00> : vector<8x512xf32>
    %470 = tpu.matmul %465, %469, %cst_238 {dimension_numbers = #tpu.dot_dimension_numbers<[1], [0], [0], [1], [0, 0, 1, 1], [], []>} : vector<8x32xf32>, vector<32x512xf32>, vector<8x512xf32> -> vector<8x512xf32>
    %471 = vector.extract_strided_slice %470 {offsets = [0, 0], sizes = [8, 128], strides = [1, 1]} : vector<8x512xf32> to vector<8x128xf32>
    %472 = vector.extract_strided_slice %470 {offsets = [0, 128], sizes = [8, 128], strides = [1, 1]} : vector<8x512xf32> to vector<8x128xf32>
    %473 = vector.extract_strided_slice %470 {offsets = [0, 256], sizes = [8, 128], strides = [1, 1]} : vector<8x512xf32> to vector<8x128xf32>
    %474 = vector.extract_strided_slice %470 {offsets = [0, 384], sizes = [8, 128], strides = [1, 1]} : vector<8x512xf32> to vector<8x128xf32>
    %475 = arith.index_cast %c4_i32 : i32 to index
    %c0_239 = arith.constant 0 : index
    %c0_240 = arith.constant 0 : index
    %476 = vector.load %arg14[%475, %c0_239, %c0_240] : memref<8x8x256xf32, #tpu.memory_space<vmem>>, vector<1x8x256xf32>
    %477 = vector.shape_cast %476 : vector<1x8x256xf32> to vector<8x256xf32>
    %478 = vector.extract_strided_slice %477 {offsets = [0, 0], sizes = [8, 128], strides = [1, 1]} : vector<8x256xf32> to vector<8x128xf32>
    %479 = vector.extract_strided_slice %477 {offsets = [0, 128], sizes = [8, 128], strides = [1, 1]} : vector<8x256xf32> to vector<8x128xf32>
    %480 = arith.addf %472, %479 : vector<8x128xf32>
    %cst_241 = arith.constant 0.000000e+00 : f32
    %481 = vector.broadcast %cst_241 : f32 to vector<8x128xf32>
    %482 = arith.maximumf %480, %481 : vector<8x128xf32>
    %c2_242 = arith.constant 2 : index
    %c0_243 = arith.constant 0 : index
    %c0_244 = arith.constant 0 : index
    %483 = vector.load %arg6[%c2_242, %c0_243, %c0_244] : memref<4x128x32xf32, #tpu.memory_space<vmem>>, vector<1x128x32xf32>
    %484 = vector.shape_cast %483 : vector<1x128x32xf32> to vector<128x32xf32>
    %cst_245 = arith.constant dense<0.000000e+00> : vector<8x32xf32>
    %485 = tpu.matmul %482, %484, %cst_245 {dimension_numbers = #tpu.dot_dimension_numbers<[1], [0], [0], [1], [0, 0, 1, 1], [], []>} : vector<8x128xf32>, vector<128x32xf32>, vector<8x32xf32> -> vector<8x32xf32>
    %c6_246 = arith.constant 6 : index
    %c0_247 = arith.constant 0 : index
    %486 = vector.load %arg11[%c6_246, %c0_247] : memref<8x32xf32, #tpu.memory_space<vmem>>, vector<1x32xf32>
    %487 = vector.broadcast %486 : vector<1x32xf32> to vector<8x32xf32>
    %488 = arith.addf %485, %487 : vector<8x32xf32>
    %c3_248 = arith.constant 3 : index
    %c0_249 = arith.constant 0 : index
    %c0_250 = arith.constant 0 : index
    %489 = vector.load %arg6[%c3_248, %c0_249, %c0_250] : memref<4x128x32xf32, #tpu.memory_space<vmem>>, vector<1x128x32xf32>
    %490 = vector.shape_cast %489 : vector<1x128x32xf32> to vector<128x32xf32>
    %cst_251 = arith.constant dense<0.000000e+00> : vector<8x32xf32>
    %491 = tpu.matmul %482, %490, %cst_251 {dimension_numbers = #tpu.dot_dimension_numbers<[1], [0], [0], [1], [0, 0, 1, 1], [], []>} : vector<8x128xf32>, vector<128x32xf32>, vector<8x32xf32> -> vector<8x32xf32>
    %c7_252 = arith.constant 7 : index
    %c0_253 = arith.constant 0 : index
    %492 = vector.load %arg11[%c7_252, %c0_253] : memref<8x32xf32, #tpu.memory_space<vmem>>, vector<1x32xf32>
    %493 = vector.broadcast %492 : vector<1x32xf32> to vector<8x32xf32>
    %494 = arith.addf %491, %493 : vector<8x32xf32>
    %cst_254 = arith.constant 5.000000e-01 : f32
    %495 = vector.broadcast %cst_254 : f32 to vector<8x32xf32>
    %496 = arith.addf %494, %495 : vector<8x32xf32>
    %cst_255 = arith.constant 0.000000e+00 : f32
    %497 = vector.broadcast %cst_255 : f32 to vector<8x32xf32>
    %498 = arith.maximumf %496, %497 : vector<8x32xf32>
    %499 = vector.broadcast %cst_255 : f32 to vector<8x32xf32>
    %500 = arith.subf %496, %499 : vector<8x32xf32>
    %501 = arith.cmpf one, %500, %500 : vector<8x32xf32>
    %502 = vector.broadcast %cst_255 : f32 to vector<8x32xf32>
    %503 = arith.addf %496, %502 : vector<8x32xf32>
    %504 = math.absf %500 : vector<8x32xf32>
    %cst_256 = arith.constant 0.000000e+00 : f32
    %505 = vector.broadcast %cst_256 : f32 to vector<8x32xf32>
    %506 = arith.subf %505, %504 : vector<8x32xf32>
    %507 = math.exp %506 : vector<8x32xf32>
    %508 = math.log1p %507 : vector<8x32xf32>
    %509 = arith.addf %498, %508 : vector<8x32xf32>
    %510 = arith.select %501, %503, %509 : vector<8x32xi1>, vector<8x32xf32>
    %cst_257 = arith.constant 0.000000e+00 : f32
    %511 = vector.broadcast %cst_257 : f32 to vector<8x32xf32>
    %512 = arith.maximumf %510, %511 : vector<8x32xf32>
    %513 = arith.mulf %512, %468 : vector<8x32xf32>
    %514 = arith.addf %488, %513 : vector<8x32xf32>
    %c1_258 = arith.constant 1 : index
    %c0_259 = arith.constant 0 : index
    %c0_260 = arith.constant 0 : index
    %515 = vector.load %arg7[%c1_258, %c0_259, %c0_260] : memref<3x32x32xf32, #tpu.memory_space<vmem>>, vector<1x32x32xf32>
    %516 = vector.shape_cast %515 : vector<1x32x32xf32> to vector<32x32xf32>
    %cst_261 = arith.constant dense<0.000000e+00> : vector<8x32xf32>
    %517 = tpu.matmul %514, %516, %cst_261 {dimension_numbers = #tpu.dot_dimension_numbers<[1], [0], [0], [1], [0, 0, 1, 1], [], []>} : vector<8x32xf32>, vector<32x32xf32>, vector<8x32xf32> -> vector<8x32xf32>
    %c2_262 = arith.constant 2 : index
    %c0_263 = arith.constant 0 : index
    %518 = vector.load %arg11[%c2_262, %c0_263] : memref<8x32xf32, #tpu.memory_space<vmem>>, vector<1x32xf32>
    %519 = vector.broadcast %518 : vector<1x32xf32> to vector<8x32xf32>
    %520 = arith.addf %517, %519 : vector<8x32xf32>
    %cst_264 = arith.constant 0.000000e+00 : f32
    %521 = vector.broadcast %cst_264 : f32 to vector<8x32xf32>
    %522 = arith.maximumf %520, %521 : vector<8x32xf32>
    %c2_265 = arith.constant 2 : index
    %c0_266 = arith.constant 0 : index
    %c0_267 = arith.constant 0 : index
    %523 = vector.load %arg7[%c2_265, %c0_266, %c0_267] : memref<3x32x32xf32, #tpu.memory_space<vmem>>, vector<1x32x32xf32>
    %524 = vector.shape_cast %523 : vector<1x32x32xf32> to vector<32x32xf32>
    %cst_268 = arith.constant dense<0.000000e+00> : vector<8x32xf32>
    %525 = tpu.matmul %522, %524, %cst_268 {dimension_numbers = #tpu.dot_dimension_numbers<[1], [0], [0], [1], [0, 0, 1, 1], [], []>} : vector<8x32xf32>, vector<32x32xf32>, vector<8x32xf32> -> vector<8x32xf32>
    %c3_269 = arith.constant 3 : index
    %c0_270 = arith.constant 0 : index
    %526 = vector.load %arg11[%c3_269, %c0_270] : memref<8x32xf32, #tpu.memory_space<vmem>>, vector<1x32xf32>
    %527 = vector.broadcast %526 : vector<1x32xf32> to vector<8x32xf32>
    %528 = arith.addf %525, %527 : vector<8x32xf32>
    %c1_271 = arith.constant 1 : index
    %c0_272 = arith.constant 0 : index
    %c0_273 = arith.constant 0 : index
    %529 = vector.load %arg5[%c1_271, %c0_272, %c0_273] : memref<2x32x256xf32, #tpu.memory_space<vmem>>, vector<1x32x256xf32>
    %530 = vector.shape_cast %529 : vector<1x32x256xf32> to vector<32x256xf32>
    %cst_274 = arith.constant dense<0.000000e+00> : vector<8x256xf32>
    %531 = tpu.matmul %528, %530, %cst_274 {dimension_numbers = #tpu.dot_dimension_numbers<[1], [0], [0], [1], [0, 0, 1, 1], [], []>} : vector<8x32xf32>, vector<32x256xf32>, vector<8x256xf32> -> vector<8x256xf32>
    %532 = vector.extract_strided_slice %531 {offsets = [0, 0], sizes = [8, 128], strides = [1, 1]} : vector<8x256xf32> to vector<8x128xf32>
    %533 = vector.extract_strided_slice %531 {offsets = [0, 128], sizes = [8, 128], strides = [1, 1]} : vector<8x256xf32> to vector<8x128xf32>
    %534 = arith.index_cast %c4_i32 : i32 to index
    %c0_275 = arith.constant 0 : index
    %c0_276 = arith.constant 0 : index
    %535 = vector.load %arg15[%534, %c0_275, %c0_276] : memref<8x8x128xf32, #tpu.memory_space<vmem>>, vector<1x8x128xf32>
    %536 = vector.shape_cast %535 : vector<1x8x128xf32> to vector<8x128xf32>
    %537 = vector.shape_cast %474 : vector<8x128xf32> to vector<1x8x128xf32>
    tpu.vector_store %arg15[%534, %c0_275, %c0_276], %537 {strides = array<i32>} : memref<8x8x128xf32, #tpu.memory_space<vmem>>, vector<1x8x128xf32>,
    %538 = arith.addf %473, %533 : vector<8x128xf32>
    %539 = arith.index_cast %c4_i32 : i32 to index
    %c0_277 = arith.constant 0 : index
    %c0_278 = arith.constant 0 : index
    %540 = vector.load %arg16[%539, %c0_277, %c0_278] : memref<8x8x128xf32, #tpu.memory_space<vmem>>, vector<1x8x128xf32>
    %541 = vector.shape_cast %540 : vector<1x8x128xf32> to vector<8x128xf32>
    %542 = vector.shape_cast %538 : vector<8x128xf32> to vector<1x8x128xf32>
    tpu.vector_store %arg16[%539, %c0_277, %c0_278], %542 {strides = array<i32>} : memref<8x8x128xf32, #tpu.memory_space<vmem>>, vector<1x8x128xf32>,
    %543 = arith.index_cast %c4_i32 : i32 to index
    %c0_279 = arith.constant 0 : index
    %c0_280 = arith.constant 0 : index
    %544 = vector.load %arg17[%543, %c0_279, %c0_280] : memref<8x8x32xf32, #tpu.memory_space<vmem>>, vector<1x8x32xf32>
    %545 = vector.shape_cast %544 : vector<1x8x32xf32> to vector<8x32xf32>
    %546 = vector.shape_cast %514 : vector<8x32xf32> to vector<1x8x32xf32>
    tpu.vector_store %arg17[%543, %c0_279, %c0_280], %546 {strides = array<i32>} : memref<8x8x32xf32, #tpu.memory_space<vmem>>, vector<1x8x32xf32>,
    %547 = arith.index_cast %c4_i32 : i32 to index
    %c0_281 = arith.constant 0 : index
    %c0_282 = arith.constant 0 : index
    %548 = vector.load %arg18[%547, %c0_281, %c0_282] : memref<8x8x32xf32, #tpu.memory_space<vmem>>, vector<1x8x32xf32>
    %549 = vector.shape_cast %548 : vector<1x8x32xf32> to vector<8x32xf32>
    %550 = vector.shape_cast %488 : vector<8x32xf32> to vector<1x8x32xf32>
    tpu.vector_store %arg18[%547, %c0_281, %c0_282], %550 {strides = array<i32>} : memref<8x8x32xf32, #tpu.memory_space<vmem>>, vector<1x8x32xf32>,
    %551 = arith.index_cast %c4_i32 : i32 to index
    %c0_283 = arith.constant 0 : index
    %c0_284 = arith.constant 0 : index
    %552 = vector.load %arg19[%551, %c0_283, %c0_284] : memref<8x8x32xf32, #tpu.memory_space<vmem>>, vector<1x8x32xf32>
    %553 = vector.shape_cast %552 : vector<1x8x32xf32> to vector<8x32xf32>
    %554 = vector.shape_cast %512 : vector<8x32xf32> to vector<1x8x32xf32>
    tpu.vector_store %arg19[%551, %c0_283, %c0_284], %554 {strides = array<i32>} : memref<8x8x32xf32, #tpu.memory_space<vmem>>, vector<1x8x32xf32>,
    %555 = arith.addf %471, %478 : vector<8x128xf32>
    %556 = arith.addf %555, %532 : vector<8x128xf32>
    %cst_285 = arith.constant 5.000000e-01 : f32
    %557 = vector.broadcast %cst_285 : f32 to vector<8x128xf32>
    %558 = arith.mulf %557, %556 : vector<8x128xf32>
    %559 = arith.select %27, %556, %558 : vector<8x128xi1>, vector<8x128xf32>
    %560 = math.tanh %559 : vector<8x128xf32>
    %cst_286 = arith.constant 5.000000e-01 : f32
    %561 = vector.broadcast %cst_286 : f32 to vector<8x128xf32>
    %562 = arith.mulf %561, %560 : vector<8x128xf32>
    %cst_287 = arith.constant 5.000000e-01 : f32
    %563 = vector.broadcast %cst_287 : f32 to vector<8x128xf32>
    %564 = arith.addf %562, %563 : vector<8x128xf32>
    %565 = arith.select %27, %560, %564 : vector<8x128xi1>, vector<8x128xf32>
    %566 = vector.extract_strided_slice %565 {offsets = [0, 0], sizes = [8, 32], strides = [1, 1]} : vector<8x128xf32> to vector<8x32xf32>
    %567 = vector.extract_strided_slice %565 {offsets = [0, 32], sizes = [8, 32], strides = [1, 1]} : vector<8x128xf32> to vector<8x32xf32>
    %568 = vector.extract_strided_slice %565 {offsets = [0, 64], sizes = [8, 32], strides = [1, 1]} : vector<8x128xf32> to vector<8x32xf32>
    %569 = vector.extract_strided_slice %565 {offsets = [0, 96], sizes = [8, 32], strides = [1, 1]} : vector<8x128xf32> to vector<8x32xf32>
    %570 = arith.mulf %567, %463 : vector<8x32xf32>
    %571 = arith.mulf %566, %568 : vector<8x32xf32>
    %572 = arith.addf %570, %571 : vector<8x32xf32>
    %573 = math.tanh %572 : vector<8x32xf32>
    %574 = arith.mulf %569, %573 : vector<8x32xf32>
    %c5_i32 = arith.constant 5 : i32
    %575 = arith.index_cast %c5_i32 : i32 to index
    %c0_288 = arith.constant 0 : index
    %c0_289 = arith.constant 0 : index
    %576 = vector.load %arg3[%575, %c0_288, %c0_289] : memref<8x8x32xf32, #tpu.memory_space<vmem>>, vector<1x8x32xf32>
    %577 = vector.shape_cast %576 : vector<1x8x32xf32> to vector<8x32xf32>
    %c0_290 = arith.constant 0 : index
    %c0_291 = arith.constant 0 : index
    %578 = vector.load %arg4[%c0_290, %c0_291] : memref<32x512xf32, #tpu.memory_space<vmem>>, vector<32x512xf32>
    %cst_292 = arith.constant dense<0.000000e+00> : vector<8x512xf32>
    %579 = tpu.matmul %574, %578, %cst_292 {dimension_numbers = #tpu.dot_dimension_numbers<[1], [0], [0], [1], [0, 0, 1, 1], [], []>} : vector<8x32xf32>, vector<32x512xf32>, vector<8x512xf32> -> vector<8x512xf32>
    %580 = vector.extract_strided_slice %579 {offsets = [0, 0], sizes = [8, 128], strides = [1, 1]} : vector<8x512xf32> to vector<8x128xf32>
    %581 = vector.extract_strided_slice %579 {offsets = [0, 128], sizes = [8, 128], strides = [1, 1]} : vector<8x512xf32> to vector<8x128xf32>
    %582 = vector.extract_strided_slice %579 {offsets = [0, 256], sizes = [8, 128], strides = [1, 1]} : vector<8x512xf32> to vector<8x128xf32>
    %583 = vector.extract_strided_slice %579 {offsets = [0, 384], sizes = [8, 128], strides = [1, 1]} : vector<8x512xf32> to vector<8x128xf32>
    %584 = arith.index_cast %c5_i32 : i32 to index
    %c0_293 = arith.constant 0 : index
    %c0_294 = arith.constant 0 : index
    %585 = vector.load %arg14[%584, %c0_293, %c0_294] : memref<8x8x256xf32, #tpu.memory_space<vmem>>, vector<1x8x256xf32>
    %586 = vector.shape_cast %585 : vector<1x8x256xf32> to vector<8x256xf32>
    %587 = vector.extract_strided_slice %586 {offsets = [0, 0], sizes = [8, 128], strides = [1, 1]} : vector<8x256xf32> to vector<8x128xf32>
    %588 = vector.extract_strided_slice %586 {offsets = [0, 128], sizes = [8, 128], strides = [1, 1]} : vector<8x256xf32> to vector<8x128xf32>
    %589 = arith.addf %581, %588 : vector<8x128xf32>
    %cst_295 = arith.constant 0.000000e+00 : f32
    %590 = vector.broadcast %cst_295 : f32 to vector<8x128xf32>
    %591 = arith.maximumf %589, %590 : vector<8x128xf32>
    %c2_296 = arith.constant 2 : index
    %c0_297 = arith.constant 0 : index
    %c0_298 = arith.constant 0 : index
    %592 = vector.load %arg6[%c2_296, %c0_297, %c0_298] : memref<4x128x32xf32, #tpu.memory_space<vmem>>, vector<1x128x32xf32>
    %593 = vector.shape_cast %592 : vector<1x128x32xf32> to vector<128x32xf32>
    %cst_299 = arith.constant dense<0.000000e+00> : vector<8x32xf32>
    %594 = tpu.matmul %591, %593, %cst_299 {dimension_numbers = #tpu.dot_dimension_numbers<[1], [0], [0], [1], [0, 0, 1, 1], [], []>} : vector<8x128xf32>, vector<128x32xf32>, vector<8x32xf32> -> vector<8x32xf32>
    %c6_300 = arith.constant 6 : index
    %c0_301 = arith.constant 0 : index
    %595 = vector.load %arg11[%c6_300, %c0_301] : memref<8x32xf32, #tpu.memory_space<vmem>>, vector<1x32xf32>
    %596 = vector.broadcast %595 : vector<1x32xf32> to vector<8x32xf32>
    %597 = arith.addf %594, %596 : vector<8x32xf32>
    %c3_302 = arith.constant 3 : index
    %c0_303 = arith.constant 0 : index
    %c0_304 = arith.constant 0 : index
    %598 = vector.load %arg6[%c3_302, %c0_303, %c0_304] : memref<4x128x32xf32, #tpu.memory_space<vmem>>, vector<1x128x32xf32>
    %599 = vector.shape_cast %598 : vector<1x128x32xf32> to vector<128x32xf32>
    %cst_305 = arith.constant dense<0.000000e+00> : vector<8x32xf32>
    %600 = tpu.matmul %591, %599, %cst_305 {dimension_numbers = #tpu.dot_dimension_numbers<[1], [0], [0], [1], [0, 0, 1, 1], [], []>} : vector<8x128xf32>, vector<128x32xf32>, vector<8x32xf32> -> vector<8x32xf32>
    %c7_306 = arith.constant 7 : index
    %c0_307 = arith.constant 0 : index
    %601 = vector.load %arg11[%c7_306, %c0_307] : memref<8x32xf32, #tpu.memory_space<vmem>>, vector<1x32xf32>
    %602 = vector.broadcast %601 : vector<1x32xf32> to vector<8x32xf32>
    %603 = arith.addf %600, %602 : vector<8x32xf32>
    %cst_308 = arith.constant 5.000000e-01 : f32
    %604 = vector.broadcast %cst_308 : f32 to vector<8x32xf32>
    %605 = arith.addf %603, %604 : vector<8x32xf32>
    %cst_309 = arith.constant 0.000000e+00 : f32
    %606 = vector.broadcast %cst_309 : f32 to vector<8x32xf32>
    %607 = arith.maximumf %605, %606 : vector<8x32xf32>
    %608 = vector.broadcast %cst_309 : f32 to vector<8x32xf32>
    %609 = arith.subf %605, %608 : vector<8x32xf32>
    %610 = arith.cmpf one, %609, %609 : vector<8x32xf32>
    %611 = vector.broadcast %cst_309 : f32 to vector<8x32xf32>
    %612 = arith.addf %605, %611 : vector<8x32xf32>
    %613 = math.absf %609 : vector<8x32xf32>
    %cst_310 = arith.constant 0.000000e+00 : f32
    %614 = vector.broadcast %cst_310 : f32 to vector<8x32xf32>
    %615 = arith.subf %614, %613 : vector<8x32xf32>
    %616 = math.exp %615 : vector<8x32xf32>
    %617 = math.log1p %616 : vector<8x32xf32>
    %618 = arith.addf %607, %617 : vector<8x32xf32>
    %619 = arith.select %610, %612, %618 : vector<8x32xi1>, vector<8x32xf32>
    %cst_311 = arith.constant 0.000000e+00 : f32
    %620 = vector.broadcast %cst_311 : f32 to vector<8x32xf32>
    %621 = arith.maximumf %619, %620 : vector<8x32xf32>
    %622 = arith.mulf %621, %577 : vector<8x32xf32>
    %623 = arith.addf %597, %622 : vector<8x32xf32>
    %c1_312 = arith.constant 1 : index
    %c0_313 = arith.constant 0 : index
    %c0_314 = arith.constant 0 : index
    %624 = vector.load %arg7[%c1_312, %c0_313, %c0_314] : memref<3x32x32xf32, #tpu.memory_space<vmem>>, vector<1x32x32xf32>
    %625 = vector.shape_cast %624 : vector<1x32x32xf32> to vector<32x32xf32>
    %cst_315 = arith.constant dense<0.000000e+00> : vector<8x32xf32>
    %626 = tpu.matmul %623, %625, %cst_315 {dimension_numbers = #tpu.dot_dimension_numbers<[1], [0], [0], [1], [0, 0, 1, 1], [], []>} : vector<8x32xf32>, vector<32x32xf32>, vector<8x32xf32> -> vector<8x32xf32>
    %c2_316 = arith.constant 2 : index
    %c0_317 = arith.constant 0 : index
    %627 = vector.load %arg11[%c2_316, %c0_317] : memref<8x32xf32, #tpu.memory_space<vmem>>, vector<1x32xf32>
    %628 = vector.broadcast %627 : vector<1x32xf32> to vector<8x32xf32>
    %629 = arith.addf %626, %628 : vector<8x32xf32>
    %cst_318 = arith.constant 0.000000e+00 : f32
    %630 = vector.broadcast %cst_318 : f32 to vector<8x32xf32>
    %631 = arith.maximumf %629, %630 : vector<8x32xf32>
    %c2_319 = arith.constant 2 : index
    %c0_320 = arith.constant 0 : index
    %c0_321 = arith.constant 0 : index
    %632 = vector.load %arg7[%c2_319, %c0_320, %c0_321] : memref<3x32x32xf32, #tpu.memory_space<vmem>>, vector<1x32x32xf32>
    %633 = vector.shape_cast %632 : vector<1x32x32xf32> to vector<32x32xf32>
    %cst_322 = arith.constant dense<0.000000e+00> : vector<8x32xf32>
    %634 = tpu.matmul %631, %633, %cst_322 {dimension_numbers = #tpu.dot_dimension_numbers<[1], [0], [0], [1], [0, 0, 1, 1], [], []>} : vector<8x32xf32>, vector<32x32xf32>, vector<8x32xf32> -> vector<8x32xf32>
    %c3_323 = arith.constant 3 : index
    %c0_324 = arith.constant 0 : index
    %635 = vector.load %arg11[%c3_323, %c0_324] : memref<8x32xf32, #tpu.memory_space<vmem>>, vector<1x32xf32>
    %636 = vector.broadcast %635 : vector<1x32xf32> to vector<8x32xf32>
    %637 = arith.addf %634, %636 : vector<8x32xf32>
    %c1_325 = arith.constant 1 : index
    %c0_326 = arith.constant 0 : index
    %c0_327 = arith.constant 0 : index
    %638 = vector.load %arg5[%c1_325, %c0_326, %c0_327] : memref<2x32x256xf32, #tpu.memory_space<vmem>>, vector<1x32x256xf32>
    %639 = vector.shape_cast %638 : vector<1x32x256xf32> to vector<32x256xf32>
    %cst_328 = arith.constant dense<0.000000e+00> : vector<8x256xf32>
    %640 = tpu.matmul %637, %639, %cst_328 {dimension_numbers = #tpu.dot_dimension_numbers<[1], [0], [0], [1], [0, 0, 1, 1], [], []>} : vector<8x32xf32>, vector<32x256xf32>, vector<8x256xf32> -> vector<8x256xf32>
    %641 = vector.extract_strided_slice %640 {offsets = [0, 0], sizes = [8, 128], strides = [1, 1]} : vector<8x256xf32> to vector<8x128xf32>
    %642 = vector.extract_strided_slice %640 {offsets = [0, 128], sizes = [8, 128], strides = [1, 1]} : vector<8x256xf32> to vector<8x128xf32>
    %643 = arith.index_cast %c5_i32 : i32 to index
    %c0_329 = arith.constant 0 : index
    %c0_330 = arith.constant 0 : index
    %644 = vector.load %arg15[%643, %c0_329, %c0_330] : memref<8x8x128xf32, #tpu.memory_space<vmem>>, vector<1x8x128xf32>
    %645 = vector.shape_cast %644 : vector<1x8x128xf32> to vector<8x128xf32>
    %646 = vector.shape_cast %583 : vector<8x128xf32> to vector<1x8x128xf32>
    tpu.vector_store %arg15[%643, %c0_329, %c0_330], %646 {strides = array<i32>} : memref<8x8x128xf32, #tpu.memory_space<vmem>>, vector<1x8x128xf32>,
    %647 = arith.addf %582, %642 : vector<8x128xf32>
    %648 = arith.index_cast %c5_i32 : i32 to index
    %c0_331 = arith.constant 0 : index
    %c0_332 = arith.constant 0 : index
    %649 = vector.load %arg16[%648, %c0_331, %c0_332] : memref<8x8x128xf32, #tpu.memory_space<vmem>>, vector<1x8x128xf32>
    %650 = vector.shape_cast %649 : vector<1x8x128xf32> to vector<8x128xf32>
    %651 = vector.shape_cast %647 : vector<8x128xf32> to vector<1x8x128xf32>
    tpu.vector_store %arg16[%648, %c0_331, %c0_332], %651 {strides = array<i32>} : memref<8x8x128xf32, #tpu.memory_space<vmem>>, vector<1x8x128xf32>,
    %652 = arith.index_cast %c5_i32 : i32 to index
    %c0_333 = arith.constant 0 : index
    %c0_334 = arith.constant 0 : index
    %653 = vector.load %arg17[%652, %c0_333, %c0_334] : memref<8x8x32xf32, #tpu.memory_space<vmem>>, vector<1x8x32xf32>
    %654 = vector.shape_cast %653 : vector<1x8x32xf32> to vector<8x32xf32>
    %655 = vector.shape_cast %623 : vector<8x32xf32> to vector<1x8x32xf32>
    tpu.vector_store %arg17[%652, %c0_333, %c0_334], %655 {strides = array<i32>} : memref<8x8x32xf32, #tpu.memory_space<vmem>>, vector<1x8x32xf32>,
    %656 = arith.index_cast %c5_i32 : i32 to index
    %c0_335 = arith.constant 0 : index
    %c0_336 = arith.constant 0 : index
    %657 = vector.load %arg18[%656, %c0_335, %c0_336] : memref<8x8x32xf32, #tpu.memory_space<vmem>>, vector<1x8x32xf32>
    %658 = vector.shape_cast %657 : vector<1x8x32xf32> to vector<8x32xf32>
    %659 = vector.shape_cast %597 : vector<8x32xf32> to vector<1x8x32xf32>
    tpu.vector_store %arg18[%656, %c0_335, %c0_336], %659 {strides = array<i32>} : memref<8x8x32xf32, #tpu.memory_space<vmem>>, vector<1x8x32xf32>,
    %660 = arith.index_cast %c5_i32 : i32 to index
    %c0_337 = arith.constant 0 : index
    %c0_338 = arith.constant 0 : index
    %661 = vector.load %arg19[%660, %c0_337, %c0_338] : memref<8x8x32xf32, #tpu.memory_space<vmem>>, vector<1x8x32xf32>
    %662 = vector.shape_cast %661 : vector<1x8x32xf32> to vector<8x32xf32>
    %663 = vector.shape_cast %621 : vector<8x32xf32> to vector<1x8x32xf32>
    tpu.vector_store %arg19[%660, %c0_337, %c0_338], %663 {strides = array<i32>} : memref<8x8x32xf32, #tpu.memory_space<vmem>>, vector<1x8x32xf32>,
    %664 = arith.addf %580, %587 : vector<8x128xf32>
    %665 = arith.addf %664, %641 : vector<8x128xf32>
    %cst_339 = arith.constant 5.000000e-01 : f32
    %666 = vector.broadcast %cst_339 : f32 to vector<8x128xf32>
    %667 = arith.mulf %666, %665 : vector<8x128xf32>
    %668 = arith.select %27, %665, %667 : vector<8x128xi1>, vector<8x128xf32>
    %669 = math.tanh %668 : vector<8x128xf32>
    %cst_340 = arith.constant 5.000000e-01 : f32
    %670 = vector.broadcast %cst_340 : f32 to vector<8x128xf32>
    %671 = arith.mulf %670, %669 : vector<8x128xf32>
    %cst_341 = arith.constant 5.000000e-01 : f32
    %672 = vector.broadcast %cst_341 : f32 to vector<8x128xf32>
    %673 = arith.addf %671, %672 : vector<8x128xf32>
    %674 = arith.select %27, %669, %673 : vector<8x128xi1>, vector<8x128xf32>
    %675 = vector.extract_strided_slice %674 {offsets = [0, 0], sizes = [8, 32], strides = [1, 1]} : vector<8x128xf32> to vector<8x32xf32>
    %676 = vector.extract_strided_slice %674 {offsets = [0, 32], sizes = [8, 32], strides = [1, 1]} : vector<8x128xf32> to vector<8x32xf32>
    %677 = vector.extract_strided_slice %674 {offsets = [0, 64], sizes = [8, 32], strides = [1, 1]} : vector<8x128xf32> to vector<8x32xf32>
    %678 = vector.extract_strided_slice %674 {offsets = [0, 96], sizes = [8, 32], strides = [1, 1]} : vector<8x128xf32> to vector<8x32xf32>
    %679 = arith.mulf %676, %572 : vector<8x32xf32>
    %680 = arith.mulf %675, %677 : vector<8x32xf32>
    %681 = arith.addf %679, %680 : vector<8x32xf32>
    %682 = math.tanh %681 : vector<8x32xf32>
    %683 = arith.mulf %678, %682 : vector<8x32xf32>
    %c6_i32 = arith.constant 6 : i32
    %684 = arith.index_cast %c6_i32 : i32 to index
    %c0_342 = arith.constant 0 : index
    %c0_343 = arith.constant 0 : index
    %685 = vector.load %arg3[%684, %c0_342, %c0_343] : memref<8x8x32xf32, #tpu.memory_space<vmem>>, vector<1x8x32xf32>
    %686 = vector.shape_cast %685 : vector<1x8x32xf32> to vector<8x32xf32>
    %c0_344 = arith.constant 0 : index
    %c0_345 = arith.constant 0 : index
    %687 = vector.load %arg4[%c0_344, %c0_345] : memref<32x512xf32, #tpu.memory_space<vmem>>, vector<32x512xf32>
    %cst_346 = arith.constant dense<0.000000e+00> : vector<8x512xf32>
    %688 = tpu.matmul %683, %687, %cst_346 {dimension_numbers = #tpu.dot_dimension_numbers<[1], [0], [0], [1], [0, 0, 1, 1], [], []>} : vector<8x32xf32>, vector<32x512xf32>, vector<8x512xf32> -> vector<8x512xf32>
    %689 = vector.extract_strided_slice %688 {offsets = [0, 0], sizes = [8, 128], strides = [1, 1]} : vector<8x512xf32> to vector<8x128xf32>
    %690 = vector.extract_strided_slice %688 {offsets = [0, 128], sizes = [8, 128], strides = [1, 1]} : vector<8x512xf32> to vector<8x128xf32>
    %691 = vector.extract_strided_slice %688 {offsets = [0, 256], sizes = [8, 128], strides = [1, 1]} : vector<8x512xf32> to vector<8x128xf32>
    %692 = vector.extract_strided_slice %688 {offsets = [0, 384], sizes = [8, 128], strides = [1, 1]} : vector<8x512xf32> to vector<8x128xf32>
    %693 = arith.index_cast %c6_i32 : i32 to index
    %c0_347 = arith.constant 0 : index
    %c0_348 = arith.constant 0 : index
    %694 = vector.load %arg14[%693, %c0_347, %c0_348] : memref<8x8x256xf32, #tpu.memory_space<vmem>>, vector<1x8x256xf32>
    %695 = vector.shape_cast %694 : vector<1x8x256xf32> to vector<8x256xf32>
    %696 = vector.extract_strided_slice %695 {offsets = [0, 0], sizes = [8, 128], strides = [1, 1]} : vector<8x256xf32> to vector<8x128xf32>
    %697 = vector.extract_strided_slice %695 {offsets = [0, 128], sizes = [8, 128], strides = [1, 1]} : vector<8x256xf32> to vector<8x128xf32>
    %698 = arith.addf %690, %697 : vector<8x128xf32>
    %cst_349 = arith.constant 0.000000e+00 : f32
    %699 = vector.broadcast %cst_349 : f32 to vector<8x128xf32>
    %700 = arith.maximumf %698, %699 : vector<8x128xf32>
    %c2_350 = arith.constant 2 : index
    %c0_351 = arith.constant 0 : index
    %c0_352 = arith.constant 0 : index
    %701 = vector.load %arg6[%c2_350, %c0_351, %c0_352] : memref<4x128x32xf32, #tpu.memory_space<vmem>>, vector<1x128x32xf32>
    %702 = vector.shape_cast %701 : vector<1x128x32xf32> to vector<128x32xf32>
    %cst_353 = arith.constant dense<0.000000e+00> : vector<8x32xf32>
    %703 = tpu.matmul %700, %702, %cst_353 {dimension_numbers = #tpu.dot_dimension_numbers<[1], [0], [0], [1], [0, 0, 1, 1], [], []>} : vector<8x128xf32>, vector<128x32xf32>, vector<8x32xf32> -> vector<8x32xf32>
    %c6_354 = arith.constant 6 : index
    %c0_355 = arith.constant 0 : index
    %704 = vector.load %arg11[%c6_354, %c0_355] : memref<8x32xf32, #tpu.memory_space<vmem>>, vector<1x32xf32>
    %705 = vector.broadcast %704 : vector<1x32xf32> to vector<8x32xf32>
    %706 = arith.addf %703, %705 : vector<8x32xf32>
    %c3_356 = arith.constant 3 : index
    %c0_357 = arith.constant 0 : index
    %c0_358 = arith.constant 0 : index
    %707 = vector.load %arg6[%c3_356, %c0_357, %c0_358] : memref<4x128x32xf32, #tpu.memory_space<vmem>>, vector<1x128x32xf32>
    %708 = vector.shape_cast %707 : vector<1x128x32xf32> to vector<128x32xf32>
    %cst_359 = arith.constant dense<0.000000e+00> : vector<8x32xf32>
    %709 = tpu.matmul %700, %708, %cst_359 {dimension_numbers = #tpu.dot_dimension_numbers<[1], [0], [0], [1], [0, 0, 1, 1], [], []>} : vector<8x128xf32>, vector<128x32xf32>, vector<8x32xf32> -> vector<8x32xf32>
    %c7_360 = arith.constant 7 : index
    %c0_361 = arith.constant 0 : index
    %710 = vector.load %arg11[%c7_360, %c0_361] : memref<8x32xf32, #tpu.memory_space<vmem>>, vector<1x32xf32>
    %711 = vector.broadcast %710 : vector<1x32xf32> to vector<8x32xf32>
    %712 = arith.addf %709, %711 : vector<8x32xf32>
    %cst_362 = arith.constant 5.000000e-01 : f32
    %713 = vector.broadcast %cst_362 : f32 to vector<8x32xf32>
    %714 = arith.addf %712, %713 : vector<8x32xf32>
    %cst_363 = arith.constant 0.000000e+00 : f32
    %715 = vector.broadcast %cst_363 : f32 to vector<8x32xf32>
    %716 = arith.maximumf %714, %715 : vector<8x32xf32>
    %717 = vector.broadcast %cst_363 : f32 to vector<8x32xf32>
    %718 = arith.subf %714, %717 : vector<8x32xf32>
    %719 = arith.cmpf one, %718, %718 : vector<8x32xf32>
    %720 = vector.broadcast %cst_363 : f32 to vector<8x32xf32>
    %721 = arith.addf %714, %720 : vector<8x32xf32>
    %722 = math.absf %718 : vector<8x32xf32>
    %cst_364 = arith.constant 0.000000e+00 : f32
    %723 = vector.broadcast %cst_364 : f32 to vector<8x32xf32>
    %724 = arith.subf %723, %722 : vector<8x32xf32>
    %725 = math.exp %724 : vector<8x32xf32>
    %726 = math.log1p %725 : vector<8x32xf32>
    %727 = arith.addf %716, %726 : vector<8x32xf32>
    %728 = arith.select %719, %721, %727 : vector<8x32xi1>, vector<8x32xf32>
    %cst_365 = arith.constant 0.000000e+00 : f32
    %729 = vector.broadcast %cst_365 : f32 to vector<8x32xf32>
    %730 = arith.maximumf %728, %729 : vector<8x32xf32>
    %731 = arith.mulf %730, %686 : vector<8x32xf32>
    %732 = arith.addf %706, %731 : vector<8x32xf32>
    %c1_366 = arith.constant 1 : index
    %c0_367 = arith.constant 0 : index
    %c0_368 = arith.constant 0 : index
    %733 = vector.load %arg7[%c1_366, %c0_367, %c0_368] : memref<3x32x32xf32, #tpu.memory_space<vmem>>, vector<1x32x32xf32>
    %734 = vector.shape_cast %733 : vector<1x32x32xf32> to vector<32x32xf32>
    %cst_369 = arith.constant dense<0.000000e+00> : vector<8x32xf32>
    %735 = tpu.matmul %732, %734, %cst_369 {dimension_numbers = #tpu.dot_dimension_numbers<[1], [0], [0], [1], [0, 0, 1, 1], [], []>} : vector<8x32xf32>, vector<32x32xf32>, vector<8x32xf32> -> vector<8x32xf32>
    %c2_370 = arith.constant 2 : index
    %c0_371 = arith.constant 0 : index
    %736 = vector.load %arg11[%c2_370, %c0_371] : memref<8x32xf32, #tpu.memory_space<vmem>>, vector<1x32xf32>
    %737 = vector.broadcast %736 : vector<1x32xf32> to vector<8x32xf32>
    %738 = arith.addf %735, %737 : vector<8x32xf32>
    %cst_372 = arith.constant 0.000000e+00 : f32
    %739 = vector.broadcast %cst_372 : f32 to vector<8x32xf32>
    %740 = arith.maximumf %738, %739 : vector<8x32xf32>
    %c2_373 = arith.constant 2 : index
    %c0_374 = arith.constant 0 : index
    %c0_375 = arith.constant 0 : index
    %741 = vector.load %arg7[%c2_373, %c0_374, %c0_375] : memref<3x32x32xf32, #tpu.memory_space<vmem>>, vector<1x32x32xf32>
    %742 = vector.shape_cast %741 : vector<1x32x32xf32> to vector<32x32xf32>
    %cst_376 = arith.constant dense<0.000000e+00> : vector<8x32xf32>
    %743 = tpu.matmul %740, %742, %cst_376 {dimension_numbers = #tpu.dot_dimension_numbers<[1], [0], [0], [1], [0, 0, 1, 1], [], []>} : vector<8x32xf32>, vector<32x32xf32>, vector<8x32xf32> -> vector<8x32xf32>
    %c3_377 = arith.constant 3 : index
    %c0_378 = arith.constant 0 : index
    %744 = vector.load %arg11[%c3_377, %c0_378] : memref<8x32xf32, #tpu.memory_space<vmem>>, vector<1x32xf32>
    %745 = vector.broadcast %744 : vector<1x32xf32> to vector<8x32xf32>
    %746 = arith.addf %743, %745 : vector<8x32xf32>
    %c1_379 = arith.constant 1 : index
    %c0_380 = arith.constant 0 : index
    %c0_381 = arith.constant 0 : index
    %747 = vector.load %arg5[%c1_379, %c0_380, %c0_381] : memref<2x32x256xf32, #tpu.memory_space<vmem>>, vector<1x32x256xf32>
    %748 = vector.shape_cast %747 : vector<1x32x256xf32> to vector<32x256xf32>
    %cst_382 = arith.constant dense<0.000000e+00> : vector<8x256xf32>
    %749 = tpu.matmul %746, %748, %cst_382 {dimension_numbers = #tpu.dot_dimension_numbers<[1], [0], [0], [1], [0, 0, 1, 1], [], []>} : vector<8x32xf32>, vector<32x256xf32>, vector<8x256xf32> -> vector<8x256xf32>
    %750 = vector.extract_strided_slice %749 {offsets = [0, 0], sizes = [8, 128], strides = [1, 1]} : vector<8x256xf32> to vector<8x128xf32>
    %751 = vector.extract_strided_slice %749 {offsets = [0, 128], sizes = [8, 128], strides = [1, 1]} : vector<8x256xf32> to vector<8x128xf32>
    %752 = arith.index_cast %c6_i32 : i32 to index
    %c0_383 = arith.constant 0 : index
    %c0_384 = arith.constant 0 : index
    %753 = vector.load %arg15[%752, %c0_383, %c0_384] : memref<8x8x128xf32, #tpu.memory_space<vmem>>, vector<1x8x128xf32>
    %754 = vector.shape_cast %753 : vector<1x8x128xf32> to vector<8x128xf32>
    %755 = vector.shape_cast %692 : vector<8x128xf32> to vector<1x8x128xf32>
    tpu.vector_store %arg15[%752, %c0_383, %c0_384], %755 {strides = array<i32>} : memref<8x8x128xf32, #tpu.memory_space<vmem>>, vector<1x8x128xf32>,
    %756 = arith.addf %691, %751 : vector<8x128xf32>
    %757 = arith.index_cast %c6_i32 : i32 to index
    %c0_385 = arith.constant 0 : index
    %c0_386 = arith.constant 0 : index
    %758 = vector.load %arg16[%757, %c0_385, %c0_386] : memref<8x8x128xf32, #tpu.memory_space<vmem>>, vector<1x8x128xf32>
    %759 = vector.shape_cast %758 : vector<1x8x128xf32> to vector<8x128xf32>
    %760 = vector.shape_cast %756 : vector<8x128xf32> to vector<1x8x128xf32>
    tpu.vector_store %arg16[%757, %c0_385, %c0_386], %760 {strides = array<i32>} : memref<8x8x128xf32, #tpu.memory_space<vmem>>, vector<1x8x128xf32>,
    %761 = arith.index_cast %c6_i32 : i32 to index
    %c0_387 = arith.constant 0 : index
    %c0_388 = arith.constant 0 : index
    %762 = vector.load %arg17[%761, %c0_387, %c0_388] : memref<8x8x32xf32, #tpu.memory_space<vmem>>, vector<1x8x32xf32>
    %763 = vector.shape_cast %762 : vector<1x8x32xf32> to vector<8x32xf32>
    %764 = vector.shape_cast %732 : vector<8x32xf32> to vector<1x8x32xf32>
    tpu.vector_store %arg17[%761, %c0_387, %c0_388], %764 {strides = array<i32>} : memref<8x8x32xf32, #tpu.memory_space<vmem>>, vector<1x8x32xf32>,
    %765 = arith.index_cast %c6_i32 : i32 to index
    %c0_389 = arith.constant 0 : index
    %c0_390 = arith.constant 0 : index
    %766 = vector.load %arg18[%765, %c0_389, %c0_390] : memref<8x8x32xf32, #tpu.memory_space<vmem>>, vector<1x8x32xf32>
    %767 = vector.shape_cast %766 : vector<1x8x32xf32> to vector<8x32xf32>
    %768 = vector.shape_cast %706 : vector<8x32xf32> to vector<1x8x32xf32>
    tpu.vector_store %arg18[%765, %c0_389, %c0_390], %768 {strides = array<i32>} : memref<8x8x32xf32, #tpu.memory_space<vmem>>, vector<1x8x32xf32>,
    %769 = arith.index_cast %c6_i32 : i32 to index
    %c0_391 = arith.constant 0 : index
    %c0_392 = arith.constant 0 : index
    %770 = vector.load %arg19[%769, %c0_391, %c0_392] : memref<8x8x32xf32, #tpu.memory_space<vmem>>, vector<1x8x32xf32>
    %771 = vector.shape_cast %770 : vector<1x8x32xf32> to vector<8x32xf32>
    %772 = vector.shape_cast %730 : vector<8x32xf32> to vector<1x8x32xf32>
    tpu.vector_store %arg19[%769, %c0_391, %c0_392], %772 {strides = array<i32>} : memref<8x8x32xf32, #tpu.memory_space<vmem>>, vector<1x8x32xf32>,
    %773 = arith.addf %689, %696 : vector<8x128xf32>
    %774 = arith.addf %773, %750 : vector<8x128xf32>
    %cst_393 = arith.constant 5.000000e-01 : f32
    %775 = vector.broadcast %cst_393 : f32 to vector<8x128xf32>
    %776 = arith.mulf %775, %774 : vector<8x128xf32>
    %777 = arith.select %27, %774, %776 : vector<8x128xi1>, vector<8x128xf32>
    %778 = math.tanh %777 : vector<8x128xf32>
    %cst_394 = arith.constant 5.000000e-01 : f32
    %779 = vector.broadcast %cst_394 : f32 to vector<8x128xf32>
    %780 = arith.mulf %779, %778 : vector<8x128xf32>
    %cst_395 = arith.constant 5.000000e-01 : f32
    %781 = vector.broadcast %cst_395 : f32 to vector<8x128xf32>
    %782 = arith.addf %780, %781 : vector<8x128xf32>
    %783 = arith.select %27, %778, %782 : vector<8x128xi1>, vector<8x128xf32>
    %784 = vector.extract_strided_slice %783 {offsets = [0, 0], sizes = [8, 32], strides = [1, 1]} : vector<8x128xf32> to vector<8x32xf32>
    %785 = vector.extract_strided_slice %783 {offsets = [0, 32], sizes = [8, 32], strides = [1, 1]} : vector<8x128xf32> to vector<8x32xf32>
    %786 = vector.extract_strided_slice %783 {offsets = [0, 64], sizes = [8, 32], strides = [1, 1]} : vector<8x128xf32> to vector<8x32xf32>
    %787 = vector.extract_strided_slice %783 {offsets = [0, 96], sizes = [8, 32], strides = [1, 1]} : vector<8x128xf32> to vector<8x32xf32>
    %788 = arith.mulf %785, %681 : vector<8x32xf32>
    %789 = arith.mulf %784, %786 : vector<8x32xf32>
    %790 = arith.addf %788, %789 : vector<8x32xf32>
    %791 = math.tanh %790 : vector<8x32xf32>
    %792 = arith.mulf %787, %791 : vector<8x32xf32>
    %c7_i32 = arith.constant 7 : i32
    %793 = arith.index_cast %c7_i32 : i32 to index
    %c0_396 = arith.constant 0 : index
    %c0_397 = arith.constant 0 : index
    %794 = vector.load %arg3[%793, %c0_396, %c0_397] : memref<8x8x32xf32, #tpu.memory_space<vmem>>, vector<1x8x32xf32>
    %795 = vector.shape_cast %794 : vector<1x8x32xf32> to vector<8x32xf32>
    %c0_398 = arith.constant 0 : index
    %c0_399 = arith.constant 0 : index
    %796 = vector.load %arg4[%c0_398, %c0_399] : memref<32x512xf32, #tpu.memory_space<vmem>>, vector<32x512xf32>
    %cst_400 = arith.constant dense<0.000000e+00> : vector<8x512xf32>
    %797 = tpu.matmul %792, %796, %cst_400 {dimension_numbers = #tpu.dot_dimension_numbers<[1], [0], [0], [1], [0, 0, 1, 1], [], []>} : vector<8x32xf32>, vector<32x512xf32>, vector<8x512xf32> -> vector<8x512xf32>
    %798 = vector.extract_strided_slice %797 {offsets = [0, 0], sizes = [8, 128], strides = [1, 1]} : vector<8x512xf32> to vector<8x128xf32>
    %799 = vector.extract_strided_slice %797 {offsets = [0, 128], sizes = [8, 128], strides = [1, 1]} : vector<8x512xf32> to vector<8x128xf32>
    %800 = vector.extract_strided_slice %797 {offsets = [0, 256], sizes = [8, 128], strides = [1, 1]} : vector<8x512xf32> to vector<8x128xf32>
    %801 = vector.extract_strided_slice %797 {offsets = [0, 384], sizes = [8, 128], strides = [1, 1]} : vector<8x512xf32> to vector<8x128xf32>
    %802 = arith.index_cast %c7_i32 : i32 to index
    %c0_401 = arith.constant 0 : index
    %c0_402 = arith.constant 0 : index
    %803 = vector.load %arg14[%802, %c0_401, %c0_402] : memref<8x8x256xf32, #tpu.memory_space<vmem>>, vector<1x8x256xf32>
    %804 = vector.shape_cast %803 : vector<1x8x256xf32> to vector<8x256xf32>
    %805 = vector.extract_strided_slice %804 {offsets = [0, 0], sizes = [8, 128], strides = [1, 1]} : vector<8x256xf32> to vector<8x128xf32>
    %806 = vector.extract_strided_slice %804 {offsets = [0, 128], sizes = [8, 128], strides = [1, 1]} : vector<8x256xf32> to vector<8x128xf32>
    %807 = arith.addf %799, %806 : vector<8x128xf32>
    %cst_403 = arith.constant 0.000000e+00 : f32
    %808 = vector.broadcast %cst_403 : f32 to vector<8x128xf32>
    %809 = arith.maximumf %807, %808 : vector<8x128xf32>
    %c2_404 = arith.constant 2 : index
    %c0_405 = arith.constant 0 : index
    %c0_406 = arith.constant 0 : index
    %810 = vector.load %arg6[%c2_404, %c0_405, %c0_406] : memref<4x128x32xf32, #tpu.memory_space<vmem>>, vector<1x128x32xf32>
    %811 = vector.shape_cast %810 : vector<1x128x32xf32> to vector<128x32xf32>
    %cst_407 = arith.constant dense<0.000000e+00> : vector<8x32xf32>
    %812 = tpu.matmul %809, %811, %cst_407 {dimension_numbers = #tpu.dot_dimension_numbers<[1], [0], [0], [1], [0, 0, 1, 1], [], []>} : vector<8x128xf32>, vector<128x32xf32>, vector<8x32xf32> -> vector<8x32xf32>
    %c6_408 = arith.constant 6 : index
    %c0_409 = arith.constant 0 : index
    %813 = vector.load %arg11[%c6_408, %c0_409] : memref<8x32xf32, #tpu.memory_space<vmem>>, vector<1x32xf32>
    %814 = vector.broadcast %813 : vector<1x32xf32> to vector<8x32xf32>
    %815 = arith.addf %812, %814 : vector<8x32xf32>
    %c3_410 = arith.constant 3 : index
    %c0_411 = arith.constant 0 : index
    %c0_412 = arith.constant 0 : index
    %816 = vector.load %arg6[%c3_410, %c0_411, %c0_412] : memref<4x128x32xf32, #tpu.memory_space<vmem>>, vector<1x128x32xf32>
    %817 = vector.shape_cast %816 : vector<1x128x32xf32> to vector<128x32xf32>
    %cst_413 = arith.constant dense<0.000000e+00> : vector<8x32xf32>
    %818 = tpu.matmul %809, %817, %cst_413 {dimension_numbers = #tpu.dot_dimension_numbers<[1], [0], [0], [1], [0, 0, 1, 1], [], []>} : vector<8x128xf32>, vector<128x32xf32>, vector<8x32xf32> -> vector<8x32xf32>
    %c7_414 = arith.constant 7 : index
    %c0_415 = arith.constant 0 : index
    %819 = vector.load %arg11[%c7_414, %c0_415] : memref<8x32xf32, #tpu.memory_space<vmem>>, vector<1x32xf32>
    %820 = vector.broadcast %819 : vector<1x32xf32> to vector<8x32xf32>
    %821 = arith.addf %818, %820 : vector<8x32xf32>
    %cst_416 = arith.constant 5.000000e-01 : f32
    %822 = vector.broadcast %cst_416 : f32 to vector<8x32xf32>
    %823 = arith.addf %821, %822 : vector<8x32xf32>
    %cst_417 = arith.constant 0.000000e+00 : f32
    %824 = vector.broadcast %cst_417 : f32 to vector<8x32xf32>
    %825 = arith.maximumf %823, %824 : vector<8x32xf32>
    %826 = vector.broadcast %cst_417 : f32 to vector<8x32xf32>
    %827 = arith.subf %823, %826 : vector<8x32xf32>
    %828 = arith.cmpf one, %827, %827 : vector<8x32xf32>
    %829 = vector.broadcast %cst_417 : f32 to vector<8x32xf32>
    %830 = arith.addf %823, %829 : vector<8x32xf32>
    %831 = math.absf %827 : vector<8x32xf32>
    %cst_418 = arith.constant 0.000000e+00 : f32
    %832 = vector.broadcast %cst_418 : f32 to vector<8x32xf32>
    %833 = arith.subf %832, %831 : vector<8x32xf32>
    %834 = math.exp %833 : vector<8x32xf32>
    %835 = math.log1p %834 : vector<8x32xf32>
    %836 = arith.addf %825, %835 : vector<8x32xf32>
    %837 = arith.select %828, %830, %836 : vector<8x32xi1>, vector<8x32xf32>
    %cst_419 = arith.constant 0.000000e+00 : f32
    %838 = vector.broadcast %cst_419 : f32 to vector<8x32xf32>
    %839 = arith.maximumf %837, %838 : vector<8x32xf32>
    %840 = arith.mulf %839, %795 : vector<8x32xf32>
    %841 = arith.addf %815, %840 : vector<8x32xf32>
    %c1_420 = arith.constant 1 : index
    %c0_421 = arith.constant 0 : index
    %c0_422 = arith.constant 0 : index
    %842 = vector.load %arg7[%c1_420, %c0_421, %c0_422] : memref<3x32x32xf32, #tpu.memory_space<vmem>>, vector<1x32x32xf32>
    %843 = vector.shape_cast %842 : vector<1x32x32xf32> to vector<32x32xf32>
    %cst_423 = arith.constant dense<0.000000e+00> : vector<8x32xf32>
    %844 = tpu.matmul %841, %843, %cst_423 {dimension_numbers = #tpu.dot_dimension_numbers<[1], [0], [0], [1], [0, 0, 1, 1], [], []>} : vector<8x32xf32>, vector<32x32xf32>, vector<8x32xf32> -> vector<8x32xf32>
    %c2_424 = arith.constant 2 : index
    %c0_425 = arith.constant 0 : index
    %845 = vector.load %arg11[%c2_424, %c0_425] : memref<8x32xf32, #tpu.memory_space<vmem>>, vector<1x32xf32>
    %846 = vector.broadcast %845 : vector<1x32xf32> to vector<8x32xf32>
    %847 = arith.addf %844, %846 : vector<8x32xf32>
    %cst_426 = arith.constant 0.000000e+00 : f32
    %848 = vector.broadcast %cst_426 : f32 to vector<8x32xf32>
    %849 = arith.maximumf %847, %848 : vector<8x32xf32>
    %c2_427 = arith.constant 2 : index
    %c0_428 = arith.constant 0 : index
    %c0_429 = arith.constant 0 : index
    %850 = vector.load %arg7[%c2_427, %c0_428, %c0_429] : memref<3x32x32xf32, #tpu.memory_space<vmem>>, vector<1x32x32xf32>
    %851 = vector.shape_cast %850 : vector<1x32x32xf32> to vector<32x32xf32>
    %cst_430 = arith.constant dense<0.000000e+00> : vector<8x32xf32>
    %852 = tpu.matmul %849, %851, %cst_430 {dimension_numbers = #tpu.dot_dimension_numbers<[1], [0], [0], [1], [0, 0, 1, 1], [], []>} : vector<8x32xf32>, vector<32x32xf32>, vector<8x32xf32> -> vector<8x32xf32>
    %c3_431 = arith.constant 3 : index
    %c0_432 = arith.constant 0 : index
    %853 = vector.load %arg11[%c3_431, %c0_432] : memref<8x32xf32, #tpu.memory_space<vmem>>, vector<1x32xf32>
    %854 = vector.broadcast %853 : vector<1x32xf32> to vector<8x32xf32>
    %855 = arith.addf %852, %854 : vector<8x32xf32>
    %c1_433 = arith.constant 1 : index
    %c0_434 = arith.constant 0 : index
    %c0_435 = arith.constant 0 : index
    %856 = vector.load %arg5[%c1_433, %c0_434, %c0_435] : memref<2x32x256xf32, #tpu.memory_space<vmem>>, vector<1x32x256xf32>
    %857 = vector.shape_cast %856 : vector<1x32x256xf32> to vector<32x256xf32>
    %cst_436 = arith.constant dense<0.000000e+00> : vector<8x256xf32>
    %858 = tpu.matmul %855, %857, %cst_436 {dimension_numbers = #tpu.dot_dimension_numbers<[1], [0], [0], [1], [0, 0, 1, 1], [], []>} : vector<8x32xf32>, vector<32x256xf32>, vector<8x256xf32> -> vector<8x256xf32>
    %859 = vector.extract_strided_slice %858 {offsets = [0, 0], sizes = [8, 128], strides = [1, 1]} : vector<8x256xf32> to vector<8x128xf32>
    %860 = vector.extract_strided_slice %858 {offsets = [0, 128], sizes = [8, 128], strides = [1, 1]} : vector<8x256xf32> to vector<8x128xf32>
    %861 = arith.index_cast %c7_i32 : i32 to index
    %c0_437 = arith.constant 0 : index
    %c0_438 = arith.constant 0 : index
    %862 = vector.load %arg15[%861, %c0_437, %c0_438] : memref<8x8x128xf32, #tpu.memory_space<vmem>>, vector<1x8x128xf32>
    %863 = vector.shape_cast %862 : vector<1x8x128xf32> to vector<8x128xf32>
    %864 = vector.shape_cast %801 : vector<8x128xf32> to vector<1x8x128xf32>
    tpu.vector_store %arg15[%861, %c0_437, %c0_438], %864 {strides = array<i32>} : memref<8x8x128xf32, #tpu.memory_space<vmem>>, vector<1x8x128xf32>,
    %865 = arith.addf %800, %860 : vector<8x128xf32>
    %866 = arith.index_cast %c7_i32 : i32 to index
    %c0_439 = arith.constant 0 : index
    %c0_440 = arith.constant 0 : index
    %867 = vector.load %arg16[%866, %c0_439, %c0_440] : memref<8x8x128xf32, #tpu.memory_space<vmem>>, vector<1x8x128xf32>
    %868 = vector.shape_cast %867 : vector<1x8x128xf32> to vector<8x128xf32>
    %869 = vector.shape_cast %865 : vector<8x128xf32> to vector<1x8x128xf32>
    tpu.vector_store %arg16[%866, %c0_439, %c0_440], %869 {strides = array<i32>} : memref<8x8x128xf32, #tpu.memory_space<vmem>>, vector<1x8x128xf32>,
    %870 = arith.index_cast %c7_i32 : i32 to index
    %c0_441 = arith.constant 0 : index
    %c0_442 = arith.constant 0 : index
    %871 = vector.load %arg17[%870, %c0_441, %c0_442] : memref<8x8x32xf32, #tpu.memory_space<vmem>>, vector<1x8x32xf32>
    %872 = vector.shape_cast %871 : vector<1x8x32xf32> to vector<8x32xf32>
    %873 = vector.shape_cast %841 : vector<8x32xf32> to vector<1x8x32xf32>
    tpu.vector_store %arg17[%870, %c0_441, %c0_442], %873 {strides = array<i32>} : memref<8x8x32xf32, #tpu.memory_space<vmem>>, vector<1x8x32xf32>,
    %874 = arith.index_cast %c7_i32 : i32 to index
    %c0_443 = arith.constant 0 : index
    %c0_444 = arith.constant 0 : index
    %875 = vector.load %arg18[%874, %c0_443, %c0_444] : memref<8x8x32xf32, #tpu.memory_space<vmem>>, vector<1x8x32xf32>
    %876 = vector.shape_cast %875 : vector<1x8x32xf32> to vector<8x32xf32>
    %877 = vector.shape_cast %815 : vector<8x32xf32> to vector<1x8x32xf32>
    tpu.vector_store %arg18[%874, %c0_443, %c0_444], %877 {strides = array<i32>} : memref<8x8x32xf32, #tpu.memory_space<vmem>>, vector<1x8x32xf32>,
    %878 = arith.index_cast %c7_i32 : i32 to index
    %c0_445 = arith.constant 0 : index
    %c0_446 = arith.constant 0 : index
    %879 = vector.load %arg19[%878, %c0_445, %c0_446] : memref<8x8x32xf32, #tpu.memory_space<vmem>>, vector<1x8x32xf32>
    %880 = vector.shape_cast %879 : vector<1x8x32xf32> to vector<8x32xf32>
    %881 = vector.shape_cast %839 : vector<8x32xf32> to vector<1x8x32xf32>
    tpu.vector_store %arg19[%878, %c0_445, %c0_446], %881 {strides = array<i32>} : memref<8x8x32xf32, #tpu.memory_space<vmem>>, vector<1x8x32xf32>,
    %882 = arith.addf %798, %805 : vector<8x128xf32>
    %883 = arith.addf %882, %859 : vector<8x128xf32>
    %cst_447 = arith.constant 5.000000e-01 : f32
    %884 = vector.broadcast %cst_447 : f32 to vector<8x128xf32>
    %885 = arith.mulf %884, %883 : vector<8x128xf32>
    %886 = arith.select %27, %883, %885 : vector<8x128xi1>, vector<8x128xf32>
    %887 = math.tanh %886 : vector<8x128xf32>
    %cst_448 = arith.constant 5.000000e-01 : f32
    %888 = vector.broadcast %cst_448 : f32 to vector<8x128xf32>
    %889 = arith.mulf %888, %887 : vector<8x128xf32>
    %cst_449 = arith.constant 5.000000e-01 : f32
    %890 = vector.broadcast %cst_449 : f32 to vector<8x128xf32>
    %891 = arith.addf %889, %890 : vector<8x128xf32>
    %892 = arith.select %27, %887, %891 : vector<8x128xi1>, vector<8x128xf32>
    %893 = vector.extract_strided_slice %892 {offsets = [0, 0], sizes = [8, 32], strides = [1, 1]} : vector<8x128xf32> to vector<8x32xf32>
    %894 = vector.extract_strided_slice %892 {offsets = [0, 32], sizes = [8, 32], strides = [1, 1]} : vector<8x128xf32> to vector<8x32xf32>
    %895 = vector.extract_strided_slice %892 {offsets = [0, 64], sizes = [8, 32], strides = [1, 1]} : vector<8x128xf32> to vector<8x32xf32>
    %896 = vector.extract_strided_slice %892 {offsets = [0, 96], sizes = [8, 32], strides = [1, 1]} : vector<8x128xf32> to vector<8x32xf32>
    %897 = arith.mulf %894, %790 : vector<8x32xf32>
    %898 = arith.mulf %893, %895 : vector<8x32xf32>
    %899 = arith.addf %897, %898 : vector<8x32xf32>
    %900 = math.tanh %899 : vector<8x32xf32>
    %901 = arith.mulf %896, %900 : vector<8x32xf32>
    %c8_i32 = arith.constant 8 : i32
    %c1_450 = arith.constant 1 : index
    %c0_451 = arith.constant 0 : index
    %902 = vector.load %arg10[%c1_450, %c0_451] : memref<2x256xf32, #tpu.memory_space<vmem>>, vector<1x128xf32>
    %c1_452 = arith.constant 1 : index
    %c128 = arith.constant 128 : index
    %903 = vector.load %arg10[%c1_452, %c128] : memref<2x256xf32, #tpu.memory_space<vmem>>, vector<1x128xf32>
    %c0_453 = arith.constant 0 : index
    %c0_454 = arith.constant 0 : index
    %c0_455 = arith.constant 0 : index
    %904 = vector.load %arg15[%c0_453, %c0_454, %c0_455] : memref<8x8x128xf32, #tpu.memory_space<vmem>>, vector<8x8x128xf32>
    %905 = vector.shape_cast %904 : vector<8x8x128xf32> to vector<64x128xf32>
    %906 = vector.broadcast %902 : vector<1x128xf32> to vector<64x128xf32>
    %907 = arith.addf %905, %906 : vector<64x128xf32>
    %cst_456 = arith.constant 0.000000e+00 : f32
    %908 = vector.broadcast %cst_456 : f32 to vector<64x128xf32>
    %909 = arith.maximumf %907, %908 : vector<64x128xf32>
    %c0_457 = arith.constant 0 : index
    %c0_458 = arith.constant 0 : index
    %c0_459 = arith.constant 0 : index
    %910 = vector.load %arg6[%c0_457, %c0_458, %c0_459] : memref<4x128x32xf32, #tpu.memory_space<vmem>>, vector<1x128x32xf32>
    %911 = vector.shape_cast %910 : vector<1x128x32xf32> to vector<128x32xf32>
    %cst_460 = arith.constant dense<0.000000e+00> : vector<64x32xf32>
    %912 = tpu.matmul %909, %911, %cst_460 {dimension_numbers = #tpu.dot_dimension_numbers<[1], [0], [0], [1], [0, 0, 1, 1], [], []>} : vector<64x128xf32>, vector<128x32xf32>, vector<64x32xf32> -> vector<64x32xf32>
    %c4 = arith.constant 4 : index
    %c0_461 = arith.constant 0 : index
    %913 = vector.load %arg11[%c4, %c0_461] : memref<8x32xf32, #tpu.memory_space<vmem>>, vector<1x32xf32>
    %914 = vector.broadcast %913 : vector<1x32xf32> to vector<64x32xf32>
    %915 = arith.addf %912, %914 : vector<64x32xf32>
    %c1_462 = arith.constant 1 : index
    %c0_463 = arith.constant 0 : index
    %c0_464 = arith.constant 0 : index
    %916 = vector.load %arg6[%c1_462, %c0_463, %c0_464] : memref<4x128x32xf32, #tpu.memory_space<vmem>>, vector<1x128x32xf32>
    %917 = vector.shape_cast %916 : vector<1x128x32xf32> to vector<128x32xf32>
    %cst_465 = arith.constant dense<0.000000e+00> : vector<64x32xf32>
    %918 = tpu.matmul %909, %917, %cst_465 {dimension_numbers = #tpu.dot_dimension_numbers<[1], [0], [0], [1], [0, 0, 1, 1], [], []>} : vector<64x128xf32>, vector<128x32xf32>, vector<64x32xf32> -> vector<64x32xf32>
    %c5 = arith.constant 5 : index
    %c0_466 = arith.constant 0 : index
    %919 = vector.load %arg11[%c5, %c0_466] : memref<8x32xf32, #tpu.memory_space<vmem>>, vector<1x32xf32>
    %920 = vector.broadcast %919 : vector<1x32xf32> to vector<64x32xf32>
    %921 = arith.addf %918, %920 : vector<64x32xf32>
    %cst_467 = arith.constant 5.000000e-01 : f32
    %922 = vector.broadcast %cst_467 : f32 to vector<64x32xf32>
    %923 = arith.addf %921, %922 : vector<64x32xf32>
    %cst_468 = arith.constant 0.000000e+00 : f32
    %924 = vector.broadcast %cst_468 : f32 to vector<64x32xf32>
    %925 = arith.maximumf %923, %924 : vector<64x32xf32>
    %926 = vector.broadcast %cst_468 : f32 to vector<64x32xf32>
    %927 = arith.subf %923, %926 : vector<64x32xf32>
    %928 = arith.cmpf one, %927, %927 : vector<64x32xf32>
    %929 = vector.broadcast %cst_468 : f32 to vector<64x32xf32>
    %930 = arith.addf %923, %929 : vector<64x32xf32>
    %931 = math.absf %927 : vector<64x32xf32>
    %cst_469 = arith.constant 0.000000e+00 : f32
    %932 = vector.broadcast %cst_469 : f32 to vector<64x32xf32>
    %933 = arith.subf %932, %931 : vector<64x32xf32>
    %934 = math.exp %933 : vector<64x32xf32>
    %935 = math.log1p %934 : vector<64x32xf32>
    %936 = arith.addf %925, %935 : vector<64x32xf32>
    %937 = arith.select %928, %930, %936 : vector<64x32xi1>, vector<64x32xf32>
    %cst_470 = arith.constant 0.000000e+00 : f32
    %938 = vector.broadcast %cst_470 : f32 to vector<64x32xf32>
    %939 = arith.maximumf %937, %938 : vector<64x32xf32>
    %c0_471 = arith.constant 0 : index
    %c0_472 = arith.constant 0 : index
    %c0_473 = arith.constant 0 : index
    %940 = vector.load %arg16[%c0_471, %c0_472, %c0_473] : memref<8x8x128xf32, #tpu.memory_space<vmem>>, vector<8x8x128xf32>
    %941 = vector.shape_cast %940 : vector<8x8x128xf32> to vector<64x128xf32>
    %942 = vector.broadcast %903 : vector<1x128xf32> to vector<64x128xf32>
    %943 = arith.addf %941, %942 : vector<64x128xf32>
    %cst_474 = arith.constant 0.000000e+00 : f32
    %944 = vector.broadcast %cst_474 : f32 to vector<64x128xf32>
    %945 = arith.maximumf %943, %944 : vector<64x128xf32>
    %c0_475 = arith.constant 0 : index
    %c0_476 = arith.constant 0 : index
    %946 = vector.load %arg9[%c0_475, %c0_476] : memref<128x16xf32, #tpu.memory_space<vmem>>, vector<128x16xf32>
    %cst_477 = arith.constant dense<0.000000e+00> : vector<64x16xf32>
    %947 = tpu.matmul %945, %946, %cst_477 {dimension_numbers = #tpu.dot_dimension_numbers<[1], [0], [0], [1], [0, 0, 1, 1], [], []>} : vector<64x128xf32>, vector<128x16xf32>, vector<64x16xf32> -> vector<64x16xf32>
    %c0_478 = arith.constant 0 : index
    %c0_479 = arith.constant 0 : index
    %948 = vector.load %arg12[%c0_478, %c0_479] : memref<1x16xf32, #tpu.memory_space<vmem>>, vector<1x16xf32>
    %949 = vector.broadcast %948 : vector<1x16xf32> to vector<64x16xf32>
    %950 = arith.addf %947, %949 : vector<64x16xf32>
    %c0_480 = arith.constant 0 : index
    %c0_481 = arith.constant 0 : index
    %951 = vector.load %arg2[%c0_480, %c0_481] : memref<64x16xf32, #tpu.memory_space<vmem>>, vector<64x16xf32>
    %952 = arith.mulf %950, %951 : vector<64x16xf32>
    %cst_482 = arith.constant 0.000000e+00 : f32
    %953 = vector.broadcast %cst_482 : f32 to vector<64x16xf32>
    %954 = arith.maximumf %950, %953 : vector<64x16xf32>
    %955 = vector.broadcast %cst_482 : f32 to vector<64x16xf32>
    %956 = arith.subf %950, %955 : vector<64x16xf32>
    %957 = arith.cmpf one, %956, %956 : vector<64x16xf32>
    %958 = vector.broadcast %cst_482 : f32 to vector<64x16xf32>
    %959 = arith.addf %950, %958 : vector<64x16xf32>
    %960 = math.absf %956 : vector<64x16xf32>
    %cst_483 = arith.constant 0.000000e+00 : f32
    %961 = vector.broadcast %cst_483 : f32 to vector<64x16xf32>
    %962 = arith.subf %961, %960 : vector<64x16xf32>
    %963 = math.exp %962 : vector<64x16xf32>
    %964 = math.log1p %963 : vector<64x16xf32>
    %965 = arith.addf %954, %964 : vector<64x16xf32>
    %966 = arith.select %957, %959, %965 : vector<64x16xi1>, vector<64x16xf32>
    %967 = arith.subf %952, %966 : vector<64x16xf32>
    %cst_484 = arith.constant dense<0.000000e+00> : vector<64xf32>
    %968 = vector.multi_reduction <add>, %967, %cst_484 [1] : vector<64x16xf32> to vector<64xf32>
    %969 = vector.shape_cast %968 : vector<64xf32> to vector<64x1xf32>
    %c0_485 = arith.constant 0 : index
    %c0_486 = arith.constant 0 : index
    %c0_487 = arith.constant 0 : index
    %970 = vector.load %arg17[%c0_485, %c0_486, %c0_487] : memref<8x8x32xf32, #tpu.memory_space<vmem>>, vector<8x8x32xf32>
    %971 = vector.shape_cast %970 : vector<8x8x32xf32> to vector<64x32xf32>
    %c0_488 = arith.constant 0 : index
    %c0_489 = arith.constant 0 : index
    %c0_490 = arith.constant 0 : index
    %972 = vector.load %arg18[%c0_488, %c0_489, %c0_490] : memref<8x8x32xf32, #tpu.memory_space<vmem>>, vector<8x8x32xf32>
    %973 = vector.shape_cast %972 : vector<8x8x32xf32> to vector<64x32xf32>
    %c0_491 = arith.constant 0 : index
    %c0_492 = arith.constant 0 : index
    %c0_493 = arith.constant 0 : index
    %974 = vector.load %arg19[%c0_491, %c0_492, %c0_493] : memref<8x8x32xf32, #tpu.memory_space<vmem>>, vector<8x8x32xf32>
    %975 = vector.shape_cast %974 : vector<8x8x32xf32> to vector<64x32xf32>
    %976 = arith.subf %971, %915 : vector<64x32xf32>
    %977 = arith.divf %976, %939 : vector<64x32xf32>
    %cst_494 = arith.constant -5.000000e-01 : f32
    %978 = vector.broadcast %cst_494 : f32 to vector<64x32xf32>
    %979 = arith.mulf %978, %977 : vector<64x32xf32>
    %980 = arith.mulf %979, %977 : vector<64x32xf32>
    %981 = math.log %939 : vector<64x32xf32>
    %982 = arith.subf %980, %981 : vector<64x32xf32>
    %cst_495 = arith.constant 0.918938517 : f32
    %983 = vector.broadcast %cst_495 : f32 to vector<64x32xf32>
    %984 = arith.subf %982, %983 : vector<64x32xf32>
    %cst_496 = arith.constant dense<0.000000e+00> : vector<64xf32>
    %985 = vector.multi_reduction <add>, %984, %cst_496 [1] : vector<64x32xf32> to vector<64xf32>
    %986 = vector.shape_cast %985 : vector<64xf32> to vector<64x1xf32>
    %987 = arith.subf %971, %973 : vector<64x32xf32>
    %988 = arith.divf %987, %975 : vector<64x32xf32>
    %cst_497 = arith.constant -5.000000e-01 : f32
    %989 = vector.broadcast %cst_497 : f32 to vector<64x32xf32>
    %990 = arith.mulf %989, %988 : vector<64x32xf32>
    %991 = arith.mulf %990, %988 : vector<64x32xf32>
    %992 = math.log %975 : vector<64x32xf32>
    %993 = arith.subf %991, %992 : vector<64x32xf32>
    %cst_498 = arith.constant 0.918938517 : f32
    %994 = vector.broadcast %cst_498 : f32 to vector<64x32xf32>
    %995 = arith.subf %993, %994 : vector<64x32xf32>
    %cst_499 = arith.constant dense<0.000000e+00> : vector<64xf32>
    %996 = vector.multi_reduction <add>, %995, %cst_499 [1] : vector<64x32xf32> to vector<64xf32>
    %997 = vector.shape_cast %996 : vector<64xf32> to vector<64x1xf32>
    %998 = tpu.concatenate %969, %986, %997 in 1 : vector<64x1xf32>, vector<64x1xf32>, vector<64x1xf32> -> vector<64x3xf32>
    %c0_500 = arith.constant 0 : index
    %c0_501 = arith.constant 0 : index
    %999 = vector.load %arg13[%c0_500, %c0_501] : memref<64x3xf32, #tpu.memory_space<vmem>>, vector<64x3xf32>
    tpu.vector_store %arg13[%c0_500, %c0_501], %998 {strides = array<i32>} : memref<64x3xf32, #tpu.memory_space<vmem>>, vector<64x3xf32>,
    return
  }
  func.func @transform_0(%arg0: i32) -> (i32, i32) {
    %c0_i32 = arith.constant 0 : i32
    %c0_i32_0 = arith.constant 0 : i32
    %c0_i32_1 = arith.constant 0 : i32
    return %c0_i32, %c0_i32_0 : i32, i32
  }
  func.func @transform_1(%arg0: i32) -> (i32, i32) {
    %c0_i32 = arith.constant 0 : i32
    %c0_i32_0 = arith.constant 0 : i32
    %c0_i32_1 = arith.constant 0 : i32
    return %c0_i32, %c0_i32_0 : i32, i32
  }
  func.func @transform_2(%arg0: i32) -> (i32, i32, i32) {
    %c0_i32 = arith.constant 0 : i32
    %c0_i32_0 = arith.constant 0 : i32
    %c0_i32_1 = arith.constant 0 : i32
    %c0_i32_2 = arith.constant 0 : i32
    return %c0_i32, %c0_i32_0, %c0_i32_1 : i32, i32, i32
  }
  func.func @transform_3(%arg0: i32) -> (i32, i32) {
    %c0_i32 = arith.constant 0 : i32
    %c0_i32_0 = arith.constant 0 : i32
    %c0_i32_1 = arith.constant 0 : i32
    return %c0_i32, %c0_i32_0 : i32, i32
  }
  func.func @transform_4(%arg0: i32) -> (i32, i32, i32) {
    %c0_i32 = arith.constant 0 : i32
    %c0_i32_0 = arith.constant 0 : i32
    %c0_i32_1 = arith.constant 0 : i32
    %c0_i32_2 = arith.constant 0 : i32
    return %c0_i32, %c0_i32_0, %c0_i32_1 : i32, i32, i32
  }
  func.func @transform_5(%arg0: i32) -> (i32, i32, i32) {
    %c0_i32 = arith.constant 0 : i32
    %c0_i32_0 = arith.constant 0 : i32
    %c0_i32_1 = arith.constant 0 : i32
    %c0_i32_2 = arith.constant 0 : i32
    return %c0_i32, %c0_i32_0, %c0_i32_1 : i32, i32, i32
  }
  func.func @transform_6(%arg0: i32) -> (i32, i32, i32) {
    %c0_i32 = arith.constant 0 : i32
    %c0_i32_0 = arith.constant 0 : i32
    %c0_i32_1 = arith.constant 0 : i32
    %c0_i32_2 = arith.constant 0 : i32
    return %c0_i32, %c0_i32_0, %c0_i32_1 : i32, i32, i32
  }
  func.func @transform_7(%arg0: i32) -> (i32, i32) {
    %c0_i32 = arith.constant 0 : i32
    %c0_i32_0 = arith.constant 0 : i32
    %c0_i32_1 = arith.constant 0 : i32
    return %c0_i32, %c0_i32_0 : i32, i32
  }
  func.func @transform_8(%arg0: i32) -> (i32, i32) {
    %c0_i32 = arith.constant 0 : i32
    %c0_i32_0 = arith.constant 0 : i32
    %c0_i32_1 = arith.constant 0 : i32
    return %c0_i32, %c0_i32_0 : i32, i32
  }
  func.func @transform_9(%arg0: i32) -> (i32, i32) {
    %c0_i32 = arith.constant 0 : i32
    %c0_i32_0 = arith.constant 0 : i32
    %c0_i32_1 = arith.constant 0 : i32
    return %c0_i32, %c0_i32_0 : i32, i32
  }
  func.func @transform_10(%arg0: i32) -> (i32, i32) {
    %c0_i32 = arith.constant 0 : i32
    %c0_i32_0 = arith.constant 0 : i32
    %c0_i32_1 = arith.constant 0 : i32
    return %c0_i32, %c0_i32_0 : i32, i32
  }
  func.func @transform_11(%arg0: i32) -> (i32, i32) {
    %c0_i32 = arith.constant 0 : i32
    %c0_i32_0 = arith.constant 0 : i32
    %c0_i32_1 = arith.constant 0 : i32
    return %c0_i32, %c0_i32_0 : i32, i32
  }
  func.func @transform_12(%arg0: i32) -> (i32, i32) {
    %c0_i32 = arith.constant 0 : i32
    %c0_i32_0 = arith.constant 0 : i32
    %c0_i32_1 = arith.constant 0 : i32
    return %c0_i32, %c0_i32_0 : i32, i32
  }
}

</mosaic_0001>

<bundles_post_ra>
// kernel: vrnn_forward.1
= control target key start
LH: loop header
LB: loop body
LE: loop exit
PB: predicated region body
PF: predicated region fallthrough
CT: control target
= control target key end

     0   :  { %vm56_vm0 = vcmask 130048   ;;  %vm203_vm1 = vcmask 261120   ;;  %vm9671_vm2 = vmmov 0   ;;  %s9672_s30 = smov 64   ;;  %s9673_s13 = smov 32   ;;  %s12213_s7 = inlined_call_operand.vmem [shape: f32[16,32], index: 7, kind: input, shape index: {}]   ;;  %s12214_s0 = inlined_call_operand.vmem [shape: f32[64,16], index: 0, kind: input, shape index: {}]   ;;  %s12215_s6 = inlined_call_operand.vmem [shape: f32[3,32,32], index: 6, kind: input, shape index: {}]   ;;  %s12216_s4 = inlined_call_operand.vmem [shape: f32[2,32,256], index: 4, kind: input, shape index: {}]   ;;  %s12217_s3 = inlined_call_operand.vmem [shape: f32[32,512], index: 3, kind: input, shape index: {}]   ;;  %s12218_s10 = inlined_call_operand.vmem [shape: f32[8,32], index: 10, kind: input, shape index: {}]   ;;  %s12219_s5 = inlined_call_operand.vmem [shape: f32[4,128,32], index: 5, kind: input, shape index: {}]   ;;  %s12220_s9 = inlined_call_operand.vmem [shape: f32[2,256], index: 9, kind: input, shape index: {}]   ;;  %s12221_s2 = inlined_call_operand.vmem [shape: f32[8,8,32], index: 2, kind: input, shape index: {}]   ;;  %s12222_s8 = inlined_call_operand.vmem [shape: f32[128,16], index: 8, kind: input, shape index: {}]   ;;  %s12223_s11 = inlined_call_operand.vmem [shape: f32[1,16], index: 11, kind: input, shape index: {}]   ;;  %s12224_s1 = inlined_call_operand.vmem [shape: f32[64,16], index: 1, kind: input, shape index: {}]   ;;  %s12225_s12 = inlined_call_operand.vmem [shape: f32[64,3], index: 12, kind: output, shape index: {}]  }
   0x1   :  { %v49_v0 = vld [vmem:[%s12213_s7] sm:$0xff]  ;;  %v50_v1 = vld [vmem:[%s12213_s7 + $0x8] sm:$0xff]  ;;  %v196_v8 = vld [vmem:[%s12215_s6 + $0x10] sm:$0xff] }
   0x2   :  { %v41_v2 = vld [vmem:[%s12214_s0] sm:$0xff]  ;;  %v8647_v3 = vpack.c.bf16 %v50_v1, %v49_v0  ;;  %v195_v5 = vld [vmem:[%s12215_s6 + $0x8] sm:$0xff]  ;;  %v197_v9 = vld [vmem:[%s12215_s6 + $0x18] sm:$0xff] }
   0x3   :  { %7747 = vmatprep.mubr.msk.f32.mxu0 %vm56_vm0, %v41_v2  ;;  %v194_v4 = vld [vmem:[%s12215_s6] sm:$0xff]  ;;  %v42_v6 = vld [vmem:[%s12214_s0 + $0x8] sm:$0xff]  ;;  %v43_v10 = vld [vmem:[%s12214_s0 + $0x10] sm:$0xff]  ;;  %v8655_v11 = vpack.c.bf16 %v197_v9, %v196_v8  ;;  %v12226_v2 = vmov 0.0  }
   0x4   :  { %8648 = vmatprep.subr.bf16.mxu0 %v8647_v3  ;;  %v8651_v7 = vpack.c.bf16 %v195_v5, %v194_v4  ;;  %v44_v12 = vld [vmem:[%s12214_s0 + $0x18] sm:$0xff]  ;;  %v45_v13 = vld [vmem:[%s12214_s0 + $0x20] sm:$0xff]  ;;  %v46_v14 = vld [vmem:[%s12214_s0 + $0x28] sm:$0xff] }
   0x5   :  { %8650 = vmatpush3.bf16.msra.mxu0 %v8647_v3  ;;  %v47_v15 = vld [vmem:[%s12214_s0 + $0x30] sm:$0xff]  ;;  %v48_v16 = vld [vmem:[%s12214_s0 + $0x38] sm:$0xff]  ;;  %v334_v17 = vld [vmem:[%s12216_s4 + $0x8] sm:$0xff] }
   0x6   :  { %8652 = vmatprep.subr.bf16.mxu0 %v8651_v7  ;;  %9435 = vmatprep.subr.bf16.mxu1 %v8651_v7  ;;  %v336_v18 = vld [vmem:[%s12216_s4 + $0x18] sm:$0xff]  ;;  %v513_v20 = vld [vmem:[%s12217_s3 + $0x8] sm:$0xff]  ;;  %v6773_v23 = vld [vmem:[%s12218_s10] ss:$0 sm:$0xff] }
   0x7   :  { %9437 = vmatpush3.bf16.msra.mxu1 %v8651_v7  ;;  %v8659_v19 = vpack.c.bf16 %v336_v18, %v334_v17  ;;  %v517_v21 = vld [vmem:[%s12217_s3 + $0x28] sm:$0xff]  ;;  %v333_v27 = vld [vmem:[%s12216_s4] sm:$0xff]  ;;  %v335_v28 = vld [vmem:[%s12216_s4 + $0x10] sm:$0xff] }
   0x8   :  { %7748 = vmatmul.mubr.msk.f32.vlgmr.msra.gmra.mrb[0].mxu0 %vm56_vm0, %v42_v6  ;;  %9436 = vmatprep.subr.bf16.mxu1 %v8655_v11  ;;  %v9801_v22 = vpack.c.bf16 %v517_v21, %v513_v20  ;;  %v338_v30 = vld [vmem:[%s12216_s4 + $0x28] sm:$0xff]  ;;  %v340_v31 = vld [vmem:[%s12216_s4 + $0x38] sm:$0xff]  ;;  %v8661_v34 = vpack.c.bf16 %v335_v28, %v333_v27  ;;  %v512_v45 = vld [vmem:[%s12217_s3] sm:$0xff] }
   0x9   :  { %7750 = vmatprep.mubr.msk.f32.mxu0 %vm56_vm0, %v43_v10  ;;  %8654 = vmatpush3.bf16.msra.mxu0 %v8651_v7  ;;  %v8663_v38 = vpack.c.bf16 %v340_v31, %v338_v30  ;;  %v516_v46 = vld [vmem:[%s12217_s3 + $0x20] sm:$0xff]  ;;  %v339_v58 = vld [vmem:[%s12216_s4 + $0x30] sm:$0xff]  ;;  %v521_v59 = vld [vmem:[%s12217_s3 + $0x48] sm:$0xff]  ;;  %v12228_v10 = vmov 0.0|0.0  }
   0xa   :  { %8656 = vmatprep.subr.bf16.mxu0 %v8655_v11  ;;  %v9829_v51 = vpack.c.bf16 %v516_v46, %v512_v45  ;;  %v337_v57 = vld [vmem:[%s12216_s4 + $0x20] sm:$0xff]  ;;  %v525_v61 = vld [vmem:[%s12217_s3 + $0x68] sm:$0xff]  ;;  %v515_v3 = vld [vmem:[%s12217_s3 + $0x18] sm:$0xff] }
   0xb   :  { %9438 = vmatpush3.bf16.msra.mxu1 %v8655_v11  ;;  %v8665_v60 = vpack.c.bf16 %v339_v58, %v337_v57  ;;  %v520_v62 = vld [vmem:[%s12217_s3 + $0x40] sm:$0xff]  ;;  %v9854_v0 = vpack.c.bf16 %v525_v61, %v521_v59  ;;  %v519_v4 = vld [vmem:[%s12217_s3 + $0x38] sm:$0xff]  ;;  %v514_v5 = vld [vmem:[%s12217_s3 + $0x10] sm:$0xff] }
   0xc   :  { %7751 = vmatmul.mubr.msk.f32.gmra.mrb[2].mxu0 %vm56_vm0, %v44_v12  ;;  %8668 = vmatprep.subr.bf16.mxu1 %v9801_v22  ;;  %v524_v63 = vld [vmem:[%s12217_s3 + $0x60] sm:$0xff]  ;;  %v9873_v6 = vpack.c.bf16 %v519_v4, %v515_v3  ;;  %v518_v7 = vld [vmem:[%s12217_s3 + $0x30] sm:$0xff]  ;;  %v523_v8 = vld [vmem:[%s12217_s3 + $0x58] sm:$0xff] }
   0xd   :  { %7753 = vmatprep.mubr.msk.f32.mxu0 %vm56_vm0, %v45_v13  ;;  %8658 = vmatpush3.bf16.msra.mxu0 %v8655_v11  ;;  %v9856_v1 = vpack.c.bf16 %v524_v63, %v520_v62  ;;  %v527_v9 = vld [vmem:[%s12217_s3 + $0x78] sm:$0xff]  ;;  %v9885_v11 = vpack.c.bf16 %v518_v7, %v514_v5  ;;  %v522_v13 = vld [vmem:[%s12217_s3 + $0x50] sm:$0xff]  ;;  %v6800_v17 = vld [vmem:[%s12219_s5 + $0x108] sm:$0xff] }
   0xe   :  { %8660 = vmatprep.subr.bf16.mxu0 %v8659_v19  ;;  %v9887_v12 = vpack.c.bf16 %v527_v9, %v523_v8  ;;  %v6801_v19 = vld [vmem:[%s12219_s5 + $0x110] sm:$0xff]  ;;  %v6802_v20 = vld [vmem:[%s12219_s5 + $0x118] sm:$0xff]  ;;  %v6808_v30 = vld [vmem:[%s12219_s5 + $0x148] sm:$0xff] }
   0xf   :  { %v9918_v21 = vpack.c.bf16 %v6802_v20, %v6801_v19  ;;  %v6806_v27 = vld [vmem:[%s12219_s5 + $0x138] sm:$0xff]  ;;  %v6824_v5 = vld [vmem:[%s12219_s5 + $0x1c0] sm:$0xff]  ;;  %v6825_v7 = vld [vmem:[%s12219_s5 + $0x1c8] sm:$0xff] }
  0x10   :  { %7754 = vmatmul.mubr.msk.f32.gmra.mrb[4].mxu0 %vm56_vm0, %v46_v14  ;;  %v526_v14 = vld [vmem:[%s12217_s3 + $0x70] sm:$0xff]  ;;  %v6823_v61 = vld [vmem:[%s12219_s5 + $0x1b8] sm:$0xff]  ;;  %v10031_v9 = vpack.c.bf16 %v6825_v7, %v6824_v5 }
  0x11   :  { %7756 = vmatprep.mubr.msk.f32.mxu0 %vm56_vm0, %v47_v15  ;;  %v9897_v15 = vpack.c.bf16 %v526_v14, %v522_v13  ;;  %v6826_v13 = vld [vmem:[%s12219_s5 + $0x1d0] sm:$0xff]  ;;  %v6827_v14 = vld [vmem:[%s12219_s5 + $0x1d8] sm:$0xff] }
  0x14   :  { %7757 = vmatmul.mubr.msk.f32.gmra.mrb[6].mxu0 %vm56_vm0, %v48_v16  ;;  %v6799_v16 = vld [vmem:[%s12219_s5 + $0x100] sm:$0xff] }
  0x15   :  { %v9907_v18 = vpack.c.bf16 %v6800_v17, %v6799_v16  ;;  %v10043_v17 = vpack.c.bf16 %v6827_v14, %v6826_v13 }
  0xdb   :  { %v7749_v24 = vpop.f32.mrb[0].mxu0 }
  0xdc   :  { %v153_v25 = vadd.f32 %v7749_v24, %v6773_v23  ;;  %v147_v26 = vpop.f32.mrb[1].mxu0  ;;  %v6804_v24 = vld [vmem:[%s12219_s5 + $0x128] sm:$0xff] }
  0xdd   :  { %v148_v29 = vadd.f32 %v6773_v23, %v147_v26  ;;  %v6805_v26 = vld [vmem:[%s12219_s5 + $0x130] sm:$0xff] }
  0xde   :  { %v187_v35 = vmax.f32 %v153_v25, 0.0  ;;  %v9938_v28 = vpack.c.bf16 %v6806_v27, %v6805_v26  ;;  %v6811_v26 = vld [vmem:[%s12219_s5 + $0x160] sm:$0xff] }
  0xdf   :  { %v186_v32 = vmax.f32 %v148_v29, 0.0  ;;  %v7752_v33 = vpop.f32.mrb[2].mxu0  ;;  %v6807_v29 = vld [vmem:[%s12219_s5 + $0x140] sm:$0xff] }
  0xe0   :  { %v163_v36 = vadd.f32 %v7752_v33, %v6773_v23  ;;  %v157_v37 = vpop.f32.mrb[3].mxu0  ;;  %v9948_v31 = vpack.c.bf16 %v6808_v30, %v6807_v29  ;;  %v6809_v33 = vld [vmem:[%s12219_s5 + $0x150] sm:$0xff]  ;;  %v6812_v29 = vld [vmem:[%s12219_s5 + $0x168] sm:$0xff] }
  0xe1   :  { %7767 = vmatprep.mubr.msk.f32.mxu0 %vm203_vm1, %v186_v32  ;;  %v158_v39 = vadd.f32 %v6773_v23, %v157_v37  ;;  %v343_v32 = vlaneseq  ;;  %v10067_v30 = vpack.c.bf16 %v6812_v29, %v6811_v26 }
  0xe2   :  { %7768 = vmatmul.mubr.msk.f32.vlgmr.msra.gmra.mrb[8].mxu0 %vm203_vm1, %v187_v35  ;;  %v189_v40 = vmax.f32 %v163_v36, 0.0  ;;  %v9963_v36 = vld [vmem:[%s12220_s9] ss:$2 sm:$0x3] }
  0xe3   :  { %v188_v41 = vmax.f32 %v158_v39, 0.0  ;;  %v7755_v42 = vpop.f32.mrb[4].mxu0  ;;  %8662 = vmatpush1.bf16.msra.mxu0 %v8661_v34  ;;  %v6810_v34 = vld [vmem:[%s12219_s5 + $0x158] sm:$0xff]  ;;  %v9958_v35 = vshrl.u32 %v343_v32, 7 }
  0xe4   :  { %v173_v43 = vadd.f32 %v7755_v42, %v6773_v23  ;;  %v167_v44 = vpop.f32.mrb[5].mxu0  ;;  %8664 = vmatprep.subr.bf16.mxu0 %v8663_v38  ;;  %v9966_v37 = vpack.c.bf16 %v6810_v34, %v6809_v33  ;;  %v6782_v42 = vld [vmem:[%s12218_s10 + $0x1] ss:$0 sm:$0xff]  ;;  %v6830_v34 = vld [vmem:[%s12219_s5 + $0x1f0] sm:$0xff] }
  0xe5   :  { %7770 = vmatprep.mubr.msk.f32.mxu0 %vm203_vm1, %v188_v41  ;;  %v168_v47 = vadd.f32 %v6773_v23, %v167_v44  ;;  %v345_v38 = vsub.s32 0, %v9958_v35  ;;  %v6817_v41 = vld [vmem:[%s12219_s5 + $0x188] sm:$0xff] }
  0xe6   :  { %7771 = vmatmul.mubr.msk.f32.gmra.mrb[10].mxu0 %vm203_vm1, %v189_v40  ;;  %v191_v48 = vmax.f32 %v173_v43, 0.0  ;;  %v6816_v40 = vld [vmem:[%s12219_s5 + $0x180] sm:$0xff] }
  0xe7   :  { %v190_v49 = vmax.f32 %v168_v47, 0.0  ;;  %v7758_v50 = vpop.f32.mrb[6].mxu0  ;;  %8666 = vmatpush1.bf16.msra.mxu0 %v8665_v60  ;;  %441 = vmatprep.mubr.f32.mxu0 %v12226_v2  ;;  %v9971_v39 = vrot.slane %v9963_v36, %v345_v38  ;;  %v9984_v45 = vpack.c.bf16 %v6817_v41, %v6816_v40  ;;  %v6818_v47 = vld [vmem:[%s12219_s5 + $0x190] sm:$0xff]  ;;  %v6831_v38 = vld [vmem:[%s12219_s5 + $0x1f8] sm:$0xff] }
  0xe8   :  { %v183_v52 = vadd.f32 %v7758_v50, %v6773_v23  ;;  %v177_v53 = vpop.f32.mrb[7].mxu0  ;;  %8707 = vmatprep.subr.bf16.mxu0 %v12228_v10  ;;  %v6822_v60 = vld [vmem:[%s12219_s5 + $0x1b0] sm:$0xff] }
  0xe9   :  { %7773 = vmatprep.mubr.msk.f32.mxu1 %vm203_vm1, %v190_v49  ;;  %v178_v54 = vadd.f32 %v6773_v23, %v177_v53  ;;  %v6803_v23 = vld [vmem:[%s12219_s5 + $0x120] sm:$0xff]  ;;  %v10019_v3 = vpack.c.bf16 %v6823_v61, %v6822_v60  ;;  %v6813_v40 = vld [vmem:[%s12219_s5 + $0x170] sm:$0xff] }
  0xea   :  { %7774 = vmatmul.mubr.msk.f32.vlgmr.msra.gmra.mrb[0].mxu1 %vm203_vm1, %v191_v48  ;;  %v193_v55 = vmax.f32 %v183_v52, 0.0  ;;  %v9928_v25 = vpack.c.bf16 %v6804_v24, %v6803_v23  ;;  %v6819_v48 = vld [vmem:[%s12219_s5 + $0x198] sm:$0xff]  ;;  %v6828_v23 = vld [vmem:[%s12219_s5 + $0x1e0] sm:$0xff]  ;;  %v6829_v24 = vld [vmem:[%s12219_s5 + $0x1e8] sm:$0xff] }
  0xeb   :  { %v192_v56 = vmax.f32 %v178_v54, 0.0  ;;  %8670 = vmatpush1.bf16.msra.mxu1 %v9829_v51  ;;  %v9995_v52 = vpack.c.bf16 %v6819_v48, %v6818_v47  ;;  %v6820_v54 = vld [vmem:[%s12219_s5 + $0x1a0] sm:$0xff]  ;;  %v10062_v27 = vpack.c.bf16 %v6829_v24, %v6828_v23  ;;  %v349_v48 = vsub.s32 1, %v9958_v35 }
  0xec   :  { %8672 = vmatprep.subr.bf16.mxu1 %v9854_v0  ;;  %v6833_v35 = vld [vmem:[%s12215_s6 + $0x20] sm:$0xff] }
  0xed   :  { %7776 = vmatprep.mubr.msk.f32.mxu1 %vm203_vm1, %v192_v56  ;;  %v10139_v60 = vld [vmem:[%s12218_s10 + $0x6] ss:$0 sm:$0xff]  ;;  %v10144_v61 = vld [vmem:[%s12218_s10 + $0x7] ss:$0 sm:$0xff] }
  0xee   :  { %7777 = vmatmul.mubr.msk.f32.gmra.mrb[2].mxu1 %vm203_vm1, %v193_v55  ;;  %v6821_v55 = vld [vmem:[%s12219_s5 + $0x1a8] sm:$0xff] }
  0xef   :  { %8674 = vmatpush1.bf16.msra.mxu1 %v9856_v1  ;;  %595 = vmatprep.mubr.f32.mxu1 %v12226_v2  ;;  %v10007_v59 = vpack.c.bf16 %v6821_v55, %v6820_v54 }
  0xf0   :  { %8676 = vmatprep.subr.bf16.mxu1 %v9873_v6 }
  0xf2   :  { %596 = vmatmul.mubr.f32.vlgmr.msra.gmra.mrb[4].mxu1 %v12226_v2 }
  0xf3   :  { %666 = vmatprep.mubr.f32.mxu1 %v12226_v2  ;;  %8678 = vmatpush1.bf16.msra.mxu1 %v9885_v11 }
  0xf4   :  { %8680 = vmatprep.subr.bf16.mxu1 %v9887_v12 }
  0xf7   :  { %8682 = vmatpush1.bf16.msra.mxu1 %v9897_v15 }
  0xf8   :  { %8683 = vmatprep.subr.bf16.mxu1 %v12228_v10 }
  0xfa   :  { %667 = vmatmul.mubr.f32.vlgmr.msra.gmra.mrb[6].mxu1 %v12226_v2 }
  0xfb   :  { %8685 = vmatpush3.bf16.msra.mxu1 %v9907_v18  ;;  %7811 = vmatprep.mubr.msk.f32.mxu1 %vm9671_vm2, %v12226_v2 }
  0xfc   :  { %8686 = vmatprep.subr.bf16.mxu1 %v12228_v10 }
  0xff   :  { %8688 = vmatpush3.bf16.msra.mxu1 %v9918_v21 }
 0x100   :  { %8689 = vmatprep.subr.bf16.mxu1 %v12228_v10 }
 0x103   :  { %8691 = vmatpush3.bf16.msra.mxu1 %v9928_v25 }
 0x104   :  { %8692 = vmatprep.subr.bf16.mxu1 %v12228_v10 }
 0x107   :  { %8694 = vmatpush3.bf16.msra.mxu1 %v9938_v28 }
 0x108   :  { %8695 = vmatprep.subr.bf16.mxu1 %v12228_v10 }
 0x10b   :  { %8697 = vmatpush3.bf16.msra.mxu1 %v9948_v31 }
 0x10c   :  { %8698 = vmatprep.subr.bf16.mxu1 %v12228_v10 }
 0x10f   :  { %8700 = vmatpush3.bf16.msra.mxu1 %v9966_v37 }
 0x110   :  { %8701 = vmatprep.subr.bf16.mxu1 %v12228_v10 }
 0x113   :  { %8703 = vmatpush3.bf16.msra.mxu1 %v10067_v30 }
 0x114   :  { %8704 = vmatprep.subr.bf16.mxu1 %v12228_v10 }
 0x1b5   :  { %v7769_v43 = vpop.f32.mrb[8].mxu0 }
 0x1b6   :  { %v294_v44 = vpop.f32.mrb[9].mxu0  ;;  %v300_v53 = vadd.f32 %v7769_v43, %v6782_v42  ;;  %v6814_v43 = vld [vmem:[%s12219_s5 + $0x178] sm:$0xff] }
 0x1b7   :  { %v295_v46 = vadd.f32 %v6782_v42, %v294_v44  ;;  %v10087_v44 = vpack.c.bf16 %v6814_v43, %v6813_v40 }
 0x1b9   :  { %6791 = vmatmul.mubr.msk.f32.vlgmr.msra.gmra.mrb[12].mxu0 %vm203_vm1, %v295_v46  ;;  %v7772_v49 = vpop.f32.mrb[10].mxu0  ;;  %8706 = vmatpush3.bf16.msra.mxu1 %v10087_v44 }
 0x1ba   :  { %447 = vmatprep.mubr.f32.mxu0 %v12226_v2  ;;  %v304_v50 = vpop.f32.mrb[11].mxu0  ;;  %8709 = vmatpush3.bf16.msra.mxu0 %v9984_v45  ;;  %v310_v62 = vadd.f32 %v7772_v49, %v6782_v42  ;;  %v10103_v49 = vrot.slane %v9963_v36, %v349_v48  ;;  %v6834_v36 = vld [vmem:[%s12215_s6 + $0x28] sm:$0xff]  ;;  %v511_v48 = vld [vmem:[%s12221_s2] sm:$0xff] }
 0x1bb   :  { %8710 = vmatprep.subr.bf16.mxu0 %v12228_v10  ;;  %v305_v56 = vadd.f32 %v6782_v42, %v304_v50  ;;  %8731 = vmatprep.subr.bf16.mxu1 %v12228_v10 }
 0x1bd   :  { %6792 = vmatmul.mubr.msk.f32.gmra.mrb[14].mxu0 %vm203_vm1, %v300_v53  ;;  %v7775_v57 = vpop.f32.mrb[0].mxu1 }
 0x1be   :  { %453 = vmatprep.mubr.f32.mxu0 %v12226_v2  ;;  %8712 = vmatpush3.bf16.msra.mxu0 %v9995_v52  ;;  %v314_v58 = vpop.f32.mrb[1].mxu1  ;;  %v320_v16 = vadd.f32 %v7775_v57, %v6782_v42 }
 0x1bf   :  { %8713 = vmatprep.subr.bf16.mxu0 %v12228_v10  ;;  %v315_v8 = vadd.f32 %v6782_v42, %v314_v58  ;;  %v10122_v58 = vpack.c.bf16 %v6834_v36, %v6833_v35  ;;  %v6841_v36 = vld [vmem:[%s12215_s6 + $0x50] sm:$0xff] }
 0x1c1   :  { %6793 = vmatmul.mubr.msk.f32.gmra.mrb[16].mxu0 %vm203_vm1, %v305_v56  ;;  %v7778_v63 = vpop.f32.mrb[2].mxu1 }
 0x1c2   :  { %459 = vmatprep.mubr.f32.mxu0 %v12226_v2  ;;  %8715 = vmatpush3.bf16.msra.mxu0 %v10007_v59  ;;  %v324_v4 = vpop.f32.mrb[3].mxu1  ;;  %v330_v20 = vadd.f32 %v7778_v63, %v6782_v42 }
 0x1c3   :  { %8716 = vmatprep.subr.bf16.mxu0 %v12228_v10  ;;  %v325_v19 = vadd.f32 %v6782_v42, %v324_v4  ;;  %v10082_v42 = vpack.c.bf16 %v6831_v38, %v6830_v34 }
 0x1c5   :  { %6794 = vmatmul.mubr.msk.f32.gmra.mrb[18].mxu0 %vm203_vm1, %v310_v62  ;;  %v597_v33 = vpop.f32.mrb[4].mxu1 }
 0x1c6   :  { %465 = vmatprep.mubr.f32.mxu0 %v12226_v2  ;;  %8718 = vmatpush3.bf16.msra.mxu0 %v10019_v3  ;;  %v599_v41 = vpop.f32.mrb[5].mxu1 }
 0x1c7   :  { %8719 = vmatprep.subr.bf16.mxu0 %v12228_v10 }
 0x1c9   :  { %6795 = vmatmul.mubr.msk.f32.gmra.mrb[20].mxu0 %vm203_vm1, %v315_v8 }
 0x1ca   :  { %471 = vmatprep.mubr.f32.mxu0 %v12226_v2  ;;  %8721 = vmatpush3.bf16.msra.mxu0 %v10031_v9 }
 0x1cb   :  { %8722 = vmatprep.subr.bf16.mxu0 %v12228_v10 }
 0x1cd   :  { %6796 = vmatmul.mubr.msk.f32.gmra.mrb[22].mxu0 %vm203_vm1, %v320_v16  ;;  %v10097_v46 = vpop.f32.mrb[6].mxu1 }
 0x1ce   :  { %477 = vmatprep.mubr.f32.mxu0 %v12226_v2  ;;  %8724 = vmatpush3.bf16.msra.mxu0 %v10043_v17  ;;  %v10099_v47 = vpop.f32.mrb[7].mxu1 }
 0x1cf   :  { %8725 = vmatprep.subr.bf16.mxu0 %v12228_v10 }
 0x1d1   :  { %6797 = vmatmul.mubr.msk.f32.gmra.mrb[24].mxu0 %vm203_vm1, %v325_v19 }
 0x1d2   :  { %483 = vmatprep.mubr.f32.mxu0 %v12226_v2  ;;  %8727 = vmatpush3.bf16.msra.mxu0 %v10062_v27 }
 0x1d3   :  { %8728 = vmatprep.subr.bf16.mxu0 %v12228_v10 }
 0x1d5   :  { %6798 = vmatmul.mubr.msk.f32.gmra.mrb[26].mxu0 %vm203_vm1, %v330_v20 }
 0x1d6   :  { %8730 = vmatpush3.bf16.msra.mxu0 %v10082_v42  ;;  %7846 = vmatprep.mubr.msk.f32.mxu0 %vm9671_vm2, %v12226_v2 }
 0x1d7   :  { %8752 = vmatprep.subr.bf16.mxu0 %v9801_v22 }
 0x28c   :  { %v443_v50 = vpop.f32.mrb[12].mxu0 }
 0x28d   :  { %v444_v22 = vadd.f32 %v443_v50, %v9971_v39  ;;  %v445_v53 = vpop.f32.mrb[13].mxu0 }
 0x28e   :  { %v446_v54 = vadd.f32 %v445_v53, %v10103_v49  ;;  %v6839_v53 = vld [vmem:[%s12215_s6 + $0x40] sm:$0xff] }
 0x28f   :  { %v10107_v55 = vadd.f32 %v597_v33, %v444_v22 }
 0x290   :  { %v675_v56 = vadd.f32 %v599_v41, %v446_v54  ;;  %v6840_v54 = vld [vmem:[%s12215_s6 + $0x48] sm:$0xff] }
 0x292   :  { %v676_v57 = vmax.f32 %v675_v56, 0.0 }
 0x294   :  { %7812 = vmatmul.mubr.f32.vlgmr.msra.gmra.mrb[8].mxu1 %v676_v57  ;;  %7847 = vmatmul.mubr.f32.vlgmr.msra.gmra.mrb[28].mxu0 %v676_v57  ;;  %v10159_v57 = vpack.c.bf16 %v6840_v54, %v6839_v53 }
 0x295   :  { %7857 = vmatprep.mubr.msk.f32.mxu1 %vm9671_vm2, %v12226_v2  ;;  %8754 = vmatpush1.bf16.msra.mxu0 %v9829_v51  ;;  %v6835_v51 = vld [vmem:[%s12215_s6 + $0x30] sm:$0xff] }
 0x296   :  { %8756 = vmatprep.subr.bf16.mxu0 %v9854_v0  ;;  %1251 = vmatprep.mubr.f32.mxu0 %v12226_v2  ;;  %v6836_v0 = vld [vmem:[%s12215_s6 + $0x38] sm:$0xff] }
 0x297   :  { %8733 = vmatpush3.bf16.msra.mxu1 %v10122_v58 }
 0x298   :  { %8734 = vmatprep.subr.bf16.mxu1 %v12228_v10 }
 0x299   :  { %8758 = vmatpush1.bf16.msra.mxu0 %v9856_v1  ;;  %v10132_v1 = vpack.c.bf16 %v6836_v0, %v6835_v51  ;;  %v6842_v51 = vld [vmem:[%s12215_s6 + $0x58] sm:$0xff] }
 0x29a   :  { %8791 = vmatprep.subr.bf16.mxu0 %v12228_v10  ;;  %v10173_v0 = vpack.c.bf16 %v6842_v51, %v6841_v36 }
 0x29b   :  { %8736 = vmatpush3.bf16.msra.mxu1 %v10132_v1 }
 0x29c   :  { %8737 = vmatprep.subr.bf16.mxu1 %v12228_v10 }
 0x367   :  { %v765_v62 = vpop.f32.mrb[8].mxu1  ;;  %v857_v63 = vpop.f32.mrb[28].mxu0 }
 0x368   :  { %v766_v4 = vadd.f32 %v10139_v60, %v765_v62  ;;  %v858_v5 = vadd.f32 %v10144_v61, %v857_v63  ;;  %v7813_v7 = vpop.f32.mrb[9].mxu1  ;;  %v7848_v8 = vpop.f32.mrb[29].mxu0  ;;  %v6846_v62 = vld [vmem:[%s12216_s4 + $0x48] sm:$0xff]  ;;  %v6848_v63 = vld [vmem:[%s12216_s4 + $0x58] sm:$0xff] }
 0x369   :  { %v6845_v7 = vld [vmem:[%s12216_s4 + $0x40] sm:$0xff]  ;;  %v6847_v8 = vld [vmem:[%s12216_s4 + $0x50] sm:$0xff] }
 0x36a   :  { %1137 = vst.msk [vmem:[#allocation6] sm:$0xff] %vm203_vm1, %v766_v4  ;;  %v861_v13 = vadd.f32 0.5, %v858_v5  ;;  %v10188_v5 = vld [vmem:[%s12218_s10 + $0x2] ss:$0 sm:$0xff] }
 0x36c   :  { %v865_v14 = vand.u32 2147483647, %v861_v13  ;;  %v862_v40 = vmax.f32 %v861_v13, 0.0  ;;  %vm863_vm4 = vcmp.ne.f32.partialorder %v861_v13, %v861_v13 }
 0x36e   :  { %v866_v16 = vsub.f32 0.0, %v865_v14  ;;  %v6850_v14 = vld [vmem:[%s12216_s4 + $0x68] sm:$0xff] }
 0x370   :  { %v867_v19 = vmul.f32 1.442695, %v866_v16  ;;  %v6852_v16 = vld [vmem:[%s12216_s4 + $0x78] sm:$0xff] }
 0x372   :  { %9475 = vpow2.f32 %v867_v19 }
 0x37c   :  { %v9476_v20 = vpop.eup %9475 }
 0x37d   :  { %v869_v23 = vadd.f32 1.0, %v9476_v20  ;;  %v872_v24 = vmul.f32 -0.5, %v9476_v20  ;;  %v875_v29 = vand.u32 2147483647, %v9476_v20 }
 0x37f   :  { %9477 = vlog2.f32 %v869_v23  ;;  %v873_v26 = vadd.f32 1.0, %v872_v24  ;;  %vm876_vm3 = vcmp.lt.f32.partialorder %v875_v29, 0.0004427343  ;;  %v10203_v23 = vpack.c.bf16 %v6847_v8, %v6845_v7  ;;  %v6849_v29 = vld [vmem:[%s12216_s4 + $0x60] sm:$0xff] }
 0x381   :  { %v874_v38 = vmul.f32 %v9476_v20, %v873_v26  ;;  %v10205_v26 = vpack.c.bf16 %v6852_v16, %v6850_v14 }
 0x389   :  { %v9478_v33 = vpop.eup %9477 }
 0x38a   :  { %v871_v34 = vmul.f32 0.6931472, %v9478_v33  ;;  %v6851_v33 = vld [vmem:[%s12216_s4 + $0x70] sm:$0xff] }
 0x38c   :  { %v877_v41 = vsel %vm876_vm3, %v874_v38, %v871_v34  ;;  %v10217_v34 = vpack.c.bf16 %v6851_v33, %v6849_v29  ;;  %v10224_v38 = vld [vmem:[%s12218_s10 + $0x3] ss:$0 sm:$0xff] }
 0x38d   :  { %v878_v43 = vadd.f32 %v877_v41, %v862_v40 }
 0x38f   :  { %v879_v50 = vsel %vm863_vm4, %v861_v13, %v878_v43 }
 0x390   :  { %v880_v22 = vmax.f32 %v879_v50, 0.0 }
 0x392   :  { %v881_v56 = vmul.f32 %v880_v22, %v511_v48  ;;  %1138 = vst.msk [vmem:[#allocation7] sm:$0xff] %vm203_vm1, %v880_v22  ;;  %v507_v48 = vand.u32 127, %v343_v32 }
 0x394   :  { %v882_v35 = vadd.f32 %v881_v56, %v766_v4  ;;  %v10182_v4 = vpack.c.bf16 %v6848_v63, %v6846_v62  ;;  %vm508_vm5 = vcmp.ge.s32.totalorder %v507_v48, 64  ;;  %vm509_vm6 = vcmp.lt.s32.totalorder %v507_v48, 96 }
 0x395   :  { %vm10235_vm7 = vmand %vm508_vm5, %vm509_vm6 }
 0x396   :  { %7858 = vmatmul.mubr.msk.f32.vlgmr.msra.gmra.mrb[10].mxu1 %vm203_vm1, %v882_v35  ;;  %1136 = vst.msk [vmem:[#allocation5] sm:$0xff] %vm203_vm1, %v882_v35 }
 0x397   :  { %8739 = vmatpush3.bf16.msra.mxu1 %v10159_v57  ;;  %7868 = vmatprep.mubr.msk.f32.mxu1 %vm9671_vm2, %v12226_v2 }
 0x398   :  { %8740 = vmatprep.subr.bf16.mxu1 %v12228_v10 }
 0x39b   :  { %8742 = vmatpush3.bf16.msra.mxu1 %v10173_v0 }
 0x39c   :  { %8744 = vmatprep.subr.bf16.mxu1 %v10182_v4 }
 0x469   :  { %v962_v13 = vpop.f32.mrb[10].mxu1 }
 0x46a   :  { %v963_v19 = vadd.f32 %v10188_v5, %v962_v13  ;;  %v7859_v20 = vpop.f32.mrb[11].mxu1 }
 0x46c   :  { %v966_v24 = vmax.f32 %v963_v19, 0.0 }
 0x46e   :  { %7869 = vmatmul.mubr.msk.f32.vlgmr.msra.gmra.mrb[12].mxu1 %vm203_vm1, %v966_v24 }
 0x46f   :  { %8746 = vmatpush1.bf16.msra.mxu1 %v10203_v23  ;;  %1126 = vmatprep.mubr.f32.mxu1 %v12226_v2 }
 0x470   :  { %8748 = vmatprep.subr.bf16.mxu1 %v10205_v26 }
 0x473   :  { %8750 = vmatpush1.bf16.msra.mxu1 %v10217_v34 }
 0x474   :  { %8760 = vmatprep.subr.bf16.mxu1 %v9873_v6 }
 0x541   :  { %v1046_v40 = vpop.f32.mrb[12].mxu1 }
 0x542   :  { %v1047_v41 = vadd.f32 %v10224_v38, %v1046_v40  ;;  %v7870_v43 = vpop.f32.mrb[13].mxu1 }
 0x544   :  { %6853 = vmatmul.mubr.msk.f32.vlgmr.msra.gmra.mrb[14].mxu1 %vm203_vm1, %v1047_v41 }
 0x545   :  { %8762 = vmatpush1.bf16.msra.mxu1 %v9885_v11  ;;  %1322 = vmatprep.mubr.f32.mxu1 %v12226_v2 }
 0x546   :  { %8764 = vmatprep.subr.bf16.mxu1 %v9887_v12 }
 0x549   :  { %8766 = vmatpush1.bf16.msra.mxu1 %v9897_v15 }
 0x54a   :  { %8767 = vmatprep.subr.bf16.mxu1 %v12228_v10 }
 0x617   :  { %v1128_v50 = vpop.f32.mrb[14].mxu1 }
 0x618   :  { %v1140_v22 = vadd.f32 %v10107_v55, %v1128_v50  ;;  %v1130_v53 = vpop.f32.mrb[15].mxu1 }
 0x619   :  { %v10240_v11 = vadd.f32 %v1130_v53, %v10097_v46 }
 0x61a   :  { %v1141_v12 = vmul.f32 0.5, %v1140_v22 }
 0x61c   :  { %v1142_v15 = vsel %vm10235_vm7, %v1140_v22, %v1141_v12 }
 0x61d   :  { %9479 = vtanh.f32 %v1142_v15 }
 0x627   :  { %v9480_v56 = vpop.eup %9479 }
 0x628   :  { %v1144_v32 = vmul.f32 0.5, %v9480_v56 }
 0x62a   :  { %v1145_v35 = vadd.f32 0.5, %v1144_v32 }
 0x62c   :  { %v1146_v36 = vsel %vm10235_vm7, %v9480_v56, %v1145_v35 }
 0x62d   :  { %1149 = vrot.lane.b32.xlu0 %v1146_v36, %s9672_s30  ;;  %v1147_v46 = vmul.f32 0.0, %v1146_v36 }
 0x69f   :  { %v1150_v55 = vpop.permute.xlu0 %1149 }
 0x6a0   :  { %v1152_v51 = vmul.f32 %v1150_v55, %v1146_v36 }
 0x6a2   :  { %1154 = vrot.lane.b32.xlu0 %v1152_v51, %s9673_s13 }
 0x714   :  { %v1155_v62 = vpop.permute.xlu0 %1154 }
 0x715   :  { %v10248_v63 = vadd.f32 %v1155_v62, %v1147_v46 }
 0x717   :  { %9481 = vtanh.f32 %v10248_v63 }
 0x721   :  { %v9482_v7 = vpop.eup %9481 }
 0x722   :  { %1160 = vrot.lane.b32.xlu1 %v9482_v7, %s9672_s30 }
 0x794   :  { %v1161_v8 = vpop.permute.xlu1 %1160 }
 0x795   :  { %v1163_v13 = vmul.f32 %v1161_v8, %v1146_v36  ;;  %v6854_v8 = vld [vmem:[%s12221_s2 + $0x8] sm:$0xff] }
 0x797   :  { %1183 = vrot.lane.b32.xlu1 %v1163_v13, %s9673_s13 }
 0x809   :  { %v1184_v14 = vpop.permute.xlu1 %1183 }
 0x80a   :  { %6855 = vmatmul.mubr.msk.f32.vlgmr.msra.gmra.mrb[14].mxu0 %vm203_vm1, %v1184_v14  ;;  %6856 = vmatmul.mubr.msk.f32.vlgmr.msra.gmra.mrb[16].mxu1 %vm203_vm1, %v1184_v14 }
 0x80b   :  { %8769 = vmatpush3.bf16.msra.mxu1 %v9907_v18  ;;  %8793 = vmatpush3.bf16.msra.mxu0 %v9984_v45 }
 0x80c   :  { %8770 = vmatprep.subr.bf16.mxu1 %v12228_v10  ;;  %8794 = vmatprep.subr.bf16.mxu0 %v12228_v10 }
 0x80d   :  { %7903 = vmatprep.mubr.msk.f32.mxu1 %vm9671_vm2, %v12226_v2  ;;  %7938 = vmatprep.mubr.msk.f32.mxu0 %vm9671_vm2, %v12226_v2 }
 0x80f   :  { %8772 = vmatpush3.bf16.msra.mxu1 %v9918_v21  ;;  %8796 = vmatpush3.bf16.msra.mxu0 %v9995_v52 }
 0x810   :  { %8773 = vmatprep.subr.bf16.mxu1 %v12228_v10  ;;  %8797 = vmatprep.subr.bf16.mxu0 %v12228_v10 }
 0x813   :  { %8775 = vmatpush3.bf16.msra.mxu1 %v9928_v25  ;;  %8799 = vmatpush3.bf16.msra.mxu0 %v10007_v59 }
 0x814   :  { %8776 = vmatprep.subr.bf16.mxu1 %v12228_v10  ;;  %8800 = vmatprep.subr.bf16.mxu0 %v12228_v10 }
 0x817   :  { %8778 = vmatpush3.bf16.msra.mxu1 %v9938_v28  ;;  %8802 = vmatpush3.bf16.msra.mxu0 %v10019_v3 }
 0x818   :  { %8779 = vmatprep.subr.bf16.mxu1 %v12228_v10  ;;  %8803 = vmatprep.subr.bf16.mxu0 %v12228_v10 }
 0x81b   :  { %8781 = vmatpush3.bf16.msra.mxu1 %v9948_v31  ;;  %8805 = vmatpush3.bf16.msra.mxu0 %v10031_v9 }
 0x81c   :  { %8782 = vmatprep.subr.bf16.mxu1 %v12228_v10  ;;  %8806 = vmatprep.subr.bf16.mxu0 %v12228_v10 }
 0x81f   :  { %8784 = vmatpush3.bf16.msra.mxu1 %v9966_v37  ;;  %8808 = vmatpush3.bf16.msra.mxu0 %v10043_v17 }
 0x820   :  { %8785 = vmatprep.subr.bf16.mxu1 %v12228_v10  ;;  %8809 = vmatprep.subr.bf16.mxu0 %v12228_v10 }
 0x823   :  { %8787 = vmatpush3.bf16.msra.mxu1 %v10067_v30  ;;  %8811 = vmatpush3.bf16.msra.mxu0 %v10062_v27 }
 0x824   :  { %8788 = vmatprep.subr.bf16.mxu1 %v12228_v10  ;;  %8812 = vmatprep.subr.bf16.mxu0 %v12228_v10 }
 0x827   :  { %8790 = vmatpush3.bf16.msra.mxu1 %v10087_v44  ;;  %8814 = vmatpush3.bf16.msra.mxu0 %v10082_v42 }
 0x828   :  { %8815 = vmatprep.subr.bf16.mxu1 %v12228_v10  ;;  %8821 = vmatprep.subr.bf16.mxu0 %v12228_v10 }
 0x8dd   :  { %v10291_v45 = vpop.f32.mrb[14].mxu0  ;;  %v10293_v52 = vpop.f32.mrb[16].mxu1 }
 0x8de   :  { %v1255_v59 = vpop.f32.mrb[15].mxu0  ;;  %v10295_v16 = vpop.f32.mrb[17].mxu1 }
 0x8df   :  { %v9444_v19 = vadd.f32 %v1255_v59, %v10103_v49 }
 0x8e1   :  { %v1333_v20 = vmax.f32 %v9444_v19, 0.0 }
 0x8e3   :  { %7904 = vmatmul.mubr.f32.vlgmr.msra.gmra.mrb[18].mxu1 %v1333_v20  ;;  %7939 = vmatmul.mubr.f32.vlgmr.msra.gmra.mrb[30].mxu0 %v1333_v20 }
 0x8e4   :  { %8817 = vmatpush3.bf16.msra.mxu1 %v10122_v58  ;;  %7949 = vmatprep.mubr.msk.f32.mxu1 %vm9671_vm2, %v12226_v2 }
 0x8e5   :  { %8818 = vmatprep.subr.bf16.mxu1 %v12228_v10  ;;  %8823 = vmatpush3.bf16.msra.mxu0 %v10159_v57 }
 0x8e6   :  { %8824 = vmatprep.subr.bf16.mxu0 %v12228_v10  ;;  %7960 = vmatprep.mubr.msk.f32.mxu0 %vm9671_vm2, %v12226_v2 }
 0x8e8   :  { %8820 = vmatpush3.bf16.msra.mxu1 %v10132_v1 }
 0x8e9   :  { %8826 = vmatpush3.bf16.msra.mxu0 %v10173_v0  ;;  %8828 = vmatprep.subr.bf16.mxu1 %v10182_v4 }
 0x9b6   :  { %v1421_v24 = vpop.f32.mrb[18].mxu1  ;;  %v1512_v29 = vpop.f32.mrb[30].mxu0 }
 0x9b7   :  { %v1422_v33 = vadd.f32 %v10139_v60, %v1421_v24  ;;  %v1513_v40 = vadd.f32 %v10144_v61, %v1512_v29  ;;  %v7905_v41 = vpop.f32.mrb[19].mxu1  ;;  %v7940_v43 = vpop.f32.mrb[31].mxu0 }
 0x9b9   :  { %1793 = vst.msk [vmem:[#allocation6 + $0x8] sm:$0xff] %vm203_vm1, %v1422_v33  ;;  %v1516_v48 = vadd.f32 0.5, %v1513_v40 }
 0x9bb   :  { %v1520_v50 = vand.u32 2147483647, %v1516_v48  ;;  %v1517_v46 = vmax.f32 %v1516_v48, 0.0  ;;  %vm1518_vm9 = vcmp.ne.f32.partialorder %v1516_v48, %v1516_v48 }
 0x9bd   :  { %v1521_v22 = vsub.f32 0.0, %v1520_v50 }
 0x9bf   :  { %v1522_v53 = vmul.f32 1.442695, %v1521_v22 }
 0x9c1   :  { %9483 = vpow2.f32 %v1522_v53 }
 0x9cb   :  { %v9484_v12 = vpop.eup %9483 }
 0x9cc   :  { %v1524_v15 = vadd.f32 1.0, %v9484_v12  ;;  %v1527_v56 = vmul.f32 -0.5, %v9484_v12  ;;  %v1530_v35 = vand.u32 2147483647, %v9484_v12 }
 0x9ce   :  { %9485 = vlog2.f32 %v1524_v15  ;;  %v1528_v32 = vadd.f32 1.0, %v1527_v56  ;;  %vm1531_vm8 = vcmp.lt.f32.partialorder %v1530_v35, 0.0004427343 }
 0x9d0   :  { %v1529_v51 = vmul.f32 %v9484_v12, %v1528_v32 }
 0x9d8   :  { %v9486_v36 = vpop.eup %9485 }
 0x9d9   :  { %v1526_v55 = vmul.f32 0.6931472, %v9486_v36 }
 0x9db   :  { %v1532_v62 = vsel %vm1531_vm8, %v1529_v51, %v1526_v55 }
 0x9dc   :  { %v1533_v7 = vadd.f32 %v1532_v62, %v1517_v46  ;;  %v1824_v62 = vld [vmem:[%s12217_s3 + $0x8] sm:$0xff] }
 0x9de   :  { %v1534_v13 = vsel %vm1518_vm9, %v1516_v48, %v1533_v7  ;;  %v1828_v7 = vld [vmem:[%s12217_s3 + $0x28] sm:$0xff] }
 0x9df   :  { %v1535_v14 = vmax.f32 %v1534_v13, 0.0  ;;  %v10353_v13 = vpack.c.bf16 %v1828_v7, %v1824_v62 }
 0x9e1   :  { %v1536_v59 = vmul.f32 %v6854_v8, %v1535_v14  ;;  %1795 = vst.msk [vmem:[#allocation7 + $0x8] sm:$0xff] %vm203_vm1, %v1535_v14  ;;  %v1823_v8 = vld [vmem:[%s12217_s3] sm:$0xff]  ;;  %v1825_v14 = vld [vmem:[%s12217_s3 + $0x10] sm:$0xff]  ;;  %8836 = vmatprep.subr.bf16.mxu0 %v10353_v13 }
 0x9e3   :  { %v1537_v19 = vadd.f32 %v1536_v59, %v1422_v33  ;;  %v1829_v59 = vld [vmem:[%s12217_s3 + $0x30] sm:$0xff] }
 0x9e5   :  { %7950 = vmatmul.mubr.msk.f32.vlgmr.msra.gmra.mrb[20].mxu1 %vm203_vm1, %v1537_v19  ;;  %1791 = vst.msk [vmem:[#allocation5 + $0x8] sm:$0xff] %vm203_vm1, %v1537_v19 }
 0x9e6   :  { %8830 = vmatpush1.bf16.msra.mxu1 %v10203_v23  ;;  %1778 = vmatprep.mubr.f32.mxu1 %v12226_v2 }
 0x9e7   :  { %8832 = vmatprep.subr.bf16.mxu1 %v10205_v26 }
 0x9ea   :  { %8834 = vmatpush1.bf16.msra.mxu1 %v10217_v34 }
 0x9eb   :  { %8844 = vmatprep.subr.bf16.mxu1 %v9873_v6  ;;  %v9443_v6 = vadd.f32 %v10291_v45, %v9971_v39 }
 0xab8   :  { %v1616_v20 = vpop.f32.mrb[20].mxu1 }
 0xab9   :  { %v1617_v24 = vadd.f32 %v10188_v5, %v1616_v20  ;;  %v7951_v29 = vpop.f32.mrb[21].mxu1  ;;  %v10366_v20 = vpack.c.bf16 %v1829_v59, %v1825_v14 }
 0xaba   :  { %v1836_v29 = vld [vmem:[%s12217_s3 + $0x68] sm:$0xff] }
 0xabb   :  { %v1620_v40 = vmax.f32 %v1617_v24, 0.0  ;;  %v1832_v24 = vld [vmem:[%s12217_s3 + $0x48] sm:$0xff] }
 0xabd   :  { %7961 = vmatmul.mubr.msk.f32.vlgmr.msra.gmra.mrb[32].mxu0 %vm203_vm1, %v1620_v40  ;;  %v1834_v40 = vld [vmem:[%s12217_s3 + $0x58] sm:$0xff] }
 0xabe   :  { %1908 = vmatprep.mubr.f32.mxu0 %v12226_v2 }
 0xb90   :  { %v1699_v33 = vpop.f32.mrb[32].mxu0 }
 0xb91   :  { %v1700_v41 = vadd.f32 %v10224_v38, %v1699_v33  ;;  %v7962_v43 = vpop.f32.mrb[33].mxu0  ;;  %v10378_v33 = vpack.c.bf16 %v1836_v29, %v1832_v24 }
 0xb92   :  { %v1831_v43 = vld [vmem:[%s12217_s3 + $0x40] sm:$0xff] }
 0xb93   :  { %6911 = vmatmul.mubr.msk.f32.vlgmr.msra.gmra.mrb[22].mxu1 %vm203_vm1, %v1700_v41  ;;  %v1838_v41 = vld [vmem:[%s12217_s3 + $0x78] sm:$0xff] }
 0xb94   :  { %1979 = vmatprep.mubr.f32.mxu1 %v12226_v2  ;;  %8846 = vmatpush1.bf16.msra.mxu1 %v10366_v20 }
 0xc66   :  { %v1780_v48 = vpop.f32.mrb[22].mxu1 }
 0xc67   :  { %v1797_v50 = vadd.f32 %v9443_v6, %v1780_v48  ;;  %v1782_v22 = vpop.f32.mrb[23].mxu1  ;;  %v1835_v6 = vld [vmem:[%s12217_s3 + $0x60] sm:$0xff]  ;;  %v10391_v48 = vpack.c.bf16 %v1838_v41, %v1834_v40 }
 0xc68   :  { %v10332_v53 = vadd.f32 %v1782_v22, %v10293_v52  ;;  %v1833_v22 = vld [vmem:[%s12217_s3 + $0x50] sm:$0xff] }
 0xc69   :  { %v1798_v12 = vmul.f32 0.5, %v1797_v50  ;;  %8848 = vmatprep.subr.bf16.mxu1 %v10391_v48 }
 0xc6b   :  { %v1799_v15 = vsel %vm10235_vm7, %v1797_v50, %v1798_v12  ;;  %v10393_v50 = vpack.c.bf16 %v1835_v6, %v1831_v43  ;;  %v1837_v12 = vld [vmem:[%s12217_s3 + $0x70] sm:$0xff] }
 0xc6c   :  { %9487 = vtanh.f32 %v1799_v15  ;;  %v10402_v15 = vpack.c.bf16 %v1837_v12, %v1833_v22  ;;  %v6912_v22 = vld [vmem:[%s12221_s2 + $0x10] sm:$0xff] }
 0xc6e   :  { %8850 = vmatpush1.bf16.msra.mxu1 %v10402_v15 }
 0xc6f   :  { %8875 = vmatprep.subr.bf16.mxu1 %v12228_v10 }
 0xc76   :  { %v9488_v56 = vpop.eup %9487 }
 0xc77   :  { %v1801_v32 = vmul.f32 0.5, %v9488_v56 }
 0xc79   :  { %v1802_v35 = vadd.f32 0.5, %v1801_v32 }
 0xc7b   :  { %v1803_v36 = vsel %vm10235_vm7, %v9488_v56, %v1802_v35 }
 0xc7c   :  { %1806 = vrot.lane.b32.xlu0 %v1803_v36, %s9672_s30  ;;  %v1804_v52 = vmul.f32 %v1803_v36, %v10248_v63  ;;  %v1827_v63 = vld [vmem:[%s12217_s3 + $0x20] sm:$0xff] }
 0xc7d   :  { %v10364_v19 = vpack.c.bf16 %v1827_v63, %v1823_v8  ;;  %v6936_v8 = vld [vmem:[%s12219_s5 + $0x1a0] sm:$0xff]  ;;  %v6937_v63 = vld [vmem:[%s12219_s5 + $0x1a8] sm:$0xff] }
 0xc7f   :  { %8838 = vmatpush1.bf16.msra.mxu0 %v10364_v19 }
 0xc80   :  { %8840 = vmatprep.subr.bf16.mxu0 %v10378_v33 }
 0xc83   :  { %8842 = vmatpush1.bf16.msra.mxu0 %v10393_v50 }
 0xc84   :  { %8851 = vmatprep.subr.bf16.mxu0 %v12228_v10 }
 0xcee   :  { %v1807_v45 = vpop.permute.xlu0 %1806 }
 0xcef   :  { %v1809_v55 = vmul.f32 %v1807_v45, %v1803_v36  ;;  %v6932_v45 = vld [vmem:[%s12219_s5 + $0x180] sm:$0xff] }
 0xcf1   :  { %1811 = vrot.lane.b32.xlu1 %v1809_v55, %s9673_s13  ;;  %v6933_v55 = vld [vmem:[%s12219_s5 + $0x188] sm:$0xff] }
 0xd63   :  { %v1812_v51 = vpop.permute.xlu1 %1811 }
 0xd64   :  { %v10341_v46 = vadd.f32 %v1812_v51, %v1804_v52  ;;  %v10417_v52 = vpack.c.bf16 %v6933_v55, %v6932_v45  ;;  %v6934_v51 = vld [vmem:[%s12219_s5 + $0x190] sm:$0xff] }
 0xd66   :  { %9489 = vtanh.f32 %v10341_v46 }
 0xd70   :  { %v9490_v56 = vpop.eup %9489 }
 0xd71   :  { %1817 = vrot.lane.b32.xlu0 %v9490_v56, %s9672_s30 }
 0xde3   :  { %v1818_v32 = vpop.permute.xlu0 %1817 }
 0xde4   :  { %v1820_v35 = vmul.f32 %v1818_v32, %v1803_v36  ;;  %v6935_v36 = vld [vmem:[%s12219_s5 + $0x198] sm:$0xff] }
 0xde5   :  { %v10429_v7 = vpack.c.bf16 %v6935_v36, %v6934_v51 }
 0xde6   :  { %1840 = vrot.lane.b32.xlu1 %v1820_v35, %s9673_s13 }
 0xe58   :  { %v1841_v62 = vpop.permute.xlu1 %1840 }
 0xe59   :  { %6913 = vmatmul.mubr.msk.f32.vlgmr.msra.gmra.mrb[16].mxu0 %vm203_vm1, %v1841_v62  ;;  %6914 = vmatmul.mubr.msk.f32.vlgmr.msra.gmra.mrb[24].mxu1 %vm203_vm1, %v1841_v62 }
 0xe5a   :  { %8853 = vmatpush3.bf16.msra.mxu0 %v9907_v18  ;;  %8877 = vmatpush3.bf16.msra.mxu1 %v10417_v52  ;;  %v10445_v18 = vpack.c.bf16 %v6937_v63, %v6936_v8 }
 0xe5b   :  { %8854 = vmatprep.subr.bf16.mxu0 %v12228_v10  ;;  %8878 = vmatprep.subr.bf16.mxu1 %v12228_v10 }
 0xe5c   :  { %7995 = vmatprep.mubr.msk.f32.mxu0 %vm9671_vm2, %v12226_v2  ;;  %8030 = vmatprep.mubr.msk.f32.mxu1 %vm9671_vm2, %v12226_v2 }
 0xe5e   :  { %8856 = vmatpush3.bf16.msra.mxu0 %v9918_v21  ;;  %8880 = vmatpush3.bf16.msra.mxu1 %v10429_v7 }
 0xe5f   :  { %8857 = vmatprep.subr.bf16.mxu0 %v12228_v10  ;;  %8881 = vmatprep.subr.bf16.mxu1 %v12228_v10 }
 0xe62   :  { %8859 = vmatpush3.bf16.msra.mxu0 %v9928_v25  ;;  %8883 = vmatpush3.bf16.msra.mxu1 %v10445_v18 }
 0xe63   :  { %8860 = vmatprep.subr.bf16.mxu0 %v12228_v10  ;;  %8884 = vmatprep.subr.bf16.mxu1 %v12228_v10 }
 0xe66   :  { %8862 = vmatpush3.bf16.msra.mxu0 %v9938_v28  ;;  %8886 = vmatpush3.bf16.msra.mxu1 %v10019_v3 }
 0xe67   :  { %8863 = vmatprep.subr.bf16.mxu0 %v12228_v10  ;;  %8887 = vmatprep.subr.bf16.mxu1 %v12228_v10 }
 0xe6a   :  { %8865 = vmatpush3.bf16.msra.mxu0 %v9948_v31  ;;  %8889 = vmatpush3.bf16.msra.mxu1 %v10031_v9 }
 0xe6b   :  { %8866 = vmatprep.subr.bf16.mxu0 %v12228_v10  ;;  %8890 = vmatprep.subr.bf16.mxu1 %v12228_v10 }
 0xe6e   :  { %8868 = vmatpush3.bf16.msra.mxu0 %v9966_v37  ;;  %8892 = vmatpush3.bf16.msra.mxu1 %v10043_v17 }
 0xe6f   :  { %8869 = vmatprep.subr.bf16.mxu0 %v12228_v10  ;;  %8893 = vmatprep.subr.bf16.mxu1 %v12228_v10 }
 0xe72   :  { %8871 = vmatpush3.bf16.msra.mxu0 %v10067_v30  ;;  %8895 = vmatpush3.bf16.msra.mxu1 %v10062_v27 }
 0xe73   :  { %8872 = vmatprep.subr.bf16.mxu0 %v12228_v10  ;;  %8896 = vmatprep.subr.bf16.mxu1 %v12228_v10 }
 0xe76   :  { %8874 = vmatpush3.bf16.msra.mxu0 %v10087_v44  ;;  %8898 = vmatpush3.bf16.msra.mxu1 %v10082_v42 }
 0xe77   :  { %8899 = vmatprep.subr.bf16.mxu0 %v12228_v10  ;;  %8905 = vmatprep.subr.bf16.mxu1 %v12228_v10 }
 0xf2c   :  { %v10473_v21 = vpop.f32.mrb[16].mxu0  ;;  %v10475_v25 = vpop.f32.mrb[24].mxu1 }
 0xf2d   :  { %v1912_v28 = vpop.f32.mrb[17].mxu0  ;;  %v10477_v31 = vpop.f32.mrb[25].mxu1 }
 0xf2e   :  { %v9446_v37 = vadd.f32 %v1912_v28, %v10103_v49 }
 0xf30   :  { %v1990_v3 = vmax.f32 %v9446_v37, 0.0 }
 0xf32   :  { %7996 = vmatmul.mubr.f32.vlgmr.msra.gmra.mrb[34].mxu0 %v1990_v3  ;;  %8031 = vmatmul.mubr.f32.vlgmr.msra.gmra.mrb[26].mxu1 %v1990_v3 }
 0xf33   :  { %8901 = vmatpush3.bf16.msra.mxu0 %v10122_v58  ;;  %8041 = vmatprep.mubr.msk.f32.mxu0 %vm9671_vm2, %v12226_v2 }
 0xf34   :  { %8902 = vmatprep.subr.bf16.mxu0 %v12228_v10  ;;  %8907 = vmatpush3.bf16.msra.mxu1 %v10159_v57 }
 0xf35   :  { %8908 = vmatprep.subr.bf16.mxu1 %v12228_v10  ;;  %8052 = vmatprep.mubr.msk.f32.mxu1 %vm9671_vm2, %v12226_v2 }
 0xf37   :  { %8904 = vmatpush3.bf16.msra.mxu0 %v10132_v1 }
 0xf38   :  { %8910 = vmatpush3.bf16.msra.mxu1 %v10173_v0  ;;  %8912 = vmatprep.subr.bf16.mxu0 %v10182_v4 }
0x1005   :  { %v2078_v9 = vpop.f32.mrb[34].mxu0  ;;  %v2169_v17 = vpop.f32.mrb[26].mxu1 }
0x1006   :  { %v2079_v27 = vadd.f32 %v10139_v60, %v2078_v9  ;;  %v2170_v30 = vadd.f32 %v10144_v61, %v2169_v17  ;;  %v7997_v42 = vpop.f32.mrb[35].mxu0  ;;  %v8032_v44 = vpop.f32.mrb[27].mxu1 }
0x1008   :  { %2450 = vst.msk [vmem:[#allocation6 + $0x10] sm:$0xff] %vm203_vm1, %v2079_v27  ;;  %v2173_v58 = vadd.f32 0.5, %v2170_v30 }
0x100a   :  { %v2177_v57 = vand.u32 2147483647, %v2173_v58  ;;  %v2174_v43 = vmax.f32 %v2173_v58, 0.0  ;;  %vm2175_vm11 = vcmp.ne.f32.partialorder %v2173_v58, %v2173_v58 }
0x100c   :  { %v2178_v14 = vsub.f32 0.0, %v2177_v57  ;;  %v2487_v57 = vld [vmem:[%s12217_s3 + $0x38] sm:$0xff] }
0x100e   :  { %v2179_v59 = vmul.f32 1.442695, %v2178_v14 }
0x1010   :  { %9491 = vpow2.f32 %v2179_v59 }
0x101a   :  { %v9492_v1 = vpop.eup %9491 }
0x101b   :  { %v2181_v24 = vadd.f32 1.0, %v9492_v1  ;;  %v2184_v0 = vmul.f32 -0.5, %v9492_v1  ;;  %v2187_v29 = vand.u32 2147483647, %v9492_v1 }
0x101d   :  { %9493 = vlog2.f32 %v2181_v24  ;;  %v2185_v4 = vadd.f32 1.0, %v2184_v0  ;;  %vm2188_vm10 = vcmp.lt.f32.partialorder %v2187_v29, 0.0004427343  ;;  %v6973_v24 = vld [vmem:[%s12219_s5 + $0x100] sm:$0xff]  ;;  %v6974_v0 = vld [vmem:[%s12219_s5 + $0x108] sm:$0xff]  ;;  %v6975_v29 = vld [vmem:[%s12219_s5 + $0x110] sm:$0xff] }
0x101f   :  { %v2186_v60 = vmul.f32 %v9492_v1, %v2185_v4  ;;  %v10551_v4 = vpack.c.bf16 %v6974_v0, %v6973_v24 }
0x1027   :  { %v9494_v40 = vpop.eup %9493 }
0x1028   :  { %v2183_v41 = vmul.f32 0.6931472, %v9494_v40  ;;  %v6976_v40 = vld [vmem:[%s12219_s5 + $0x118] sm:$0xff] }
0x102a   :  { %v2189_v61 = vsel %vm2188_vm10, %v2186_v60, %v2183_v41  ;;  %v10563_v60 = vpack.c.bf16 %v6976_v40, %v6975_v29 }
0x102b   :  { %v2190_v6 = vadd.f32 %v2189_v61, %v2174_v43  ;;  %v6977_v43 = vld [vmem:[%s12219_s5 + $0x120] sm:$0xff]  ;;  %v6978_v61 = vld [vmem:[%s12219_s5 + $0x128] sm:$0xff] }
0x102d   :  { %v2191_v12 = vsel %vm2175_vm11, %v2173_v58, %v2190_v6  ;;  %v2483_v58 = vld [vmem:[%s12217_s3 + $0x18] sm:$0xff]  ;;  %v10579_v6 = vpack.c.bf16 %v6978_v61, %v6977_v43  ;;  %v7007_v43 = vld [vmem:[%s12215_s6 + $0x20] sm:$0xff]  ;;  %v7008_v61 = vld [vmem:[%s12215_s6 + $0x28] sm:$0xff] }
0x102e   :  { %v2192_v56 = vmax.f32 %v2191_v12, 0.0  ;;  %v10536_v14 = vpack.c.bf16 %v2487_v57, %v2483_v58  ;;  %v6980_v12 = vld [vmem:[%s12219_s5 + $0x138] sm:$0xff]  ;;  %v7004_v58 = vld [vmem:[%s12219_s5 + $0x1f0] sm:$0xff] }
0x1030   :  { %v2193_v32 = vmul.f32 %v6912_v22, %v2192_v56  ;;  %2452 = vst.msk [vmem:[#allocation7 + $0x10] sm:$0xff] %vm203_vm1, %v2192_v56  ;;  %8928 = vmatprep.subr.bf16.mxu1 %v10536_v14  ;;  %v6979_v22 = vld [vmem:[%s12219_s5 + $0x130] sm:$0xff] }
0x1031   :  { %v6996_v56 = vld [vmem:[%s12219_s5 + $0x1b0] sm:$0xff] }
0x1032   :  { %v2194_v35 = vadd.f32 %v2193_v32, %v2079_v27  ;;  %v6997_v32 = vld [vmem:[%s12219_s5 + $0x1b8] sm:$0xff] }
0x1034   :  { %8042 = vmatmul.mubr.msk.f32.vlgmr.msra.gmra.mrb[36].mxu0 %vm203_vm1, %v2194_v35  ;;  %2448 = vst.msk [vmem:[#allocation5 + $0x10] sm:$0xff] %vm203_vm1, %v2194_v35  ;;  %v10597_v35 = vpack.c.bf16 %v6980_v12, %v6979_v22  ;;  %v10704_v22 = vpack.c.bf16 %v7008_v61, %v7007_v43  ;;  %v7009_v12 = vld [vmem:[%s12215_s6 + $0x30] sm:$0xff] }
0x1035   :  { %8914 = vmatpush1.bf16.msra.mxu0 %v10203_v23  ;;  %2435 = vmatprep.mubr.f32.mxu0 %v12226_v2 }
0x1036   :  { %8916 = vmatprep.subr.bf16.mxu0 %v10205_v26 }
0x1039   :  { %8918 = vmatpush1.bf16.msra.mxu0 %v10217_v34 }
0x103a   :  { %8920 = vmatprep.subr.bf16.mxu0 %v10353_v13 }
0x1107   :  { %v2273_v45 = vpop.f32.mrb[36].mxu0 }
0x1108   :  { %v2274_v55 = vadd.f32 %v10188_v5, %v2273_v45  ;;  %v8043_v51 = vpop.f32.mrb[37].mxu0  ;;  %v9445_v5 = vadd.f32 %v10473_v21, %v9971_v39  ;;  %v10599_v45 = vpack.c.bf16 %v6997_v32, %v6996_v56  ;;  %v7010_v56 = vld [vmem:[%s12215_s6 + $0x38] sm:$0xff] }
0x1109   :  { %v6982_v51 = vld [vmem:[%s12219_s5 + $0x148] sm:$0xff]  ;;  %v10714_v32 = vpack.c.bf16 %v7010_v56, %v7009_v12 }
0x110a   :  { %v2277_v36 = vmax.f32 %v2274_v55, 0.0  ;;  %v6981_v55 = vld [vmem:[%s12219_s5 + $0x140] sm:$0xff] }
0x110c   :  { %8053 = vmatmul.mubr.msk.f32.vlgmr.msra.gmra.mrb[28].mxu1 %vm203_vm1, %v2277_v36  ;;  %v6998_v36 = vld [vmem:[%s12219_s5 + $0x1c0] sm:$0xff] }
0x110d   :  { %2636 = vmatprep.mubr.f32.mxu1 %v12226_v2  ;;  %8930 = vmatpush1.bf16.msra.mxu1 %v10366_v20 }
0x110e   :  { %8932 = vmatprep.subr.bf16.mxu1 %v10391_v48 }
0x1111   :  { %8934 = vmatpush1.bf16.msra.mxu1 %v10402_v15 }
0x1112   :  { %8935 = vmatprep.subr.bf16.mxu1 %v12228_v10 }
0x11df   :  { %v2356_v62 = vpop.f32.mrb[28].mxu1 }
0x11e0   :  { %v2357_v23 = vadd.f32 %v10224_v38, %v2356_v62  ;;  %v8054_v8 = vpop.f32.mrb[29].mxu1  ;;  %v6999_v62 = vld [vmem:[%s12219_s5 + $0x1c8] sm:$0xff] }
0x11e1   :  { %v10619_v8 = vpack.c.bf16 %v6999_v62, %v6998_v36  ;;  %v10730_v62 = vld [vmem:[%s12218_s10 + $0x6] ss:$0 sm:$0xff] }
0x11e2   :  { %6969 = vmatmul.mubr.msk.f32.vlgmr.msra.gmra.mrb[38].mxu0 %vm203_vm1, %v2357_v23  ;;  %v10617_v23 = vpack.c.bf16 %v6982_v51, %v6981_v55  ;;  %v7013_v55 = vld [vmem:[%s12215_s6 + $0x40] sm:$0xff]  ;;  %v7014_v51 = vld [vmem:[%s12215_s6 + $0x48] sm:$0xff] }
0x11e3   :  { %8922 = vmatpush1.bf16.msra.mxu0 %v10364_v19  ;;  %2565 = vmatprep.mubr.f32.mxu0 %v12226_v2  ;;  %v10723_v36 = vpack.c.bf16 %v7014_v51, %v7013_v55 }
0x11e4   :  { %8924 = vmatprep.subr.bf16.mxu0 %v10378_v33 }
0x11e7   :  { %8926 = vmatpush1.bf16.msra.mxu0 %v10393_v50 }
0x11e8   :  { %8959 = vmatprep.subr.bf16.mxu0 %v12228_v10 }
0x12b5   :  { %v2437_v26 = vpop.f32.mrb[38].mxu0 }
0x12b6   :  { %v2454_v34 = vadd.f32 %v9445_v5, %v2437_v26  ;;  %v2439_v63 = vpop.f32.mrb[39].mxu0  ;;  %v6983_v5 = vld [vmem:[%s12219_s5 + $0x150] sm:$0xff]  ;;  %v6984_v26 = vld [vmem:[%s12219_s5 + $0x158] sm:$0xff] }
0x12b7   :  { %v10518_v38 = vadd.f32 %v2439_v63, %v10475_v25  ;;  %v7001_v63 = vld [vmem:[%s12219_s5 + $0x1d8] sm:$0xff] }
0x12b8   :  { %v2455_v28 = vmul.f32 0.5, %v2454_v34 }
0x12ba   :  { %v2456_v37 = vsel %vm10235_vm7, %v2454_v34, %v2455_v28  ;;  %v7000_v34 = vld [vmem:[%s12219_s5 + $0x1d0] sm:$0xff]  ;;  %v10637_v28 = vpack.c.bf16 %v6984_v26, %v6983_v5  ;;  %v10735_v5 = vld [vmem:[%s12218_s10 + $0x7] ss:$0 sm:$0xff] }
0x12bb   :  { %9495 = vtanh.f32 %v2456_v37  ;;  %v10639_v37 = vpack.c.bf16 %v7001_v63, %v7000_v34 }
0x12c5   :  { %v9496_v3 = vpop.eup %9495 }
0x12c6   :  { %v2458_v9 = vmul.f32 0.5, %v9496_v3 }
0x12c8   :  { %v2459_v17 = vadd.f32 0.5, %v2458_v9  ;;  %v6986_v9 = vld [vmem:[%s12219_s5 + $0x168] sm:$0xff] }
0x12ca   :  { %v2460_v27 = vsel %vm10235_vm7, %v9496_v3, %v2459_v17  ;;  %v6985_v3 = vld [vmem:[%s12219_s5 + $0x160] sm:$0xff] }
0x12cb   :  { %2463 = vrot.lane.b32.xlu0 %v2460_v27, %s9672_s30  ;;  %v2461_v25 = vmul.f32 %v2460_v27, %v10341_v46  ;;  %v7002_v17 = vld [vmem:[%s12219_s5 + $0x1e0] sm:$0xff] }
0x133d   :  { %v2464_v21 = vpop.permute.xlu0 %2463 }
0x133e   :  { %v2466_v30 = vmul.f32 %v2464_v21, %v2460_v27  ;;  %v10657_v21 = vpack.c.bf16 %v6986_v9, %v6985_v3 }
0x1340   :  { %2468 = vrot.lane.b32.xlu1 %v2466_v30, %s9673_s13 }
0x13b2   :  { %v2469_v42 = vpop.permute.xlu1 %2468 }
0x13b3   :  { %v10527_v44 = vadd.f32 %v2469_v42, %v2461_v25  ;;  %v6987_v25 = vld [vmem:[%s12219_s5 + $0x170] sm:$0xff]  ;;  %v6988_v42 = vld [vmem:[%s12219_s5 + $0x178] sm:$0xff] }
0x13b4   :  { %v10676_v57 = vpack.c.bf16 %v6988_v42, %v6987_v25 }
0x13b5   :  { %9497 = vtanh.f32 %v10527_v44 }
0x13bf   :  { %v9498_v46 = vpop.eup %9497 }
0x13c0   :  { %2474 = vrot.lane.b32.xlu0 %v9498_v46, %s9672_s30  ;;  %v7005_v46 = vld [vmem:[%s12219_s5 + $0x1f8] sm:$0xff] }
0x1432   :  { %v2475_v59 = vpop.permute.xlu0 %2474 }
0x1433   :  { %v2477_v1 = vmul.f32 %v2475_v59, %v2460_v27  ;;  %v7003_v27 = vld [vmem:[%s12219_s5 + $0x1e8] sm:$0xff]  ;;  %v10681_v59 = vpack.c.bf16 %v7005_v46, %v7004_v58 }
0x1434   :  { %v10659_v30 = vpack.c.bf16 %v7003_v27, %v7002_v17 }
0x1435   :  { %2497 = vrot.lane.b32.xlu1 %v2477_v1, %s9673_s13 }
0x14a7   :  { %v2498_v41 = vpop.permute.xlu1 %2497 }
0x14a8   :  { %6971 = vmatmul.mubr.msk.f32.vlgmr.msra.gmra.mrb[18].mxu0 %vm203_vm1, %v2498_v41  ;;  %6972 = vmatmul.mubr.msk.f32.vlgmr.msra.gmra.mrb[30].mxu1 %vm203_vm1, %v2498_v41 }
0x14a9   :  { %8937 = vmatpush3.bf16.msra.mxu1 %v10551_v4  ;;  %8961 = vmatpush3.bf16.msra.mxu0 %v10417_v52 }
0x14aa   :  { %8938 = vmatprep.subr.bf16.mxu1 %v12228_v10  ;;  %8962 = vmatprep.subr.bf16.mxu0 %v12228_v10 }
0x14ab   :  { %8087 = vmatprep.mubr.msk.f32.mxu1 %vm9671_vm2, %v12226_v2  ;;  %8122 = vmatprep.mubr.msk.f32.mxu0 %vm9671_vm2, %v12226_v2 }
0x14ad   :  { %8940 = vmatpush3.bf16.msra.mxu1 %v10563_v60  ;;  %8964 = vmatpush3.bf16.msra.mxu0 %v10429_v7 }
0x14ae   :  { %8941 = vmatprep.subr.bf16.mxu1 %v12228_v10  ;;  %8965 = vmatprep.subr.bf16.mxu0 %v12228_v10 }
0x14b1   :  { %8943 = vmatpush3.bf16.msra.mxu1 %v10579_v6  ;;  %8967 = vmatpush3.bf16.msra.mxu0 %v10445_v18 }
0x14b2   :  { %8944 = vmatprep.subr.bf16.mxu1 %v12228_v10  ;;  %8968 = vmatprep.subr.bf16.mxu0 %v12228_v10 }
0x14b5   :  { %8946 = vmatpush3.bf16.msra.mxu1 %v10597_v35  ;;  %8970 = vmatpush3.bf16.msra.mxu0 %v10599_v45 }
0x14b6   :  { %8947 = vmatprep.subr.bf16.mxu1 %v12228_v10  ;;  %8971 = vmatprep.subr.bf16.mxu0 %v12228_v10 }
0x14b9   :  { %8949 = vmatpush3.bf16.msra.mxu1 %v10617_v23  ;;  %8973 = vmatpush3.bf16.msra.mxu0 %v10619_v8 }
0x14ba   :  { %8950 = vmatprep.subr.bf16.mxu1 %v12228_v10  ;;  %8974 = vmatprep.subr.bf16.mxu0 %v12228_v10 }
0x14bd   :  { %8952 = vmatpush3.bf16.msra.mxu1 %v10637_v28  ;;  %8976 = vmatpush3.bf16.msra.mxu0 %v10639_v37 }
0x14be   :  { %8953 = vmatprep.subr.bf16.mxu1 %v12228_v10  ;;  %8977 = vmatprep.subr.bf16.mxu0 %v12228_v10 }
0x14c1   :  { %8955 = vmatpush3.bf16.msra.mxu1 %v10657_v21  ;;  %8979 = vmatpush3.bf16.msra.mxu0 %v10659_v30 }
0x14c2   :  { %8956 = vmatprep.subr.bf16.mxu1 %v12228_v10  ;;  %8980 = vmatprep.subr.bf16.mxu0 %v12228_v10 }
0x14c5   :  { %8958 = vmatpush3.bf16.msra.mxu1 %v10676_v57  ;;  %8982 = vmatpush3.bf16.msra.mxu0 %v10681_v59 }
0x14c6   :  { %8983 = vmatprep.subr.bf16.mxu1 %v12228_v10  ;;  %8989 = vmatprep.subr.bf16.mxu0 %v12228_v10 }
0x157b   :  { %v10687_v1 = vpop.f32.mrb[18].mxu0  ;;  %v10689_v24 = vpop.f32.mrb[30].mxu1 }
0x157c   :  { %v2569_v0 = vpop.f32.mrb[19].mxu0  ;;  %v10691_v29 = vpop.f32.mrb[31].mxu1 }
0x157d   :  { %v9448_v40 = vadd.f32 %v2569_v0, %v10103_v49 }
0x157f   :  { %v2647_v41 = vmax.f32 %v9448_v40, 0.0 }
0x1581   :  { %8088 = vmatmul.mubr.f32.vlgmr.msra.gmra.mrb[32].mxu1 %v2647_v41  ;;  %8123 = vmatmul.mubr.f32.vlgmr.msra.gmra.mrb[40].mxu0 %v2647_v41 }
0x1582   :  { %8133 = vmatprep.mubr.msk.f32.mxu1 %vm9671_vm2, %v12226_v2  ;;  %8144 = vmatprep.mubr.msk.f32.mxu0 %vm9671_vm2, %v12226_v2 }
0x1583   :  { %8985 = vmatpush3.bf16.msra.mxu1 %v10704_v22  ;;  %8991 = vmatpush3.bf16.msra.mxu0 %v10723_v36 }
0x1584   :  { %8986 = vmatprep.subr.bf16.mxu1 %v12228_v10  ;;  %8992 = vmatprep.subr.bf16.mxu0 %v12228_v10 }
0x1587   :  { %8988 = vmatpush3.bf16.msra.mxu1 %v10714_v32 }
0x1654   :  { %v2735_v26 = vpop.f32.mrb[32].mxu1  ;;  %v2826_v34 = vpop.f32.mrb[40].mxu0 }
0x1655   :  { %v2736_v63 = vadd.f32 %v10730_v62, %v2735_v26  ;;  %v2827_v3 = vadd.f32 %v10735_v5, %v2826_v34  ;;  %v8089_v9 = vpop.f32.mrb[33].mxu1  ;;  %v8124_v17 = vpop.f32.mrb[41].mxu0  ;;  %v6970_v34 = vld [vmem:[%s12221_s2 + $0x18] sm:$0xff] }
0x1657   :  { %3107 = vst.msk [vmem:[#allocation6 + $0x18] sm:$0xff] %vm203_vm1, %v2736_v63  ;;  %v2830_v27 = vadd.f32 0.5, %v2827_v3 }
0x1659   :  { %v2834_v25 = vand.u32 2147483647, %v2830_v27  ;;  %v2831_v55 = vmax.f32 %v2830_v27, 0.0  ;;  %vm2832_vm13 = vcmp.ne.f32.partialorder %v2830_v27, %v2830_v27 }
0x165b   :  { %v2835_v42 = vsub.f32 0.0, %v2834_v25 }
0x165d   :  { %v2836_v58 = vmul.f32 1.442695, %v2835_v42  ;;  %v7015_v42 = vld [vmem:[%s12215_s6 + $0x50] sm:$0xff] }
0x165f   :  { %9499 = vpow2.f32 %v2836_v58  ;;  %v7016_v58 = vld [vmem:[%s12215_s6 + $0x58] sm:$0xff] }
0x1669   :  { %v9500_v46 = vpop.eup %9499 }
0x166a   :  { %v2838_v0 = vadd.f32 1.0, %v9500_v46  ;;  %v2841_v40 = vmul.f32 -0.5, %v9500_v46  ;;  %v2844_v43 = vand.u32 2147483647, %v9500_v46 }
0x166c   :  { %9501 = vlog2.f32 %v2838_v0  ;;  %v2842_v41 = vadd.f32 1.0, %v2841_v40  ;;  %vm2845_vm12 = vcmp.lt.f32.partialorder %v2844_v43, 0.0004427343  ;;  %v7019_v0 = vld [vmem:[%s12216_s4 + $0x40] sm:$0xff]  ;;  %v7026_v43 = vld [vmem:[%s12216_s4 + $0x78] sm:$0xff] }
0x166e   :  { %v2843_v56 = vmul.f32 %v9500_v46, %v2842_v41  ;;  %v7022_v46 = vld [vmem:[%s12216_s4 + $0x58] sm:$0xff]  ;;  %v7021_v41 = vld [vmem:[%s12216_s4 + $0x50] sm:$0xff] }
0x1676   :  { %v9502_v61 = vpop.eup %9501 }
0x1677   :  { %v2840_v12 = vmul.f32 0.6931472, %v9502_v61  ;;  %v10777_v61 = vpack.c.bf16 %v7021_v41, %v7019_v0 }
0x1679   :  { %v2846_v51 = vsel %vm2845_vm12, %v2843_v56, %v2840_v12  ;;  %v10787_v56 = vld [vmem:[%s12218_s10 + $0x2] ss:$0 sm:$0xff] }
0x167a   :  { %v2847_v26 = vadd.f32 %v2846_v51, %v2831_v55 }
0x167c   :  { %v2848_v3 = vsel %vm2832_vm13, %v2830_v27, %v2847_v26  ;;  %v10753_v27 = vpack.c.bf16 %v7016_v58, %v7015_v42  ;;  %v9447_v42 = vadd.f32 %v10687_v1, %v9971_v39 }
0x167d   :  { %v2849_v9 = vmax.f32 %v2848_v3, 0.0  ;;  %v7023_v3 = vld [vmem:[%s12216_s4 + $0x60] sm:$0xff] }
0x167e   :  { %8994 = vmatpush3.bf16.msra.mxu0 %v10753_v27 }
0x167f   :  { %v2850_v17 = vmul.f32 %v6970_v34, %v2849_v9  ;;  %3109 = vst.msk [vmem:[#allocation7 + $0x18] sm:$0xff] %vm203_vm1, %v2849_v9  ;;  %9004 = vmatprep.subr.bf16.mxu0 %v10353_v13  ;;  %v7024_v13 = vld [vmem:[%s12216_s4 + $0x68] sm:$0xff]  ;;  %v7025_v9 = vld [vmem:[%s12216_s4 + $0x70] sm:$0xff] }
0x1680   :  { %v10779_v12 = vpack.c.bf16 %v7026_v43, %v7024_v13 }
0x1681   :  { %v2851_v25 = vadd.f32 %v2850_v17, %v2736_v63  ;;  %v7020_v63 = vld [vmem:[%s12216_s4 + $0x48] sm:$0xff]  ;;  %v10802_v17 = vpack.c.bf16 %v7025_v9, %v7023_v3 }
0x1682   :  { %v10766_v40 = vpack.c.bf16 %v7022_v46, %v7020_v63 }
0x1683   :  { %8134 = vmatmul.mubr.msk.f32.vlgmr.msra.gmra.mrb[34].mxu1 %vm203_vm1, %v2851_v25  ;;  %3105 = vst.msk [vmem:[#allocation5 + $0x18] sm:$0xff] %vm203_vm1, %v2851_v25 }
0x1684   :  { %3092 = vmatprep.mubr.f32.mxu1 %v12226_v2  ;;  %8996 = vmatprep.subr.bf16.mxu1 %v10766_v40 }
0x1685   :  { %8998 = vmatpush1.bf16.msra.mxu1 %v10777_v61 }
0x1686   :  { %9000 = vmatprep.subr.bf16.mxu1 %v10779_v12 }
0x1689   :  { %9002 = vmatpush1.bf16.msra.mxu1 %v10802_v17 }
0x168a   :  { %9012 = vmatprep.subr.bf16.mxu1 %v10536_v14 }
0x1756   :  { %v2930_v55 = vpop.f32.mrb[34].mxu1 }
0x1757   :  { %v2931_v51 = vadd.f32 %v10787_v56, %v2930_v55  ;;  %v8135_v26 = vpop.f32.mrb[35].mxu1 }
0x1759   :  { %v2934_v34 = vmax.f32 %v2931_v51, 0.0 }
0x175b   :  { %8145 = vmatmul.mubr.msk.f32.vlgmr.msra.gmra.mrb[42].mxu0 %vm203_vm1, %v2934_v34 }
0x175c   :  { %9006 = vmatpush1.bf16.msra.mxu0 %v10364_v19  ;;  %3222 = vmatprep.mubr.f32.mxu0 %v12226_v2  ;;  %v10809_v19 = vld [vmem:[%s12218_s10 + $0x3] ss:$0 sm:$0xff] }
0x175d   :  { %9008 = vmatprep.subr.bf16.mxu0 %v10378_v33 }
0x1760   :  { %9010 = vmatpush1.bf16.msra.mxu0 %v10393_v50 }
0x1761   :  { %9019 = vmatprep.subr.bf16.mxu0 %v12228_v10 }
0x182e   :  { %v3013_v33 = vpop.f32.mrb[42].mxu0 }
0x182f   :  { %v3014_v50 = vadd.f32 %v10809_v19, %v3013_v33  ;;  %v8146_v25 = vpop.f32.mrb[43].mxu0 }
0x1831   :  { %7027 = vmatmul.mubr.msk.f32.vlgmr.msra.gmra.mrb[36].mxu1 %vm203_vm1, %v3014_v50 }
0x1832   :  { %9014 = vmatpush1.bf16.msra.mxu1 %v10366_v20  ;;  %3293 = vmatprep.mubr.f32.mxu1 %v12226_v2 }
0x1833   :  { %9016 = vmatprep.subr.bf16.mxu1 %v10391_v48 }
0x1836   :  { %9018 = vmatpush1.bf16.msra.mxu1 %v10402_v15 }
0x1837   :  { %9043 = vmatprep.subr.bf16.mxu1 %v12228_v10 }
0x1904   :  { %v3094_v58 = vpop.f32.mrb[36].mxu1 }
0x1905   :  { %v3111_v63 = vadd.f32 %v9447_v42, %v3094_v58  ;;  %v3096_v46 = vpop.f32.mrb[37].mxu1 }
0x1906   :  { %v10821_v0 = vadd.f32 %v3096_v46, %v10689_v24 }
0x1907   :  { %v3112_v41 = vmul.f32 0.5, %v3111_v63 }
0x1909   :  { %v3113_v20 = vsel %vm10235_vm7, %v3111_v63, %v3112_v41 }
0x190a   :  { %9503 = vtanh.f32 %v3113_v20 }
0x1914   :  { %v9504_v13 = vpop.eup %9503 }
0x1915   :  { %v3115_v48 = vmul.f32 0.5, %v9504_v13 }
0x1917   :  { %v3116_v43 = vadd.f32 0.5, %v3115_v48 }
0x1919   :  { %v3117_v15 = vsel %vm10235_vm7, %v9504_v13, %v3116_v43 }
0x191a   :  { %3120 = vrot.lane.b32.xlu0 %v3117_v15, %s9672_s30  ;;  %v3118_v24 = vmul.f32 %v3117_v15, %v10527_v44 }
0x198c   :  { %v3121_v1 = vpop.permute.xlu0 %3120 }
0x198d   :  { %v3123_v55 = vmul.f32 %v3121_v1, %v3117_v15 }
0x198f   :  { %3125 = vrot.lane.b32.xlu1 %v3123_v55, %s9673_s13 }
0x1a01   :  { %v3126_v51 = vpop.permute.xlu1 %3125 }
0x1a02   :  { %v10830_v26 = vadd.f32 %v3126_v51, %v3118_v24 }
0x1a04   :  { %9505 = vtanh.f32 %v10830_v26 }
0x1a0e   :  { %v9506_v34 = vpop.eup %9505 }
0x1a0f   :  { %3131 = vrot.lane.b32.xlu0 %v9506_v34, %s9672_s30 }
0x1a81   :  { %v3132_v3 = vpop.permute.xlu0 %3131 }
0x1a82   :  { %v3134_v9 = vmul.f32 %v3132_v3, %v3117_v15 }
0x1a84   :  { %3154 = vrot.lane.b32.xlu1 %v3134_v9, %s9673_s13 }
0x1af6   :  { %v3155_v33 = vpop.permute.xlu1 %3154 }
0x1af7   :  { %7029 = vmatmul.mubr.msk.f32.vlgmr.msra.gmra.mrb[20].mxu0 %vm203_vm1, %v3155_v33  ;;  %7030 = vmatmul.mubr.msk.f32.vlgmr.msra.gmra.mrb[38].mxu1 %vm203_vm1, %v3155_v33 }
0x1af8   :  { %9021 = vmatpush3.bf16.msra.mxu0 %v10551_v4  ;;  %9045 = vmatpush3.bf16.msra.mxu1 %v10417_v52 }
0x1af9   :  { %9022 = vmatprep.subr.bf16.mxu0 %v12228_v10  ;;  %9046 = vmatprep.subr.bf16.mxu1 %v12228_v10 }
0x1afa   :  { %8179 = vmatprep.mubr.msk.f32.mxu0 %vm9671_vm2, %v12226_v2  ;;  %8214 = vmatprep.mubr.msk.f32.mxu1 %vm9671_vm2, %v12226_v2 }
0x1afc   :  { %9024 = vmatpush3.bf16.msra.mxu0 %v10563_v60  ;;  %9048 = vmatpush3.bf16.msra.mxu1 %v10429_v7 }
0x1afd   :  { %9025 = vmatprep.subr.bf16.mxu0 %v12228_v10  ;;  %9049 = vmatprep.subr.bf16.mxu1 %v12228_v10 }
0x1b00   :  { %9027 = vmatpush3.bf16.msra.mxu0 %v10579_v6  ;;  %9051 = vmatpush3.bf16.msra.mxu1 %v10445_v18 }
0x1b01   :  { %9028 = vmatprep.subr.bf16.mxu0 %v12228_v10  ;;  %9052 = vmatprep.subr.bf16.mxu1 %v12228_v10 }
0x1b04   :  { %9030 = vmatpush3.bf16.msra.mxu0 %v10597_v35  ;;  %9054 = vmatpush3.bf16.msra.mxu1 %v10599_v45 }
0x1b05   :  { %9031 = vmatprep.subr.bf16.mxu0 %v12228_v10  ;;  %9055 = vmatprep.subr.bf16.mxu1 %v12228_v10 }
0x1b08   :  { %9033 = vmatpush3.bf16.msra.mxu0 %v10617_v23  ;;  %9057 = vmatpush3.bf16.msra.mxu1 %v10619_v8 }
0x1b09   :  { %9034 = vmatprep.subr.bf16.mxu0 %v12228_v10  ;;  %9058 = vmatprep.subr.bf16.mxu1 %v12228_v10 }
0x1b0c   :  { %9036 = vmatpush3.bf16.msra.mxu0 %v10637_v28  ;;  %9060 = vmatpush3.bf16.msra.mxu1 %v10639_v37 }
0x1b0d   :  { %9037 = vmatprep.subr.bf16.mxu0 %v12228_v10  ;;  %9061 = vmatprep.subr.bf16.mxu1 %v12228_v10 }
0x1b10   :  { %9039 = vmatpush3.bf16.msra.mxu0 %v10657_v21  ;;  %9063 = vmatpush3.bf16.msra.mxu1 %v10659_v30 }
0x1b11   :  { %9040 = vmatprep.subr.bf16.mxu0 %v12228_v10  ;;  %9064 = vmatprep.subr.bf16.mxu1 %v12228_v10 }
0x1b14   :  { %9042 = vmatpush3.bf16.msra.mxu0 %v10676_v57  ;;  %9066 = vmatpush3.bf16.msra.mxu1 %v10681_v59 }
0x1b15   :  { %9067 = vmatprep.subr.bf16.mxu0 %v12228_v10  ;;  %9073 = vmatprep.subr.bf16.mxu1 %v12228_v10 }
0x1bca   :  { %v10873_v52 = vpop.f32.mrb[20].mxu0  ;;  %v10875_v7 = vpop.f32.mrb[38].mxu1 }
0x1bcb   :  { %v3226_v18 = vpop.f32.mrb[21].mxu0  ;;  %v10877_v44 = vpop.f32.mrb[39].mxu1 }
0x1bcc   :  { %v9450_v50 = vadd.f32 %v3226_v18, %v10103_v49 }
0x1bce   :  { %v3304_v25 = vmax.f32 %v9450_v50, 0.0 }
0x1bd0   :  { %8180 = vmatmul.mubr.f32.vlgmr.msra.gmra.mrb[44].mxu0 %v3304_v25  ;;  %8215 = vmatmul.mubr.f32.vlgmr.msra.gmra.mrb[40].mxu1 %v3304_v25  ;;  %v7028_v25 = vld [vmem:[%s12221_s2 + $0x20] sm:$0xff] }
0x1bd1   :  { %9069 = vmatpush3.bf16.msra.mxu0 %v10704_v22  ;;  %8225 = vmatprep.mubr.msk.f32.mxu0 %vm9671_vm2, %v12226_v2 }
0x1bd2   :  { %9070 = vmatprep.subr.bf16.mxu0 %v12228_v10  ;;  %9075 = vmatpush3.bf16.msra.mxu1 %v10723_v36 }
0x1bd3   :  { %9076 = vmatprep.subr.bf16.mxu1 %v12228_v10  ;;  %8236 = vmatprep.mubr.msk.f32.mxu1 %vm9671_vm2, %v12226_v2 }
0x1bd5   :  { %9072 = vmatpush3.bf16.msra.mxu0 %v10714_v32 }
0x1bd6   :  { %9078 = vmatpush3.bf16.msra.mxu1 %v10753_v27  ;;  %9080 = vmatprep.subr.bf16.mxu0 %v10766_v40 }
0x1bd7   :  { %9096 = vmatprep.subr.bf16.mxu1 %v10536_v14 }
0x1ca3   :  { %v3392_v42 = vpop.f32.mrb[44].mxu0  ;;  %v3483_v58 = vpop.f32.mrb[40].mxu1 }
0x1ca4   :  { %v3393_v63 = vadd.f32 %v10730_v62, %v3392_v42  ;;  %v3484_v46 = vadd.f32 %v10735_v5, %v3483_v58  ;;  %v8181_v41 = vpop.f32.mrb[45].mxu0  ;;  %v8216_v20 = vpop.f32.mrb[41].mxu1 }
0x1ca6   :  { %3764 = vst.msk [vmem:[#allocation6 + $0x20] sm:$0xff] %vm203_vm1, %v3393_v63  ;;  %v3487_v13 = vadd.f32 0.5, %v3484_v46 }
0x1ca8   :  { %v3491_v48 = vand.u32 2147483647, %v3487_v13  ;;  %v3488_v33 = vmax.f32 %v3487_v13, 0.0  ;;  %vm3489_vm15 = vcmp.ne.f32.partialorder %v3487_v13, %v3487_v13 }
0x1caa   :  { %v3492_v43 = vsub.f32 0.0, %v3491_v48 }
0x1cac   :  { %v3493_v15 = vmul.f32 1.442695, %v3492_v43 }
0x1cae   :  { %9507 = vpow2.f32 %v3493_v15 }
0x1cb8   :  { %v9508_v1 = vpop.eup %9507 }
0x1cb9   :  { %v3495_v55 = vadd.f32 1.0, %v9508_v1  ;;  %v3498_v24 = vmul.f32 -0.5, %v9508_v1  ;;  %v3501_v51 = vand.u32 2147483647, %v9508_v1 }
0x1cbb   :  { %9509 = vlog2.f32 %v3495_v55  ;;  %v3499_v14 = vadd.f32 1.0, %v3498_v24  ;;  %vm3502_vm14 = vcmp.lt.f32.partialorder %v3501_v51, 0.0004427343  ;;  %v9449_v55 = vadd.f32 %v10873_v52, %v9971_v39 }
0x1cbd   :  { %v3500_v9 = vmul.f32 %v9508_v1, %v3499_v14 }
0x1cc5   :  { %v9510_v34 = vpop.eup %9509 }
0x1cc6   :  { %v3497_v3 = vmul.f32 0.6931472, %v9510_v34 }
0x1cc8   :  { %v3503_v18 = vsel %vm3502_vm14, %v3500_v9, %v3497_v3 }
0x1cc9   :  { %v3504_v50 = vadd.f32 %v3503_v18, %v3488_v33 }
0x1ccb   :  { %v3505_v42 = vsel %vm3489_vm15, %v3487_v13, %v3504_v50 }
0x1ccc   :  { %v3506_v58 = vmax.f32 %v3505_v42, 0.0 }
0x1cce   :  { %v3507_v46 = vmul.f32 %v7028_v25, %v3506_v58  ;;  %3766 = vst.msk [vmem:[#allocation7 + $0x20] sm:$0xff] %vm203_vm1, %v3506_v58 }
0x1cd0   :  { %v3508_v41 = vadd.f32 %v3507_v46, %v3393_v63 }
0x1cd2   :  { %8226 = vmatmul.mubr.msk.f32.vlgmr.msra.gmra.mrb[46].mxu0 %vm203_vm1, %v3508_v41  ;;  %3762 = vst.msk [vmem:[#allocation5 + $0x20] sm:$0xff] %vm203_vm1, %v3508_v41  ;;  %v3795_v41 = vld [vmem:[%s12217_s3 + $0x8] sm:$0xff] }
0x1cd3   :  { %9082 = vmatpush1.bf16.msra.mxu0 %v10777_v61  ;;  %3749 = vmatprep.mubr.f32.mxu0 %v12226_v2 }
0x1cd4   :  { %9084 = vmatprep.subr.bf16.mxu0 %v10779_v12 }
0x1cd7   :  { %9086 = vmatpush1.bf16.msra.mxu0 %v10802_v17 }
0x1da5   :  { %v3587_v20 = vpop.f32.mrb[46].mxu0 }
0x1da6   :  { %v3588_v13 = vadd.f32 %v10787_v56, %v3587_v20  ;;  %v8227_v48 = vpop.f32.mrb[47].mxu0  ;;  %v3799_v20 = vld [vmem:[%s12217_s3 + $0x28] sm:$0xff] }
0x1da7   :  { %v10935_v48 = vpack.c.bf16 %v3799_v20, %v3795_v41 }
0x1da8   :  { %v3591_v43 = vmax.f32 %v3588_v13, 0.0  ;;  %v3794_v13 = vld [vmem:[%s12217_s3] sm:$0xff] }
0x1da9   :  { %9088 = vmatprep.subr.bf16.mxu0 %v10935_v48 }
0x1daa   :  { %8237 = vmatmul.mubr.msk.f32.vlgmr.msra.gmra.mrb[42].mxu1 %vm203_vm1, %v3591_v43  ;;  %v3796_v43 = vld [vmem:[%s12217_s3 + $0x10] sm:$0xff] }
0x1dab   :  { %3950 = vmatprep.mubr.f32.mxu1 %v12226_v2 }
0x1e7d   :  { %v3670_v63 = vpop.f32.mrb[42].mxu1 }
0x1e7e   :  { %v3671_v15 = vadd.f32 %v10809_v19, %v3670_v63  ;;  %v8238_v1 = vpop.f32.mrb[43].mxu1  ;;  %v3800_v63 = vld [vmem:[%s12217_s3 + $0x30] sm:$0xff] }
0x1e7f   :  { %v10948_v1 = vpack.c.bf16 %v3800_v63, %v3796_v43  ;;  %v7108_v63 = vld [vmem:[%s12219_s5 + $0x190] sm:$0xff] }
0x1e80   :  { %7085 = vmatmul.mubr.msk.f32.vlgmr.msra.gmra.mrb[48].mxu0 %vm203_vm1, %v3671_v15 }
0x1e81   :  { %3879 = vmatprep.mubr.f32.mxu0 %v12226_v2  ;;  %9098 = vmatpush1.bf16.msra.mxu1 %v10948_v1 }
0x1f53   :  { %v3751_v24 = vpop.f32.mrb[48].mxu0 }
0x1f54   :  { %v3768_v14 = vadd.f32 %v9449_v55, %v3751_v24  ;;  %v3753_v51 = vpop.f32.mrb[49].mxu0  ;;  %v3803_v55 = vld [vmem:[%s12217_s3 + $0x48] sm:$0xff] }
0x1f55   :  { %v10914_v34 = vadd.f32 %v3753_v51, %v10875_v7  ;;  %v3807_v24 = vld [vmem:[%s12217_s3 + $0x68] sm:$0xff] }
0x1f56   :  { %v3769_v3 = vmul.f32 0.5, %v3768_v14  ;;  %v10960_v51 = vpack.c.bf16 %v3807_v24, %v3803_v55 }
0x1f58   :  { %v3770_v9 = vsel %vm10235_vm7, %v3768_v14, %v3769_v3  ;;  %v3805_v14 = vld [vmem:[%s12217_s3 + $0x58] sm:$0xff] }
0x1f59   :  { %9511 = vtanh.f32 %v3770_v9  ;;  %v3809_v3 = vld [vmem:[%s12217_s3 + $0x78] sm:$0xff]  ;;  %v3802_v9 = vld [vmem:[%s12217_s3 + $0x40] sm:$0xff] }
0x1f63   :  { %v9512_v33 = vpop.eup %9511 }
0x1f64   :  { %v3772_v18 = vmul.f32 0.5, %v9512_v33 }
0x1f66   :  { %v3773_v50 = vadd.f32 0.5, %v3772_v18  ;;  %v10973_v18 = vpack.c.bf16 %v3809_v3, %v3805_v14  ;;  %v7110_v14 = vld [vmem:[%s12219_s5 + $0x1a0] sm:$0xff]  ;;  %v7111_v3 = vld [vmem:[%s12219_s5 + $0x1a8] sm:$0xff] }
0x1f68   :  { %v3774_v25 = vsel %vm10235_vm7, %v9512_v33, %v3773_v50  ;;  %v3806_v33 = vld [vmem:[%s12217_s3 + $0x60] sm:$0xff]  ;;  %9100 = vmatprep.subr.bf16.mxu1 %v10973_v18 }
0x1f69   :  { %3777 = vrot.lane.b32.xlu0 %v3774_v25, %s9672_s30  ;;  %v3775_v7 = vmul.f32 %v3774_v25, %v10830_v26  ;;  %v3798_v26 = vld [vmem:[%s12217_s3 + $0x20] sm:$0xff]  ;;  %v10975_v50 = vpack.c.bf16 %v3806_v33, %v3802_v9 }
0x1f6a   :  { %v10946_v15 = vpack.c.bf16 %v3798_v26, %v3794_v13  ;;  %v7106_v13 = vld [vmem:[%s12219_s5 + $0x180] sm:$0xff]  ;;  %v7107_v26 = vld [vmem:[%s12219_s5 + $0x188] sm:$0xff] }
0x1f6b   :  { %v10999_v43 = vpack.c.bf16 %v7107_v26, %v7106_v13  ;;  %v7086_v13 = vld [vmem:[%s12221_s2 + $0x28] sm:$0xff] }
0x1f6c   :  { %9090 = vmatpush1.bf16.msra.mxu0 %v10946_v15 }
0x1f6d   :  { %9092 = vmatprep.subr.bf16.mxu0 %v10960_v51 }
0x1f70   :  { %9094 = vmatpush1.bf16.msra.mxu0 %v10975_v50 }
0x1f71   :  { %9127 = vmatprep.subr.bf16.mxu0 %v12228_v10 }
0x1fdb   :  { %v3778_v52 = vpop.permute.xlu0 %3777 }
0x1fdc   :  { %v3780_v42 = vmul.f32 %v3778_v52, %v3774_v25  ;;  %v3804_v52 = vld [vmem:[%s12217_s3 + $0x50] sm:$0xff] }
0x1fde   :  { %3782 = vrot.lane.b32.xlu1 %v3780_v42, %s9673_s13  ;;  %v3808_v42 = vld [vmem:[%s12217_s3 + $0x70] sm:$0xff] }
0x2050   :  { %v3783_v58 = vpop.permute.xlu1 %3782 }
0x2051   :  { %v10923_v46 = vadd.f32 %v3783_v58, %v3775_v7  ;;  %v10984_v7 = vpack.c.bf16 %v3808_v42, %v3804_v52 }
0x2053   :  { %9513 = vtanh.f32 %v10923_v46  ;;  %9102 = vmatpush1.bf16.msra.mxu1 %v10984_v7 }
0x2054   :  { %9103 = vmatprep.subr.bf16.mxu1 %v12228_v10 }
0x205d   :  { %v9514_v58 = vpop.eup %9513 }
0x205e   :  { %3788 = vrot.lane.b32.xlu0 %v9514_v58, %s9672_s30 }
0x20d0   :  { %v3789_v41 = vpop.permute.xlu0 %3788 }
0x20d1   :  { %v3791_v20 = vmul.f32 %v3789_v41, %v3774_v25  ;;  %v7109_v25 = vld [vmem:[%s12219_s5 + $0x198] sm:$0xff] }
0x20d2   :  { %v11011_v24 = vpack.c.bf16 %v7109_v25, %v7108_v63 }
0x20d3   :  { %3811 = vrot.lane.b32.xlu1 %v3791_v20, %s9673_s13 }
0x2145   :  { %v3812_v55 = vpop.permute.xlu1 %3811 }
0x2146   :  { %7087 = vmatmul.mubr.msk.f32.vlgmr.msra.gmra.mrb[22].mxu0 %vm203_vm1, %v3812_v55  ;;  %7088 = vmatmul.mubr.msk.f32.vlgmr.msra.gmra.mrb[44].mxu1 %vm203_vm1, %v3812_v55 }
0x2147   :  { %9105 = vmatpush3.bf16.msra.mxu1 %v10551_v4  ;;  %9129 = vmatpush3.bf16.msra.mxu0 %v10999_v43  ;;  %v11027_v4 = vpack.c.bf16 %v7111_v3, %v7110_v14 }
0x2148   :  { %9106 = vmatprep.subr.bf16.mxu1 %v12228_v10  ;;  %9130 = vmatprep.subr.bf16.mxu0 %v12228_v10 }
0x2149   :  { %8271 = vmatprep.mubr.msk.f32.mxu1 %vm9671_vm2, %v12226_v2  ;;  %8306 = vmatprep.mubr.msk.f32.mxu0 %vm9671_vm2, %v12226_v2 }
0x214b   :  { %9108 = vmatpush3.bf16.msra.mxu1 %v10563_v60  ;;  %9132 = vmatpush3.bf16.msra.mxu0 %v11011_v24 }
0x214c   :  { %9109 = vmatprep.subr.bf16.mxu1 %v12228_v10  ;;  %9133 = vmatprep.subr.bf16.mxu0 %v12228_v10 }
0x214f   :  { %9111 = vmatpush3.bf16.msra.mxu1 %v10579_v6  ;;  %9135 = vmatpush3.bf16.msra.mxu0 %v11027_v4 }
0x2150   :  { %9112 = vmatprep.subr.bf16.mxu1 %v12228_v10  ;;  %9136 = vmatprep.subr.bf16.mxu0 %v12228_v10 }
0x2153   :  { %9114 = vmatpush3.bf16.msra.mxu1 %v10597_v35  ;;  %9138 = vmatpush3.bf16.msra.mxu0 %v10599_v45 }
0x2154   :  { %9115 = vmatprep.subr.bf16.mxu1 %v12228_v10  ;;  %9139 = vmatprep.subr.bf16.mxu0 %v12228_v10 }
0x2157   :  { %9117 = vmatpush3.bf16.msra.mxu1 %v10617_v23  ;;  %9141 = vmatpush3.bf16.msra.mxu0 %v10619_v8 }
0x2158   :  { %9118 = vmatprep.subr.bf16.mxu1 %v12228_v10  ;;  %9142 = vmatprep.subr.bf16.mxu0 %v12228_v10 }
0x215b   :  { %9120 = vmatpush3.bf16.msra.mxu1 %v10637_v28  ;;  %9144 = vmatpush3.bf16.msra.mxu0 %v10639_v37 }
0x215c   :  { %9121 = vmatprep.subr.bf16.mxu1 %v12228_v10  ;;  %9145 = vmatprep.subr.bf16.mxu0 %v12228_v10 }
0x215f   :  { %9123 = vmatpush3.bf16.msra.mxu1 %v10657_v21  ;;  %9147 = vmatpush3.bf16.msra.mxu0 %v10659_v30 }
0x2160   :  { %9124 = vmatprep.subr.bf16.mxu1 %v12228_v10  ;;  %9148 = vmatprep.subr.bf16.mxu0 %v12228_v10 }
0x2163   :  { %9126 = vmatpush3.bf16.msra.mxu1 %v10676_v57  ;;  %9150 = vmatpush3.bf16.msra.mxu0 %v10681_v59 }
0x2164   :  { %9151 = vmatprep.subr.bf16.mxu1 %v12228_v10  ;;  %9157 = vmatprep.subr.bf16.mxu0 %v12228_v10 }
0x2219   :  { %v11055_v60 = vpop.f32.mrb[22].mxu0  ;;  %v11057_v6 = vpop.f32.mrb[44].mxu1 }
0x221a   :  { %v3883_v35 = vpop.f32.mrb[23].mxu0  ;;  %v11059_v45 = vpop.f32.mrb[45].mxu1 }
0x221b   :  { %v9452_v23 = vadd.f32 %v3883_v35, %v10103_v49 }
0x221d   :  { %v3961_v8 = vmax.f32 %v9452_v23, 0.0 }
0x221f   :  { %8272 = vmatmul.mubr.f32.vlgmr.msra.gmra.mrb[46].mxu1 %v3961_v8  ;;  %8307 = vmatmul.mubr.f32.vlgmr.msra.gmra.mrb[50].mxu0 %v3961_v8 }
0x2220   :  { %9153 = vmatpush3.bf16.msra.mxu1 %v10704_v22  ;;  %8317 = vmatprep.mubr.msk.f32.mxu1 %vm9671_vm2, %v12226_v2 }
0x2221   :  { %9154 = vmatprep.subr.bf16.mxu1 %v12228_v10  ;;  %9159 = vmatpush3.bf16.msra.mxu0 %v10723_v36 }
0x2222   :  { %9160 = vmatprep.subr.bf16.mxu0 %v12228_v10  ;;  %8328 = vmatprep.mubr.msk.f32.mxu0 %vm9671_vm2, %v12226_v2 }
0x2224   :  { %9156 = vmatpush3.bf16.msra.mxu1 %v10714_v32 }
0x2225   :  { %9162 = vmatpush3.bf16.msra.mxu0 %v10753_v27  ;;  %9164 = vmatprep.subr.bf16.mxu1 %v10766_v40 }
0x2226   :  { %9172 = vmatprep.subr.bf16.mxu0 %v10935_v48 }
0x22f2   :  { %v4049_v28 = vpop.f32.mrb[46].mxu1  ;;  %v4140_v37 = vpop.f32.mrb[50].mxu0 }
0x22f3   :  { %v4050_v21 = vadd.f32 %v10730_v62, %v4049_v28  ;;  %v4141_v30 = vadd.f32 %v10735_v5, %v4140_v37  ;;  %v8273_v57 = vpop.f32.mrb[47].mxu1  ;;  %v8308_v59 = vpop.f32.mrb[51].mxu0 }
0x22f5   :  { %4421 = vst.msk [vmem:[#allocation6 + $0x28] sm:$0xff] %vm203_vm1, %v4050_v21  ;;  %v4144_v22 = vadd.f32 0.5, %v4141_v30 }
0x22f7   :  { %v4148_v36 = vand.u32 2147483647, %v4144_v22  ;;  %v4145_v41 = vmax.f32 %v4144_v22, 0.0  ;;  %vm4146_vm4 = vcmp.ne.f32.partialorder %v4144_v22, %v4144_v22 }
0x22f9   :  { %v4149_v9 = vsub.f32 0.0, %v4148_v36 }
0x22fb   :  { %v4150_v32 = vmul.f32 1.442695, %v4149_v9  ;;  %v4454_v9 = vld [vmem:[%s12217_s3 + $0x18] sm:$0xff] }
0x22fd   :  { %9515 = vpow2.f32 %v4150_v32  ;;  %v4458_v32 = vld [vmem:[%s12217_s3 + $0x38] sm:$0xff] }
0x2307   :  { %v9516_v27 = vpop.eup %9515 }
0x2308   :  { %v4152_v33 = vadd.f32 1.0, %v9516_v27  ;;  %v4155_v40 = vmul.f32 -0.5, %v9516_v27  ;;  %v4158_v52 = vand.u32 2147483647, %v9516_v27 }
0x230a   :  { %9517 = vlog2.f32 %v4152_v33  ;;  %v4156_v48 = vadd.f32 1.0, %v4155_v40  ;;  %vm4159_vm3 = vcmp.lt.f32.partialorder %v4158_v52, 0.0004427343  ;;  %v7150_v52 = vld [vmem:[%s12219_s5 + $0x118] sm:$0xff] }
0x230c   :  { %v4157_v62 = vmul.f32 %v9516_v27, %v4156_v48  ;;  %v11118_v27 = vpack.c.bf16 %v4458_v32, %v4454_v9  ;;  %v7147_v48 = vld [vmem:[%s12219_s5 + $0x100] sm:$0xff] }
0x2314   :  { %v9518_v42 = vpop.eup %9517 }
0x2315   :  { %v4154_v58 = vmul.f32 0.6931472, %v9518_v42 }
0x2317   :  { %v4160_v5 = vsel %vm4159_vm3, %v4157_v62, %v4154_v58  ;;  %v7151_v62 = vld [vmem:[%s12219_s5 + $0x120] sm:$0xff] }
0x2318   :  { %v4161_v20 = vadd.f32 %v4160_v5, %v4145_v41  ;;  %v7152_v41 = vld [vmem:[%s12219_s5 + $0x128] sm:$0xff]  ;;  %v7153_v5 = vld [vmem:[%s12219_s5 + $0x130] sm:$0xff] }
0x231a   :  { %v4162_v26 = vsel %vm4146_vm4, %v4144_v22, %v4161_v20  ;;  %v7154_v20 = vld [vmem:[%s12219_s5 + $0x138] sm:$0xff] }
0x231b   :  { %v4163_v63 = vmax.f32 %v4162_v26, 0.0  ;;  %v11179_v26 = vpack.c.bf16 %v7154_v20, %v7153_v5  ;;  %v7187_v5 = vld [vmem:[%s12215_s6 + $0x40] sm:$0xff]  ;;  %v7188_v20 = vld [vmem:[%s12215_s6 + $0x48] sm:$0xff] }
0x231d   :  { %v4164_v25 = vmul.f32 %v7086_v13, %v4163_v63  ;;  %4423 = vst.msk [vmem:[#allocation7 + $0x28] sm:$0xff] %vm203_vm1, %v4163_v63  ;;  %v7170_v13 = vld [vmem:[%s12219_s5 + $0x1b0] sm:$0xff] }
0x231f   :  { %v4165_v55 = vadd.f32 %v4164_v25, %v4050_v21  ;;  %v7155_v25 = vld [vmem:[%s12219_s5 + $0x140] sm:$0xff] }
0x2321   :  { %8318 = vmatmul.mubr.msk.f32.vlgmr.msra.gmra.mrb[48].mxu1 %vm203_vm1, %v4165_v55  ;;  %4419 = vst.msk [vmem:[#allocation5 + $0x28] sm:$0xff] %vm203_vm1, %v4165_v55  ;;  %v7156_v55 = vld [vmem:[%s12219_s5 + $0x148] sm:$0xff] }
0x2322   :  { %9166 = vmatpush1.bf16.msra.mxu1 %v10777_v61  ;;  %4406 = vmatprep.mubr.f32.mxu1 %v12226_v2 }
0x2323   :  { %9168 = vmatprep.subr.bf16.mxu1 %v10779_v12 }
0x2326   :  { %9170 = vmatpush1.bf16.msra.mxu1 %v10802_v17 }
0x2327   :  { %9180 = vmatprep.subr.bf16.mxu1 %v11118_v27 }
0x23f4   :  { %v4244_v14 = vpop.f32.mrb[48].mxu1 }
0x23f5   :  { %v4245_v3 = vadd.f32 %v10787_v56, %v4244_v14  ;;  %v8319_v35 = vpop.f32.mrb[49].mxu1  ;;  %v9451_v56 = vadd.f32 %v11055_v60, %v9971_v39  ;;  %v7173_v14 = vld [vmem:[%s12219_s5 + $0x1c8] sm:$0xff] }
0x23f7   :  { %v4248_v23 = vmax.f32 %v4245_v3, 0.0  ;;  %v11199_v3 = vpack.c.bf16 %v7156_v55, %v7155_v25  ;;  %v11317_v25 = vld [vmem:[%s12218_s10 + $0x7] ss:$0 sm:$0xff] }
0x23f9   :  { %8329 = vmatmul.mubr.msk.f32.vlgmr.msra.gmra.mrb[52].mxu0 %vm203_vm1, %v4248_v23  ;;  %v7157_v23 = vld [vmem:[%s12219_s5 + $0x150] sm:$0xff] }
0x23fa   :  { %9174 = vmatpush1.bf16.msra.mxu0 %v10946_v15  ;;  %4536 = vmatprep.mubr.f32.mxu0 %v12226_v2 }
0x23fb   :  { %9176 = vmatprep.subr.bf16.mxu0 %v10960_v51 }
0x23fe   :  { %9178 = vmatpush1.bf16.msra.mxu0 %v10975_v50 }
0x23ff   :  { %9187 = vmatprep.subr.bf16.mxu0 %v12228_v10 }
0x24cc   :  { %v4327_v61 = vpop.f32.mrb[52].mxu0 }
0x24cd   :  { %v4328_v12 = vadd.f32 %v10809_v19, %v4327_v61  ;;  %v8330_v17 = vpop.f32.mrb[53].mxu0  ;;  %v7158_v61 = vld [vmem:[%s12219_s5 + $0x158] sm:$0xff] }
0x24ce   :  { %v7175_v17 = vld [vmem:[%s12219_s5 + $0x1d8] sm:$0xff] }
0x24cf   :  { %7143 = vmatmul.mubr.msk.f32.vlgmr.msra.gmra.mrb[50].mxu1 %vm203_vm1, %v4328_v12  ;;  %v7174_v12 = vld [vmem:[%s12219_s5 + $0x1d0] sm:$0xff] }
0x24d0   :  { %4607 = vmatprep.mubr.f32.mxu1 %v12226_v2  ;;  %9182 = vmatpush1.bf16.msra.mxu1 %v10948_v1  ;;  %v7148_v1 = vld [vmem:[%s12219_s5 + $0x108] sm:$0xff] }
0x24d1   :  { %9184 = vmatprep.subr.bf16.mxu1 %v10973_v18  ;;  %v11133_v18 = vpack.c.bf16 %v7148_v1, %v7147_v48  ;;  %v7181_v1 = vld [vmem:[%s12215_s6 + $0x20] sm:$0xff] }
0x24d4   :  { %9186 = vmatpush1.bf16.msra.mxu1 %v10984_v7  ;;  %v7149_v7 = vld [vmem:[%s12219_s5 + $0x110] sm:$0xff] }
0x24d5   :  { %9211 = vmatprep.subr.bf16.mxu1 %v12228_v10  ;;  %v11145_v58 = vpack.c.bf16 %v7150_v52, %v7149_v7  ;;  %v7182_v7 = vld [vmem:[%s12215_s6 + $0x28] sm:$0xff] }
0x24d6   :  { %v11286_v52 = vpack.c.bf16 %v7182_v7, %v7181_v1 }
0x25a2   :  { %v4408_v15 = vpop.f32.mrb[50].mxu1 }
0x25a3   :  { %v4425_v8 = vadd.f32 %v9451_v56, %v4408_v15  ;;  %v4410_v28 = vpop.f32.mrb[51].mxu1  ;;  %v11219_v56 = vpack.c.bf16 %v7158_v61, %v7157_v23  ;;  %v11221_v15 = vpack.c.bf16 %v7175_v17, %v7174_v12 }
0x25a4   :  { %v11100_v51 = vadd.f32 %v4410_v28, %v11057_v6  ;;  %v7160_v28 = vld [vmem:[%s12219_s5 + $0x168] sm:$0xff] }
0x25a5   :  { %v4426_v50 = vmul.f32 0.5, %v4425_v8 }
0x25a7   :  { %v4427_v37 = vsel %vm10235_vm7, %v4425_v8, %v4426_v50  ;;  %v7159_v8 = vld [vmem:[%s12219_s5 + $0x160] sm:$0xff] }
0x25a8   :  { %9519 = vtanh.f32 %v4427_v37  ;;  %v7176_v50 = vld [vmem:[%s12219_s5 + $0x1e0] sm:$0xff]  ;;  %v7177_v37 = vld [vmem:[%s12219_s5 + $0x1e8] sm:$0xff] }
0x25b2   :  { %v9520_v19 = vpop.eup %9519 }
0x25b3   :  { %v4429_v21 = vmul.f32 0.5, %v9520_v19 }
0x25b5   :  { %v4430_v30 = vadd.f32 0.5, %v4429_v21  ;;  %v11241_v21 = vpack.c.bf16 %v7177_v37, %v7176_v50 }
0x25b7   :  { %v4431_v57 = vsel %vm10235_vm7, %v9520_v19, %v4430_v30  ;;  %v11239_v19 = vpack.c.bf16 %v7160_v28, %v7159_v8  ;;  %v7161_v30 = vld [vmem:[%s12219_s5 + $0x170] sm:$0xff] }
0x25b8   :  { %4434 = vrot.lane.b32.xlu0 %v4431_v57, %s9672_s30  ;;  %v4432_v6 = vmul.f32 %v4431_v57, %v10923_v46 }
0x262a   :  { %v4435_v60 = vpop.permute.xlu0 %4434 }
0x262b   :  { %v4437_v59 = vmul.f32 %v4435_v60, %v4431_v57  ;;  %v7178_v60 = vld [vmem:[%s12219_s5 + $0x1f0] sm:$0xff] }
0x262d   :  { %4439 = vrot.lane.b32.xlu1 %v4437_v59, %s9673_s13 }
0x269f   :  { %v4440_v22 = vpop.permute.xlu1 %4439 }
0x26a0   :  { %v11109_v36 = vadd.f32 %v4440_v22, %v4432_v6  ;;  %v7179_v6 = vld [vmem:[%s12219_s5 + $0x1f8] sm:$0xff] }
0x26a1   :  { %v11263_v22 = vpack.c.bf16 %v7179_v6, %v7178_v60 }
0x26a2   :  { %9521 = vtanh.f32 %v11109_v36 }
0x26ac   :  { %v9522_v46 = vpop.eup %9521 }
0x26ad   :  { %4445 = vrot.lane.b32.xlu0 %v9522_v46, %s9672_s30 }
0x271f   :  { %v4446_v33 = vpop.permute.xlu0 %4445 }
0x2720   :  { %v4448_v40 = vmul.f32 %v4446_v33, %v4431_v57  ;;  %v7162_v57 = vld [vmem:[%s12219_s5 + $0x178] sm:$0xff] }
0x2721   :  { %v11258_v59 = vpack.c.bf16 %v7162_v57, %v7161_v30 }
0x2722   :  { %4468 = vrot.lane.b32.xlu1 %v4448_v40, %s9673_s13 }
0x2794   :  { %v4469_v42 = vpop.permute.xlu1 %4468 }
0x2795   :  { %7145 = vmatmul.mubr.msk.f32.vlgmr.msra.gmra.mrb[24].mxu0 %vm203_vm1, %v4469_v42  ;;  %7146 = vmatmul.mubr.msk.f32.vlgmr.msra.gmra.mrb[52].mxu1 %vm203_vm1, %v4469_v42  ;;  %v7183_v42 = vld [vmem:[%s12215_s6 + $0x30] sm:$0xff] }
0x2796   :  { %9189 = vmatpush3.bf16.msra.mxu0 %v11133_v18  ;;  %9213 = vmatpush3.bf16.msra.mxu1 %v10999_v43  ;;  %v11161_v43 = vpack.c.bf16 %v7152_v41, %v7151_v62  ;;  %v7184_v62 = vld [vmem:[%s12215_s6 + $0x38] sm:$0xff] }
0x2797   :  { %9190 = vmatprep.subr.bf16.mxu0 %v12228_v10  ;;  %9214 = vmatprep.subr.bf16.mxu1 %v12228_v10  ;;  %v11296_v41 = vpack.c.bf16 %v7184_v62, %v7183_v42  ;;  %v7144_v62 = vld [vmem:[%s12221_s2 + $0x30] sm:$0xff] }
0x2798   :  { %8363 = vmatprep.mubr.msk.f32.mxu0 %vm9671_vm2, %v12226_v2  ;;  %8398 = vmatprep.mubr.msk.f32.mxu1 %vm9671_vm2, %v12226_v2 }
0x279a   :  { %9192 = vmatpush3.bf16.msra.mxu0 %v11145_v58  ;;  %9216 = vmatpush3.bf16.msra.mxu1 %v11011_v24  ;;  %v7171_v24 = vld [vmem:[%s12219_s5 + $0x1b8] sm:$0xff] }
0x279b   :  { %9193 = vmatprep.subr.bf16.mxu0 %v12228_v10  ;;  %9217 = vmatprep.subr.bf16.mxu1 %v12228_v10  ;;  %v11181_v63 = vpack.c.bf16 %v7171_v24, %v7170_v13  ;;  %v11305_v13 = vpack.c.bf16 %v7188_v20, %v7187_v5  ;;  %v11312_v24 = vld [vmem:[%s12218_s10 + $0x6] ss:$0 sm:$0xff] }
0x279e   :  { %9195 = vmatpush3.bf16.msra.mxu0 %v11161_v43  ;;  %9219 = vmatpush3.bf16.msra.mxu1 %v11027_v4  ;;  %v7172_v4 = vld [vmem:[%s12219_s5 + $0x1c0] sm:$0xff] }
0x279f   :  { %9196 = vmatprep.subr.bf16.mxu0 %v12228_v10  ;;  %9220 = vmatprep.subr.bf16.mxu1 %v12228_v10  ;;  %v11201_v35 = vpack.c.bf16 %v7173_v14, %v7172_v4 }
0x27a2   :  { %9198 = vmatpush3.bf16.msra.mxu0 %v11179_v26  ;;  %9222 = vmatpush3.bf16.msra.mxu1 %v11181_v63 }
0x27a3   :  { %9199 = vmatprep.subr.bf16.mxu0 %v12228_v10  ;;  %9223 = vmatprep.subr.bf16.mxu1 %v12228_v10 }
0x27a6   :  { %9201 = vmatpush3.bf16.msra.mxu0 %v11199_v3  ;;  %9225 = vmatpush3.bf16.msra.mxu1 %v11201_v35 }
0x27a7   :  { %9202 = vmatprep.subr.bf16.mxu0 %v12228_v10  ;;  %9226 = vmatprep.subr.bf16.mxu1 %v12228_v10 }
0x27aa   :  { %9204 = vmatpush3.bf16.msra.mxu0 %v11219_v56  ;;  %9228 = vmatpush3.bf16.msra.mxu1 %v11221_v15 }
0x27ab   :  { %9205 = vmatprep.subr.bf16.mxu0 %v12228_v10  ;;  %9229 = vmatprep.subr.bf16.mxu1 %v12228_v10 }
0x27ae   :  { %9207 = vmatpush3.bf16.msra.mxu0 %v11239_v19  ;;  %9231 = vmatpush3.bf16.msra.mxu1 %v11241_v21 }
0x27af   :  { %9208 = vmatprep.subr.bf16.mxu0 %v12228_v10  ;;  %9232 = vmatprep.subr.bf16.mxu1 %v12228_v10 }
0x27b2   :  { %9210 = vmatpush3.bf16.msra.mxu0 %v11258_v59  ;;  %9234 = vmatpush3.bf16.msra.mxu1 %v11263_v22 }
0x27b3   :  { %9235 = vmatprep.subr.bf16.mxu0 %v12228_v10  ;;  %9241 = vmatprep.subr.bf16.mxu1 %v12228_v10 }
0x2868   :  { %v11269_v9 = vpop.f32.mrb[24].mxu0  ;;  %v11271_v32 = vpop.f32.mrb[52].mxu1 }
0x2869   :  { %v4540_v46 = vpop.f32.mrb[25].mxu0  ;;  %v11273_v33 = vpop.f32.mrb[53].mxu1 }
0x286a   :  { %v9454_v40 = vadd.f32 %v4540_v46, %v10103_v49 }
0x286c   :  { %v4618_v48 = vmax.f32 %v9454_v40, 0.0 }
0x286e   :  { %8364 = vmatmul.mubr.f32.vlgmr.msra.gmra.mrb[54].mxu0 %v4618_v48  ;;  %8399 = vmatmul.mubr.f32.vlgmr.msra.gmra.mrb[54].mxu1 %v4618_v48 }
0x286f   :  { %8409 = vmatprep.mubr.msk.f32.mxu0 %vm9671_vm2, %v12226_v2  ;;  %8420 = vmatprep.mubr.msk.f32.mxu1 %vm9671_vm2, %v12226_v2 }
0x2870   :  { %9237 = vmatpush3.bf16.msra.mxu0 %v11286_v52  ;;  %9243 = vmatpush3.bf16.msra.mxu1 %v11305_v13 }
0x2871   :  { %9238 = vmatprep.subr.bf16.mxu0 %v12228_v10  ;;  %9244 = vmatprep.subr.bf16.mxu1 %v12228_v10 }
0x2874   :  { %9240 = vmatpush3.bf16.msra.mxu0 %v11296_v41 }
0x2941   :  { %v4706_v55 = vpop.f32.mrb[54].mxu0  ;;  %v4797_v4 = vpop.f32.mrb[54].mxu1 }
0x2942   :  { %v4707_v14 = vadd.f32 %v11312_v24, %v4706_v55  ;;  %v4798_v23 = vadd.f32 %v11317_v25, %v4797_v4  ;;  %v8365_v61 = vpop.f32.mrb[55].mxu0  ;;  %v8400_v12 = vpop.f32.mrb[55].mxu1 }
0x2943   :  { %v7190_v61 = vld [vmem:[%s12215_s6 + $0x58] sm:$0xff] }
0x2944   :  { %5078 = vst.msk [vmem:[#allocation6 + $0x30] sm:$0xff] %vm203_vm1, %v4707_v14  ;;  %v4801_v17 = vadd.f32 0.5, %v4798_v23  ;;  %v7189_v23 = vld [vmem:[%s12215_s6 + $0x50] sm:$0xff] }
0x2945   :  { %v11335_v12 = vpack.c.bf16 %v7190_v61, %v7189_v23 }
0x2946   :  { %v4805_v8 = vand.u32 2147483647, %v4801_v17  ;;  %v4802_v1 = vmax.f32 %v4801_v17, 0.0  ;;  %vm4803_vm6 = vcmp.ne.f32.partialorder %v4801_v17, %v4801_v17 }
0x2947   :  { %9246 = vmatpush3.bf16.msra.mxu1 %v11335_v12 }
0x2948   :  { %v4806_v28 = vsub.f32 0.0, %v4805_v8  ;;  %9264 = vmatprep.subr.bf16.mxu1 %v11118_v27  ;;  %v7193_v8 = vld [vmem:[%s12216_s4 + $0x40] sm:$0xff]  ;;  %v7198_v27 = vld [vmem:[%s12216_s4 + $0x68] sm:$0xff] }
0x294a   :  { %v4807_v50 = vmul.f32 1.442695, %v4806_v28 }
0x294c   :  { %9523 = vpow2.f32 %v4807_v50  ;;  %v7195_v50 = vld [vmem:[%s12216_s4 + $0x50] sm:$0xff] }
0x2956   :  { %v9524_v37 = vpop.eup %9523 }
0x2957   :  { %v4809_v30 = vadd.f32 1.0, %v9524_v37  ;;  %v4812_v57 = vmul.f32 -0.5, %v9524_v37  ;;  %v4815_v6 = vand.u32 2147483647, %v9524_v37 }
0x2959   :  { %9525 = vlog2.f32 %v4809_v30  ;;  %v4813_v60 = vadd.f32 1.0, %v4812_v57  ;;  %vm4816_vm5 = vcmp.lt.f32.partialorder %v4815_v6, 0.0004427343  ;;  %v11359_v30 = vpack.c.bf16 %v7195_v50, %v7193_v8 }
0x295b   :  { %v4814_v48 = vmul.f32 %v9524_v37, %v4813_v60  ;;  %v7200_v37 = vld [vmem:[%s12216_s4 + $0x78] sm:$0xff]  ;;  %v11369_v60 = vld [vmem:[%s12218_s10 + $0x2] ss:$0 sm:$0xff] }
0x295c   :  { %v11361_v57 = vpack.c.bf16 %v7200_v37, %v7198_v27 }
0x2963   :  { %v9526_v46 = vpop.eup %9525 }
0x2964   :  { %v4811_v40 = vmul.f32 0.6931472, %v9526_v46 }
0x2966   :  { %v4817_v7 = vsel %vm4816_vm5, %v4814_v48, %v4811_v40 }
0x2967   :  { %v4818_v42 = vadd.f32 %v4817_v7, %v4802_v1  ;;  %v7197_v1 = vld [vmem:[%s12216_s4 + $0x60] sm:$0xff]  ;;  %v7199_v7 = vld [vmem:[%s12216_s4 + $0x70] sm:$0xff] }
0x2969   :  { %v4819_v5 = vsel %vm4803_vm6, %v4801_v17, %v4818_v42  ;;  %v7196_v17 = vld [vmem:[%s12216_s4 + $0x58] sm:$0xff]  ;;  %v11380_v42 = vpack.c.bf16 %v7199_v7, %v7197_v1  ;;  %v6543_v1 = vld [vmem:[#allocation7 + $0x8] sm:$0xff] }
0x296a   :  { %v4820_v20 = vmax.f32 %v4819_v5, 0.0  ;;  %v6545_v7 = vld [vmem:[#allocation7 + $0x18] sm:$0xff] }
0x296c   :  { %v4821_v55 = vmul.f32 %v7144_v62, %v4820_v20  ;;  %5080 = vst.msk [vmem:[#allocation7 + $0x30] sm:$0xff] %vm203_vm1, %v4820_v20  ;;  %v11386_v62 = vld [vmem:[%s12218_s10 + $0x3] ss:$0 sm:$0xff] }
0x296d   :  { %12233 = vst [vmem:[#allocation8_spill] sm:$0xff] %v11386_v62 }
0x296e   :  { %v4822_v4 = vadd.f32 %v4821_v55, %v4707_v14  ;;  %v7194_v14 = vld [vmem:[%s12216_s4 + $0x48] sm:$0xff] }
0x296f   :  { %v11348_v28 = vpack.c.bf16 %v7196_v17, %v7194_v14 }
0x2970   :  { %8410 = vmatmul.mubr.msk.f32.vlgmr.msra.gmra.mrb[56].mxu0 %vm203_vm1, %v4822_v4  ;;  %5076 = vst.msk [vmem:[#allocation5 + $0x30] sm:$0xff] %vm203_vm1, %v4822_v4  ;;  %v9453_v4 = vadd.f32 %v11269_v9, %v9971_v39 }
0x2971   :  { %5063 = vmatprep.mubr.f32.mxu0 %v12226_v2  ;;  %9248 = vmatprep.subr.bf16.mxu0 %v11348_v28 }
0x2972   :  { %9250 = vmatpush1.bf16.msra.mxu0 %v11359_v30 }
0x2973   :  { %9252 = vmatprep.subr.bf16.mxu0 %v11361_v57 }
0x2976   :  { %9254 = vmatpush1.bf16.msra.mxu0 %v11380_v42 }
0x2a43   :  { %v4901_v6 = vpop.f32.mrb[56].mxu0 }
0x2a44   :  { %v4902_v46 = vadd.f32 %v11369_v60, %v4901_v6  ;;  %v8411_v40 = vpop.f32.mrb[57].mxu0 }
0x2a46   :  { %v4905_v48 = vmax.f32 %v4902_v46, 0.0 }
0x2a48   :  { %8421 = vmatmul.mubr.msk.f32.vlgmr.msra.gmra.mrb[56].mxu1 %vm203_vm1, %v4905_v48 }
0x2a49   :  { %5263 = vmatprep.mubr.f32.mxu1 %v12226_v2 }
0x2b1b   :  { %v4984_v5 = vpop.f32.mrb[56].mxu1 }
0x2b1c   :  { %v4985_v20 = vadd.f32 %v11386_v62, %v4984_v5  ;;  %v8422_v55 = vpop.f32.mrb[57].mxu1  ;;  %v6547_v5 = vld [vmem:[#allocation7 + $0x28] sm:$0xff] }
0x2b1e   :  { %7201 = vmatmul.mubr.msk.f32.vlgmr.msra.gmra.mrb[58].mxu0 %vm203_vm1, %v4985_v20  ;;  %v6527_v20 = vld [vmem:[#allocation5 + $0x8] sm:$0xff] }
0x2b1f   :  { %5193 = vmatprep.mubr.f32.mxu0 %v12226_v2 }
0x2bf1   :  { %v5065_v23 = vpop.f32.mrb[58].mxu0 }
0x2bf2   :  { %v5082_v61 = vadd.f32 %v9453_v4, %v5065_v23  ;;  %v5067_v14 = vpop.f32.mrb[59].mxu0  ;;  %v6535_v4 = vld [vmem:[#allocation6 + $0x8] sm:$0xff] }
0x2bf3   :  { %v11394_v17 = vadd.f32 %v5067_v14, %v11271_v32  ;;  %v6647_v23 = vsub.f32 %v6527_v20, %v6535_v4 }
0x2bf4   :  { %v5083_v8 = vmul.f32 0.5, %v5082_v61 }
0x2bf5   :  { %12234 = vst [vmem:[#allocation9_spill] sm:$0xff] %v11394_v17 }
0x2bf6   :  { %v5084_v50 = vsel %vm10235_vm7, %v5082_v61, %v5083_v8  ;;  %v6529_v61 = vld [vmem:[#allocation5 + $0x18] sm:$0xff] }
0x2bf7   :  { %9527 = vtanh.f32 %v5084_v50  ;;  %v6537_v8 = vld [vmem:[#allocation6 + $0x18] sm:$0xff] }
0x2bf8   :  { %v6649_v50 = vsub.f32 %v6529_v61, %v6537_v8 }
0x2c01   :  { %v9528_v27 = vpop.eup %9527 }
0x2c02   :  { %v5086_v37 = vmul.f32 0.5, %v9528_v27 }
0x2c04   :  { %v5087_v6 = vadd.f32 0.5, %v5086_v37 }
0x2c06   :  { %v11400_v46 = vsel %vm10235_vm7, %v9528_v27, %v5087_v6  ;;  %v6531_v27 = vld [vmem:[#allocation5 + $0x28] sm:$0xff] }
0x2c07   :  { %5091 = vrot.lane.b32.xlu0 %v11400_v46, %s9672_s30  ;;  %v5089_v32 = vmul.f32 %v11400_v46, %v11109_v36 }
0x2c79   :  { %v5092_v39 = vpop.permute.xlu0 %5091 }
0x2c7a   :  { %v5094_v9 = vmul.f32 %v5092_v39, %v11400_v46 }
0x2c7c   :  { %5096 = vrot.lane.b32.xlu1 %v5094_v9, %s9673_s13  ;;  %v6539_v9 = vld [vmem:[#allocation6 + $0x28] sm:$0xff] }
0x2cee   :  { %v5097_v40 = vpop.permute.xlu1 %5096 }
0x2cef   :  { %v5099_v48 = vadd.f32 %v5097_v40, %v5089_v32  ;;  %v6651_v32 = vsub.f32 %v6531_v27, %v6539_v9  ;;  %v5114_v9 = vld [vmem:[%s12217_s3 + $0x30] sm:$0xff] }
0x2cf1   :  { %9529 = vtanh.f32 %v5099_v48 }
0x2cf2   :  { %9531 = vrcp.f32 %v6543_v1 }
0x2cf3   :  { %9533 = vrcp.f32 %v6545_v7 }
0x2cf4   :  { %9535 = vrcp.f32 %v6547_v5 }
0x2cf5   :  { %9537 = vlog2.f32 %v6543_v1 }
0x2cf6   :  { %9539 = vlog2.f32 %v6545_v7 }
0x2cf7   :  { %9541 = vlog2.f32 %v6547_v5 }
0x2cfb   :  { %v9530_v54 = vpop.eup %9529 }
0x2cfc   :  { %5102 = vrot.lane.b32.xlu0 %v9530_v54, %s9672_s30  ;;  %v9532_v55 = vpop.eup %9531 }
0x2cfd   :  { %v6657_v14 = vmul.f32 %v9532_v55, %v6647_v23  ;;  %v9534_v36 = vpop.eup %9533 }
0x2cfe   :  { %v6661_v6 = vmul.f32 %v9534_v36, %v6649_v50  ;;  %v9536_v39 = vpop.eup %9535 }
0x2cff   :  { %v6671_v37 = vmul.f32 -0.5, %v6657_v14  ;;  %v9538_v40 = vpop.eup %9537  ;;  %v6665_v2 = vmul.f32 %v9536_v39, %v6651_v32  ;;  %v5110_v39 = vld [vmem:[%s12217_s3 + $0x10] sm:$0xff] }
0x2d00   :  { %v6673_v54 = vmul.f32 -0.5, %v6661_v6  ;;  %v6689_v10 = vmul.f32 0.6931472, %v9538_v40  ;;  %v9540_v1 = vpop.eup %9539  ;;  %v9265_v40 = vpack.c.bf16 %v5114_v9, %v5110_v39  ;;  %v6528_v9 = vld [vmem:[#allocation5 + $0x10] sm:$0xff] }
0x2d01   :  { %v6679_v48 = vmul.f32 %v6671_v37, %v6657_v14  ;;  %v6675_v55 = vmul.f32 -0.5, %v6665_v2  ;;  %v6693_v23 = vmul.f32 0.6931472, %v9540_v1  ;;  %v9542_v62 = vpop.eup %9541  ;;  %v5119_v1 = vld [vmem:[%s12217_s3 + $0x58] sm:$0xff] }
0x2d02   :  { %v6681_v4 = vmul.f32 %v6673_v54, %v6661_v6  ;;  %v6697_v17 = vmul.f32 0.6931472, %v9542_v62  ;;  %v5108_v62 = vld [vmem:[%s12217_s3] sm:$0xff]  ;;  %v5121_v54 = vld [vmem:[%s12217_s3 + $0x68] sm:$0xff]  ;;  %9266 = vmatpush1.bf16.msra.mxu1 %v9265_v40 }
0x2d03   :  { %v6703_v20 = vsub.f32 %v6679_v48, %v6689_v10  ;;  %v6683_v8 = vmul.f32 %v6675_v55, %v6665_v2  ;;  %v5109_v10 = vld [vmem:[%s12217_s3 + $0x8] sm:$0xff]  ;;  %v5112_v6 = vld [vmem:[%s12217_s3 + $0x20] sm:$0xff] }
0x2d04   :  { %v6705_v61 = vsub.f32 %v6681_v4, %v6693_v23  ;;  %v5113_v2 = vld [vmem:[%s12217_s3 + $0x28] sm:$0xff]  ;;  %v9257_v32 = vpack.c.bf16 %v5112_v6, %v5108_v62  ;;  %v5123_v4 = vld [vmem:[%s12217_s3 + $0x78] sm:$0xff]  ;;  %v5116_v55 = vld [vmem:[%s12217_s3 + $0x40] sm:$0xff] }
0x2d05   :  { %v7290_v7 = vadd.f32 -0.9189385, %v6703_v20  ;;  %v6707_v5 = vsub.f32 %v6683_v8, %v6697_v17  ;;  %v9255_v17 = vpack.c.bf16 %v5113_v2, %v5109_v10  ;;  %v5117_v48 = vld [vmem:[%s12217_s3 + $0x48] sm:$0xff]  ;;  %v5120_v23 = vld [vmem:[%s12217_s3 + $0x60] sm:$0xff]  ;;  %v5118_v8 = vld [vmem:[%s12217_s3 + $0x50] sm:$0xff] }
0x2d06   :  { %v7292_v50 = vadd.f32 -0.9189385, %v6705_v61  ;;  %v9259_v20 = vpack.c.bf16 %v5121_v54, %v5117_v48  ;;  %v9261_v61 = vpack.c.bf16 %v5120_v23, %v5116_v55  ;;  %v6544_v10 = vld [vmem:[#allocation7 + $0x10] sm:$0xff]  ;;  %v6546_v2 = vld [vmem:[#allocation7 + $0x20] sm:$0xff] }
0x2d07   :  { %v6721_v36 = vsel %vm203_vm1, %v7290_v7, 0.0  ;;  %v7294_v27 = vadd.f32 -0.9189385, %v6707_v5  ;;  %9256 = vmatprep.subr.bf16.mxu0 %v9255_v17  ;;  %v9267_v7 = vpack.c.bf16 %v5123_v4, %v5119_v1  ;;  %v12235_v5 = vmov 0.0|0.0   ;;  %v6526_v62 = vld [vmem:[#allocation5] sm:$0xff]  ;;  %v6536_v48 = vld [vmem:[#allocation6 + $0x10] sm:$0xff] }
0x2d08   :  { %v6727_v14 = vsel %vm203_vm1, %v7292_v50, 0.0  ;;  %9258 = vmatpush1.bf16.msra.mxu0 %v9257_v32  ;;  %v6534_v6 = vld [vmem:[#allocation6] sm:$0xff]  ;;  %v6648_v54 = vsub.f32 %v6528_v9, %v6536_v48 }
0x2d09   :  { %v6733_v37 = vsel %vm203_vm1, %v7294_v27, 0.0  ;;  %9260 = vmatprep.subr.bf16.mxu0 %v9259_v20  ;;  %9268 = vmatprep.subr.bf16.mxu1 %v9267_v7  ;;  %v6646_v39 = vsub.f32 %v6526_v62, %v6534_v6  ;;  %v6538_v55 = vld [vmem:[#allocation6 + $0x20] sm:$0xff] }
0x2d0c   :  { %9262 = vmatpush1.bf16.msra.mxu0 %v9261_v61 }
0x2d0d   :  { %9295 = vmatprep.subr.bf16.mxu0 %v12235_v5 }
0x2d1b   :  { %6722 = vadd.xlane.f32.xlu0 %v6721_v36  ;;  %v5122_v36 = vld [vmem:[%s12217_s3 + $0x70] sm:$0xff] }
0x2d1c   :  { %v9269_v50 = vpack.c.bf16 %v5122_v36, %v5118_v8 }
0x2d1e   :  { %9270 = vmatpush1.bf16.msra.mxu1 %v9269_v50 }
0x2d1f   :  { %6728 = vadd.xlane.f32.xlu0 %v6727_v14  ;;  %9271 = vmatprep.subr.bf16.mxu1 %v12235_v5 }
0x2d23   :  { %6734 = vadd.xlane.f32.xlu0 %v6733_v37  ;;  %v6542_v37 = vld [vmem:[#allocation7] sm:$0xff] }
0x2d24   :  { %9543 = vrcp.f32 %v6542_v37 }
0x2d25   :  { %9545 = vrcp.f32 %v6544_v10 }
0x2d26   :  { %9547 = vrcp.f32 %v6546_v2 }
0x2d27   :  { %9549 = vlog2.f32 %v6542_v37 }
0x2d28   :  { %9551 = vlog2.f32 %v6544_v10 }
0x2d29   :  { %9553 = vlog2.f32 %v6546_v2 }
0x2d2e   :  { %v9544_v17 = vpop.eup %9543 }
0x2d2f   :  { %v6655_v32 = vmul.f32 %v9544_v17, %v6646_v39  ;;  %v9546_v40 = vpop.eup %9545 }
0x2d30   :  { %v6659_v20 = vmul.f32 %v9546_v40, %v6648_v54  ;;  %v9548_v4 = vpop.eup %9547 }
0x2d31   :  { %v6670_v1 = vmul.f32 -0.5, %v6655_v32  ;;  %v9550_v7 = vpop.eup %9549 }
0x2d32   :  { %v6672_v8 = vmul.f32 -0.5, %v6659_v20  ;;  %v6687_v50 = vmul.f32 0.6931472, %v9550_v7  ;;  %v7225_v7 = vld [vmem:[%s12219_s5 + $0x198] sm:$0xff] }
0x2d33   :  { %v6678_v61 = vmul.f32 %v6670_v1, %v6655_v32 }
0x2d34   :  { %v6680_v37 = vmul.f32 %v6672_v8, %v6659_v20  ;;  %v7222_v20 = vld [vmem:[%s12219_s5 + $0x180] sm:$0xff] }
0x2d6e   :  { %v5103_v14 = vpop.permute.xlu0 %5102 }
0x2d6f   :  { %v5105_v27 = vmul.f32 %v5103_v14, %v11400_v46  ;;  %v6530_v46 = vld [vmem:[#allocation5 + $0x20] sm:$0xff]  ;;  %v9552_v14 = vpop.eup %9551 }
0x2d70   :  { %v6650_v23 = vsub.f32 %v6530_v46, %v6538_v55  ;;  %v6691_v17 = vmul.f32 0.6931472, %v9552_v14  ;;  %v9554_v6 = vpop.eup %9553  ;;  %v12236_v14 = vmov 0.0  }
0x2d71   :  { %5125 = vrot.lane.b32.xlu1 %v5105_v27, %s9673_s13  ;;  %v6702_v27 = vsub.f32 %v6678_v61, %v6687_v50  ;;  %v6695_v48 = vmul.f32 0.6931472, %v9554_v6  ;;  %v7227_v50 = vld [vmem:[%s12219_s5 + $0x1a8] sm:$0xff] }
0x2d72   :  { %v6663_v36 = vmul.f32 %v9548_v4, %v6650_v23  ;;  %v6704_v39 = vsub.f32 %v6680_v37, %v6691_v17  ;;  %v7223_v4 = vld [vmem:[%s12219_s5 + $0x188] sm:$0xff]  ;;  %v7224_v23 = vld [vmem:[%s12219_s5 + $0x190] sm:$0xff] }
0x2d73   :  { %v7289_v10 = vadd.f32 -0.9189385, %v6702_v27  ;;  %v9296_v55 = vpack.c.bf16 %v7223_v4, %v7222_v20  ;;  %v9299_v8 = vpack.c.bf16 %v7225_v7, %v7224_v23  ;;  %v5768_v20 = vld [vmem:[%s12219_s5 + $0x18] sm:$0xff] }
0x2d74   :  { %v6674_v62 = vmul.f32 -0.5, %v6663_v36  ;;  %v7291_v54 = vadd.f32 -0.9189385, %v6704_v39  ;;  %v7202_v39 = vld [vmem:[%s12221_s2 + $0x38] sm:$0xff] }
0x2d75   :  { %v6718_v40 = vsel %vm203_vm1, %v7289_v10, 0.0 }
0x2d76   :  { %v6682_v9 = vmul.f32 %v6674_v62, %v6663_v36  ;;  %v6724_v32 = vsel %vm203_vm1, %v7291_v54, 0.0  ;;  %v7226_v36 = vld [vmem:[%s12219_s5 + $0x1a0] sm:$0xff] }
0x2d78   :  { %v6706_v2 = vsub.f32 %v6682_v9, %v6695_v48 }
0x2d7a   :  { %v7293_v46 = vadd.f32 -0.9189385, %v6706_v2  ;;  %v5765_v2 = vld [vmem:[%s12219_s5] sm:$0xff] }
0x2d7c   :  { %v6730_v1 = vsel %vm203_vm1, %v7293_v46, 0.0 }
0x2d95   :  { %6719 = vadd.xlane.f32.xlu1 %v6718_v40 }
0x2d99   :  { %6725 = vadd.xlane.f32.xlu1 %v6724_v32  ;;  %v5766_v32 = vld [vmem:[%s12219_s5 + $0x8] sm:$0xff] }
0x2d9a   :  { %v9339_v46 = vpack.c.bf16 %v5766_v32, %v5765_v2 }
0x2d9d   :  { %6731 = vadd.xlane.f32.xlu1 %v6730_v1  ;;  %v5767_v1 = vld [vmem:[%s12219_s5 + $0x10] sm:$0xff] }
0x2d9e   :  { %v9343_v7 = vpack.c.bf16 %v5768_v20, %v5767_v1  ;;  %v6216_v1 = vld [vmem:[%s12222_s8 + $0x50] sm:$0xff]  ;;  %v6217_v20 = vld [vmem:[%s12222_s8 + $0x58] sm:$0xff] }
0x2de3   :  { %v5126_v61 = vpop.permute.xlu1 %5125 }
0x2de4   :  { %7203 = vmatmul.mubr.msk.f32.vlgmr.msra.gmra.mrb[26].mxu0 %vm203_vm1, %v5126_v61  ;;  %7204 = vmatmul.mubr.msk.f32.vlgmr.msra.gmra.mrb[58].mxu1 %vm203_vm1, %v5126_v61 }
0x2de5   :  { %9273 = vmatpush3.bf16.msra.mxu1 %v11133_v18  ;;  %9297 = vmatpush3.bf16.msra.mxu0 %v9296_v55  ;;  %v9302_v18 = vpack.c.bf16 %v7227_v50, %v7226_v36  ;;  %v5771_v36 = vld [vmem:[%s12219_s5 + $0x30] sm:$0xff]  ;;  %v5772_v50 = vld [vmem:[%s12219_s5 + $0x38] sm:$0xff] }
0x2de6   :  { %9274 = vmatprep.subr.bf16.mxu1 %v12235_v5  ;;  %9298 = vmatprep.subr.bf16.mxu0 %v12235_v5 }
0x2de7   :  { %8455 = vmatprep.mubr.msk.f32.mxu1 %vm9671_vm2, %v12236_v14  ;;  %8490 = vmatprep.mubr.msk.f32.mxu0 %vm9671_vm2, %v12236_v14 }
0x2de9   :  { %9276 = vmatpush3.bf16.msra.mxu1 %v11145_v58  ;;  %9300 = vmatpush3.bf16.msra.mxu0 %v9299_v8  ;;  %v5770_v8 = vld [vmem:[%s12219_s5 + $0x28] sm:$0xff] }
0x2dea   :  { %9277 = vmatprep.subr.bf16.mxu1 %v12235_v5  ;;  %9301 = vmatprep.subr.bf16.mxu0 %v12235_v5 }
0x2ded   :  { %9279 = vmatpush3.bf16.msra.mxu1 %v11161_v43  ;;  %9303 = vmatpush3.bf16.msra.mxu0 %v9302_v18  ;;  %v5773_v18 = vld [vmem:[%s12219_s5 + $0x40] sm:$0xff] }
0x2dee   :  { %9280 = vmatprep.subr.bf16.mxu1 %v12235_v5  ;;  %9304 = vmatprep.subr.bf16.mxu0 %v12235_v5 }
0x2df1   :  { %9282 = vmatpush3.bf16.msra.mxu1 %v11179_v26  ;;  %9306 = vmatpush3.bf16.msra.mxu0 %v11181_v63 }
0x2df2   :  { %9283 = vmatprep.subr.bf16.mxu1 %v12235_v5  ;;  %9307 = vmatprep.subr.bf16.mxu0 %v12235_v5 }
0x2df5   :  { %9285 = vmatpush3.bf16.msra.mxu1 %v11199_v3  ;;  %9309 = vmatpush3.bf16.msra.mxu0 %v11201_v35 }
0x2df6   :  { %9286 = vmatprep.subr.bf16.mxu1 %v12235_v5  ;;  %9310 = vmatprep.subr.bf16.mxu0 %v12235_v5 }
0x2df9   :  { %9288 = vmatpush3.bf16.msra.mxu1 %v11219_v56  ;;  %9312 = vmatpush3.bf16.msra.mxu0 %v11221_v15 }
0x2dfa   :  { %9289 = vmatprep.subr.bf16.mxu1 %v12235_v5  ;;  %9313 = vmatprep.subr.bf16.mxu0 %v12235_v5 }
0x2dfd   :  { %9291 = vmatpush3.bf16.msra.mxu1 %v11239_v19  ;;  %9315 = vmatpush3.bf16.msra.mxu0 %v11241_v21 }
0x2dfe   :  { %9292 = vmatprep.subr.bf16.mxu1 %v12235_v5  ;;  %9316 = vmatprep.subr.bf16.mxu0 %v12235_v5 }
0x2e01   :  { %9294 = vmatpush3.bf16.msra.mxu1 %v11258_v59  ;;  %9318 = vmatpush3.bf16.msra.mxu0 %v11263_v22 }
0x2e02   :  { %9319 = vmatprep.subr.bf16.mxu1 %v12235_v5  ;;  %9325 = vmatprep.subr.bf16.mxu0 %v12235_v5 }
0x2eb7   :  { %v5195_v58 = vpop.f32.mrb[26].mxu0  ;;  %v11514_v43 = vpop.f32.mrb[58].mxu1 }
0x2eb8   :  { %v5196_v26 = vpop.f32.mrb[27].mxu0  ;;  %v11516_v63 = vpop.f32.mrb[59].mxu1  ;;  %v5774_v58 = vld [vmem:[%s12219_s5 + $0x48] sm:$0xff] }
0x2eb9   :  { %v9455_v3 = vadd.f32 %v5196_v26, %v10103_v49  ;;  %v9355_v26 = vpack.c.bf16 %v5774_v58, %v5773_v18 }
0x2ebb   :  { %v5273_v35 = vmax.f32 %v9455_v3, 0.0  ;;  %v5775_v3 = vld [vmem:[%s12219_s5 + $0x50] sm:$0xff] }
0x2ebd   :  { %8456 = vmatmul.mubr.f32.vlgmr.msra.gmra.mrb[60].mxu1 %v5273_v35  ;;  %8491 = vmatmul.mubr.f32.vlgmr.msra.gmra.mrb[60].mxu0 %v5273_v35  ;;  %v5776_v35 = vld [vmem:[%s12219_s5 + $0x58] sm:$0xff] }
0x2ebe   :  { %9321 = vmatpush3.bf16.msra.mxu1 %v11286_v52  ;;  %8501 = vmatprep.mubr.msk.f32.mxu1 %vm9671_vm2, %v12236_v14 }
0x2ebf   :  { %9322 = vmatprep.subr.bf16.mxu1 %v12235_v5  ;;  %9327 = vmatpush3.bf16.msra.mxu0 %v11305_v13 }
0x2ec0   :  { %9328 = vmatprep.subr.bf16.mxu0 %v12235_v5  ;;  %8512 = vmatprep.mubr.msk.f32.mxu0 %vm9671_vm2, %v12236_v14 }
0x2ec2   :  { %9324 = vmatpush3.bf16.msra.mxu1 %v11296_v41 }
0x2ec3   :  { %9330 = vmatpush3.bf16.msra.mxu0 %v11335_v12  ;;  %9332 = vmatprep.subr.bf16.mxu1 %v11348_v28 }
0x2ec4   :  { %9340 = vmatprep.subr.bf16.mxu0 %v9339_v46 }
0x2f90   :  { %v5361_v49 = vpop.f32.mrb[60].mxu1  ;;  %v5452_v56 = vpop.f32.mrb[60].mxu0 }
0x2f91   :  { %v5362_v15 = vadd.f32 %v11312_v24, %v5361_v49  ;;  %v5453_v19 = vadd.f32 %v11317_v25, %v5452_v56  ;;  %v8457_v21 = vpop.f32.mrb[61].mxu1  ;;  %v8492_v59 = vpop.f32.mrb[61].mxu0  ;;  %v9359_v49 = vpack.c.bf16 %v5776_v35, %v5775_v3  ;;  %v5777_v56 = vld [vmem:[%s12219_s5 + $0x60] sm:$0xff] }
0x2f92   :  { %v5779_v21 = vld [vmem:[%s12219_s5 + $0x70] sm:$0xff]  ;;  %v5780_v59 = vld [vmem:[%s12219_s5 + $0x78] sm:$0xff] }
0x2f93   :  { %5732 = vst.msk [vmem:[#allocation6 + $0x38] sm:$0xff] %vm203_vm1, %v5362_v15  ;;  %v5456_v22 = vadd.f32 0.5, %v5453_v19 }
0x2f95   :  { %v5460_v52 = vand.u32 2147483647, %v5456_v22  ;;  %v5457_v6 = vmax.f32 %v5456_v22, 0.0  ;;  %vm5458_vm7 = vcmp.ne.f32.partialorder %v5456_v22, %v5456_v22 }
0x2f97   :  { %v5461_v13 = vsub.f32 0.0, %v5460_v52  ;;  %v6206_v52 = vld [vmem:[%s12222_s8] sm:$0xff] }
0x2f99   :  { %v5462_v5 = vmul.f32 1.442695, %v5461_v13  ;;  %v6207_v13 = vld [vmem:[%s12222_s8 + $0x8] sm:$0xff] }
0x2f9b   :  { %9555 = vpow2.f32 %v5462_v5 }
0x2fa5   :  { %v9556_v41 = vpop.eup %9555 }
0x2fa6   :  { %v5464_v27 = vadd.f32 1.0, %v9556_v41  ;;  %v5467_v12 = vmul.f32 -0.5, %v9556_v41  ;;  %v5470_v37 = vand.u32 2147483647, %v9556_v41 }
0x2fa8   :  { %9557 = vlog2.f32 %v5464_v27  ;;  %v5468_v28 = vadd.f32 1.0, %v5467_v12  ;;  %vm5471_vm2 = vcmp.lt.f32.partialorder %v5470_v37, 0.0004427343  ;;  %v6208_v12 = vld [vmem:[%s12222_s8 + $0x10] sm:$0xff] }
0x2faa   :  { %v5469_v24 = vmul.f32 %v9556_v41, %v5468_v28  ;;  %v9403_v41 = vpack.c.bf16 %v6207_v13, %v6206_v52  ;;  %v6209_v28 = vld [vmem:[%s12222_s8 + $0x18] sm:$0xff] }
0x2fb2   :  { %v9558_v62 = vpop.eup %9557 }
0x2fb3   :  { %v5466_v17 = vmul.f32 0.6931472, %v9558_v62  ;;  %v9407_v62 = vpack.c.bf16 %v6209_v28, %v6208_v12  ;;  %v7266_v12 = vld [vmem:[%s12219_s5 + $0xa0] sm:$0xff]  ;;  %v7267_v28 = vld [vmem:[%s12219_s5 + $0xa8] sm:$0xff] }
0x2fb5   :  { %v5472_v25 = vsel %vm5471_vm2, %v5469_v24, %v5466_v17  ;;  %v6210_v24 = vld [vmem:[%s12222_s8 + $0x20] sm:$0xff] }
0x2fb6   :  { %v5473_v10 = vadd.f32 %v5472_v25, %v5457_v6  ;;  %v6211_v6 = vld [vmem:[%s12222_s8 + $0x28] sm:$0xff] }
0x2fb7   :  { %v9411_v25 = vpack.c.bf16 %v6211_v6, %v6210_v24  ;;  %v7268_v24 = vld [vmem:[%s12219_s5 + $0xb0] sm:$0xff]  ;;  %v7269_v6 = vld [vmem:[%s12219_s5 + $0xb8] sm:$0xff] }
0x2fb8   :  { %v5474_v9 = vsel %vm5458_vm7, %v5456_v22, %v5473_v10  ;;  %v9367_v22 = vpack.c.bf16 %v5780_v59, %v5779_v21  ;;  %v7265_v21 = vld [vmem:[%s12219_s5 + $0x98] sm:$0xff] }
0x2fb9   :  { %v5475_v48 = vmax.f32 %v5474_v9, 0.0  ;;  %v6212_v9 = vld [vmem:[%s12222_s8 + $0x30] sm:$0xff] }
0x2fbb   :  { %v5476_v40 = vmul.f32 %v7202_v39, %v5475_v48  ;;  %5734 = vst.msk [vmem:[#allocation7 + $0x38] sm:$0xff] %vm203_vm1, %v5475_v48  ;;  %v6213_v48 = vld [vmem:[%s12222_s8 + $0x38] sm:$0xff] }
0x2fbd   :  { %v5477_v54 = vadd.f32 %v5476_v40, %v5362_v15  ;;  %v5778_v15 = vld [vmem:[%s12219_s5 + $0x68] sm:$0xff] }
0x2fbe   :  { %v9363_v19 = vpack.c.bf16 %v5778_v15, %v5777_v56 }
0x2fbf   :  { %8502 = vmatmul.mubr.msk.f32.vlgmr.msra.gmra.mrb[62].mxu1 %vm203_vm1, %v5477_v54  ;;  %5730 = vst.msk [vmem:[#allocation5 + $0x38] sm:$0xff] %vm203_vm1, %v5477_v54  ;;  %v9415_v54 = vpack.c.bf16 %v6213_v48, %v6212_v9  ;;  %v7270_v9 = vld [vmem:[%s12219_s5 + $0xc0] sm:$0xff]  ;;  %v7272_v48 = vld [vmem:[%s12219_s5 + $0xd0] sm:$0xff] }
0x2fc0   :  { %9334 = vmatpush1.bf16.msra.mxu1 %v11359_v30  ;;  %5718 = vmatprep.mubr.f32.mxu1 %v12236_v14  ;;  %v11552_v30 = vld [vmem:[%s12220_s9 + $0x1] ss:$0 sm:$0xff]  ;;  %v9351_v14 = vpack.c.bf16 %v5772_v50, %v5771_v36 }
0x2fc1   :  { %9336 = vmatprep.subr.bf16.mxu1 %v11361_v57  ;;  %v11556_v57 = vadd.f32 %v11552_v30, %v10099_v47  ;;  %v5769_v47 = vld [vmem:[%s12219_s5 + $0x20] sm:$0xff]  ;;  %v11613_v5 = vadd.f32 %v11552_v30, %v10295_v16  ;;  %v11617_v27 = vadd.f32 %v11552_v30, %v10477_v31  ;;  %v11628_v16 = vadd.f32 %v11552_v30, %v10691_v29 }
0x2fc2   :  { %v11633_v17 = vadd.f32 %v11552_v30, %v10877_v44  ;;  %v11648_v44 = vadd.f32 %v11552_v30, %v11059_v45  ;;  %v11653_v39 = vadd.f32 %v11552_v30, %v11273_v33  ;;  %v11664_v45 = vld [vmem:[%s12220_s9 + $0x3] ss:$0 sm:$0xff]  ;;  %v11673_v40 = vadd.f32 %v11552_v30, %v11516_v63 }
0x2fc3   :  { %v5757_v61 = vmax.f32 %v11556_v57, 0.0  ;;  %v5758_v37 = vmax.f32 %v11613_v5, 0.0  ;;  %v5759_v31 = vmax.f32 %v11617_v27, 0.0  ;;  %v5760_v29 = vmax.f32 %v11628_v16, 0.0  ;;  %v7271_v57 = vld [vmem:[%s12219_s5 + $0xc8] sm:$0xff] }
0x2fc4   :  { %9338 = vmatpush1.bf16.msra.mxu1 %v11380_v42  ;;  %v5761_v10 = vmax.f32 %v11633_v17, 0.0  ;;  %v5762_v33 = vmax.f32 %v11648_v44, 0.0  ;;  %v6190_v2 = vadd.f32 %v11664_v45, %v10240_v11  ;;  %v5763_v32 = vmax.f32 %v11653_v39, 0.0 }
0x2fc5   :  { %v5764_v63 = vmax.f32 %v11673_v40, 0.0  ;;  %v6191_v36 = vadd.f32 %v11664_v45, %v10332_v53  ;;  %v6192_v50 = vadd.f32 %v11664_v45, %v10518_v38  ;;  %v6193_v18 = vadd.f32 %v11664_v45, %v10821_v0  ;;  %v7262_v0 = vld [vmem:[%s12219_s5 + $0x80] sm:$0xff] }
0x2fc6   :  { %v6198_v30 = vmax.f32 %v6190_v2, 0.0  ;;  %v6195_v35 = vadd.f32 %v11664_v45, %v11100_v51  ;;  %v7264_v51 = vld [vmem:[%s12219_s5 + $0x90] sm:$0xff] }
0x2fc7   :  { %v6200_v58 = vmax.f32 %v6192_v50, 0.0  ;;  %v6201_v3 = vmax.f32 %v6193_v18, 0.0 }
0x2fc8   :  { %v6203_v38 = vmax.f32 %v6195_v35, 0.0 }
0x3092   :  { %v5556_v42 = vpop.f32.mrb[62].mxu1 }
0x3093   :  { %v5557_v4 = vadd.f32 %v11369_v60, %v5556_v42  ;;  %v8503_v55 = vpop.f32.mrb[63].mxu1  ;;  %v9347_v60 = vpack.c.bf16 %v5770_v8, %v5769_v47  ;;  %v6215_v42 = vld [vmem:[%s12222_s8 + $0x48] sm:$0xff]  ;;  %v6220_v47 = vld [vmem:[%s12222_s8 + $0x70] sm:$0xff]  ;;  %v6221_v8 = vld [vmem:[%s12222_s8 + $0x78] sm:$0xff] }
0x3094   :  { %v6218_v55 = vld [vmem:[%s12222_s8 + $0x60] sm:$0xff] }
0x3095   :  { %v5560_v23 = vmax.f32 %v5557_v4, 0.0  ;;  %v9423_v4 = vpack.c.bf16 %v6217_v20, %v6216_v1  ;;  %v7277_v1 = vld [vmem:[%s12219_s5 + $0xf8] sm:$0xff] }
0x3097   :  { %8513 = vmatmul.mubr.msk.f32.vlgmr.msra.gmra.mrb[62].mxu0 %vm203_vm1, %v5560_v23  ;;  %v6219_v23 = vld [vmem:[%s12222_s8 + $0x68] sm:$0xff] }
0x3098   :  { %9342 = vmatpush3.bf16.msra.mxu0 %v9339_v46  ;;  %8547 = vmatprep.mubr.f32.mxu0 %v5757_v61  ;;  %v6214_v46 = vld [vmem:[%s12222_s8 + $0x40] sm:$0xff] }
0x3099   :  { %9344 = vmatprep.subr.bf16.mxu0 %v9343_v7  ;;  %v9419_v11 = vpack.c.bf16 %v6215_v42, %v6214_v46  ;;  %v7274_v46 = vld [vmem:[%s12219_s5 + $0xe0] sm:$0xff]  ;;  %v7275_v42 = vld [vmem:[%s12219_s5 + $0xe8] sm:$0xff] }
0x309c   :  { %9346 = vmatpush3.bf16.msra.mxu0 %v9343_v7  ;;  %v9427_v7 = vpack.c.bf16 %v6219_v23, %v6218_v55 }
0x309d   :  { %9348 = vmatprep.subr.bf16.mxu0 %v9347_v60 }
0x30a0   :  { %9350 = vmatpush3.bf16.msra.mxu0 %v9347_v60  ;;  %v9431_v60 = vpack.c.bf16 %v6221_v8, %v6220_v47 }
0x30a1   :  { %9352 = vmatprep.subr.bf16.mxu0 %v9351_v14 }
0x30a4   :  { %9354 = vmatpush3.bf16.msra.mxu0 %v9351_v14  ;;  %v6199_v14 = vmax.f32 %v6191_v36, 0.0 }
0x30a5   :  { %9356 = vmatprep.subr.bf16.mxu0 %v9355_v26 }
0x30a8   :  { %9358 = vmatpush3.bf16.msra.mxu0 %v9355_v26  ;;  %v6194_v26 = vadd.f32 %v11664_v45, %v10914_v34  ;;  %v7263_v34 = vld [vmem:[%s12219_s5 + $0x88] sm:$0xff] }
0x30a9   :  { %9360 = vmatprep.subr.bf16.mxu0 %v9359_v49 }
0x30aa   :  { %v6202_v53 = vmax.f32 %v6194_v26, 0.0 }
0x30ac   :  { %9362 = vmatpush3.bf16.msra.mxu0 %v9359_v49  ;;  %v12237_v49 = vld [vmem:[#allocation9_spill] sm:$0xff] }
0x30ad   :  { %9364 = vmatprep.subr.bf16.mxu0 %v9363_v19  ;;  %v6196_v56 = vadd.f32 %v11664_v45, %v12237_v49 }
0x30af   :  { %v6204_v15 = vmax.f32 %v6196_v56, 0.0 }
0x30b0   :  { %9366 = vmatpush3.bf16.msra.mxu0 %v9363_v19  ;;  %v9371_v19 = vpack.c.bf16 %v7263_v34, %v7262_v0 }
0x30b1   :  { %9368 = vmatprep.subr.bf16.mxu0 %v9367_v22 }
0x30b2   :  { %9372 = vmatprep.subr.bf16.mxu1 %v9371_v19 }
0x30b4   :  { %9370 = vmatpush3.bf16.msra.mxu0 %v9367_v22  ;;  %v12238_v22 = vld [vmem:[#allocation8_spill] sm:$0xff] }
0x30b5   :  { %9404 = vmatprep.subr.bf16.mxu0 %v9403_v41 }
0x30b7   :  { %8548 = vmatmul.mubr.f32.vlgmr.msra.gmra.mrb[64].mxu0 %v5758_v37 }
0x30b8   :  { %8550 = vmatprep.mubr.f32.mxu0 %v5759_v31  ;;  %9406 = vmatpush3.bf16.msra.mxu0 %v9403_v41  ;;  %v9375_v41 = vpack.c.bf16 %v7265_v21, %v7264_v51 }
0x30b9   :  { %9408 = vmatprep.subr.bf16.mxu0 %v9407_v62 }
0x30bb   :  { %8551 = vmatmul.mubr.f32.gmra.mrb[66].mxu0 %v5760_v29 }
0x30bc   :  { %8553 = vmatprep.mubr.f32.mxu0 %v5761_v10  ;;  %9410 = vmatpush3.bf16.msra.mxu0 %v9407_v62  ;;  %v9379_v62 = vpack.c.bf16 %v7267_v28, %v7266_v12  ;;  %v6335_v28 = vld [vmem:[%s12224_s1 + $0x8] sm:$0xff] }
0x30bd   :  { %9412 = vmatprep.subr.bf16.mxu0 %v9411_v25 }
0x30bf   :  { %8554 = vmatmul.mubr.f32.gmra.mrb[68].mxu0 %v5762_v33 }
0x30c0   :  { %8556 = vmatprep.mubr.f32.mxu0 %v5763_v32  ;;  %9414 = vmatpush3.bf16.msra.mxu0 %v9411_v25  ;;  %v9383_v25 = vpack.c.bf16 %v7269_v6, %v7268_v24  ;;  %v6334_v6 = vld [vmem:[%s12224_s1] sm:$0xff] }
0x30c1   :  { %9416 = vmatprep.subr.bf16.mxu0 %v9415_v54 }
0x30c3   :  { %8557 = vmatmul.mubr.f32.gmra.mrb[70].mxu0 %v5764_v63 }
0x30c4   :  { %9418 = vmatpush3.bf16.msra.mxu0 %v9415_v54  ;;  %8635 = vmatprep.mubr.f32.mxu0 %v6198_v30  ;;  %v7273_v54 = vld [vmem:[%s12219_s5 + $0xd8] sm:$0xff]  ;;  %v7276_v30 = vld [vmem:[%s12219_s5 + $0xf0] sm:$0xff] }
0x30c5   :  { %9420 = vmatprep.subr.bf16.mxu0 %v9419_v11  ;;  %v9391_v2 = vpack.c.bf16 %v7273_v54, %v7272_v48  ;;  %v9399_v20 = vpack.c.bf16 %v7277_v1, %v7276_v30  ;;  %v6337_v48 = vld [vmem:[%s12224_s1 + $0x18] sm:$0xff] }
0x30c8   :  { %9422 = vmatpush3.bf16.msra.mxu0 %v9419_v11  ;;  %v9395_v11 = vpack.c.bf16 %v7275_v42, %v7274_v46 }
0x30c9   :  { %9424 = vmatprep.subr.bf16.mxu0 %v9423_v4 }
0x30cc   :  { %9426 = vmatpush3.bf16.msra.mxu0 %v9423_v4 }
0x30cd   :  { %9428 = vmatprep.subr.bf16.mxu0 %v9427_v7 }
0x30d0   :  { %9430 = vmatpush3.bf16.msra.mxu0 %v9427_v7 }
0x30d1   :  { %9432 = vmatprep.subr.bf16.mxu0 %v9431_v60 }
0x30d4   :  { %9434 = vmatpush3.bf16.msra.mxu0 %v9431_v60 }
0x30d7   :  { %8636 = vmatmul.mubr.f32.vlgmr.msra.gmra.mrb[72].mxu0 %v6199_v14 }
0x30d8   :  { %8638 = vmatprep.mubr.f32.mxu0 %v6200_v58 }
0x30db   :  { %8639 = vmatmul.mubr.f32.gmra.mrb[74].mxu0 %v6201_v3 }
0x30dc   :  { %8641 = vmatprep.mubr.f32.mxu0 %v6202_v53 }
0x30df   :  { %8642 = vmatmul.mubr.f32.gmra.mrb[76].mxu0 %v6203_v38 }
0x30e0   :  { %8644 = vmatprep.mubr.f32.mxu0 %v6204_v15 }
0x316a   :  { %v5639_v59 = vpop.f32.mrb[62].mxu0 }
0x316b   :  { %v5640_v52 = vadd.f32 %v12238_v22, %v5639_v59  ;;  %v8514_v13 = vpop.f32.mrb[63].mxu0 }
0x316d   :  { %7259 = vmatmul.mubr.msk.f32.vlgmr.msra.gmra.mrb[64].mxu1 %vm203_vm1, %v5640_v52 }
0x316e   :  { %9374 = vmatpush3.bf16.msra.mxu1 %v9371_v19  ;;  %8591 = vmatprep.mubr.f32.mxu1 %v5757_v61  ;;  %v9387_v61 = vpack.c.bf16 %v7271_v57, %v7270_v9 }
0x316f   :  { %9376 = vmatprep.subr.bf16.mxu1 %v9375_v41 }
0x3172   :  { %9378 = vmatpush3.bf16.msra.mxu1 %v9375_v41 }
0x3173   :  { %9380 = vmatprep.subr.bf16.mxu1 %v9379_v62 }
0x3176   :  { %9382 = vmatpush3.bf16.msra.mxu1 %v9379_v62 }
0x3177   :  { %9384 = vmatprep.subr.bf16.mxu1 %v9383_v25 }
0x317a   :  { %9386 = vmatpush3.bf16.msra.mxu1 %v9383_v25 }
0x317b   :  { %9388 = vmatprep.subr.bf16.mxu1 %v9387_v61 }
0x317e   :  { %9390 = vmatpush3.bf16.msra.mxu1 %v9387_v61 }
0x317f   :  { %9392 = vmatprep.subr.bf16.mxu1 %v9391_v2 }
0x3182   :  { %9394 = vmatpush3.bf16.msra.mxu1 %v9391_v2 }
0x3183   :  { %9396 = vmatprep.subr.bf16.mxu1 %v9395_v11 }
0x3186   :  { %9398 = vmatpush3.bf16.msra.mxu1 %v9395_v11 }
0x3187   :  { %9400 = vmatprep.subr.bf16.mxu1 %v9399_v20 }
0x318a   :  { %v11773_v4 = vpop.f32.mrb[64].mxu0  ;;  %9402 = vmatpush3.bf16.msra.mxu1 %v9399_v20 }
0x318b   :  { %v11775_v55 = vpop.f32.mrb[65].mxu0 }
0x318d   :  { %8592 = vmatmul.mubr.f32.vlgmr.msra.gmra.mrb[66].mxu1 %v5758_v37  ;;  %v11806_v37 = vld [vmem:[%s12223_s11] ss:$0 sm:$0xff] }
0x318e   :  { %v11779_v23 = vpop.f32.mrb[66].mxu0  ;;  %8594 = vmatprep.mubr.f32.mxu1 %v5759_v31 }
0x318f   :  { %v11783_v7 = vpop.f32.mrb[67].mxu0 }
0x3191   :  { %8595 = vmatmul.mubr.f32.gmra.mrb[68].mxu1 %v5760_v29 }
0x3192   :  { %v11787_v47 = vpop.f32.mrb[68].mxu0  ;;  %8597 = vmatprep.mubr.f32.mxu1 %v5761_v10 }
0x3193   :  { %v11791_v8 = vpop.f32.mrb[69].mxu0 }
0x3195   :  { %8598 = vmatmul.mubr.f32.gmra.mrb[70].mxu1 %v5762_v33 }
0x3196   :  { %v11795_v5 = vpop.f32.mrb[70].mxu0  ;;  %8600 = vmatprep.mubr.f32.mxu1 %v5763_v32 }
0x3197   :  { %v11799_v27 = vpop.f32.mrb[71].mxu0 }
0x3199   :  { %8601 = vmatmul.mubr.f32.gmra.mrb[72].mxu1 %v5764_v63 }
0x31aa   :  { %v8637_v16 = vpop.f32.mrb[72].mxu0 }
0x31ab   :  { %v11809_v31 = vadd.f32 %v8637_v16, %v11806_v37  ;;  %v6295_v17 = vpop.f32.mrb[73].mxu0 }
0x31ac   :  { %v11812_v29 = vadd.f32 %v11806_v37, %v6295_v17 }
0x31ad   :  { %v6375_v44 = vand.u32 2147483647, %v11809_v31  ;;  %v11844_v61 = vmul.f32 %v6335_v28, %v11809_v31  ;;  %v6351_v2 = vmax.f32 %v11809_v31, 0.0  ;;  %vm6359_vm8 = vcmp.ne.f32.partialorder %v11809_v31, %v11809_v31 }
0x31ae   :  { %v6374_v10 = vand.u32 2147483647, %v11812_v29  ;;  %v8640_v39 = vpop.f32.mrb[74].mxu0  ;;  %v11853_v42 = vmul.f32 %v6334_v6, %v11812_v29  ;;  %v6350_v1 = vmax.f32 %v11812_v29, 0.0  ;;  %vm6358_vm9 = vcmp.ne.f32.partialorder %v11812_v29, %v11812_v29 }
0x31af   :  { %v6383_v33 = vsub.f32 0.0, %v6375_v44  ;;  %v11817_v40 = vadd.f32 %v8640_v39, %v11806_v37  ;;  %v6305_v32 = vpop.f32.mrb[75].mxu0 }
0x31b0   :  { %v6382_v63 = vsub.f32 0.0, %v6374_v10  ;;  %v11820_v60 = vadd.f32 %v11806_v37, %v6305_v32 }
0x31b1   :  { %v6392_v36 = vmul.f32 1.442695, %v6383_v33  ;;  %v6377_v50 = vand.u32 2147483647, %v11817_v40  ;;  %v11863_v44 = vmul.f32 %v6337_v48, %v11817_v40  ;;  %v6353_v33 = vmax.f32 %v11817_v40, 0.0 }
0x31b2   :  { %v6390_v14 = vmul.f32 1.442695, %v6382_v63  ;;  %v6376_v18 = vand.u32 2147483647, %v11820_v60  ;;  %v8643_v58 = vpop.f32.mrb[76].mxu0  ;;  %vm6361_vm11 = vcmp.ne.f32.partialorder %v11817_v40, %v11817_v40  ;;  %vm6360_vm12 = vcmp.ne.f32.partialorder %v11820_v60, %v11820_v60 }
0x31b3   :  { %9559 = vpow2.f32 %v6392_v36  ;;  %v6385_v26 = vsub.f32 0.0, %v6377_v50  ;;  %v11825_v3 = vadd.f32 %v8643_v58, %v11806_v37  ;;  %v6315_v35 = vpop.f32.mrb[77].mxu0  ;;  %v6352_v50 = vmax.f32 %v11820_v60, 0.0 }
0x31b4   :  { %9561 = vpow2.f32 %v6390_v14  ;;  %v6384_v53 = vsub.f32 0.0, %v6376_v18  ;;  %v11828_v49 = vadd.f32 %v11806_v37, %v6315_v35 }
0x31b5   :  { %v6396_v56 = vmul.f32 1.442695, %v6385_v26  ;;  %v6379_v38 = vand.u32 2147483647, %v11825_v3  ;;  %v6355_v18 = vmax.f32 %v11825_v3, 0.0  ;;  %vm6363_vm6 = vcmp.ne.f32.partialorder %v11825_v3, %v11825_v3 }
0x31b6   :  { %v6394_v15 = vmul.f32 1.442695, %v6384_v53  ;;  %v6378_v0 = vand.u32 2147483647, %v11828_v49  ;;  %vm6362_vm5 = vcmp.ne.f32.partialorder %v11828_v49, %v11828_v49 }
0x31b7   :  { %9563 = vpow2.f32 %v6396_v56  ;;  %v6387_v34 = vsub.f32 0.0, %v6379_v38 }
0x31b8   :  { %9565 = vpow2.f32 %v6394_v15  ;;  %v6386_v19 = vsub.f32 0.0, %v6378_v0 }
0x31b9   :  { %v6400_v51 = vmul.f32 1.442695, %v6387_v34 }
0x31ba   :  { %v6398_v21 = vmul.f32 1.442695, %v6386_v19 }
0x31bb   :  { %9567 = vpow2.f32 %v6400_v51 }
0x31bc   :  { %9569 = vpow2.f32 %v6398_v21  ;;  %v6354_v21 = vmax.f32 %v11828_v49, 0.0 }
0x31bd   :  { %v9560_v59 = vpop.eup %9559 }
0x31be   :  { %v9562_v22 = vpop.eup %9561  ;;  %v6415_v52 = vadd.f32 1.0, %v9560_v59  ;;  %v6418_v24 = vmul.f32 -0.5, %v9560_v59  ;;  %v6421_v46 = vand.u32 2147483647, %v9560_v59 }
0x31bf   :  { %v6406_v13 = vadd.f32 1.0, %v9562_v22  ;;  %v6409_v9 = vmul.f32 -0.5, %v9562_v22  ;;  %v6412_v39 = vand.u32 2147483647, %v9562_v22 }
0x31c0   :  { %9571 = vlog2.f32 %v6415_v52  ;;  %v6419_v30 = vadd.f32 1.0, %v6418_v24  ;;  %vm11867_vm10 = vcmp.lt.f32.partialorder %v6421_v46, 0.0004427343 }
0x31c1   :  { %v9564_v41 = vpop.eup %9563  ;;  %9573 = vlog2.f32 %v6406_v13  ;;  %v6410_v17 = vadd.f32 1.0, %v6409_v9  ;;  %vm6413_vm13 = vcmp.lt.f32.partialorder %v6412_v39, 0.0004427343 }
0x31c2   :  { %v11832_v12 = vpop.eup %9565  ;;  %v6433_v62 = vadd.f32 1.0, %v9564_v41  ;;  %v6436_v20 = vmul.f32 -0.5, %v9564_v41  ;;  %v6439_v32 = vand.u32 2147483647, %v9564_v41  ;;  %v6420_v35 = vmul.f32 %v9560_v59, %v6419_v30 }
0x31c3   :  { %v6424_v25 = vadd.f32 1.0, %v11832_v12  ;;  %v6427_v10 = vmul.f32 -0.5, %v11832_v12  ;;  %v6430_v14 = vand.u32 2147483647, %v11832_v12  ;;  %v6411_v15 = vmul.f32 %v9562_v22, %v6410_v17 }
0x31c4   :  { %9575 = vlog2.f32 %v6433_v62  ;;  %v6437_v53 = vadd.f32 1.0, %v6436_v20  ;;  %vm11882_vm14 = vcmp.lt.f32.partialorder %v6439_v32, 0.0004427343 }
0x31c5   :  { %v11841_v57 = vpop.eup %9567  ;;  %9577 = vlog2.f32 %v6424_v25  ;;  %v6428_v34 = vadd.f32 1.0, %v6427_v10  ;;  %vm11887_vm15 = vcmp.lt.f32.partialorder %v6430_v14, 0.0004427343 }
0x31c6   :  { %v11849_v54 = vpop.eup %9569  ;;  %v6451_v11 = vadd.f32 1.0, %v11841_v57  ;;  %v6454_v56 = vmul.f32 -0.5, %v11841_v57  ;;  %v6457_v28 = vand.u32 2147483647, %v11841_v57  ;;  %v6438_v25 = vmul.f32 %v9564_v41, %v6437_v53 }
0x31c7   :  { %v6442_v16 = vadd.f32 1.0, %v11849_v54  ;;  %v6445_v0 = vmul.f32 -0.5, %v11849_v54 }
0x31c8   :  { %9579 = vlog2.f32 %v6451_v11  ;;  %v6455_v9 = vadd.f32 1.0, %v6454_v56  ;;  %vm11908_vm3 = vcmp.lt.f32.partialorder %v6457_v28, 0.0004427343 }
0x31c9   :  { %9581 = vlog2.f32 %v6442_v16  ;;  %v6446_v46 = vadd.f32 1.0, %v6445_v0 }
0x31ca   :  { %v9572_v63 = vpop.eup %9571  ;;  %v6456_v36 = vmul.f32 %v11841_v57, %v6455_v9 }
0x31cb   :  { %v9574_v58 = vpop.eup %9573  ;;  %v6417_v26 = vmul.f32 0.6931472, %v9572_v63 }
0x31cc   :  { %v6408_v38 = vmul.f32 0.6931472, %v9574_v58  ;;  %v6447_v58 = vmul.f32 %v11849_v54, %v6446_v46 }
0x31cd   :  { %v6423_v19 = vsel %vm11867_vm10, %v6420_v35, %v6417_v26 }
0x31ce   :  { %v9576_v59 = vpop.eup %9575  ;;  %v6479_v52 = vadd.f32 %v6423_v19, %v6351_v2  ;;  %v6414_v13 = vsel %vm6413_vm13, %v6411_v15, %v6408_v38  ;;  %v6429_v2 = vmul.f32 %v11832_v12, %v6428_v34  ;;  %v6339_v38 = vld [vmem:[%s12224_s1 + $0x28] sm:$0xff] }
0x31cf   :  { %v9578_v62 = vpop.eup %9577  ;;  %v6478_v24 = vadd.f32 %v6414_v13, %v6350_v1  ;;  %v6435_v6 = vmul.f32 0.6931472, %v9576_v59  ;;  %v6448_v1 = vand.u32 2147483647, %v11849_v54  ;;  %v6347_v19 = vmul.f32 %v6339_v38, %v11825_v3 }
0x31d0   :  { %v6487_v48 = vsel %vm6359_vm8, %v11809_v31, %v6479_v52  ;;  %v6426_v11 = vmul.f32 0.6931472, %v9578_v62 }
0x31d1   :  { %v6495_v30 = vsub.f32 %v11844_v61, %v6487_v48  ;;  %v6486_v20 = vsel %vm6358_vm9, %v11812_v29, %v6478_v24  ;;  %v6441_v41 = vsel %vm11882_vm14, %v6438_v25, %v6435_v6  ;;  %v6336_v29 = vld [vmem:[%s12224_s1 + $0x10] sm:$0xff]  ;;  %vm6449_vm4 = vcmp.lt.f32.partialorder %v6448_v1, 0.0004427343 }
0x31d2   :  { %v9580_v16 = vpop.eup %9579  ;;  %v6494_v17 = vsub.f32 %v11853_v42, %v6486_v20  ;;  %v6481_v31 = vadd.f32 %v6441_v41, %v6353_v33  ;;  %v6432_v10 = vsel %vm11887_vm15, %v6429_v2, %v6426_v11  ;;  %v6344_v53 = vmul.f32 %v6336_v29, %v11820_v60 }
0x31d3   :  { %v9582_v61 = vpop.eup %9581  ;;  %v6505_v39 = vsel %vm56_vm0, %v6495_v30, 0.0  ;;  %v6480_v32 = vadd.f32 %v6432_v10, %v6352_v50  ;;  %v6453_v63 = vmul.f32 0.6931472, %v9580_v16  ;;  %v6338_v50 = vld [vmem:[%s12224_s1 + $0x20] sm:$0xff] }
0x31d4   :  { %6506 = vadd.xlane.f32.xlu1 %v6505_v39  ;;  %v6502_v42 = vsel %vm56_vm0, %v6494_v17, 0.0  ;;  %v6489_v33 = vsel %vm6361_vm11, %v11817_v40, %v6481_v31  ;;  %v6444_v14 = vmul.f32 0.6931472, %v9582_v61  ;;  %v6346_v15 = vmul.f32 %v6338_v50, %v11828_v49 }
0x31d5   :  { %6503 = vadd.xlane.f32.xlu0 %v6502_v42  ;;  %v6497_v26 = vsub.f32 %v11863_v44, %v6489_v33  ;;  %v6488_v57 = vsel %vm6360_vm12, %v11820_v60, %v6480_v32  ;;  %v6459_v35 = vsel %vm11908_vm3, %v6456_v36, %v6453_v63 }
0x31d6   :  { %v6450_v40 = vsel %vm6449_vm4, %v6447_v58, %v6444_v14  ;;  %v6483_v54 = vadd.f32 %v6459_v35, %v6355_v18  ;;  %v6496_v0 = vsub.f32 %v6344_v53, %v6488_v57 }
0x31d7   :  { %v6511_v56 = vsel %vm56_vm0, %v6497_v26, 0.0  ;;  %v6482_v44 = vadd.f32 %v6450_v40, %v6354_v21 }
0x31d8   :  { %v6491_v18 = vsel %vm6363_vm6, %v11825_v3, %v6483_v54  ;;  %v6508_v21 = vsel %vm56_vm0, %v6496_v0, 0.0  ;;  %v7278_v3 = vld [vmem:[%s12218_s10 + $0x5] ss:$0 sm:$0xff] }
0x31d9   :  { %6512 = vadd.xlane.f32.xlu0 %v6511_v56  ;;  %v6490_v60 = vsel %vm6362_vm5, %v11828_v49, %v6482_v44  ;;  %v6499_v59 = vsub.f32 %v6347_v19, %v6491_v18 }
0x31da   :  { %v6498_v34 = vsub.f32 %v6346_v15, %v6490_v60 }
0x31db   :  { %v6517_v52 = vsel %vm56_vm0, %v6499_v59, 0.0 }
0x31dc   :  { %v6514_v51 = vsel %vm56_vm0, %v6498_v34, 0.0 }
0x31dd   :  { %6515 = vadd.xlane.f32.xlu1 %v6514_v51  ;;  %6509 = vadd.xlane.f32.xlu0 %v6508_v21  ;;  %v11981_v21 = vld [vmem:[%s12218_s10 + $0x4] ss:$0 sm:$0xff] }
0x31e1   :  { %6518 = vadd.xlane.f32.xlu0 %v6517_v52 }
0x3240   :  { %v5720_v13 = vpop.f32.mrb[64].mxu1 }
0x3241   :  { %v5721_v22 = vpop.f32.mrb[65].mxu1 }
0x3242   :  { %v5726_v28 = vadd.f32 %v5721_v22, %v11514_v43 }
0x3244   :  { %v6197_v49 = vadd.f32 %v11664_v45, %v5726_v28 }
0x3246   :  { %v6205_v62 = vmax.f32 %v6197_v49, 0.0  ;;  %v11985_v49 = vadd.f32 %v11773_v4, %v11981_v21  ;;  %v11997_v4 = vadd.f32 %v11779_v23, %v11981_v21 }
0x3248   :  { %8645 = vmatmul.mubr.f32.gmra.mrb[78].mxu0 %v6205_v62 }
0x3260   :  { %v8593_v24 = vpop.f32.mrb[66].mxu1 }
0x3261   :  { %v5985_v6 = vadd.f32 %v8593_v24, %v7278_v3  ;;  %v5979_v25 = vpop.f32.mrb[67].mxu1 }
0x3262   :  { %v5980_v9 = vadd.f32 %v7278_v3, %v5979_v25 }
0x3263   :  { %v11954_v48 = vadd.f32 0.5, %v5985_v6 }
0x3264   :  { %v11956_v46 = vadd.f32 0.5, %v5980_v9  ;;  %v8596_v11 = vpop.f32.mrb[68].mxu1 }
0x3265   :  { %v6051_v2 = vand.u32 2147483647, %v11954_v48  ;;  %v5995_v43 = vadd.f32 %v8596_v11, %v7278_v3  ;;  %v5989_v30 = vpop.f32.mrb[69].mxu1  ;;  %vm6035_vm2 = vcmp.ne.f32.partialorder %v11954_v48, %v11954_v48 }
0x3266   :  { %v6050_v45 = vand.u32 2147483647, %v11956_v46  ;;  %v5990_v20 = vadd.f32 %v7278_v3, %v5989_v30  ;;  %v11993_v30 = vadd.f32 %v11981_v21, %v11775_v55  ;;  %vm6034_vm7 = vcmp.ne.f32.partialorder %v11956_v46, %v11956_v46 }
0x3267   :  { %v6059_v41 = vsub.f32 0.0, %v6051_v2  ;;  %v11960_v1 = vadd.f32 0.5, %v5995_v43  ;;  %v11987_v2 = vld [vmem:[#allocation5 + $0x8] sm:$0xff] }
0x3268   :  { %v6058_v16 = vsub.f32 0.0, %v6050_v45  ;;  %v11962_v17 = vadd.f32 0.5, %v5990_v20  ;;  %v8599_v31 = vpop.f32.mrb[70].mxu1  ;;  %v6551_v43 = vsub.f32 %v11987_v2, %v11985_v49  ;;  %v6027_v45 = vmax.f32 %v11954_v48, 0.0 }
0x3269   :  { %v6068_v10 = vmul.f32 1.442695, %v6059_v41  ;;  %v6053_v12 = vand.u32 2147483647, %v11960_v1  ;;  %v5999_v61 = vpop.f32.mrb[71].mxu1  ;;  %v6005_v63 = vadd.f32 %v8599_v31, %v7278_v3  ;;  %vm6037_vm8 = vcmp.ne.f32.partialorder %v11960_v1, %v11960_v1 }
0x326a   :  { %v6066_v39 = vmul.f32 1.442695, %v6058_v16  ;;  %v6052_v29 = vand.u32 2147483647, %v11962_v17  ;;  %v6000_v36 = vadd.f32 %v7278_v3, %v5999_v61  ;;  %v6026_v16 = vmax.f32 %v11956_v46, 0.0 }
0x326b   :  { %9583 = vpow2.f32 %v6068_v10  ;;  %v6061_v32 = vsub.f32 0.0, %v6053_v12  ;;  %v11966_v58 = vadd.f32 0.5, %v6005_v63  ;;  %vm6036_vm10 = vcmp.ne.f32.partialorder %v11962_v17, %v11962_v17 }
0x326c   :  { %9585 = vpow2.f32 %v6066_v39  ;;  %v6060_v42 = vsub.f32 0.0, %v6052_v29  ;;  %v8602_v33 = vpop.f32.mrb[72].mxu1  ;;  %v11968_v26 = vadd.f32 0.5, %v6000_v36  ;;  %v6029_v29 = vmax.f32 %v11960_v1, 0.0 }
0x326d   :  { %v6072_v14 = vmul.f32 1.442695, %v6061_v32  ;;  %v6015_v50 = vadd.f32 %v8602_v33, %v7278_v3  ;;  %v6009_v57 = vpop.f32.mrb[73].mxu1  ;;  %v6055_v53 = vand.u32 2147483647, %v11966_v58  ;;  %v6028_v33 = vmax.f32 %v11962_v17, 0.0 }
0x326e   :  { %v6070_v35 = vmul.f32 1.442695, %v6060_v42  ;;  %v6010_v40 = vadd.f32 %v7278_v3, %v6009_v57  ;;  %v6054_v54 = vand.u32 2147483647, %v11968_v26  ;;  %vm6039_vm3 = vcmp.ne.f32.partialorder %v11966_v58, %v11966_v58 }
0x326f   :  { %9587 = vpow2.f32 %v6072_v14  ;;  %v6063_v56 = vsub.f32 0.0, %v6055_v53  ;;  %v11972_v44 = vadd.f32 0.5, %v6015_v50  ;;  %vm6038_vm4 = vcmp.ne.f32.partialorder %v11968_v26, %v11968_v26 }
0x3270   :  { %9589 = vpow2.f32 %v6070_v35  ;;  %v11974_v38 = vadd.f32 0.5, %v6010_v40  ;;  %v6062_v15 = vsub.f32 0.0, %v6054_v54  ;;  %v12090_v49 = vadd.f32 %v11795_v5, %v11981_v21 }
0x3271   :  { %v6076_v0 = vmul.f32 1.442695, %v6063_v56  ;;  %v6057_v60 = vand.u32 2147483647, %v11972_v44  ;;  %vm6041_vm6 = vcmp.ne.f32.partialorder %v11972_v44, %v11972_v44 }
0x3272   :  { %v6074_v18 = vmul.f32 1.442695, %v6062_v15  ;;  %v6056_v34 = vand.u32 2147483647, %v11974_v38 }
0x3273   :  { %9591 = vpow2.f32 %v6076_v0  ;;  %v6065_v52 = vsub.f32 0.0, %v6057_v60  ;;  %v6031_v60 = vmax.f32 %v11966_v58, 0.0 }
0x3274   :  { %9593 = vpow2.f32 %v6074_v18  ;;  %v6064_v22 = vsub.f32 0.0, %v6056_v34 }
0x3275   :  { %v9584_v19 = vpop.eup %9583  ;;  %v6080_v6 = vmul.f32 1.442695, %v6065_v52 }
0x3276   :  { %v9586_v51 = vpop.eup %9585  ;;  %v6091_v59 = vadd.f32 1.0, %v9584_v19  ;;  %v6094_v3 = vmul.f32 -0.5, %v9584_v19  ;;  %v6078_v11 = vmul.f32 1.442695, %v6064_v22  ;;  %v6097_v12 = vand.u32 2147483647, %v9584_v19 }
0x3277   :  { %v6082_v13 = vadd.f32 1.0, %v9586_v51  ;;  %v6085_v9 = vmul.f32 -0.5, %v9586_v51  ;;  %v6088_v39 = vand.u32 2147483647, %v9586_v51 }
0x3278   :  { %9595 = vlog2.f32 %v6091_v59  ;;  %v6095_v20 = vadd.f32 1.0, %v6094_v3  ;;  %vm6098_vm9 = vcmp.lt.f32.partialorder %v6097_v12, 0.0004427343 }
0x3279   :  { %v9588_v28 = vpop.eup %9587  ;;  %9597 = vlog2.f32 %v6082_v13  ;;  %v6086_v23 = vadd.f32 1.0, %v6085_v9  ;;  %vm6089_vm11 = vcmp.lt.f32.partialorder %v6088_v39, 0.0004427343  ;;  %v6030_v39 = vmax.f32 %v11968_v26, 0.0 }
0x327a   :  { %v9590_v62 = vpop.eup %9589  ;;  %v6109_v24 = vadd.f32 1.0, %v9588_v28  ;;  %v6112_v31 = vmul.f32 -0.5, %v9588_v28  ;;  %v6115_v32 = vand.u32 2147483647, %v9588_v28  ;;  %v6096_v42 = vmul.f32 %v9584_v19, %v6095_v20 }
0x327b   :  { %v6100_v25 = vadd.f32 1.0, %v9590_v62  ;;  %v6103_v10 = vmul.f32 -0.5, %v9590_v62  ;;  %v6106_v14 = vand.u32 2147483647, %v9590_v62  ;;  %v6087_v54 = vmul.f32 %v9586_v51, %v6086_v23 }
0x327c   :  { %9599 = vlog2.f32 %v6109_v24  ;;  %v6113_v35 = vadd.f32 1.0, %v6112_v31  ;;  %vm12018_vm12 = vcmp.lt.f32.partialorder %v6115_v32, 0.0004427343 }
0x327d   :  { %9601 = vlog2.f32 %v6100_v25  ;;  %v12000_v41 = vpop.eup %9591  ;;  %v6104_v40 = vadd.f32 1.0, %v6103_v10  ;;  %vm12023_vm13 = vcmp.lt.f32.partialorder %v6106_v14, 0.0004427343 }
0x327e   :  { %9603 = vpow2.f32 %v6080_v6  ;;  %v12005_v55 = vpop.eup %9593  ;;  %v6127_v61 = vadd.f32 1.0, %v12000_v41  ;;  %v6130_v56 = vmul.f32 -0.5, %v12000_v41  ;;  %v6114_v3 = vmul.f32 %v9588_v28, %v6113_v35 }
0x327f   :  { %9605 = vpow2.f32 %v6078_v11  ;;  %v6118_v63 = vadd.f32 1.0, %v12005_v55  ;;  %v6121_v51 = vmul.f32 -0.5, %v12005_v55  ;;  %v6105_v24 = vmul.f32 %v9590_v62, %v6104_v40 }
0x3280   :  { %9607 = vlog2.f32 %v6127_v61  ;;  %v6131_v11 = vadd.f32 1.0, %v6130_v56  ;;  %v6124_v32 = vand.u32 2147483647, %v12005_v55 }
0x3281   :  { %9609 = vlog2.f32 %v6118_v63  ;;  %v6122_v23 = vadd.f32 1.0, %v6121_v51  ;;  %v9665_v51 = vld [vmem:[#allocation5 + $0x18] sm:$0xff] }
0x3282   :  { %v9596_v36 = vpop.eup %9595  ;;  %vm6125_vm15 = vcmp.lt.f32.partialorder %v6124_v32, 0.0004427343 }
0x3283   :  { %v9598_v50 = vpop.eup %9597  ;;  %v6093_v57 = vmul.f32 0.6931472, %v9596_v36  ;;  %v6132_v36 = vmul.f32 %v12000_v41, %v6131_v11  ;;  %v6123_v40 = vmul.f32 %v12005_v55, %v6122_v23  ;;  %v12070_v55 = vadd.f32 %v11981_v21, %v11791_v8 }
0x3284   :  { %v6084_v53 = vmul.f32 0.6931472, %v9598_v50 }
0x3285   :  { %v6099_v15 = vsel %vm6098_vm9, %v6096_v42, %v6093_v57  ;;  %vm6751_vm9 = vcmask 15360  }
0x3286   :  { %v9600_v18 = vpop.eup %9599  ;;  %v6155_v34 = vadd.f32 %v6099_v15, %v6027_v45  ;;  %v6090_v19 = vsel %vm6089_vm11, %v6087_v54, %v6084_v53  ;;  %v6133_v45 = vand.u32 2147483647, %v12000_v41  ;;  %v5863_v53 = vadd.f32 %v11981_v21, %v11783_v7 }
0x3287   :  { %v9602_v52 = vpop.eup %9601  ;;  %v6154_v13 = vadd.f32 %v6090_v19, %v6026_v16  ;;  %v6111_v22 = vmul.f32 0.6931472, %v9600_v18  ;;  %v9664_v18 = vld [vmem:[#allocation5] sm:$0xff] }
0x3288   :  { %v12028_v6 = vpop.eup %9603  ;;  %v6163_v25 = vsel %vm6035_vm2, %v11954_v48, %v6155_v34  ;;  %v6102_v9 = vmul.f32 0.6931472, %v9602_v52  ;;  %vm6134_vm14 = vcmp.lt.f32.partialorder %v6133_v45, 0.0004427343  ;;  %v6550_v34 = vsub.f32 %v9664_v18, %v11993_v30  ;;  %v9666_v52 = vld [vmem:[#allocation5 + $0x10] sm:$0xff] }
0x3289   :  { %v12035_v20 = vpop.eup %9605  ;;  %v6171_v31 = vmax.f32 %v6163_v25, 0.0  ;;  %v6162_v28 = vsel %vm6034_vm7, %v11956_v46, %v6154_v13  ;;  %v6117_v62 = vsel %vm12018_vm12, %v6114_v3, %v6111_v22  ;;  %v6145_v16 = vadd.f32 1.0, %v12028_v6  ;;  %v9668_v25 = vld [vmem:[#allocation5 + $0x20] sm:$0xff] }
0x328a   :  { %v6170_v10 = vmax.f32 %v6162_v28, 0.0  ;;  %v6157_v12 = vadd.f32 %v6117_v62, %v6029_v29  ;;  %v6108_v48 = vsel %vm12023_vm13, %v6105_v24, %v6102_v9  ;;  %v9608_v63 = vpop.eup %9607  ;;  %v6136_v29 = vadd.f32 1.0, %v12035_v20 }
0x328b   :  { %9611 = vrcp.f32 %v6171_v31  ;;  %v6156_v61 = vadd.f32 %v6108_v48, %v6028_v33  ;;  %v9610_v42 = vpop.eup %9609  ;;  %v6129_v50 = vmul.f32 0.6931472, %v9608_v63  ;;  %v6148_v41 = vmul.f32 -0.5, %v12028_v6 }
0x328c   :  { %9613 = vrcp.f32 %v6170_v10  ;;  %v6165_v46 = vsel %vm6037_vm8, %v11960_v1, %v6157_v12  ;;  %v6120_v35 = vmul.f32 0.6931472, %v9610_v42  ;;  %v6139_v59 = vmul.f32 -0.5, %v12035_v20 }
0x328d   :  { %v6173_v14 = vmax.f32 %v6165_v46, 0.0  ;;  %v6164_v33 = vsel %vm6036_vm10, %v11962_v17, %v6156_v61  ;;  %9615 = vlog2.f32 %v6145_v16  ;;  %v6135_v1 = vsel %vm6134_vm14, %v6132_v36, %v6129_v50 }
0x328e   :  { %v6172_v57 = vmax.f32 %v6164_v33, 0.0  ;;  %v6159_v54 = vadd.f32 %v6135_v1, %v6031_v60  ;;  %v6126_v56 = vsel %vm6125_vm15, %v6123_v40, %v6120_v35  ;;  %v12064_v17 = vadd.f32 %v11787_v47, %v11981_v21 }
0x328f   :  { %9617 = vrcp.f32 %v6173_v14  ;;  %v6158_v15 = vadd.f32 %v6126_v56, %v6030_v39  ;;  %v6149_v47 = vadd.f32 1.0, %v6148_v41  ;;  %v6552_v13 = vsub.f32 %v9666_v52, %v5863_v53 }
0x3290   :  { %9619 = vrcp.f32 %v6172_v57  ;;  %v6167_v0 = vsel %vm6039_vm3, %v11966_v58, %v6159_v54  ;;  %v6553_v58 = vsub.f32 %v9665_v51, %v11997_v4  ;;  %v6151_v22 = vand.u32 2147483647, %v12028_v6 }
0x3291   :  { %9621 = vlog2.f32 %v6136_v29  ;;  %v6175_v7 = vmax.f32 %v6167_v0, 0.0  ;;  %v6166_v60 = vsel %vm6038_vm4, %v11968_v26, %v6158_v15  ;;  %v9667_v26 = vld [vmem:[#allocation5 + $0x28] sm:$0xff]  ;;  %v6554_v30 = vsub.f32 %v9668_v25, %v12070_v55 }
0x3292   :  { %9623 = vlog2.f32 %v6171_v31  ;;  %v6174_v19 = vmax.f32 %v6166_v60, 0.0  ;;  %v6555_v24 = vsub.f32 %v9667_v26, %v12064_v17  ;;  %v6033_v4 = vmax.f32 %v11972_v44, 0.0 }
0x3293   :  { %9625 = vlog2.f32 %v6170_v10  ;;  %v6150_v45 = vmul.f32 %v12028_v6, %v6149_v47  ;;  %v6140_v62 = vadd.f32 1.0, %v6139_v59  ;;  %vm6152_vm5 = vcmp.lt.f32.partialorder %v6151_v22, 0.0004427343 }
0x3294   :  { %9627 = vlog2.f32 %v6173_v14  ;;  %v6142_v12 = vand.u32 2147483647, %v12035_v20  ;;  %v6032_v39 = vmax.f32 %v11974_v38, 0.0  ;;  %vm6040_vm7 = vcmp.ne.f32.partialorder %v11974_v38, %v11974_v38 }
0x3295   :  { %v9612_v8 = vpop.eup %9611  ;;  %9629 = vrcp.f32 %v6175_v7  ;;  %v6141_v29 = vmul.f32 %v12035_v20, %v6140_v62  ;;  %vm6742_vm8 = vcmask 7168   ;;  %vm6760_vm10 = vcmask 23552  }
0x3296   :  { %v9614_v3 = vpop.eup %9613  ;;  %9631 = vrcp.f32 %v6174_v19  ;;  %v6561_v9 = vmul.f32 %v9612_v8, %v6551_v43  ;;  %vm6143_vm2 = vcmp.lt.f32.partialorder %v6142_v12, 0.0004427343  ;;  %v5883_v12 = vadd.f32 %v11981_v21, %v11799_v27 }
0x3297   :  { %v9616_v11 = vpop.eup %9615  ;;  %v6559_v31 = vmul.f32 %v9614_v3, %v6550_v34  ;;  %9633 = vlog2.f32 %v6172_v57 }
0x3298   :  { %v6147_v28 = vmul.f32 0.6931472, %v9616_v11  ;;  %v6575_v16 = vmul.f32 -0.5, %v6561_v9  ;;  %9635 = vlog2.f32 %v6175_v7 }
0x3299   :  { %v9618_v10 = vpop.eup %9617  ;;  %v6574_v48 = vmul.f32 -0.5, %v6559_v31  ;;  %9637 = vlog2.f32 %v6174_v19 }
0x329a   :  { %v9620_v23 = vpop.eup %9619  ;;  %v6153_v2 = vsel %vm6152_vm5, %v6150_v45, %v6147_v28  ;;  %v6565_v43 = vmul.f32 %v9618_v10, %v6553_v58  ;;  %v6583_v32 = vmul.f32 %v6575_v16, %v6561_v9  ;;  %v12103_v28 = vld [vmem:[#allocation5 + $0x38] sm:$0xff] }
0x329b   :  { %v9622_v6 = vpop.eup %9621  ;;  %v6161_v61 = vadd.f32 %v6153_v2, %v6033_v4  ;;  %v6563_v63 = vmul.f32 %v9620_v23, %v6552_v13  ;;  %v6582_v42 = vmul.f32 %v6574_v48, %v6559_v31  ;;  %v6557_v10 = vsub.f32 %v12103_v28, %v12090_v49 }
0x329c   :  { %v9624_v46 = vpop.eup %9623  ;;  %v6138_v36 = vmul.f32 0.6931472, %v9622_v6  ;;  %v6577_v14 = vmul.f32 -0.5, %v6565_v43 }
0x329d   :  { %v9626_v33 = vpop.eup %9625  ;;  %v6169_v5 = vsel %vm6041_vm6, %v11972_v44, %v6161_v61  ;;  %v6593_v50 = vmul.f32 0.6931472, %v9624_v46  ;;  %v6576_v57 = vmul.f32 -0.5, %v6563_v63  ;;  %v12112_v61 = vld [vmem:[#allocation5 + $0x30] sm:$0xff] }
0x329e   :  { %v9628_v35 = vpop.eup %9627  ;;  %v6177_v40 = vmax.f32 %v6169_v5, 0.0  ;;  %v6144_v1 = vsel %vm6143_vm2, %v6141_v29, %v6138_v36  ;;  %v6591_v41 = vmul.f32 0.6931472, %v9626_v33  ;;  %v6585_v53 = vmul.f32 %v6577_v14, %v6565_v43 }
0x329f   :  { %v9630_v54 = vpop.eup %9629  ;;  %v6160_v56 = vadd.f32 %v6144_v1, %v6032_v39  ;;  %v6607_v17 = vsub.f32 %v6583_v32, %v6593_v50  ;;  %v6597_v20 = vmul.f32 0.6931472, %v9628_v35  ;;  %v6584_v0 = vmul.f32 %v6576_v57, %v6563_v63  ;;  %v6723_v1 = vpop.xlane.xlu0 %6722 }
0x32a0   :  { %v9632_v15 = vpop.eup %9631  ;;  %9639 = vrcp.f32 %v6177_v40  ;;  %v6606_v55 = vsub.f32 %v6582_v42, %v6591_v41  ;;  %v6569_v44 = vmul.f32 %v9630_v54, %v6555_v24  ;;  %v6556_v39 = vsub.f32 %v12112_v61, %v5883_v12  ;;  %v6720_v54 = vpop.xlane.xlu1 %6719 }
0x32a1   :  { %v9634_v7 = vpop.eup %9633  ;;  %v6168_v60 = vsel %vm6040_vm7, %v11974_v38, %v6160_v56  ;;  %v7282_v47 = vadd.f32 -0.9189385, %v6607_v17  ;;  %v6609_v18 = vsub.f32 %v6585_v53, %v6597_v20  ;;  %v6567_v34 = vmul.f32 %v9632_v15, %v6554_v30 }
0x32a2   :  { %v9636_v19 = vpop.eup %9635  ;;  %v6176_v59 = vmax.f32 %v6168_v60, 0.0  ;;  %v7281_v8 = vadd.f32 -0.9189385, %v6606_v55  ;;  %v6595_v51 = vmul.f32 0.6931472, %v9634_v7  ;;  %v6579_v58 = vmul.f32 -0.5, %v6569_v44 }
0x32a3   :  { %v9638_v52 = vpop.eup %9637  ;;  %v6625_v13 = vsel %vm203_vm1, %v7282_v47, 0.0  ;;  %v7284_v22 = vadd.f32 -0.9189385, %v6609_v18  ;;  %v6601_v3 = vmul.f32 0.6931472, %v9636_v19  ;;  %v6578_v26 = vmul.f32 -0.5, %v6567_v34  ;;  %v6729_v41 = vpop.xlane.xlu0 %6728 }
0x32a4   :  { %9641 = vrcp.f32 %v6176_v59  ;;  %6626 = vadd.xlane.f32.xlu0 %v6625_v13  ;;  %v6622_v24 = vsel %vm203_vm1, %v7281_v8, 0.0  ;;  %v6608_v25 = vsub.f32 %v6584_v0, %v6595_v51  ;;  %v6587_v38 = vmul.f32 %v6579_v58, %v6569_v44  ;;  %v6726_v7 = vpop.xlane.xlu1 %6725  ;;  %v6548_v19 = vld [vmem:[#allocation7 + $0x30] sm:$0xff]  ;;  %v6549_v8 = vld [vmem:[#allocation7 + $0x38] sm:$0xff] }
0x32a5   :  { %6623 = vadd.xlane.f32.xlu1 %v6622_v24  ;;  %v6631_v30 = vsel %vm203_vm1, %v7284_v22, 0.0  ;;  %v6586_v9 = vmul.f32 %v6578_v26, %v6567_v34  ;;  %v6599_v11 = vmul.f32 0.6931472, %v9638_v52  ;;  %9643 = vlog2.f32 %v6177_v40 }
0x32a6   :  { %v7283_v4 = vadd.f32 -0.9189385, %v6608_v25  ;;  %v6611_v45 = vsub.f32 %v6587_v38, %v6601_v3  ;;  %9645 = vlog2.f32 %v6176_v59  ;;  %v6540_v25 = vld [vmem:[#allocation6 + $0x30] sm:$0xff] }
0x32a7   :  { %v6610_v31 = vsub.f32 %v6586_v9, %v6599_v11  ;;  %v12117_v53 = vpop.xlane.xlu0 %6734  ;;  %v6541_v9 = vld [vmem:[#allocation6 + $0x38] sm:$0xff]  ;;  %v6652_v11 = vsub.f32 %v12112_v61, %v6540_v25 }
0x32a8   :  { %6632 = vadd.xlane.f32.xlu0 %v6631_v30  ;;  %v6628_v62 = vsel %vm203_vm1, %v7283_v4, 0.0  ;;  %v7286_v16 = vadd.f32 -0.9189385, %v6611_v45  ;;  %v12127_v51 = vpop.xlane.xlu1 %6731  ;;  %v6653_v45 = vsub.f32 %v12103_v28, %v6541_v9 }
0x32a9   :  { %6629 = vadd.xlane.f32.xlu1 %v6628_v62  ;;  %v7285_v48 = vadd.f32 -0.9189385, %v6610_v31 }
0x32aa   :  { %v9640_v23 = vpop.eup %9639  ;;  %v6637_v2 = vsel %vm203_vm1, %v7286_v16, 0.0 }
0x32ab   :  { %v6634_v43 = vsel %vm203_vm1, %v7285_v48, 0.0  ;;  %v6573_v6 = vmul.f32 %v9640_v23, %v6557_v10  ;;  %v6504_v56 = vpop.xlane.xlu0 %6503 }
0x32ac   :  { %6638 = vadd.xlane.f32.xlu0 %v6637_v2  ;;  %v6507_v58 = vpop.xlane.xlu1 %6506 }
0x32ad   :  { %6635 = vadd.xlane.f32.xlu1 %v6634_v43  ;;  %v6581_v32 = vmul.f32 -0.5, %v6573_v6 }
0x32ae   :  { %v9642_v63 = vpop.eup %9641 }
0x32af   :  { %v9644_v49 = vpop.eup %9643  ;;  %v6589_v46 = vmul.f32 %v6581_v32, %v6573_v6  ;;  %v6571_v36 = vmul.f32 %v9642_v63, %v6556_v39  ;;  %v6513_v47 = vpop.xlane.xlu0 %6512 }
0x32b0   :  { %v9646_v27 = vpop.eup %9645  ;;  %v6605_v21 = vmul.f32 0.6931472, %v9644_v49  ;;  %v6516_v22 = vpop.xlane.xlu1 %6515 }
0x32b1   :  { %v6580_v29 = vmul.f32 -0.5, %v6571_v36  ;;  %v6603_v33 = vmul.f32 0.6931472, %v9646_v27 }
0x32b2   :  { %v6613_v42 = vsub.f32 %v6589_v46, %v6605_v21 }
0x32b3   :  { %v6588_v14 = vmul.f32 %v6580_v29, %v6571_v36 }
0x32b4   :  { %v7288_v5 = vadd.f32 -0.9189385, %v6613_v42 }
0x32b5   :  { %v6612_v50 = vsub.f32 %v6588_v14, %v6603_v33 }
0x32b6   :  { %v6643_v57 = vsel %vm203_vm1, %v7288_v5, 0.0 }
0x32b7   :  { %6644 = vadd.xlane.f32.xlu0 %v6643_v57  ;;  %v7287_v35 = vadd.f32 -0.9189385, %v6612_v50 }
0x32b9   :  { %v6640_v40 = vsel %vm203_vm1, %v7287_v35, 0.0 }
0x32ba   :  { %6641 = vadd.xlane.f32.xlu1 %v6640_v40 }
0x331b   :  { %v8646_v17 = vpop.f32.mrb[78].mxu0 }
0x331c   :  { %v12120_v20 = vadd.f32 %v8646_v17, %v11806_v37  ;;  %v6325_v15 = vpop.f32.mrb[79].mxu0 }
0x331d   :  { %v12123_v55 = vadd.f32 %v11806_v37, %v6325_v15  ;;  %v6510_v37 = vpop.xlane.xlu0 %6509 }
0x331e   :  { %v6381_v0 = vand.u32 2147483647, %v12120_v20  ;;  %vm6365_vm13 = vcmp.ne.f32.partialorder %v12120_v20, %v12120_v20 }
0x331f   :  { %v6380_v44 = vand.u32 2147483647, %v12123_v55  ;;  %vm6364_vm14 = vcmp.ne.f32.partialorder %v12123_v55, %v12123_v55 }
0x3320   :  { %v6389_v60 = vsub.f32 0.0, %v6381_v0  ;;  %v6357_v0 = vmax.f32 %v12120_v20, 0.0 }
0x3321   :  { %v6388_v18 = vsub.f32 0.0, %v6380_v44  ;;  %v6519_v52 = vpop.xlane.xlu0 %6518 }
0x3322   :  { %v6404_v34 = vmul.f32 1.442695, %v6389_v60 }
0x3323   :  { %v6402_v59 = vmul.f32 1.442695, %v6388_v18  ;;  %v6356_v18 = vmax.f32 %v12123_v55, 0.0 }
0x3324   :  { %9647 = vpow2.f32 %v6404_v34 }
0x3325   :  { %9649 = vpow2.f32 %v6402_v59 }
0x3326   :  { %9651 = vrcp.f32 %v6548_v19 }
0x3327   :  { %9653 = vrcp.f32 %v6549_v8 }
0x3328   :  { %9655 = vlog2.f32 %v6548_v19 }
0x3329   :  { %9657 = vlog2.f32 %v6549_v8 }
0x332e   :  { %v12129_v13 = vpop.eup %9647 }
0x332f   :  { %v12131_v3 = vpop.eup %9649  ;;  %v6469_v26 = vadd.f32 1.0, %v12129_v13  ;;  %v6472_v2 = vmul.f32 -0.5, %v12129_v13  ;;  %v6475_v29 = vand.u32 2147483647, %v12129_v13 }
0x3330   :  { %v9652_v24 = vpop.eup %9651  ;;  %v6460_v38 = vadd.f32 1.0, %v12131_v3  ;;  %v6463_v43 = vmul.f32 -0.5, %v12131_v3  ;;  %v6466_v50 = vand.u32 2147483647, %v12131_v3 }
0x3331   :  { %v9654_v30 = vpop.eup %9653  ;;  %v6627_v4 = vpop.xlane.xlu0 %6626  ;;  %9659 = vlog2.f32 %v6469_v26  ;;  %v6667_v16 = vmul.f32 %v9652_v24, %v6652_v11  ;;  %v6473_v46 = vadd.f32 1.0, %v6472_v2  ;;  %vm6476_vm11 = vcmp.lt.f32.partialorder %v6475_v29, 0.0004427343 }
0x3332   :  { %v6744_v31 = vsel %vm6742_vm8, %v6507_v58, %v6627_v4  ;;  %v6624_v62 = vpop.xlane.xlu1 %6623  ;;  %9661 = vlog2.f32 %v6460_v38  ;;  %v6669_v48 = vmul.f32 %v9654_v30, %v6653_v45  ;;  %v9656_v27 = vpop.eup %9655  ;;  %v6464_v42 = vadd.f32 1.0, %v6463_v43 }
0x3333   :  { %v6753_v10 = vsel %vm6751_vm9, %v6744_v31, %v6723_v1  ;;  %v6743_v12 = vsel %vm6742_vm8, %v6504_v56, %v6624_v62  ;;  %v6676_v63 = vmul.f32 -0.5, %v6667_v16  ;;  %v9658_v14 = vpop.eup %9657  ;;  %v6474_v17 = vmul.f32 %v12129_v13, %v6473_v46 }
0x3334   :  { %6762 = vst.msk [vmem:[%s12225_s12 + $0x8] sm:$0xff] %vm6760_vm10, %v6753_v10  ;;  %v6752_v23 = vsel %vm6751_vm9, %v6743_v12, %v6720_v54  ;;  %v6677_v36 = vmul.f32 -0.5, %v6669_v48  ;;  %vm6467_vm12 = vcmp.lt.f32.partialorder %v6466_v50, 0.0004427343  ;;  %v6701_v34 = vmul.f32 0.6931472, %v9658_v14 }
0x3335   :  { %6761 = vst.msk [vmem:[%s12225_s12] sm:$0xff] %vm6760_vm10, %v6752_v23  ;;  %v6633_v28 = vpop.xlane.xlu0 %6632  ;;  %v6684_v1 = vmul.f32 %v6676_v63, %v6667_v16  ;;  %v6699_v8 = vmul.f32 0.6931472, %v9656_v27 }
0x3336   :  { %v6746_v6 = vsel %vm6742_vm8, %v6513_v47, %v6633_v28  ;;  %v6630_v61 = vpop.xlane.xlu1 %6629  ;;  %v6685_v15 = vmul.f32 %v6677_v36, %v6669_v48  ;;  %v6340_v47 = vld [vmem:[%s12224_s1 + $0x30] sm:$0xff] }
0x3337   :  { %v6755_v39 = vsel %vm6751_vm9, %v6746_v6, %v6729_v41  ;;  %v6745_v32 = vsel %vm6742_vm8, %v6510_v37, %v6630_v61  ;;  %v6348_v13 = vmul.f32 %v6340_v47, %v12123_v55 }
0x3338   :  { %6764 = vst.msk [vmem:[%s12225_s12 + $0x18] sm:$0xff] %vm6760_vm10, %v6755_v39  ;;  %v6754_v49 = vsel %vm6751_vm9, %v6745_v32, %v6726_v7  ;;  %v6465_v7 = vmul.f32 %v12131_v3, %v6464_v42  ;;  %v6709_v58 = vsub.f32 %v6685_v15, %v6701_v34 }
0x3339   :  { %6763 = vst.msk [vmem:[%s12225_s12 + $0x10] sm:$0xff] %vm6760_vm10, %v6754_v49  ;;  %v6639_v21 = vpop.xlane.xlu0 %6638 }
0x333a   :  { %v6748_v33 = vsel %vm6742_vm8, %v6519_v52, %v6639_v21  ;;  %v6636_v5 = vpop.xlane.xlu1 %6635  ;;  %v7296_v38 = vadd.f32 -0.9189385, %v6709_v58 }
0x333b   :  { %v9660_v57 = vpop.eup %9659  ;;  %v6757_v35 = vsel %vm6751_vm9, %v6748_v33, %v12117_v53  ;;  %v6747_v40 = vsel %vm6742_vm8, %v6516_v22, %v6636_v5  ;;  %v6341_v53 = vld [vmem:[%s12224_s1 + $0x38] sm:$0xff]  ;;  %v6708_v22 = vsub.f32 %v6684_v1, %v6699_v8 }
0x333c   :  { %v9662_v41 = vpop.eup %9661  ;;  %6766 = vst.msk [vmem:[%s12225_s12 + $0x28] sm:$0xff] %vm6760_vm10, %v6757_v35  ;;  %v6756_v54 = vsel %vm6751_vm9, %v6747_v40, %v12127_v51  ;;  %v6471_v56 = vmul.f32 0.6931472, %v9660_v57  ;;  %v6349_v51 = vmul.f32 %v6341_v53, %v12120_v20 }
0x333d   :  { %6765 = vst.msk [vmem:[%s12225_s12 + $0x20] sm:$0xff] %vm6760_vm10, %v6756_v54  ;;  %v6462_v44 = vmul.f32 0.6931472, %v9662_v41  ;;  %v7295_v9 = vadd.f32 -0.9189385, %v6708_v22 }
0x333e   :  { %v6477_v60 = vsel %vm6476_vm11, %v6474_v17, %v6471_v56 }
0x333f   :  { %v6485_v19 = vadd.f32 %v6477_v60, %v6357_v0  ;;  %v6468_v59 = vsel %vm6467_vm12, %v6465_v7, %v6462_v44  ;;  %v6736_v11 = vsel %vm203_vm1, %v7295_v9, 0.0 }
0x3340   :  { %v6484_v37 = vadd.f32 %v6468_v59, %v6356_v18 }
0x3341   :  { %v6493_v52 = vsel %vm6365_vm13, %v12120_v20, %v6485_v19  ;;  %v6739_v20 = vsel %vm203_vm1, %v7296_v38, 0.0 }
0x3342   :  { %v6501_v3 = vsub.f32 %v6349_v51, %v6493_v52  ;;  %v6492_v26 = vsel %vm6364_vm14, %v12123_v55, %v6484_v37 }
0x3343   :  { %v6500_v24 = vsub.f32 %v6348_v13, %v6492_v26 }
0x3344   :  { %v6523_v25 = vsel %vm56_vm0, %v6501_v3, 0.0  ;;  %v6645_v4 = vpop.xlane.xlu0 %6644 }
0x3345   :  { %6524 = vadd.xlane.f32.xlu0 %v6523_v25  ;;  %v6520_v30 = vsel %vm56_vm0, %v6500_v24, 0.0 }
0x3346   :  { %6521 = vadd.xlane.f32.xlu1 %v6520_v30 }
0x3347   :  { %v6642_v45 = vpop.xlane.xlu1 %6641 }
0x3349   :  { %6740 = vadd.xlane.f32.xlu0 %v6739_v20 }
0x334a   :  { %6737 = vadd.xlane.f32.xlu1 %v6736_v11 }
0x33d2   :  { %v6525_v31 = vpop.xlane.xlu0 %6524 }
0x33d3   :  { %v6522_v62 = vpop.xlane.xlu1 %6521  ;;  %v6750_v55 = vsel %vm6742_vm8, %v6525_v31, %v6645_v4 }
0x33d4   :  { %v6749_v10 = vsel %vm6742_vm8, %v6522_v62, %v6642_v45 }
0x33d6   :  { %v6741_v16 = vpop.xlane.xlu0 %6740 }
0x33d7   :  { %v6759_v12 = vsel %vm6751_vm9, %v6750_v55, %v6741_v16  ;;  %v6738_v48 = vpop.xlane.xlu1 %6737 }
0x33d8   :  { %6768 = vst.msk [vmem:[%s12225_s12 + $0x38] sm:$0xff] %vm6760_vm10, %v6759_v12  ;;  %v6758_v23 = vsel %vm6751_vm9, %v6749_v10, %v6738_v48 }
0x33d9   :  { %6767 = vst.msk [vmem:[%s12225_s12 + $0x30] sm:$0xff] %vm6760_vm10, %v6758_v23 }

</bundles_post_ra>
